<compile_context>
chip_gen: v7x
topology: tpu7x:2x2x1
jax: 0.10.0
libtpu: 0.0.40
codegen_flags: <defaults>
</compile_context>

<pallas_src>
import jax
import jax.numpy as jnp
from jax import lax
from jax.experimental import pallas as pl
from jax.experimental.pallas import tpu as pltpu


def _round_up(x, m):
    return ((x + m - 1) // m) * m


# --------------------------------------------------------------------------------------
# Tiled linear kernel (hoisted LSTM input projections, key/value projection, decoder
# embedding projection).  Grid is "parallel" over row tiles so it pipelines / megacores.
# --------------------------------------------------------------------------------------
def _linear_kernel(x_ref, w_ref, b_ref, o_ref):
    o_ref[...] = (jnp.dot(x_ref[...], w_ref[...], preferred_element_type=jnp.float32)
                  + b_ref[...])


def linear_pallas(x2d, w, b, tm=256):
    M, D = x2d.shape
    O = w.shape[1]
    tm_eff = min(tm, _round_up(M, 8))
    M_pad = _round_up(M, tm_eff)
    if M_pad != M:
        x2d = jnp.pad(x2d, ((0, M_pad - M), (0, 0)))
    out = pl.pallas_call(
        _linear_kernel,
        out_shape=jax.ShapeDtypeStruct((M_pad, O), jnp.float32),
        grid=(M_pad // tm_eff,),
        in_specs=[pl.BlockSpec((tm_eff, D), lambda i: (i, 0)),
                  pl.BlockSpec((D, O), lambda i: (0, 0)),
                  pl.BlockSpec((1, O), lambda i: (0, 0))],
        out_specs=pl.BlockSpec((tm_eff, O), lambda i: (i, 0)),
        compiler_params=pltpu.CompilerParams(dimension_semantics=("parallel",)),
    )(x2d, w, b.reshape(1, O))
    return out[:M]


# --------------------------------------------------------------------------------------
# Bidirectional masked LSTM recurrence.
# Grid = (direction, time-block).  Input-to-hidden gates are precomputed outside (HBM),
# so each step only does h @ W_hh on the MXU plus elementwise gate math.  Direction axis
# is "parallel" (2 TensorCores on v7x); time-block axis is "arbitrary" (serial carry in
# VMEM scratch).  The backward direction is fed time-reversed gates/mask, so one kernel
# serves both directions with correct packed-sequence semantics.
# --------------------------------------------------------------------------------------
def _bilstm_kernel(g_ref, m_ref, whh_ref, y_ref, h_scr, c_scr):
    @pl.when(pl.program_id(1) == 0)
    def _():
        h_scr[...] = jnp.zeros_like(h_scr)
        c_scr[...] = jnp.zeros_like(c_scr)

    whh = whh_ref[...]                       # (H, 4H), loaded once per grid step
    H = h_scr.shape[-1]
    B = g_ref.shape[0]

    def step(j, carry):
        h = h_scr[...]
        c = c_scr[...]
        # recurrent-only matmul; input projection was hoisted into g_ref
        g = g_ref[j] + jnp.dot(h, whh, preferred_element_type=jnp.float32)   # (N, 4H)
        m = m_ref[j]                                                          # (N, 1)
        # NOTE: for production sizes pick H as a multiple of 128 so these gate slices
        # are lane-aligned.
        i = jax.nn.sigmoid(g[:, 0:H])
        f = jax.nn.sigmoid(g[:, H:2 * H])
        gg = jnp.tanh(g[:, 2 * H:3 * H])
        o = jax.nn.sigmoid(g[:, 3 * H:4 * H])
        c_new = f * c + i * gg
        h_new = o * jnp.tanh(c_new)
        live = m > 0.5
        h_scr[...] = jnp.where(live, h_new, h)      # select, not mul/add blend
        c_scr[...] = jnp.where(live, c_new, c)
        y_ref[j] = jnp.where(live, h_new, 0.0)      # padded positions emit zeros
        return carry

    lax.fori_loop(0, B, step, 0, unroll=True)


def bilstm_masked_tm(x_tm, lens, p_fwd, p_bwd, time_block=8):
    """Bidirectional masked LSTM, time-major in/out: (T, N, Din) -> (T, N, 2H)."""
    T, N, Din = x_tm.shape
    wih_f, whh_f, b_f = p_fwd
    wih_b, whh_b, b_b = p_bwd
    H = whh_f.shape[0]
    G = 4 * H

    # Hoisted input projection for BOTH directions as one big MXU matmul.
    w_ih = jnp.concatenate([wih_f, wih_b], axis=1)                  # (Din, 8H)
    b_ih = jnp.concatenate([b_f, b_b], axis=1)                      # (1, 8H)
    gx = linear_pallas(x_tm.reshape(T * N, Din), w_ih, b_ih).reshape(T, N, 2 * G)
    gx_f, gx_b = gx[..., :G], gx[..., G:]

    B = time_block
    T_pad = _round_up(T, B)
    mask = (jnp.arange(T)[:, None] < lens[None, :]).astype(jnp.float32)[:, :, None]
    if T_pad != T:
        pad = ((0, T_pad - T), (0, 0), (0, 0))
        gx_f = jnp.pad(gx_f, pad)
        gx_b = jnp.pad(gx_b, pad)
        mask = jnp.pad(mask, pad)

    g_stack = jnp.stack([gx_f, gx_b[::-1]], axis=0)                 # (2, T_pad, N, 4H)
    m_stack = jnp.stack([mask, mask[::-1]], axis=0)                 # (2, T_pad, N, 1)
    whh = jnp.stack([whh_f, whh_b], axis=0)                         # (2, H, 4H)

    y = pl.pallas_call(
        _bilstm_kernel,
        out_shape=jax.ShapeDtypeStruct((2, T_pad, N, H), jnp.float32),
        grid=(2, T_pad // B),
        in_specs=[
            pl.BlockSpec((None, B, N, G), lambda d, k: (d, k, 0, 0)),
            pl.BlockSpec((None, B, N, 1), lambda d, k: (d, k, 0, 0)),
            pl.BlockSpec((None, H, G), lambda d, k: (d, 0, 0)),
        ],
        out_specs=pl.BlockSpec((None, B, N, H), lambda d, k: (d, k, 0, 0)),
        scratch_shapes=[pltpu.VMEM((N, H), jnp.float32),
                        pltpu.VMEM((N, H), jnp.float32)],
        compiler_params=pltpu.CompilerParams(
            dimension_semantics=("parallel", "arbitrary")),
    )(g_stack, m_stack, whh)

    y_f = y[0, :T]                      # forward direction, original time order
    y_b = y[1, ::-1][:T]                # un-reverse backward direction
    return jnp.concatenate([y_f, y_b], axis=-1)                     # (T, N, 2H)


# --------------------------------------------------------------------------------------
# Decoder: attention + 2 LSTM cells + character_prob.  Grid over blocks of decode steps;
# state lives in VMEM scratch; key/value stay resident in VMEM for the whole call.
# TODO(synk): at production sizes (N~64, Tk~512, K=V=128+) block the attention over Tk
# (flash-style) or single-buffer key/value so v7x's 64 MiB VMEM is not exceeded.
# --------------------------------------------------------------------------------------
def _decoder_kernel(g1x_ref, key_ref, val_ref, amask_ref,
                    w1ch_ref, w2_ref, b2_ref, wp_ref, bp_ref,
                    pred_ref, h1, c1, h2, c2):
    @pl.when(pl.program_id(0) == 0)
    def _():
        h1[...] = jnp.zeros_like(h1)
        c1[...] = jnp.zeros_like(c1)
        h2[...] = jnp.zeros_like(h2)
        c2[...] = jnp.zeros_like(c2)

    # Hoist all constant loads out of the per-step loop.
    key = key_ref[...]                  # (N, Tk, K)
    val = val_ref[...]                  # (N, Tk, V)
    valid = amask_ref[...] > 0.5        # (N, Tk)
    w1ch = w1ch_ref[...]
    w2 = w2_ref[...]
    b2 = b2_ref[...]
    wp = wp_ref[...]
    bp = bp_ref[...]
    Hd = h1.shape[-1]
    K = h2.shape[-1]
    B = g1x_ref.shape[0]

    def step(j, carry):
        # ---- attention: bmm(key, q) -> masked softmax -> bmm(att, value), on MXU ----
        q = h2[...]                                                  # (N, K)
        energy = jnp.einsum('ntk,nok->nto', key, q[:, None, :],
                            preferred_element_type=jnp.float32)[:, :, 0]   # (N, Tk)
        energy = jnp.where(valid, energy, -1.0e9)
        energy = energy - jnp.max(energy, axis=1, keepdims=True)
        e = jnp.exp(energy)
        att = e * pl.reciprocal(jnp.sum(e, axis=1, keepdims=True), approx=True)
        context = jnp.einsum('not,ntv->nov', att[:, None, :], val,
                             preferred_element_type=jnp.float32)[:, 0, :]  # (N, V)

        # ---- lstm1: embedding gates precomputed (g1x); [context, h1] in one matmul ----
        x1 = jnp.concatenate([context, h1[...]], axis=1)             # (N, V+Hd)
        g1 = g1x_ref[j] + jnp.dot(x1, w1ch, preferred_element_type=jnp.float32)
        i1 = jax.nn.sigmoid(g1[:, 0:Hd])
        f1 = jax.nn.sigmoid(g1[:, Hd:2 * Hd])
        gg1 = jnp.tanh(g1[:, 2 * Hd:3 * Hd])
        o1 = jax.nn.sigmoid(g1[:, 3 * Hd:4 * Hd])
        c1n = f1 * c1[...] + i1 * gg1
        h1n = o1 * jnp.tanh(c1n)

        # ---- lstm2: [h1n, h2] in one matmul ----
        x2 = jnp.concatenate([h1n, h2[...]], axis=1)                 # (N, Hd+K)
        g2 = jnp.dot(x2, w2, preferred_element_type=jnp.float32) + b2
        i2 = jax.nn.sigmoid(g2[:, 0:K])
        f2 = jax.nn.sigmoid(g2[:, K:2 * K])
        gg2 = jnp.tanh(g2[:, 2 * K:3 * K])
        o2 = jax.nn.sigmoid(g2[:, 3 * K:4 * K])
        c2n = f2 * c2[...] + i2 * gg2
        h2n = o2 * jnp.tanh(c2n)

        # ---- character_prob(concat(output, context)), one matmul ----
        xp = jnp.concatenate([h2n, context], axis=1)                 # (N, K+V)
        pred_ref[j] = jnp.dot(xp, wp, preferred_element_type=jnp.float32) + bp

        h1[...] = h1n
        c1[...] = c1n
        h2[...] = h2n
        c2[...] = c2n
        return carry

    lax.fori_loop(0, B, step, 0, unroll=True)


def decoder_pallas(emb_tm, key_ntk, val_ntv, amask_nt, dec, step_block=8):
    L, N, E = emb_tm.shape
    _, Tk, K = key_ntk.shape
    V = val_ntv.shape[2]
    Hd = dec['w1ch'].shape[1] // 4
    vocab = dec['wp'].shape[1]

    # Hoist the embedding half of lstm1's input projection (+ bias) out of the serial
    # decode loop: one big MXU matmul over all decode steps.
    g1x = linear_pallas(emb_tm.reshape(L * N, E), dec['w1x'], dec['b1'])
    g1x = g1x.reshape(L, N, 4 * Hd)

    B = step_block
    L_pad = _round_up(L, B)
    if L_pad != L:
        g1x = jnp.pad(g1x, ((0, L_pad - L), (0, 0), (0, 0)))

    out = pl.pallas_call(
        _decoder_kernel,
        out_shape=jax.ShapeDtypeStruct((L_pad, N, vocab), jnp.float32),
        grid=(L_pad // B,),
        in_specs=[
            pl.BlockSpec((B, N, 4 * Hd), lambda t: (t, 0, 0)),
            pl.BlockSpec((N, Tk, K), lambda t: (0, 0, 0)),
            pl.BlockSpec((N, Tk, V), lambda t: (0, 0, 0)),
            pl.BlockSpec((N, Tk), lambda t: (0, 0)),
            pl.BlockSpec((V + Hd, 4 * Hd), lambda t: (0, 0)),
            pl.BlockSpec((Hd + K, 4 * K), lambda t: (0, 0)),
            pl.BlockSpec((1, 4 * K), lambda t: (0, 0)),
            pl.BlockSpec((K + V, vocab), lambda t: (0, 0)),
            pl.BlockSpec((1, vocab), lambda t: (0, 0)),
        ],
        out_specs=pl.BlockSpec((B, N, vocab), lambda t: (t, 0, 0)),
        scratch_shapes=[pltpu.VMEM((N, Hd), jnp.float32),
                        pltpu.VMEM((N, Hd), jnp.float32),
                        pltpu.VMEM((N, K), jnp.float32),
                        pltpu.VMEM((N, K), jnp.float32)],
        compiler_params=pltpu.CompilerParams(dimension_semantics=("arbitrary",)),
    )(g1x, key_ntk, val_ntv, amask_nt,
      dec['w1ch'], dec['w2'], dec['b2'], dec['wp'], dec['bp'])
    return out[:L]                                   # (L, N, vocab), time-major


# --------------------------------------------------------------------------------------
# Parameter init (deterministic; weights stored pre-transposed as (in, out)).
# --------------------------------------------------------------------------------------
def init_params(key, input_dim, vocab_size, enc_hidden, dec_hidden, emb_dim,
                value_size, key_size):
    keys = iter(jax.random.split(key, 64))

    def u(shape, scale=0.1):
        return jax.random.uniform(next(keys), shape, jnp.float32, -scale, scale)

    def lstm_dir(in_dim, hid):
        # (W_ih^T, W_hh^T, b_ih + b_hh), gate order i,f,g,o like torch.nn.LSTM(Cell)
        return (u((in_dim, 4 * hid)), u((hid, 4 * hid)), u((1, 4 * hid)))

    H = enc_hidden
    params = {
        'enc_lstm_f': lstm_dir(input_dim, H),
        'enc_lstm_b': lstm_dir(input_dim, H),
        'plstms': [{'f': lstm_dir(4 * H, H), 'b': lstm_dir(4 * H, H)} for _ in range(3)],
        # fused key/value projection: first key_size cols = key network,
        # remaining value_size cols = value network.
        'kv_w': u((2 * H, key_size + value_size)),
        'kv_b': u((key_size + value_size,)),
    }
    params['emb'] = u((vocab_size, emb_dim)).at[0].set(0.0)   # padding_idx=0 row is zero

    E, V, K, Hd = emb_dim, value_size, key_size, dec_hidden
    params['dec'] = {
        'w1x': u((E, 4 * Hd)),          # lstm1 W_ih, embedding columns (hoisted)
        'w1ch': u((V + Hd, 4 * Hd)),    # lstm1 [W_ih context columns ; W_hh] fused
        'b1': u((1, 4 * Hd)),
        'w2': u((Hd + K, 4 * K)),       # lstm2 [W_ih ; W_hh] fused
        'b2': u((1, 4 * K)),
        'wp': u((K + V, vocab_size)),   # character_prob on concat(output, context)
        'bp': u((1, vocab_size)),
    }
    return params


# --------------------------------------------------------------------------------------
# Seq2Seq forward (train path, deterministic teacher forcing).
# --------------------------------------------------------------------------------------
def seq2seq_forward(params, speech, speech_len, text):
    N0, T, _ = speech.shape
    # Pad batch to a multiple of 8 (fp32 sublane tile); padded rows have length 0 and
    # are fully masked, so they cannot affect the real rows.
    N = _round_up(max(N0, 8), 8)
    if N != N0:
        speech = jnp.pad(speech, ((0, N - N0), (0, 0), (0, 0)))
        speech_len = jnp.pad(speech_len, (0, N - N0))
        text = jnp.pad(text, ((0, N - N0), (0, 0)))

    # ---- Encoder (time-major end-to-end) ----
    lens = speech_len
    x_tm = jnp.transpose(speech, (1, 0, 2)).astype(jnp.float32)      # (T, N, Din)
    y = bilstm_masked_tm(x_tm, lens, params['enc_lstm_f'], params['enc_lstm_b'])
    for pb in params['plstms']:
        T_cur = y.shape[0]
        T2 = (T_cur // 2) * 2
        # concat adjacent frames, staying time-major (matches (N,T,D)->(N,T//2,2D) view)
        y = jnp.concatenate([y[0:T2:2], y[1:T2:2]], axis=-1)         # (T2//2, N, 4H)
        lens = lens // 2
        y = bilstm_masked_tm(y, lens, pb['f'], pb['b'])

    Tk, _, D2 = y.shape
    dec = params['dec']
    K = dec['w2'].shape[1] // 4          # key_size
    V = dec['wp'].shape[0] - K           # value_size

    # fused key/value projection (single tiled MXU matmul), then one transpose to batch-first
    kv = linear_pallas(y.reshape(Tk * N, D2), params['kv_w'], params['kv_b'])
    kv = jnp.transpose(kv.reshape(Tk, N, K + V), (1, 0, 2))          # (N, Tk, K+V)
    keys = kv[..., :K]
    vals = kv[..., K:]
    enc_lens = lens

    # ---- Decoder (teacher forcing with ground-truth embeddings at every step) ----
    emb_tm = jnp.transpose(params['emb'][text], (1, 0, 2))           # (L, N, E)
    amask = (jnp.arange(Tk)[None, :] < enc_lens[:, None]).astype(jnp.float32)
    preds_tm = decoder_pallas(emb_tm, keys, vals, amask, dec)        # (L, N, vocab)
    preds = jnp.transpose(preds_tm, (1, 0, 2))                       # (N, L, vocab)
    return preds[:N0]


if __name__ == "__main__":
    INPUT_DIM = 8
    VOCAB = 40
    ENC_H = 16
    DEC_H = 32
    EMB = 16
    VALUE_SIZE = 32
    KEY_SIZE = 32
    N, T, L = 2, 16, 6

    root = jax.random.PRNGKey(0)
    kp, kx, kt = jax.random.split(root, 3)
    params = init_params(kp, INPUT_DIM, VOCAB, ENC_H, DEC_H, EMB, VALUE_SIZE, KEY_SIZE)

    speech = jax.random.normal(kx, (N, T, INPUT_DIM), jnp.float32)
    speech_len = jnp.array([16, 14], dtype=jnp.int32)    # max len == T (padded length)
    text = jax.random.randint(kt, (N, L), 1, VOCAB)

    fwd = jax.jit(seq2seq_forward)
    preds = fwd(params, speech, speech_len, text)
    preds = jax.block_until_ready(preds)
    assert preds.shape == (N, L, VOCAB), preds.shape
    assert bool(jnp.all(jnp.isfinite(preds)))
    print("KERNEL_OK")
</pallas_src>

<mosaic_0001>
module attributes {stable_mosaic.version = 11 : i64} {
  func.func @_linear_kernel(%arg0: i32, %arg1: memref<128x8xf32, #tpu.memory_space<vmem>>, %arg2: memref<8x128xf32, #tpu.memory_space<vmem>>, %arg3: memref<1x128xf32, #tpu.memory_space<vmem>>, %arg4: memref<128x128xf32, #tpu.memory_space<vmem>>) attributes {dimension_semantics = [#tpu.dimension_semantics<parallel>], iteration_bounds = array<i64: 1>, scalar_prefetch = 0 : i64, scratch_operands = 0 : i64, tpu.core_type = #tpu.core_type<tc>, window_params = [{transform_indices = @transform_0, window_bounds = array<i64: 128, 8>}, {pipeline_mode = #tpu.pipeline_mode<synchronous>, transform_indices = @transform_1, window_bounds = array<i64: 8, 128>}, {pipeline_mode = #tpu.pipeline_mode<synchronous>, transform_indices = @transform_2, window_bounds = array<i64: 1, 128>}, {transform_indices = @transform_3, window_bounds = array<i64: 128, 128>}]} {
    %c0 = arith.constant 0 : index
    %c0_0 = arith.constant 0 : index
    %0 = vector.load %arg1[%c0, %c0_0] : memref<128x8xf32, #tpu.memory_space<vmem>>, vector<128x8xf32>
    %c0_1 = arith.constant 0 : index
    %c0_2 = arith.constant 0 : index
    %1 = vector.load %arg2[%c0_1, %c0_2] : memref<8x128xf32, #tpu.memory_space<vmem>>, vector<8x128xf32>
    %cst = arith.constant dense<0.000000e+00> : vector<128x128xf32>
    %2 = tpu.matmul %0, %1, %cst {dimension_numbers = #tpu.dot_dimension_numbers<[1], [0], [0], [1], [0, 0, 1, 1], [], []>} : vector<128x8xf32>, vector<8x128xf32>, vector<128x128xf32> -> vector<128x128xf32>
    %c0_3 = arith.constant 0 : index
    %c0_4 = arith.constant 0 : index
    %3 = vector.load %arg3[%c0_3, %c0_4] : memref<1x128xf32, #tpu.memory_space<vmem>>, vector<1x128xf32>
    %4 = vector.broadcast %3 : vector<1x128xf32> to vector<128x128xf32>
    %5 = arith.addf %2, %4 : vector<128x128xf32>
    %c0_5 = arith.constant 0 : index
    %c0_6 = arith.constant 0 : index
    %6 = vector.load %arg4[%c0_5, %c0_6] : memref<128x128xf32, #tpu.memory_space<vmem>>, vector<128x128xf32>
    tpu.vector_store %arg4[%c0_5, %c0_6], %5 {strides = array<i32>} : memref<128x128xf32, #tpu.memory_space<vmem>>, vector<128x128xf32>,
    return
  }
  func.func @transform_0(%arg0: i32) -> (i32, i32) {
    %c0_i32 = arith.constant 0 : i32
    %c0_i32_0 = arith.constant 0 : i32
    return %arg0, %c0_i32 : i32, i32
  }
  func.func @transform_1(%arg0: i32) -> (i32, i32) {
    %c0_i32 = arith.constant 0 : i32
    %c0_i32_0 = arith.constant 0 : i32
    %c0_i32_1 = arith.constant 0 : i32
    return %c0_i32, %c0_i32_0 : i32, i32
  }
  func.func @transform_2(%arg0: i32) -> (i32, i32) {
    %c0_i32 = arith.constant 0 : i32
    %c0_i32_0 = arith.constant 0 : i32
    %c0_i32_1 = arith.constant 0 : i32
    return %c0_i32, %c0_i32_0 : i32, i32
  }
  func.func @transform_3(%arg0: i32) -> (i32, i32) {
    %c0_i32 = arith.constant 0 : i32
    %c0_i32_0 = arith.constant 0 : i32
    return %arg0, %c0_i32 : i32, i32
  }
}

module attributes {stable_mosaic.version = 11 : i64} {
  func.func @_bilstm_kernel(%arg0: i32, %arg1: i32, %arg2: memref<1x8x8x64xf32, #tpu.memory_space<vmem>>, %arg3: memref<1x8x8x1xf32, #tpu.memory_space<vmem>>, %arg4: memref<1x16x64xf32, #tpu.memory_space<vmem>>, %arg5: memref<1x8x8x16xf32, #tpu.memory_space<vmem>>, %arg6: memref<8x16xf32, #tpu.memory_space<vmem>>, %arg7: memref<8x16xf32, #tpu.memory_space<vmem>>) attributes {dimension_semantics = [#tpu.dimension_semantics<parallel>, #tpu.dimension_semantics<arbitrary>], iteration_bounds = array<i64: 2, 2>, scalar_prefetch = 0 : i64, scratch_operands = 2 : i64, tpu.core_type = #tpu.core_type<tc>, window_params = [{transform_indices = @transform_0, window_bounds = array<i64: 1, 8, 8, 64>}, {transform_indices = @transform_1, window_bounds = array<i64: 1, 8, 8, 1>}, {transform_indices = @transform_2, window_bounds = array<i64: 1, 16, 64>}, {transform_indices = @transform_3, window_bounds = array<i64: 1, 8, 8, 16>}]} {
    %c0_i32 = arith.constant 0 : i32
    %0 = arith.cmpi eq, %arg1, %c0_i32 : i32
    %1 = arith.extui %0 : i1 to i32
    %c0_i32_0 = arith.constant 0 : i32
    %2 = arith.cmpi ne, %1, %c0_i32_0 : i32
    scf.if %2 {
      %cst_187 = arith.constant 0.000000e+00 : f32
      %429 = vector.broadcast %cst_187 : f32 to vector<8x16xf32>
      %c0_188 = arith.constant 0 : index
      %c0_189 = arith.constant 0 : index
      %430 = vector.load %arg6[%c0_188, %c0_189] : memref<8x16xf32, #tpu.memory_space<vmem>>, vector<8x16xf32>
      tpu.vector_store %arg6[%c0_188, %c0_189], %429 {strides = array<i32>} : memref<8x16xf32, #tpu.memory_space<vmem>>, vector<8x16xf32>,
      %cst_190 = arith.constant 0.000000e+00 : f32
      %431 = vector.broadcast %cst_190 : f32 to vector<8x16xf32>
      %c0_191 = arith.constant 0 : index
      %c0_192 = arith.constant 0 : index
      %432 = vector.load %arg7[%c0_191, %c0_192] : memref<8x16xf32, #tpu.memory_space<vmem>>, vector<8x16xf32>
      tpu.vector_store %arg7[%c0_191, %c0_192], %431 {strides = array<i32>} : memref<8x16xf32, #tpu.memory_space<vmem>>, vector<8x16xf32>,
    } else {
    }
    %c0 = arith.constant 0 : index
    %c0_1 = arith.constant 0 : index
    %c0_2 = arith.constant 0 : index
    %3 = vector.load %arg4[%c0, %c0_1, %c0_2] : memref<1x16x64xf32, #tpu.memory_space<vmem>>, vector<1x16x64xf32>
    %4 = vector.shape_cast %3 : vector<1x16x64xf32> to vector<16x64xf32>
    %c0_i32_3 = arith.constant 0 : i32
    %c0_4 = arith.constant 0 : index
    %c0_5 = arith.constant 0 : index
    %5 = vector.load %arg6[%c0_4, %c0_5] : memref<8x16xf32, #tpu.memory_space<vmem>>, vector<8x16xf32>
    %c0_6 = arith.constant 0 : index
    %c0_7 = arith.constant 0 : index
    %6 = vector.load %arg7[%c0_6, %c0_7] : memref<8x16xf32, #tpu.memory_space<vmem>>, vector<8x16xf32>
    %c0_8 = arith.constant 0 : index
    %7 = arith.index_cast %c0_i32_3 : i32 to index
    %c0_9 = arith.constant 0 : index
    %c0_10 = arith.constant 0 : index
    %8 = vector.load %arg2[%c0_8, %7, %c0_9, %c0_10] : memref<1x8x8x64xf32, #tpu.memory_space<vmem>>, vector<1x1x8x64xf32>
    %9 = vector.shape_cast %8 : vector<1x1x8x64xf32> to vector<8x64xf32>
    %cst = arith.constant dense<0.000000e+00> : vector<8x64xf32>
    %10 = tpu.matmul %5, %4, %cst {dimension_numbers = #tpu.dot_dimension_numbers<[1], [0], [0], [1], [0, 0, 1, 1], [], []>} : vector<8x16xf32>, vector<16x64xf32>, vector<8x64xf32> -> vector<8x64xf32>
    %11 = arith.addf %9, %10 : vector<8x64xf32>
    %c0_11 = arith.constant 0 : index
    %12 = arith.index_cast %c0_i32_3 : i32 to index
    %c0_12 = arith.constant 0 : index
    %c0_13 = arith.constant 0 : index
    %13 = vector.load %arg3[%c0_11, %12, %c0_12, %c0_13] : memref<1x8x8x1xf32, #tpu.memory_space<vmem>>, vector<1x1x8x1xf32>
    %14 = vector.shape_cast %13 : vector<1x1x8x1xf32> to vector<8x1xf32>
    %15 = vector.extract_strided_slice %11 {offsets = [0, 0], sizes = [8, 16], strides = [1, 1]} : vector<8x64xf32> to vector<8x16xf32>
    %16 = arith.negf %15 : vector<8x16xf32>
    %17 = math.exp %16 : vector<8x16xf32>
    %cst_14 = arith.constant 1.000000e+00 : f32
    %18 = vector.broadcast %cst_14 : f32 to vector<8x16xf32>
    %19 = arith.addf %18, %17 : vector<8x16xf32>
    %20 = arith.divf %18, %19 : vector<8x16xf32>
    %21 = vector.extract_strided_slice %11 {offsets = [0, 16], sizes = [8, 16], strides = [1, 1]} : vector<8x64xf32> to vector<8x16xf32>
    %22 = arith.negf %21 : vector<8x16xf32>
    %23 = math.exp %22 : vector<8x16xf32>
    %cst_15 = arith.constant 1.000000e+00 : f32
    %24 = vector.broadcast %cst_15 : f32 to vector<8x16xf32>
    %25 = arith.addf %24, %23 : vector<8x16xf32>
    %26 = arith.divf %24, %25 : vector<8x16xf32>
    %27 = vector.extract_strided_slice %11 {offsets = [0, 32], sizes = [8, 16], strides = [1, 1]} : vector<8x64xf32> to vector<8x16xf32>
    %28 = math.tanh %27 : vector<8x16xf32>
    %29 = vector.extract_strided_slice %11 {offsets = [0, 48], sizes = [8, 16], strides = [1, 1]} : vector<8x64xf32> to vector<8x16xf32>
    %30 = arith.negf %29 : vector<8x16xf32>
    %31 = math.exp %30 : vector<8x16xf32>
    %cst_16 = arith.constant 1.000000e+00 : f32
    %32 = vector.broadcast %cst_16 : f32 to vector<8x16xf32>
    %33 = arith.addf %32, %31 : vector<8x16xf32>
    %34 = arith.divf %32, %33 : vector<8x16xf32>
    %35 = arith.mulf %26, %6 : vector<8x16xf32>
    %36 = arith.mulf %20, %28 : vector<8x16xf32>
    %37 = arith.addf %35, %36 : vector<8x16xf32>
    %38 = math.tanh %37 : vector<8x16xf32>
    %39 = arith.mulf %34, %38 : vector<8x16xf32>
    %cst_17 = arith.constant 5.000000e-01 : f32
    %40 = vector.broadcast %cst_17 : f32 to vector<8x1xf32>
    %41 = arith.cmpf ogt, %14, %40 : vector<8x1xf32>
    %42 = vector.shape_cast %41 : vector<8x1xi1> to vector<8x1xi1>
    %43 = vector.broadcast %42 : vector<8x1xi1> to vector<8x16xi1>
    %44 = arith.select %43, %39, %5 : vector<8x16xi1>, vector<8x16xf32>
    %c0_18 = arith.constant 0 : index
    %c0_19 = arith.constant 0 : index
    %45 = vector.load %arg6[%c0_18, %c0_19] : memref<8x16xf32, #tpu.memory_space<vmem>>, vector<8x16xf32>
    tpu.vector_store %arg6[%c0_18, %c0_19], %44 {strides = array<i32>} : memref<8x16xf32, #tpu.memory_space<vmem>>, vector<8x16xf32>,
    %46 = vector.shape_cast %41 : vector<8x1xi1> to vector<8x1xi1>
    %47 = vector.broadcast %46 : vector<8x1xi1> to vector<8x16xi1>
    %48 = arith.select %47, %37, %6 : vector<8x16xi1>, vector<8x16xf32>
    %c0_20 = arith.constant 0 : index
    %c0_21 = arith.constant 0 : index
    %49 = vector.load %arg7[%c0_20, %c0_21] : memref<8x16xf32, #tpu.memory_space<vmem>>, vector<8x16xf32>
    tpu.vector_store %arg7[%c0_20, %c0_21], %48 {strides = array<i32>} : memref<8x16xf32, #tpu.memory_space<vmem>>, vector<8x16xf32>,
    %cst_22 = arith.constant 0.000000e+00 : f32
    %50 = vector.shape_cast %41 : vector<8x1xi1> to vector<8x1xi1>
    %51 = vector.broadcast %50 : vector<8x1xi1> to vector<8x16xi1>
    %52 = vector.broadcast %cst_22 : f32 to vector<8x16xf32>
    %53 = arith.select %51, %39, %52 : vector<8x16xi1>, vector<8x16xf32>
    %c0_23 = arith.constant 0 : index
    %54 = arith.index_cast %c0_i32_3 : i32 to index
    %c0_24 = arith.constant 0 : index
    %c0_25 = arith.constant 0 : index
    %55 = vector.load %arg5[%c0_23, %54, %c0_24, %c0_25] : memref<1x8x8x16xf32, #tpu.memory_space<vmem>>, vector<1x1x8x16xf32>
    %56 = vector.shape_cast %55 : vector<1x1x8x16xf32> to vector<8x16xf32>
    %57 = vector.shape_cast %53 : vector<8x16xf32> to vector<1x1x8x16xf32>
    tpu.vector_store %arg5[%c0_23, %54, %c0_24, %c0_25], %57 {strides = array<i32>} : memref<1x8x8x16xf32, #tpu.memory_space<vmem>>, vector<1x1x8x16xf32>,
    %c1_i32 = arith.constant 1 : i32
    %c0_26 = arith.constant 0 : index
    %c0_27 = arith.constant 0 : index
    %58 = vector.load %arg6[%c0_26, %c0_27] : memref<8x16xf32, #tpu.memory_space<vmem>>, vector<8x16xf32>
    %c0_28 = arith.constant 0 : index
    %c0_29 = arith.constant 0 : index
    %59 = vector.load %arg7[%c0_28, %c0_29] : memref<8x16xf32, #tpu.memory_space<vmem>>, vector<8x16xf32>
    %c0_30 = arith.constant 0 : index
    %60 = arith.index_cast %c1_i32 : i32 to index
    %c0_31 = arith.constant 0 : index
    %c0_32 = arith.constant 0 : index
    %61 = vector.load %arg2[%c0_30, %60, %c0_31, %c0_32] : memref<1x8x8x64xf32, #tpu.memory_space<vmem>>, vector<1x1x8x64xf32>
    %62 = vector.shape_cast %61 : vector<1x1x8x64xf32> to vector<8x64xf32>
    %cst_33 = arith.constant dense<0.000000e+00> : vector<8x64xf32>
    %63 = tpu.matmul %58, %4, %cst_33 {dimension_numbers = #tpu.dot_dimension_numbers<[1], [0], [0], [1], [0, 0, 1, 1], [], []>} : vector<8x16xf32>, vector<16x64xf32>, vector<8x64xf32> -> vector<8x64xf32>
    %64 = arith.addf %62, %63 : vector<8x64xf32>
    %c0_34 = arith.constant 0 : index
    %65 = arith.index_cast %c1_i32 : i32 to index
    %c0_35 = arith.constant 0 : index
    %c0_36 = arith.constant 0 : index
    %66 = vector.load %arg3[%c0_34, %65, %c0_35, %c0_36] : memref<1x8x8x1xf32, #tpu.memory_space<vmem>>, vector<1x1x8x1xf32>
    %67 = vector.shape_cast %66 : vector<1x1x8x1xf32> to vector<8x1xf32>
    %68 = vector.extract_strided_slice %64 {offsets = [0, 0], sizes = [8, 16], strides = [1, 1]} : vector<8x64xf32> to vector<8x16xf32>
    %69 = arith.negf %68 : vector<8x16xf32>
    %70 = math.exp %69 : vector<8x16xf32>
    %cst_37 = arith.constant 1.000000e+00 : f32
    %71 = vector.broadcast %cst_37 : f32 to vector<8x16xf32>
    %72 = arith.addf %71, %70 : vector<8x16xf32>
    %73 = arith.divf %71, %72 : vector<8x16xf32>
    %74 = vector.extract_strided_slice %64 {offsets = [0, 16], sizes = [8, 16], strides = [1, 1]} : vector<8x64xf32> to vector<8x16xf32>
    %75 = arith.negf %74 : vector<8x16xf32>
    %76 = math.exp %75 : vector<8x16xf32>
    %cst_38 = arith.constant 1.000000e+00 : f32
    %77 = vector.broadcast %cst_38 : f32 to vector<8x16xf32>
    %78 = arith.addf %77, %76 : vector<8x16xf32>
    %79 = arith.divf %77, %78 : vector<8x16xf32>
    %80 = vector.extract_strided_slice %64 {offsets = [0, 32], sizes = [8, 16], strides = [1, 1]} : vector<8x64xf32> to vector<8x16xf32>
    %81 = math.tanh %80 : vector<8x16xf32>
    %82 = vector.extract_strided_slice %64 {offsets = [0, 48], sizes = [8, 16], strides = [1, 1]} : vector<8x64xf32> to vector<8x16xf32>
    %83 = arith.negf %82 : vector<8x16xf32>
    %84 = math.exp %83 : vector<8x16xf32>
    %cst_39 = arith.constant 1.000000e+00 : f32
    %85 = vector.broadcast %cst_39 : f32 to vector<8x16xf32>
    %86 = arith.addf %85, %84 : vector<8x16xf32>
    %87 = arith.divf %85, %86 : vector<8x16xf32>
    %88 = arith.mulf %79, %59 : vector<8x16xf32>
    %89 = arith.mulf %73, %81 : vector<8x16xf32>
    %90 = arith.addf %88, %89 : vector<8x16xf32>
    %91 = math.tanh %90 : vector<8x16xf32>
    %92 = arith.mulf %87, %91 : vector<8x16xf32>
    %cst_40 = arith.constant 5.000000e-01 : f32
    %93 = vector.broadcast %cst_40 : f32 to vector<8x1xf32>
    %94 = arith.cmpf ogt, %67, %93 : vector<8x1xf32>
    %95 = vector.shape_cast %94 : vector<8x1xi1> to vector<8x1xi1>
    %96 = vector.broadcast %95 : vector<8x1xi1> to vector<8x16xi1>
    %97 = arith.select %96, %92, %58 : vector<8x16xi1>, vector<8x16xf32>
    %c0_41 = arith.constant 0 : index
    %c0_42 = arith.constant 0 : index
    %98 = vector.load %arg6[%c0_41, %c0_42] : memref<8x16xf32, #tpu.memory_space<vmem>>, vector<8x16xf32>
    tpu.vector_store %arg6[%c0_41, %c0_42], %97 {strides = array<i32>} : memref<8x16xf32, #tpu.memory_space<vmem>>, vector<8x16xf32>,
    %99 = vector.shape_cast %94 : vector<8x1xi1> to vector<8x1xi1>
    %100 = vector.broadcast %99 : vector<8x1xi1> to vector<8x16xi1>
    %101 = arith.select %100, %90, %59 : vector<8x16xi1>, vector<8x16xf32>
    %c0_43 = arith.constant 0 : index
    %c0_44 = arith.constant 0 : index
    %102 = vector.load %arg7[%c0_43, %c0_44] : memref<8x16xf32, #tpu.memory_space<vmem>>, vector<8x16xf32>
    tpu.vector_store %arg7[%c0_43, %c0_44], %101 {strides = array<i32>} : memref<8x16xf32, #tpu.memory_space<vmem>>, vector<8x16xf32>,
    %cst_45 = arith.constant 0.000000e+00 : f32
    %103 = vector.shape_cast %94 : vector<8x1xi1> to vector<8x1xi1>
    %104 = vector.broadcast %103 : vector<8x1xi1> to vector<8x16xi1>
    %105 = vector.broadcast %cst_45 : f32 to vector<8x16xf32>
    %106 = arith.select %104, %92, %105 : vector<8x16xi1>, vector<8x16xf32>
    %c0_46 = arith.constant 0 : index
    %107 = arith.index_cast %c1_i32 : i32 to index
    %c0_47 = arith.constant 0 : index
    %c0_48 = arith.constant 0 : index
    %108 = vector.load %arg5[%c0_46, %107, %c0_47, %c0_48] : memref<1x8x8x16xf32, #tpu.memory_space<vmem>>, vector<1x1x8x16xf32>
    %109 = vector.shape_cast %108 : vector<1x1x8x16xf32> to vector<8x16xf32>
    %110 = vector.shape_cast %106 : vector<8x16xf32> to vector<1x1x8x16xf32>
    tpu.vector_store %arg5[%c0_46, %107, %c0_47, %c0_48], %110 {strides = array<i32>} : memref<1x8x8x16xf32, #tpu.memory_space<vmem>>, vector<1x1x8x16xf32>,
    %c2_i32 = arith.constant 2 : i32
    %c0_49 = arith.constant 0 : index
    %c0_50 = arith.constant 0 : index
    %111 = vector.load %arg6[%c0_49, %c0_50] : memref<8x16xf32, #tpu.memory_space<vmem>>, vector<8x16xf32>
    %c0_51 = arith.constant 0 : index
    %c0_52 = arith.constant 0 : index
    %112 = vector.load %arg7[%c0_51, %c0_52] : memref<8x16xf32, #tpu.memory_space<vmem>>, vector<8x16xf32>
    %c0_53 = arith.constant 0 : index
    %113 = arith.index_cast %c2_i32 : i32 to index
    %c0_54 = arith.constant 0 : index
    %c0_55 = arith.constant 0 : index
    %114 = vector.load %arg2[%c0_53, %113, %c0_54, %c0_55] : memref<1x8x8x64xf32, #tpu.memory_space<vmem>>, vector<1x1x8x64xf32>
    %115 = vector.shape_cast %114 : vector<1x1x8x64xf32> to vector<8x64xf32>
    %cst_56 = arith.constant dense<0.000000e+00> : vector<8x64xf32>
    %116 = tpu.matmul %111, %4, %cst_56 {dimension_numbers = #tpu.dot_dimension_numbers<[1], [0], [0], [1], [0, 0, 1, 1], [], []>} : vector<8x16xf32>, vector<16x64xf32>, vector<8x64xf32> -> vector<8x64xf32>
    %117 = arith.addf %115, %116 : vector<8x64xf32>
    %c0_57 = arith.constant 0 : index
    %118 = arith.index_cast %c2_i32 : i32 to index
    %c0_58 = arith.constant 0 : index
    %c0_59 = arith.constant 0 : index
    %119 = vector.load %arg3[%c0_57, %118, %c0_58, %c0_59] : memref<1x8x8x1xf32, #tpu.memory_space<vmem>>, vector<1x1x8x1xf32>
    %120 = vector.shape_cast %119 : vector<1x1x8x1xf32> to vector<8x1xf32>
    %121 = vector.extract_strided_slice %117 {offsets = [0, 0], sizes = [8, 16], strides = [1, 1]} : vector<8x64xf32> to vector<8x16xf32>
    %122 = arith.negf %121 : vector<8x16xf32>
    %123 = math.exp %122 : vector<8x16xf32>
    %cst_60 = arith.constant 1.000000e+00 : f32
    %124 = vector.broadcast %cst_60 : f32 to vector<8x16xf32>
    %125 = arith.addf %124, %123 : vector<8x16xf32>
    %126 = arith.divf %124, %125 : vector<8x16xf32>
    %127 = vector.extract_strided_slice %117 {offsets = [0, 16], sizes = [8, 16], strides = [1, 1]} : vector<8x64xf32> to vector<8x16xf32>
    %128 = arith.negf %127 : vector<8x16xf32>
    %129 = math.exp %128 : vector<8x16xf32>
    %cst_61 = arith.constant 1.000000e+00 : f32
    %130 = vector.broadcast %cst_61 : f32 to vector<8x16xf32>
    %131 = arith.addf %130, %129 : vector<8x16xf32>
    %132 = arith.divf %130, %131 : vector<8x16xf32>
    %133 = vector.extract_strided_slice %117 {offsets = [0, 32], sizes = [8, 16], strides = [1, 1]} : vector<8x64xf32> to vector<8x16xf32>
    %134 = math.tanh %133 : vector<8x16xf32>
    %135 = vector.extract_strided_slice %117 {offsets = [0, 48], sizes = [8, 16], strides = [1, 1]} : vector<8x64xf32> to vector<8x16xf32>
    %136 = arith.negf %135 : vector<8x16xf32>
    %137 = math.exp %136 : vector<8x16xf32>
    %cst_62 = arith.constant 1.000000e+00 : f32
    %138 = vector.broadcast %cst_62 : f32 to vector<8x16xf32>
    %139 = arith.addf %138, %137 : vector<8x16xf32>
    %140 = arith.divf %138, %139 : vector<8x16xf32>
    %141 = arith.mulf %132, %112 : vector<8x16xf32>
    %142 = arith.mulf %126, %134 : vector<8x16xf32>
    %143 = arith.addf %141, %142 : vector<8x16xf32>
    %144 = math.tanh %143 : vector<8x16xf32>
    %145 = arith.mulf %140, %144 : vector<8x16xf32>
    %cst_63 = arith.constant 5.000000e-01 : f32
    %146 = vector.broadcast %cst_63 : f32 to vector<8x1xf32>
    %147 = arith.cmpf ogt, %120, %146 : vector<8x1xf32>
    %148 = vector.shape_cast %147 : vector<8x1xi1> to vector<8x1xi1>
    %149 = vector.broadcast %148 : vector<8x1xi1> to vector<8x16xi1>
    %150 = arith.select %149, %145, %111 : vector<8x16xi1>, vector<8x16xf32>
    %c0_64 = arith.constant 0 : index
    %c0_65 = arith.constant 0 : index
    %151 = vector.load %arg6[%c0_64, %c0_65] : memref<8x16xf32, #tpu.memory_space<vmem>>, vector<8x16xf32>
    tpu.vector_store %arg6[%c0_64, %c0_65], %150 {strides = array<i32>} : memref<8x16xf32, #tpu.memory_space<vmem>>, vector<8x16xf32>,
    %152 = vector.shape_cast %147 : vector<8x1xi1> to vector<8x1xi1>
    %153 = vector.broadcast %152 : vector<8x1xi1> to vector<8x16xi1>
    %154 = arith.select %153, %143, %112 : vector<8x16xi1>, vector<8x16xf32>
    %c0_66 = arith.constant 0 : index
    %c0_67 = arith.constant 0 : index
    %155 = vector.load %arg7[%c0_66, %c0_67] : memref<8x16xf32, #tpu.memory_space<vmem>>, vector<8x16xf32>
    tpu.vector_store %arg7[%c0_66, %c0_67], %154 {strides = array<i32>} : memref<8x16xf32, #tpu.memory_space<vmem>>, vector<8x16xf32>,
    %cst_68 = arith.constant 0.000000e+00 : f32
    %156 = vector.shape_cast %147 : vector<8x1xi1> to vector<8x1xi1>
    %157 = vector.broadcast %156 : vector<8x1xi1> to vector<8x16xi1>
    %158 = vector.broadcast %cst_68 : f32 to vector<8x16xf32>
    %159 = arith.select %157, %145, %158 : vector<8x16xi1>, vector<8x16xf32>
    %c0_69 = arith.constant 0 : index
    %160 = arith.index_cast %c2_i32 : i32 to index
    %c0_70 = arith.constant 0 : index
    %c0_71 = arith.constant 0 : index
    %161 = vector.load %arg5[%c0_69, %160, %c0_70, %c0_71] : memref<1x8x8x16xf32, #tpu.memory_space<vmem>>, vector<1x1x8x16xf32>
    %162 = vector.shape_cast %161 : vector<1x1x8x16xf32> to vector<8x16xf32>
    %163 = vector.shape_cast %159 : vector<8x16xf32> to vector<1x1x8x16xf32>
    tpu.vector_store %arg5[%c0_69, %160, %c0_70, %c0_71], %163 {strides = array<i32>} : memref<1x8x8x16xf32, #tpu.memory_space<vmem>>, vector<1x1x8x16xf32>,
    %c3_i32 = arith.constant 3 : i32
    %c0_72 = arith.constant 0 : index
    %c0_73 = arith.constant 0 : index
    %164 = vector.load %arg6[%c0_72, %c0_73] : memref<8x16xf32, #tpu.memory_space<vmem>>, vector<8x16xf32>
    %c0_74 = arith.constant 0 : index
    %c0_75 = arith.constant 0 : index
    %165 = vector.load %arg7[%c0_74, %c0_75] : memref<8x16xf32, #tpu.memory_space<vmem>>, vector<8x16xf32>
    %c0_76 = arith.constant 0 : index
    %166 = arith.index_cast %c3_i32 : i32 to index
    %c0_77 = arith.constant 0 : index
    %c0_78 = arith.constant 0 : index
    %167 = vector.load %arg2[%c0_76, %166, %c0_77, %c0_78] : memref<1x8x8x64xf32, #tpu.memory_space<vmem>>, vector<1x1x8x64xf32>
    %168 = vector.shape_cast %167 : vector<1x1x8x64xf32> to vector<8x64xf32>
    %cst_79 = arith.constant dense<0.000000e+00> : vector<8x64xf32>
    %169 = tpu.matmul %164, %4, %cst_79 {dimension_numbers = #tpu.dot_dimension_numbers<[1], [0], [0], [1], [0, 0, 1, 1], [], []>} : vector<8x16xf32>, vector<16x64xf32>, vector<8x64xf32> -> vector<8x64xf32>
    %170 = arith.addf %168, %169 : vector<8x64xf32>
    %c0_80 = arith.constant 0 : index
    %171 = arith.index_cast %c3_i32 : i32 to index
    %c0_81 = arith.constant 0 : index
    %c0_82 = arith.constant 0 : index
    %172 = vector.load %arg3[%c0_80, %171, %c0_81, %c0_82] : memref<1x8x8x1xf32, #tpu.memory_space<vmem>>, vector<1x1x8x1xf32>
    %173 = vector.shape_cast %172 : vector<1x1x8x1xf32> to vector<8x1xf32>
    %174 = vector.extract_strided_slice %170 {offsets = [0, 0], sizes = [8, 16], strides = [1, 1]} : vector<8x64xf32> to vector<8x16xf32>
    %175 = arith.negf %174 : vector<8x16xf32>
    %176 = math.exp %175 : vector<8x16xf32>
    %cst_83 = arith.constant 1.000000e+00 : f32
    %177 = vector.broadcast %cst_83 : f32 to vector<8x16xf32>
    %178 = arith.addf %177, %176 : vector<8x16xf32>
    %179 = arith.divf %177, %178 : vector<8x16xf32>
    %180 = vector.extract_strided_slice %170 {offsets = [0, 16], sizes = [8, 16], strides = [1, 1]} : vector<8x64xf32> to vector<8x16xf32>
    %181 = arith.negf %180 : vector<8x16xf32>
    %182 = math.exp %181 : vector<8x16xf32>
    %cst_84 = arith.constant 1.000000e+00 : f32
    %183 = vector.broadcast %cst_84 : f32 to vector<8x16xf32>
    %184 = arith.addf %183, %182 : vector<8x16xf32>
    %185 = arith.divf %183, %184 : vector<8x16xf32>
    %186 = vector.extract_strided_slice %170 {offsets = [0, 32], sizes = [8, 16], strides = [1, 1]} : vector<8x64xf32> to vector<8x16xf32>
    %187 = math.tanh %186 : vector<8x16xf32>
    %188 = vector.extract_strided_slice %170 {offsets = [0, 48], sizes = [8, 16], strides = [1, 1]} : vector<8x64xf32> to vector<8x16xf32>
    %189 = arith.negf %188 : vector<8x16xf32>
    %190 = math.exp %189 : vector<8x16xf32>
    %cst_85 = arith.constant 1.000000e+00 : f32
    %191 = vector.broadcast %cst_85 : f32 to vector<8x16xf32>
    %192 = arith.addf %191, %190 : vector<8x16xf32>
    %193 = arith.divf %191, %192 : vector<8x16xf32>
    %194 = arith.mulf %185, %165 : vector<8x16xf32>
    %195 = arith.mulf %179, %187 : vector<8x16xf32>
    %196 = arith.addf %194, %195 : vector<8x16xf32>
    %197 = math.tanh %196 : vector<8x16xf32>
    %198 = arith.mulf %193, %197 : vector<8x16xf32>
    %cst_86 = arith.constant 5.000000e-01 : f32
    %199 = vector.broadcast %cst_86 : f32 to vector<8x1xf32>
    %200 = arith.cmpf ogt, %173, %199 : vector<8x1xf32>
    %201 = vector.shape_cast %200 : vector<8x1xi1> to vector<8x1xi1>
    %202 = vector.broadcast %201 : vector<8x1xi1> to vector<8x16xi1>
    %203 = arith.select %202, %198, %164 : vector<8x16xi1>, vector<8x16xf32>
    %c0_87 = arith.constant 0 : index
    %c0_88 = arith.constant 0 : index
    %204 = vector.load %arg6[%c0_87, %c0_88] : memref<8x16xf32, #tpu.memory_space<vmem>>, vector<8x16xf32>
    tpu.vector_store %arg6[%c0_87, %c0_88], %203 {strides = array<i32>} : memref<8x16xf32, #tpu.memory_space<vmem>>, vector<8x16xf32>,
    %205 = vector.shape_cast %200 : vector<8x1xi1> to vector<8x1xi1>
    %206 = vector.broadcast %205 : vector<8x1xi1> to vector<8x16xi1>
    %207 = arith.select %206, %196, %165 : vector<8x16xi1>, vector<8x16xf32>
    %c0_89 = arith.constant 0 : index
    %c0_90 = arith.constant 0 : index
    %208 = vector.load %arg7[%c0_89, %c0_90] : memref<8x16xf32, #tpu.memory_space<vmem>>, vector<8x16xf32>
    tpu.vector_store %arg7[%c0_89, %c0_90], %207 {strides = array<i32>} : memref<8x16xf32, #tpu.memory_space<vmem>>, vector<8x16xf32>,
    %cst_91 = arith.constant 0.000000e+00 : f32
    %209 = vector.shape_cast %200 : vector<8x1xi1> to vector<8x1xi1>
    %210 = vector.broadcast %209 : vector<8x1xi1> to vector<8x16xi1>
    %211 = vector.broadcast %cst_91 : f32 to vector<8x16xf32>
    %212 = arith.select %210, %198, %211 : vector<8x16xi1>, vector<8x16xf32>
    %c0_92 = arith.constant 0 : index
    %213 = arith.index_cast %c3_i32 : i32 to index
    %c0_93 = arith.constant 0 : index
    %c0_94 = arith.constant 0 : index
    %214 = vector.load %arg5[%c0_92, %213, %c0_93, %c0_94] : memref<1x8x8x16xf32, #tpu.memory_space<vmem>>, vector<1x1x8x16xf32>
    %215 = vector.shape_cast %214 : vector<1x1x8x16xf32> to vector<8x16xf32>
    %216 = vector.shape_cast %212 : vector<8x16xf32> to vector<1x1x8x16xf32>
    tpu.vector_store %arg5[%c0_92, %213, %c0_93, %c0_94], %216 {strides = array<i32>} : memref<1x8x8x16xf32, #tpu.memory_space<vmem>>, vector<1x1x8x16xf32>,
    %c4_i32 = arith.constant 4 : i32
    %c0_95 = arith.constant 0 : index
    %c0_96 = arith.constant 0 : index
    %217 = vector.load %arg6[%c0_95, %c0_96] : memref<8x16xf32, #tpu.memory_space<vmem>>, vector<8x16xf32>
    %c0_97 = arith.constant 0 : index
    %c0_98 = arith.constant 0 : index
    %218 = vector.load %arg7[%c0_97, %c0_98] : memref<8x16xf32, #tpu.memory_space<vmem>>, vector<8x16xf32>
    %c0_99 = arith.constant 0 : index
    %219 = arith.index_cast %c4_i32 : i32 to index
    %c0_100 = arith.constant 0 : index
    %c0_101 = arith.constant 0 : index
    %220 = vector.load %arg2[%c0_99, %219, %c0_100, %c0_101] : memref<1x8x8x64xf32, #tpu.memory_space<vmem>>, vector<1x1x8x64xf32>
    %221 = vector.shape_cast %220 : vector<1x1x8x64xf32> to vector<8x64xf32>
    %cst_102 = arith.constant dense<0.000000e+00> : vector<8x64xf32>
    %222 = tpu.matmul %217, %4, %cst_102 {dimension_numbers = #tpu.dot_dimension_numbers<[1], [0], [0], [1], [0, 0, 1, 1], [], []>} : vector<8x16xf32>, vector<16x64xf32>, vector<8x64xf32> -> vector<8x64xf32>
    %223 = arith.addf %221, %222 : vector<8x64xf32>
    %c0_103 = arith.constant 0 : index
    %224 = arith.index_cast %c4_i32 : i32 to index
    %c0_104 = arith.constant 0 : index
    %c0_105 = arith.constant 0 : index
    %225 = vector.load %arg3[%c0_103, %224, %c0_104, %c0_105] : memref<1x8x8x1xf32, #tpu.memory_space<vmem>>, vector<1x1x8x1xf32>
    %226 = vector.shape_cast %225 : vector<1x1x8x1xf32> to vector<8x1xf32>
    %227 = vector.extract_strided_slice %223 {offsets = [0, 0], sizes = [8, 16], strides = [1, 1]} : vector<8x64xf32> to vector<8x16xf32>
    %228 = arith.negf %227 : vector<8x16xf32>
    %229 = math.exp %228 : vector<8x16xf32>
    %cst_106 = arith.constant 1.000000e+00 : f32
    %230 = vector.broadcast %cst_106 : f32 to vector<8x16xf32>
    %231 = arith.addf %230, %229 : vector<8x16xf32>
    %232 = arith.divf %230, %231 : vector<8x16xf32>
    %233 = vector.extract_strided_slice %223 {offsets = [0, 16], sizes = [8, 16], strides = [1, 1]} : vector<8x64xf32> to vector<8x16xf32>
    %234 = arith.negf %233 : vector<8x16xf32>
    %235 = math.exp %234 : vector<8x16xf32>
    %cst_107 = arith.constant 1.000000e+00 : f32
    %236 = vector.broadcast %cst_107 : f32 to vector<8x16xf32>
    %237 = arith.addf %236, %235 : vector<8x16xf32>
    %238 = arith.divf %236, %237 : vector<8x16xf32>
    %239 = vector.extract_strided_slice %223 {offsets = [0, 32], sizes = [8, 16], strides = [1, 1]} : vector<8x64xf32> to vector<8x16xf32>
    %240 = math.tanh %239 : vector<8x16xf32>
    %241 = vector.extract_strided_slice %223 {offsets = [0, 48], sizes = [8, 16], strides = [1, 1]} : vector<8x64xf32> to vector<8x16xf32>
    %242 = arith.negf %241 : vector<8x16xf32>
    %243 = math.exp %242 : vector<8x16xf32>
    %cst_108 = arith.constant 1.000000e+00 : f32
    %244 = vector.broadcast %cst_108 : f32 to vector<8x16xf32>
    %245 = arith.addf %244, %243 : vector<8x16xf32>
    %246 = arith.divf %244, %245 : vector<8x16xf32>
    %247 = arith.mulf %238, %218 : vector<8x16xf32>
    %248 = arith.mulf %232, %240 : vector<8x16xf32>
    %249 = arith.addf %247, %248 : vector<8x16xf32>
    %250 = math.tanh %249 : vector<8x16xf32>
    %251 = arith.mulf %246, %250 : vector<8x16xf32>
    %cst_109 = arith.constant 5.000000e-01 : f32
    %252 = vector.broadcast %cst_109 : f32 to vector<8x1xf32>
    %253 = arith.cmpf ogt, %226, %252 : vector<8x1xf32>
    %254 = vector.shape_cast %253 : vector<8x1xi1> to vector<8x1xi1>
    %255 = vector.broadcast %254 : vector<8x1xi1> to vector<8x16xi1>
    %256 = arith.select %255, %251, %217 : vector<8x16xi1>, vector<8x16xf32>
    %c0_110 = arith.constant 0 : index
    %c0_111 = arith.constant 0 : index
    %257 = vector.load %arg6[%c0_110, %c0_111] : memref<8x16xf32, #tpu.memory_space<vmem>>, vector<8x16xf32>
    tpu.vector_store %arg6[%c0_110, %c0_111], %256 {strides = array<i32>} : memref<8x16xf32, #tpu.memory_space<vmem>>, vector<8x16xf32>,
    %258 = vector.shape_cast %253 : vector<8x1xi1> to vector<8x1xi1>
    %259 = vector.broadcast %258 : vector<8x1xi1> to vector<8x16xi1>
    %260 = arith.select %259, %249, %218 : vector<8x16xi1>, vector<8x16xf32>
    %c0_112 = arith.constant 0 : index
    %c0_113 = arith.constant 0 : index
    %261 = vector.load %arg7[%c0_112, %c0_113] : memref<8x16xf32, #tpu.memory_space<vmem>>, vector<8x16xf32>
    tpu.vector_store %arg7[%c0_112, %c0_113], %260 {strides = array<i32>} : memref<8x16xf32, #tpu.memory_space<vmem>>, vector<8x16xf32>,
    %cst_114 = arith.constant 0.000000e+00 : f32
    %262 = vector.shape_cast %253 : vector<8x1xi1> to vector<8x1xi1>
    %263 = vector.broadcast %262 : vector<8x1xi1> to vector<8x16xi1>
    %264 = vector.broadcast %cst_114 : f32 to vector<8x16xf32>
    %265 = arith.select %263, %251, %264 : vector<8x16xi1>, vector<8x16xf32>
    %c0_115 = arith.constant 0 : index
    %266 = arith.index_cast %c4_i32 : i32 to index
    %c0_116 = arith.constant 0 : index
    %c0_117 = arith.constant 0 : index
    %267 = vector.load %arg5[%c0_115, %266, %c0_116, %c0_117] : memref<1x8x8x16xf32, #tpu.memory_space<vmem>>, vector<1x1x8x16xf32>
    %268 = vector.shape_cast %267 : vector<1x1x8x16xf32> to vector<8x16xf32>
    %269 = vector.shape_cast %265 : vector<8x16xf32> to vector<1x1x8x16xf32>
    tpu.vector_store %arg5[%c0_115, %266, %c0_116, %c0_117], %269 {strides = array<i32>} : memref<1x8x8x16xf32, #tpu.memory_space<vmem>>, vector<1x1x8x16xf32>,
    %c5_i32 = arith.constant 5 : i32
    %c0_118 = arith.constant 0 : index
    %c0_119 = arith.constant 0 : index
    %270 = vector.load %arg6[%c0_118, %c0_119] : memref<8x16xf32, #tpu.memory_space<vmem>>, vector<8x16xf32>
    %c0_120 = arith.constant 0 : index
    %c0_121 = arith.constant 0 : index
    %271 = vector.load %arg7[%c0_120, %c0_121] : memref<8x16xf32, #tpu.memory_space<vmem>>, vector<8x16xf32>
    %c0_122 = arith.constant 0 : index
    %272 = arith.index_cast %c5_i32 : i32 to index
    %c0_123 = arith.constant 0 : index
    %c0_124 = arith.constant 0 : index
    %273 = vector.load %arg2[%c0_122, %272, %c0_123, %c0_124] : memref<1x8x8x64xf32, #tpu.memory_space<vmem>>, vector<1x1x8x64xf32>
    %274 = vector.shape_cast %273 : vector<1x1x8x64xf32> to vector<8x64xf32>
    %cst_125 = arith.constant dense<0.000000e+00> : vector<8x64xf32>
    %275 = tpu.matmul %270, %4, %cst_125 {dimension_numbers = #tpu.dot_dimension_numbers<[1], [0], [0], [1], [0, 0, 1, 1], [], []>} : vector<8x16xf32>, vector<16x64xf32>, vector<8x64xf32> -> vector<8x64xf32>
    %276 = arith.addf %274, %275 : vector<8x64xf32>
    %c0_126 = arith.constant 0 : index
    %277 = arith.index_cast %c5_i32 : i32 to index
    %c0_127 = arith.constant 0 : index
    %c0_128 = arith.constant 0 : index
    %278 = vector.load %arg3[%c0_126, %277, %c0_127, %c0_128] : memref<1x8x8x1xf32, #tpu.memory_space<vmem>>, vector<1x1x8x1xf32>
    %279 = vector.shape_cast %278 : vector<1x1x8x1xf32> to vector<8x1xf32>
    %280 = vector.extract_strided_slice %276 {offsets = [0, 0], sizes = [8, 16], strides = [1, 1]} : vector<8x64xf32> to vector<8x16xf32>
    %281 = arith.negf %280 : vector<8x16xf32>
    %282 = math.exp %281 : vector<8x16xf32>
    %cst_129 = arith.constant 1.000000e+00 : f32
    %283 = vector.broadcast %cst_129 : f32 to vector<8x16xf32>
    %284 = arith.addf %283, %282 : vector<8x16xf32>
    %285 = arith.divf %283, %284 : vector<8x16xf32>
    %286 = vector.extract_strided_slice %276 {offsets = [0, 16], sizes = [8, 16], strides = [1, 1]} : vector<8x64xf32> to vector<8x16xf32>
    %287 = arith.negf %286 : vector<8x16xf32>
    %288 = math.exp %287 : vector<8x16xf32>
    %cst_130 = arith.constant 1.000000e+00 : f32
    %289 = vector.broadcast %cst_130 : f32 to vector<8x16xf32>
    %290 = arith.addf %289, %288 : vector<8x16xf32>
    %291 = arith.divf %289, %290 : vector<8x16xf32>
    %292 = vector.extract_strided_slice %276 {offsets = [0, 32], sizes = [8, 16], strides = [1, 1]} : vector<8x64xf32> to vector<8x16xf32>
    %293 = math.tanh %292 : vector<8x16xf32>
    %294 = vector.extract_strided_slice %276 {offsets = [0, 48], sizes = [8, 16], strides = [1, 1]} : vector<8x64xf32> to vector<8x16xf32>
    %295 = arith.negf %294 : vector<8x16xf32>
    %296 = math.exp %295 : vector<8x16xf32>
    %cst_131 = arith.constant 1.000000e+00 : f32
    %297 = vector.broadcast %cst_131 : f32 to vector<8x16xf32>
    %298 = arith.addf %297, %296 : vector<8x16xf32>
    %299 = arith.divf %297, %298 : vector<8x16xf32>
    %300 = arith.mulf %291, %271 : vector<8x16xf32>
    %301 = arith.mulf %285, %293 : vector<8x16xf32>
    %302 = arith.addf %300, %301 : vector<8x16xf32>
    %303 = math.tanh %302 : vector<8x16xf32>
    %304 = arith.mulf %299, %303 : vector<8x16xf32>
    %cst_132 = arith.constant 5.000000e-01 : f32
    %305 = vector.broadcast %cst_132 : f32 to vector<8x1xf32>
    %306 = arith.cmpf ogt, %279, %305 : vector<8x1xf32>
    %307 = vector.shape_cast %306 : vector<8x1xi1> to vector<8x1xi1>
    %308 = vector.broadcast %307 : vector<8x1xi1> to vector<8x16xi1>
    %309 = arith.select %308, %304, %270 : vector<8x16xi1>, vector<8x16xf32>
    %c0_133 = arith.constant 0 : index
    %c0_134 = arith.constant 0 : index
    %310 = vector.load %arg6[%c0_133, %c0_134] : memref<8x16xf32, #tpu.memory_space<vmem>>, vector<8x16xf32>
    tpu.vector_store %arg6[%c0_133, %c0_134], %309 {strides = array<i32>} : memref<8x16xf32, #tpu.memory_space<vmem>>, vector<8x16xf32>,
    %311 = vector.shape_cast %306 : vector<8x1xi1> to vector<8x1xi1>
    %312 = vector.broadcast %311 : vector<8x1xi1> to vector<8x16xi1>
    %313 = arith.select %312, %302, %271 : vector<8x16xi1>, vector<8x16xf32>
    %c0_135 = arith.constant 0 : index
    %c0_136 = arith.constant 0 : index
    %314 = vector.load %arg7[%c0_135, %c0_136] : memref<8x16xf32, #tpu.memory_space<vmem>>, vector<8x16xf32>
    tpu.vector_store %arg7[%c0_135, %c0_136], %313 {strides = array<i32>} : memref<8x16xf32, #tpu.memory_space<vmem>>, vector<8x16xf32>,
    %cst_137 = arith.constant 0.000000e+00 : f32
    %315 = vector.shape_cast %306 : vector<8x1xi1> to vector<8x1xi1>
    %316 = vector.broadcast %315 : vector<8x1xi1> to vector<8x16xi1>
    %317 = vector.broadcast %cst_137 : f32 to vector<8x16xf32>
    %318 = arith.select %316, %304, %317 : vector<8x16xi1>, vector<8x16xf32>
    %c0_138 = arith.constant 0 : index
    %319 = arith.index_cast %c5_i32 : i32 to index
    %c0_139 = arith.constant 0 : index
    %c0_140 = arith.constant 0 : index
    %320 = vector.load %arg5[%c0_138, %319, %c0_139, %c0_140] : memref<1x8x8x16xf32, #tpu.memory_space<vmem>>, vector<1x1x8x16xf32>
    %321 = vector.shape_cast %320 : vector<1x1x8x16xf32> to vector<8x16xf32>
    %322 = vector.shape_cast %318 : vector<8x16xf32> to vector<1x1x8x16xf32>
    tpu.vector_store %arg5[%c0_138, %319, %c0_139, %c0_140], %322 {strides = array<i32>} : memref<1x8x8x16xf32, #tpu.memory_space<vmem>>, vector<1x1x8x16xf32>,
    %c6_i32 = arith.constant 6 : i32
    %c0_141 = arith.constant 0 : index
    %c0_142 = arith.constant 0 : index
    %323 = vector.load %arg6[%c0_141, %c0_142] : memref<8x16xf32, #tpu.memory_space<vmem>>, vector<8x16xf32>
    %c0_143 = arith.constant 0 : index
    %c0_144 = arith.constant 0 : index
    %324 = vector.load %arg7[%c0_143, %c0_144] : memref<8x16xf32, #tpu.memory_space<vmem>>, vector<8x16xf32>
    %c0_145 = arith.constant 0 : index
    %325 = arith.index_cast %c6_i32 : i32 to index
    %c0_146 = arith.constant 0 : index
    %c0_147 = arith.constant 0 : index
    %326 = vector.load %arg2[%c0_145, %325, %c0_146, %c0_147] : memref<1x8x8x64xf32, #tpu.memory_space<vmem>>, vector<1x1x8x64xf32>
    %327 = vector.shape_cast %326 : vector<1x1x8x64xf32> to vector<8x64xf32>
    %cst_148 = arith.constant dense<0.000000e+00> : vector<8x64xf32>
    %328 = tpu.matmul %323, %4, %cst_148 {dimension_numbers = #tpu.dot_dimension_numbers<[1], [0], [0], [1], [0, 0, 1, 1], [], []>} : vector<8x16xf32>, vector<16x64xf32>, vector<8x64xf32> -> vector<8x64xf32>
    %329 = arith.addf %327, %328 : vector<8x64xf32>
    %c0_149 = arith.constant 0 : index
    %330 = arith.index_cast %c6_i32 : i32 to index
    %c0_150 = arith.constant 0 : index
    %c0_151 = arith.constant 0 : index
    %331 = vector.load %arg3[%c0_149, %330, %c0_150, %c0_151] : memref<1x8x8x1xf32, #tpu.memory_space<vmem>>, vector<1x1x8x1xf32>
    %332 = vector.shape_cast %331 : vector<1x1x8x1xf32> to vector<8x1xf32>
    %333 = vector.extract_strided_slice %329 {offsets = [0, 0], sizes = [8, 16], strides = [1, 1]} : vector<8x64xf32> to vector<8x16xf32>
    %334 = arith.negf %333 : vector<8x16xf32>
    %335 = math.exp %334 : vector<8x16xf32>
    %cst_152 = arith.constant 1.000000e+00 : f32
    %336 = vector.broadcast %cst_152 : f32 to vector<8x16xf32>
    %337 = arith.addf %336, %335 : vector<8x16xf32>
    %338 = arith.divf %336, %337 : vector<8x16xf32>
    %339 = vector.extract_strided_slice %329 {offsets = [0, 16], sizes = [8, 16], strides = [1, 1]} : vector<8x64xf32> to vector<8x16xf32>
    %340 = arith.negf %339 : vector<8x16xf32>
    %341 = math.exp %340 : vector<8x16xf32>
    %cst_153 = arith.constant 1.000000e+00 : f32
    %342 = vector.broadcast %cst_153 : f32 to vector<8x16xf32>
    %343 = arith.addf %342, %341 : vector<8x16xf32>
    %344 = arith.divf %342, %343 : vector<8x16xf32>
    %345 = vector.extract_strided_slice %329 {offsets = [0, 32], sizes = [8, 16], strides = [1, 1]} : vector<8x64xf32> to vector<8x16xf32>
    %346 = math.tanh %345 : vector<8x16xf32>
    %347 = vector.extract_strided_slice %329 {offsets = [0, 48], sizes = [8, 16], strides = [1, 1]} : vector<8x64xf32> to vector<8x16xf32>
    %348 = arith.negf %347 : vector<8x16xf32>
    %349 = math.exp %348 : vector<8x16xf32>
    %cst_154 = arith.constant 1.000000e+00 : f32
    %350 = vector.broadcast %cst_154 : f32 to vector<8x16xf32>
    %351 = arith.addf %350, %349 : vector<8x16xf32>
    %352 = arith.divf %350, %351 : vector<8x16xf32>
    %353 = arith.mulf %344, %324 : vector<8x16xf32>
    %354 = arith.mulf %338, %346 : vector<8x16xf32>
    %355 = arith.addf %353, %354 : vector<8x16xf32>
    %356 = math.tanh %355 : vector<8x16xf32>
    %357 = arith.mulf %352, %356 : vector<8x16xf32>
    %cst_155 = arith.constant 5.000000e-01 : f32
    %358 = vector.broadcast %cst_155 : f32 to vector<8x1xf32>
    %359 = arith.cmpf ogt, %332, %358 : vector<8x1xf32>
    %360 = vector.shape_cast %359 : vector<8x1xi1> to vector<8x1xi1>
    %361 = vector.broadcast %360 : vector<8x1xi1> to vector<8x16xi1>
    %362 = arith.select %361, %357, %323 : vector<8x16xi1>, vector<8x16xf32>
    %c0_156 = arith.constant 0 : index
    %c0_157 = arith.constant 0 : index
    %363 = vector.load %arg6[%c0_156, %c0_157] : memref<8x16xf32, #tpu.memory_space<vmem>>, vector<8x16xf32>
    tpu.vector_store %arg6[%c0_156, %c0_157], %362 {strides = array<i32>} : memref<8x16xf32, #tpu.memory_space<vmem>>, vector<8x16xf32>,
    %364 = vector.shape_cast %359 : vector<8x1xi1> to vector<8x1xi1>
    %365 = vector.broadcast %364 : vector<8x1xi1> to vector<8x16xi1>
    %366 = arith.select %365, %355, %324 : vector<8x16xi1>, vector<8x16xf32>
    %c0_158 = arith.constant 0 : index
    %c0_159 = arith.constant 0 : index
    %367 = vector.load %arg7[%c0_158, %c0_159] : memref<8x16xf32, #tpu.memory_space<vmem>>, vector<8x16xf32>
    tpu.vector_store %arg7[%c0_158, %c0_159], %366 {strides = array<i32>} : memref<8x16xf32, #tpu.memory_space<vmem>>, vector<8x16xf32>,
    %cst_160 = arith.constant 0.000000e+00 : f32
    %368 = vector.shape_cast %359 : vector<8x1xi1> to vector<8x1xi1>
    %369 = vector.broadcast %368 : vector<8x1xi1> to vector<8x16xi1>
    %370 = vector.broadcast %cst_160 : f32 to vector<8x16xf32>
    %371 = arith.select %369, %357, %370 : vector<8x16xi1>, vector<8x16xf32>
    %c0_161 = arith.constant 0 : index
    %372 = arith.index_cast %c6_i32 : i32 to index
    %c0_162 = arith.constant 0 : index
    %c0_163 = arith.constant 0 : index
    %373 = vector.load %arg5[%c0_161, %372, %c0_162, %c0_163] : memref<1x8x8x16xf32, #tpu.memory_space<vmem>>, vector<1x1x8x16xf32>
    %374 = vector.shape_cast %373 : vector<1x1x8x16xf32> to vector<8x16xf32>
    %375 = vector.shape_cast %371 : vector<8x16xf32> to vector<1x1x8x16xf32>
    tpu.vector_store %arg5[%c0_161, %372, %c0_162, %c0_163], %375 {strides = array<i32>} : memref<1x8x8x16xf32, #tpu.memory_space<vmem>>, vector<1x1x8x16xf32>,
    %c7_i32 = arith.constant 7 : i32
    %c0_164 = arith.constant 0 : index
    %c0_165 = arith.constant 0 : index
    %376 = vector.load %arg6[%c0_164, %c0_165] : memref<8x16xf32, #tpu.memory_space<vmem>>, vector<8x16xf32>
    %c0_166 = arith.constant 0 : index
    %c0_167 = arith.constant 0 : index
    %377 = vector.load %arg7[%c0_166, %c0_167] : memref<8x16xf32, #tpu.memory_space<vmem>>, vector<8x16xf32>
    %c0_168 = arith.constant 0 : index
    %378 = arith.index_cast %c7_i32 : i32 to index
    %c0_169 = arith.constant 0 : index
    %c0_170 = arith.constant 0 : index
    %379 = vector.load %arg2[%c0_168, %378, %c0_169, %c0_170] : memref<1x8x8x64xf32, #tpu.memory_space<vmem>>, vector<1x1x8x64xf32>
    %380 = vector.shape_cast %379 : vector<1x1x8x64xf32> to vector<8x64xf32>
    %cst_171 = arith.constant dense<0.000000e+00> : vector<8x64xf32>
    %381 = tpu.matmul %376, %4, %cst_171 {dimension_numbers = #tpu.dot_dimension_numbers<[1], [0], [0], [1], [0, 0, 1, 1], [], []>} : vector<8x16xf32>, vector<16x64xf32>, vector<8x64xf32> -> vector<8x64xf32>
    %382 = arith.addf %380, %381 : vector<8x64xf32>
    %c0_172 = arith.constant 0 : index
    %383 = arith.index_cast %c7_i32 : i32 to index
    %c0_173 = arith.constant 0 : index
    %c0_174 = arith.constant 0 : index
    %384 = vector.load %arg3[%c0_172, %383, %c0_173, %c0_174] : memref<1x8x8x1xf32, #tpu.memory_space<vmem>>, vector<1x1x8x1xf32>
    %385 = vector.shape_cast %384 : vector<1x1x8x1xf32> to vector<8x1xf32>
    %386 = vector.extract_strided_slice %382 {offsets = [0, 0], sizes = [8, 16], strides = [1, 1]} : vector<8x64xf32> to vector<8x16xf32>
    %387 = arith.negf %386 : vector<8x16xf32>
    %388 = math.exp %387 : vector<8x16xf32>
    %cst_175 = arith.constant 1.000000e+00 : f32
    %389 = vector.broadcast %cst_175 : f32 to vector<8x16xf32>
    %390 = arith.addf %389, %388 : vector<8x16xf32>
    %391 = arith.divf %389, %390 : vector<8x16xf32>
    %392 = vector.extract_strided_slice %382 {offsets = [0, 16], sizes = [8, 16], strides = [1, 1]} : vector<8x64xf32> to vector<8x16xf32>
    %393 = arith.negf %392 : vector<8x16xf32>
    %394 = math.exp %393 : vector<8x16xf32>
    %cst_176 = arith.constant 1.000000e+00 : f32
    %395 = vector.broadcast %cst_176 : f32 to vector<8x16xf32>
    %396 = arith.addf %395, %394 : vector<8x16xf32>
    %397 = arith.divf %395, %396 : vector<8x16xf32>
    %398 = vector.extract_strided_slice %382 {offsets = [0, 32], sizes = [8, 16], strides = [1, 1]} : vector<8x64xf32> to vector<8x16xf32>
    %399 = math.tanh %398 : vector<8x16xf32>
    %400 = vector.extract_strided_slice %382 {offsets = [0, 48], sizes = [8, 16], strides = [1, 1]} : vector<8x64xf32> to vector<8x16xf32>
    %401 = arith.negf %400 : vector<8x16xf32>
    %402 = math.exp %401 : vector<8x16xf32>
    %cst_177 = arith.constant 1.000000e+00 : f32
    %403 = vector.broadcast %cst_177 : f32 to vector<8x16xf32>
    %404 = arith.addf %403, %402 : vector<8x16xf32>
    %405 = arith.divf %403, %404 : vector<8x16xf32>
    %406 = arith.mulf %397, %377 : vector<8x16xf32>
    %407 = arith.mulf %391, %399 : vector<8x16xf32>
    %408 = arith.addf %406, %407 : vector<8x16xf32>
    %409 = math.tanh %408 : vector<8x16xf32>
    %410 = arith.mulf %405, %409 : vector<8x16xf32>
    %cst_178 = arith.constant 5.000000e-01 : f32
    %411 = vector.broadcast %cst_178 : f32 to vector<8x1xf32>
    %412 = arith.cmpf ogt, %385, %411 : vector<8x1xf32>
    %413 = vector.shape_cast %412 : vector<8x1xi1> to vector<8x1xi1>
    %414 = vector.broadcast %413 : vector<8x1xi1> to vector<8x16xi1>
    %415 = arith.select %414, %410, %376 : vector<8x16xi1>, vector<8x16xf32>
    %c0_179 = arith.constant 0 : index
    %c0_180 = arith.constant 0 : index
    %416 = vector.load %arg6[%c0_179, %c0_180] : memref<8x16xf32, #tpu.memory_space<vmem>>, vector<8x16xf32>
    tpu.vector_store %arg6[%c0_179, %c0_180], %415 {strides = array<i32>} : memref<8x16xf32, #tpu.memory_space<vmem>>, vector<8x16xf32>,
    %417 = vector.shape_cast %412 : vector<8x1xi1> to vector<8x1xi1>
    %418 = vector.broadcast %417 : vector<8x1xi1> to vector<8x16xi1>
    %419 = arith.select %418, %408, %377 : vector<8x16xi1>, vector<8x16xf32>
    %c0_181 = arith.constant 0 : index
    %c0_182 = arith.constant 0 : index
    %420 = vector.load %arg7[%c0_181, %c0_182] : memref<8x16xf32, #tpu.memory_space<vmem>>, vector<8x16xf32>
    tpu.vector_store %arg7[%c0_181, %c0_182], %419 {strides = array<i32>} : memref<8x16xf32, #tpu.memory_space<vmem>>, vector<8x16xf32>,
    %cst_183 = arith.constant 0.000000e+00 : f32
    %421 = vector.shape_cast %412 : vector<8x1xi1> to vector<8x1xi1>
    %422 = vector.broadcast %421 : vector<8x1xi1> to vector<8x16xi1>
    %423 = vector.broadcast %cst_183 : f32 to vector<8x16xf32>
    %424 = arith.select %422, %410, %423 : vector<8x16xi1>, vector<8x16xf32>
    %c0_184 = arith.constant 0 : index
    %425 = arith.index_cast %c7_i32 : i32 to index
    %c0_185 = arith.constant 0 : index
    %c0_186 = arith.constant 0 : index
    %426 = vector.load %arg5[%c0_184, %425, %c0_185, %c0_186] : memref<1x8x8x16xf32, #tpu.memory_space<vmem>>, vector<1x1x8x16xf32>
    %427 = vector.shape_cast %426 : vector<1x1x8x16xf32> to vector<8x16xf32>
    %428 = vector.shape_cast %424 : vector<8x16xf32> to vector<1x1x8x16xf32>
    tpu.vector_store %arg5[%c0_184, %425, %c0_185, %c0_186], %428 {strides = array<i32>} : memref<1x8x8x16xf32, #tpu.memory_space<vmem>>, vector<1x1x8x16xf32>,
    %c8_i32 = arith.constant 8 : i32
    return
  }
  func.func @transform_0(%arg0: i32, %arg1: i32) -> (i32, i32, i32, i32) {
    %c0_i32 = arith.constant 0 : i32
    %c0_i32_0 = arith.constant 0 : i32
    %c0_i32_1 = arith.constant 0 : i32
    return %arg0, %arg1, %c0_i32, %c0_i32_0 : i32, i32, i32, i32
  }
  func.func @transform_1(%arg0: i32, %arg1: i32) -> (i32, i32, i32, i32) {
    %c0_i32 = arith.constant 0 : i32
    %c0_i32_0 = arith.constant 0 : i32
    %c0_i32_1 = arith.constant 0 : i32
    return %arg0, %arg1, %c0_i32, %c0_i32_0 : i32, i32, i32, i32
  }
  func.func @transform_2(%arg0: i32, %arg1: i32) -> (i32, i32, i32) {
    %c0_i32 = arith.constant 0 : i32
    %c0_i32_0 = arith.constant 0 : i32
    %c0_i32_1 = arith.constant 0 : i32
    return %arg0, %c0_i32, %c0_i32_0 : i32, i32, i32
  }
  func.func @transform_3(%arg0: i32, %arg1: i32) -> (i32, i32, i32, i32) {
    %c0_i32 = arith.constant 0 : i32
    %c0_i32_0 = arith.constant 0 : i32
    %c0_i32_1 = arith.constant 0 : i32
    return %arg0, %arg1, %c0_i32, %c0_i32_0 : i32, i32, i32, i32
  }
}

module attributes {stable_mosaic.version = 11 : i64} {
  func.func @_linear_kernel(%arg0: i32, %arg1: memref<64x64xf32, #tpu.memory_space<vmem>>, %arg2: memref<64x128xf32, #tpu.memory_space<vmem>>, %arg3: memref<1x128xf32, #tpu.memory_space<vmem>>, %arg4: memref<64x128xf32, #tpu.memory_space<vmem>>) attributes {dimension_semantics = [#tpu.dimension_semantics<parallel>], iteration_bounds = array<i64: 1>, scalar_prefetch = 0 : i64, scratch_operands = 0 : i64, tpu.core_type = #tpu.core_type<tc>, window_params = [{transform_indices = @transform_0, window_bounds = array<i64: 64, 64>}, {pipeline_mode = #tpu.pipeline_mode<synchronous>, transform_indices = @transform_1, window_bounds = array<i64: 64, 128>}, {pipeline_mode = #tpu.pipeline_mode<synchronous>, transform_indices = @transform_2, window_bounds = array<i64: 1, 128>}, {transform_indices = @transform_3, window_bounds = array<i64: 64, 128>}]} {
    %c0 = arith.constant 0 : index
    %c0_0 = arith.constant 0 : index
    %0 = vector.load %arg1[%c0, %c0_0] : memref<64x64xf32, #tpu.memory_space<vmem>>, vector<64x64xf32>
    %c0_1 = arith.constant 0 : index
    %c0_2 = arith.constant 0 : index
    %1 = vector.load %arg2[%c0_1, %c0_2] : memref<64x128xf32, #tpu.memory_space<vmem>>, vector<64x128xf32>
    %cst = arith.constant dense<0.000000e+00> : vector<64x128xf32>
    %2 = tpu.matmul %0, %1, %cst {dimension_numbers = #tpu.dot_dimension_numbers<[1], [0], [0], [1], [0, 0, 1, 1], [], []>} : vector<64x64xf32>, vector<64x128xf32>, vector<64x128xf32> -> vector<64x128xf32>
    %c0_3 = arith.constant 0 : index
    %c0_4 = arith.constant 0 : index
    %3 = vector.load %arg3[%c0_3, %c0_4] : memref<1x128xf32, #tpu.memory_space<vmem>>, vector<1x128xf32>
    %4 = vector.broadcast %3 : vector<1x128xf32> to vector<64x128xf32>
    %5 = arith.addf %2, %4 : vector<64x128xf32>
    %c0_5 = arith.constant 0 : index
    %c0_6 = arith.constant 0 : index
    %6 = vector.load %arg4[%c0_5, %c0_6] : memref<64x128xf32, #tpu.memory_space<vmem>>, vector<64x128xf32>
    tpu.vector_store %arg4[%c0_5, %c0_6], %5 {strides = array<i32>} : memref<64x128xf32, #tpu.memory_space<vmem>>, vector<64x128xf32>,
    return
  }
  func.func @transform_0(%arg0: i32) -> (i32, i32) {
    %c0_i32 = arith.constant 0 : i32
    %c0_i32_0 = arith.constant 0 : i32
    return %arg0, %c0_i32 : i32, i32
  }
  func.func @transform_1(%arg0: i32) -> (i32, i32) {
    %c0_i32 = arith.constant 0 : i32
    %c0_i32_0 = arith.constant 0 : i32
    %c0_i32_1 = arith.constant 0 : i32
    return %c0_i32, %c0_i32_0 : i32, i32
  }
  func.func @transform_2(%arg0: i32) -> (i32, i32) {
    %c0_i32 = arith.constant 0 : i32
    %c0_i32_0 = arith.constant 0 : i32
    %c0_i32_1 = arith.constant 0 : i32
    return %c0_i32, %c0_i32_0 : i32, i32
  }
  func.func @transform_3(%arg0: i32) -> (i32, i32) {
    %c0_i32 = arith.constant 0 : i32
    %c0_i32_0 = arith.constant 0 : i32
    return %arg0, %c0_i32 : i32, i32
  }
}

module attributes {stable_mosaic.version = 11 : i64} {
  func.func @_bilstm_kernel(%arg0: i32, %arg1: i32, %arg2: memref<1x8x8x64xf32, #tpu.memory_space<vmem>>, %arg3: memref<1x8x8x1xf32, #tpu.memory_space<vmem>>, %arg4: memref<1x16x64xf32, #tpu.memory_space<vmem>>, %arg5: memref<1x8x8x16xf32, #tpu.memory_space<vmem>>, %arg6: memref<8x16xf32, #tpu.memory_space<vmem>>, %arg7: memref<8x16xf32, #tpu.memory_space<vmem>>) attributes {dimension_semantics = [#tpu.dimension_semantics<parallel>, #tpu.dimension_semantics<arbitrary>], iteration_bounds = array<i64: 2, 1>, scalar_prefetch = 0 : i64, scratch_operands = 2 : i64, tpu.core_type = #tpu.core_type<tc>, window_params = [{transform_indices = @transform_0, window_bounds = array<i64: 1, 8, 8, 64>}, {transform_indices = @transform_1, window_bounds = array<i64: 1, 8, 8, 1>}, {transform_indices = @transform_2, window_bounds = array<i64: 1, 16, 64>}, {transform_indices = @transform_3, window_bounds = array<i64: 1, 8, 8, 16>}]} {
    %c0_i32 = arith.constant 0 : i32
    %0 = arith.cmpi eq, %arg1, %c0_i32 : i32
    %1 = arith.extui %0 : i1 to i32
    %c0_i32_0 = arith.constant 0 : i32
    %2 = arith.cmpi ne, %1, %c0_i32_0 : i32
    scf.if %2 {
      %cst_187 = arith.constant 0.000000e+00 : f32
      %429 = vector.broadcast %cst_187 : f32 to vector<8x16xf32>
      %c0_188 = arith.constant 0 : index
      %c0_189 = arith.constant 0 : index
      %430 = vector.load %arg6[%c0_188, %c0_189] : memref<8x16xf32, #tpu.memory_space<vmem>>, vector<8x16xf32>
      tpu.vector_store %arg6[%c0_188, %c0_189], %429 {strides = array<i32>} : memref<8x16xf32, #tpu.memory_space<vmem>>, vector<8x16xf32>,
      %cst_190 = arith.constant 0.000000e+00 : f32
      %431 = vector.broadcast %cst_190 : f32 to vector<8x16xf32>
      %c0_191 = arith.constant 0 : index
      %c0_192 = arith.constant 0 : index
      %432 = vector.load %arg7[%c0_191, %c0_192] : memref<8x16xf32, #tpu.memory_space<vmem>>, vector<8x16xf32>
      tpu.vector_store %arg7[%c0_191, %c0_192], %431 {strides = array<i32>} : memref<8x16xf32, #tpu.memory_space<vmem>>, vector<8x16xf32>,
    } else {
    }
    %c0 = arith.constant 0 : index
    %c0_1 = arith.constant 0 : index
    %c0_2 = arith.constant 0 : index
    %3 = vector.load %arg4[%c0, %c0_1, %c0_2] : memref<1x16x64xf32, #tpu.memory_space<vmem>>, vector<1x16x64xf32>
    %4 = vector.shape_cast %3 : vector<1x16x64xf32> to vector<16x64xf32>
    %c0_i32_3 = arith.constant 0 : i32
    %c0_4 = arith.constant 0 : index
    %c0_5 = arith.constant 0 : index
    %5 = vector.load %arg6[%c0_4, %c0_5] : memref<8x16xf32, #tpu.memory_space<vmem>>, vector<8x16xf32>
    %c0_6 = arith.constant 0 : index
    %c0_7 = arith.constant 0 : index
    %6 = vector.load %arg7[%c0_6, %c0_7] : memref<8x16xf32, #tpu.memory_space<vmem>>, vector<8x16xf32>
    %c0_8 = arith.constant 0 : index
    %7 = arith.index_cast %c0_i32_3 : i32 to index
    %c0_9 = arith.constant 0 : index
    %c0_10 = arith.constant 0 : index
    %8 = vector.load %arg2[%c0_8, %7, %c0_9, %c0_10] : memref<1x8x8x64xf32, #tpu.memory_space<vmem>>, vector<1x1x8x64xf32>
    %9 = vector.shape_cast %8 : vector<1x1x8x64xf32> to vector<8x64xf32>
    %cst = arith.constant dense<0.000000e+00> : vector<8x64xf32>
    %10 = tpu.matmul %5, %4, %cst {dimension_numbers = #tpu.dot_dimension_numbers<[1], [0], [0], [1], [0, 0, 1, 1], [], []>} : vector<8x16xf32>, vector<16x64xf32>, vector<8x64xf32> -> vector<8x64xf32>
    %11 = arith.addf %9, %10 : vector<8x64xf32>
    %c0_11 = arith.constant 0 : index
    %12 = arith.index_cast %c0_i32_3 : i32 to index
    %c0_12 = arith.constant 0 : index
    %c0_13 = arith.constant 0 : index
    %13 = vector.load %arg3[%c0_11, %12, %c0_12, %c0_13] : memref<1x8x8x1xf32, #tpu.memory_space<vmem>>, vector<1x1x8x1xf32>
    %14 = vector.shape_cast %13 : vector<1x1x8x1xf32> to vector<8x1xf32>
    %15 = vector.extract_strided_slice %11 {offsets = [0, 0], sizes = [8, 16], strides = [1, 1]} : vector<8x64xf32> to vector<8x16xf32>
    %16 = arith.negf %15 : vector<8x16xf32>
    %17 = math.exp %16 : vector<8x16xf32>
    %cst_14 = arith.constant 1.000000e+00 : f32
    %18 = vector.broadcast %cst_14 : f32 to vector<8x16xf32>
    %19 = arith.addf %18, %17 : vector<8x16xf32>
    %20 = arith.divf %18, %19 : vector<8x16xf32>
    %21 = vector.extract_strided_slice %11 {offsets = [0, 16], sizes = [8, 16], strides = [1, 1]} : vector<8x64xf32> to vector<8x16xf32>
    %22 = arith.negf %21 : vector<8x16xf32>
    %23 = math.exp %22 : vector<8x16xf32>
    %cst_15 = arith.constant 1.000000e+00 : f32
    %24 = vector.broadcast %cst_15 : f32 to vector<8x16xf32>
    %25 = arith.addf %24, %23 : vector<8x16xf32>
    %26 = arith.divf %24, %25 : vector<8x16xf32>
    %27 = vector.extract_strided_slice %11 {offsets = [0, 32], sizes = [8, 16], strides = [1, 1]} : vector<8x64xf32> to vector<8x16xf32>
    %28 = math.tanh %27 : vector<8x16xf32>
    %29 = vector.extract_strided_slice %11 {offsets = [0, 48], sizes = [8, 16], strides = [1, 1]} : vector<8x64xf32> to vector<8x16xf32>
    %30 = arith.negf %29 : vector<8x16xf32>
    %31 = math.exp %30 : vector<8x16xf32>
    %cst_16 = arith.constant 1.000000e+00 : f32
    %32 = vector.broadcast %cst_16 : f32 to vector<8x16xf32>
    %33 = arith.addf %32, %31 : vector<8x16xf32>
    %34 = arith.divf %32, %33 : vector<8x16xf32>
    %35 = arith.mulf %26, %6 : vector<8x16xf32>
    %36 = arith.mulf %20, %28 : vector<8x16xf32>
    %37 = arith.addf %35, %36 : vector<8x16xf32>
    %38 = math.tanh %37 : vector<8x16xf32>
    %39 = arith.mulf %34, %38 : vector<8x16xf32>
    %cst_17 = arith.constant 5.000000e-01 : f32
    %40 = vector.broadcast %cst_17 : f32 to vector<8x1xf32>
    %41 = arith.cmpf ogt, %14, %40 : vector<8x1xf32>
    %42 = vector.shape_cast %41 : vector<8x1xi1> to vector<8x1xi1>
    %43 = vector.broadcast %42 : vector<8x1xi1> to vector<8x16xi1>
    %44 = arith.select %43, %39, %5 : vector<8x16xi1>, vector<8x16xf32>
    %c0_18 = arith.constant 0 : index
    %c0_19 = arith.constant 0 : index
    %45 = vector.load %arg6[%c0_18, %c0_19] : memref<8x16xf32, #tpu.memory_space<vmem>>, vector<8x16xf32>
    tpu.vector_store %arg6[%c0_18, %c0_19], %44 {strides = array<i32>} : memref<8x16xf32, #tpu.memory_space<vmem>>, vector<8x16xf32>,
    %46 = vector.shape_cast %41 : vector<8x1xi1> to vector<8x1xi1>
    %47 = vector.broadcast %46 : vector<8x1xi1> to vector<8x16xi1>
    %48 = arith.select %47, %37, %6 : vector<8x16xi1>, vector<8x16xf32>
    %c0_20 = arith.constant 0 : index
    %c0_21 = arith.constant 0 : index
    %49 = vector.load %arg7[%c0_20, %c0_21] : memref<8x16xf32, #tpu.memory_space<vmem>>, vector<8x16xf32>
    tpu.vector_store %arg7[%c0_20, %c0_21], %48 {strides = array<i32>} : memref<8x16xf32, #tpu.memory_space<vmem>>, vector<8x16xf32>,
    %cst_22 = arith.constant 0.000000e+00 : f32
    %50 = vector.shape_cast %41 : vector<8x1xi1> to vector<8x1xi1>
    %51 = vector.broadcast %50 : vector<8x1xi1> to vector<8x16xi1>
    %52 = vector.broadcast %cst_22 : f32 to vector<8x16xf32>
    %53 = arith.select %51, %39, %52 : vector<8x16xi1>, vector<8x16xf32>
    %c0_23 = arith.constant 0 : index
    %54 = arith.index_cast %c0_i32_3 : i32 to index
    %c0_24 = arith.constant 0 : index
    %c0_25 = arith.constant 0 : index
    %55 = vector.load %arg5[%c0_23, %54, %c0_24, %c0_25] : memref<1x8x8x16xf32, #tpu.memory_space<vmem>>, vector<1x1x8x16xf32>
    %56 = vector.shape_cast %55 : vector<1x1x8x16xf32> to vector<8x16xf32>
    %57 = vector.shape_cast %53 : vector<8x16xf32> to vector<1x1x8x16xf32>
    tpu.vector_store %arg5[%c0_23, %54, %c0_24, %c0_25], %57 {strides = array<i32>} : memref<1x8x8x16xf32, #tpu.memory_space<vmem>>, vector<1x1x8x16xf32>,
    %c1_i32 = arith.constant 1 : i32
    %c0_26 = arith.constant 0 : index
    %c0_27 = arith.constant 0 : index
    %58 = vector.load %arg6[%c0_26, %c0_27] : memref<8x16xf32, #tpu.memory_space<vmem>>, vector<8x16xf32>
    %c0_28 = arith.constant 0 : index
    %c0_29 = arith.constant 0 : index
    %59 = vector.load %arg7[%c0_28, %c0_29] : memref<8x16xf32, #tpu.memory_space<vmem>>, vector<8x16xf32>
    %c0_30 = arith.constant 0 : index
    %60 = arith.index_cast %c1_i32 : i32 to index
    %c0_31 = arith.constant 0 : index
    %c0_32 = arith.constant 0 : index
    %61 = vector.load %arg2[%c0_30, %60, %c0_31, %c0_32] : memref<1x8x8x64xf32, #tpu.memory_space<vmem>>, vector<1x1x8x64xf32>
    %62 = vector.shape_cast %61 : vector<1x1x8x64xf32> to vector<8x64xf32>
    %cst_33 = arith.constant dense<0.000000e+00> : vector<8x64xf32>
    %63 = tpu.matmul %58, %4, %cst_33 {dimension_numbers = #tpu.dot_dimension_numbers<[1], [0], [0], [1], [0, 0, 1, 1], [], []>} : vector<8x16xf32>, vector<16x64xf32>, vector<8x64xf32> -> vector<8x64xf32>
    %64 = arith.addf %62, %63 : vector<8x64xf32>
    %c0_34 = arith.constant 0 : index
    %65 = arith.index_cast %c1_i32 : i32 to index
    %c0_35 = arith.constant 0 : index
    %c0_36 = arith.constant 0 : index
    %66 = vector.load %arg3[%c0_34, %65, %c0_35, %c0_36] : memref<1x8x8x1xf32, #tpu.memory_space<vmem>>, vector<1x1x8x1xf32>
    %67 = vector.shape_cast %66 : vector<1x1x8x1xf32> to vector<8x1xf32>
    %68 = vector.extract_strided_slice %64 {offsets = [0, 0], sizes = [8, 16], strides = [1, 1]} : vector<8x64xf32> to vector<8x16xf32>
    %69 = arith.negf %68 : vector<8x16xf32>
    %70 = math.exp %69 : vector<8x16xf32>
    %cst_37 = arith.constant 1.000000e+00 : f32
    %71 = vector.broadcast %cst_37 : f32 to vector<8x16xf32>
    %72 = arith.addf %71, %70 : vector<8x16xf32>
    %73 = arith.divf %71, %72 : vector<8x16xf32>
    %74 = vector.extract_strided_slice %64 {offsets = [0, 16], sizes = [8, 16], strides = [1, 1]} : vector<8x64xf32> to vector<8x16xf32>
    %75 = arith.negf %74 : vector<8x16xf32>
    %76 = math.exp %75 : vector<8x16xf32>
    %cst_38 = arith.constant 1.000000e+00 : f32
    %77 = vector.broadcast %cst_38 : f32 to vector<8x16xf32>
    %78 = arith.addf %77, %76 : vector<8x16xf32>
    %79 = arith.divf %77, %78 : vector<8x16xf32>
    %80 = vector.extract_strided_slice %64 {offsets = [0, 32], sizes = [8, 16], strides = [1, 1]} : vector<8x64xf32> to vector<8x16xf32>
    %81 = math.tanh %80 : vector<8x16xf32>
    %82 = vector.extract_strided_slice %64 {offsets = [0, 48], sizes = [8, 16], strides = [1, 1]} : vector<8x64xf32> to vector<8x16xf32>
    %83 = arith.negf %82 : vector<8x16xf32>
    %84 = math.exp %83 : vector<8x16xf32>
    %cst_39 = arith.constant 1.000000e+00 : f32
    %85 = vector.broadcast %cst_39 : f32 to vector<8x16xf32>
    %86 = arith.addf %85, %84 : vector<8x16xf32>
    %87 = arith.divf %85, %86 : vector<8x16xf32>
    %88 = arith.mulf %79, %59 : vector<8x16xf32>
    %89 = arith.mulf %73, %81 : vector<8x16xf32>
    %90 = arith.addf %88, %89 : vector<8x16xf32>
    %91 = math.tanh %90 : vector<8x16xf32>
    %92 = arith.mulf %87, %91 : vector<8x16xf32>
    %cst_40 = arith.constant 5.000000e-01 : f32
    %93 = vector.broadcast %cst_40 : f32 to vector<8x1xf32>
    %94 = arith.cmpf ogt, %67, %93 : vector<8x1xf32>
    %95 = vector.shape_cast %94 : vector<8x1xi1> to vector<8x1xi1>
    %96 = vector.broadcast %95 : vector<8x1xi1> to vector<8x16xi1>
    %97 = arith.select %96, %92, %58 : vector<8x16xi1>, vector<8x16xf32>
    %c0_41 = arith.constant 0 : index
    %c0_42 = arith.constant 0 : index
    %98 = vector.load %arg6[%c0_41, %c0_42] : memref<8x16xf32, #tpu.memory_space<vmem>>, vector<8x16xf32>
    tpu.vector_store %arg6[%c0_41, %c0_42], %97 {strides = array<i32>} : memref<8x16xf32, #tpu.memory_space<vmem>>, vector<8x16xf32>,
    %99 = vector.shape_cast %94 : vector<8x1xi1> to vector<8x1xi1>
    %100 = vector.broadcast %99 : vector<8x1xi1> to vector<8x16xi1>
    %101 = arith.select %100, %90, %59 : vector<8x16xi1>, vector<8x16xf32>
    %c0_43 = arith.constant 0 : index
    %c0_44 = arith.constant 0 : index
    %102 = vector.load %arg7[%c0_43, %c0_44] : memref<8x16xf32, #tpu.memory_space<vmem>>, vector<8x16xf32>
    tpu.vector_store %arg7[%c0_43, %c0_44], %101 {strides = array<i32>} : memref<8x16xf32, #tpu.memory_space<vmem>>, vector<8x16xf32>,
    %cst_45 = arith.constant 0.000000e+00 : f32
    %103 = vector.shape_cast %94 : vector<8x1xi1> to vector<8x1xi1>
    %104 = vector.broadcast %103 : vector<8x1xi1> to vector<8x16xi1>
    %105 = vector.broadcast %cst_45 : f32 to vector<8x16xf32>
    %106 = arith.select %104, %92, %105 : vector<8x16xi1>, vector<8x16xf32>
    %c0_46 = arith.constant 0 : index
    %107 = arith.index_cast %c1_i32 : i32 to index
    %c0_47 = arith.constant 0 : index
    %c0_48 = arith.constant 0 : index
    %108 = vector.load %arg5[%c0_46, %107, %c0_47, %c0_48] : memref<1x8x8x16xf32, #tpu.memory_space<vmem>>, vector<1x1x8x16xf32>
    %109 = vector.shape_cast %108 : vector<1x1x8x16xf32> to vector<8x16xf32>
    %110 = vector.shape_cast %106 : vector<8x16xf32> to vector<1x1x8x16xf32>
    tpu.vector_store %arg5[%c0_46, %107, %c0_47, %c0_48], %110 {strides = array<i32>} : memref<1x8x8x16xf32, #tpu.memory_space<vmem>>, vector<1x1x8x16xf32>,
    %c2_i32 = arith.constant 2 : i32
    %c0_49 = arith.constant 0 : index
    %c0_50 = arith.constant 0 : index
    %111 = vector.load %arg6[%c0_49, %c0_50] : memref<8x16xf32, #tpu.memory_space<vmem>>, vector<8x16xf32>
    %c0_51 = arith.constant 0 : index
    %c0_52 = arith.constant 0 : index
    %112 = vector.load %arg7[%c0_51, %c0_52] : memref<8x16xf32, #tpu.memory_space<vmem>>, vector<8x16xf32>
    %c0_53 = arith.constant 0 : index
    %113 = arith.index_cast %c2_i32 : i32 to index
    %c0_54 = arith.constant 0 : index
    %c0_55 = arith.constant 0 : index
    %114 = vector.load %arg2[%c0_53, %113, %c0_54, %c0_55] : memref<1x8x8x64xf32, #tpu.memory_space<vmem>>, vector<1x1x8x64xf32>
    %115 = vector.shape_cast %114 : vector<1x1x8x64xf32> to vector<8x64xf32>
    %cst_56 = arith.constant dense<0.000000e+00> : vector<8x64xf32>
    %116 = tpu.matmul %111, %4, %cst_56 {dimension_numbers = #tpu.dot_dimension_numbers<[1], [0], [0], [1], [0, 0, 1, 1], [], []>} : vector<8x16xf32>, vector<16x64xf32>, vector<8x64xf32> -> vector<8x64xf32>
    %117 = arith.addf %115, %116 : vector<8x64xf32>
    %c0_57 = arith.constant 0 : index
    %118 = arith.index_cast %c2_i32 : i32 to index
    %c0_58 = arith.constant 0 : index
    %c0_59 = arith.constant 0 : index
    %119 = vector.load %arg3[%c0_57, %118, %c0_58, %c0_59] : memref<1x8x8x1xf32, #tpu.memory_space<vmem>>, vector<1x1x8x1xf32>
    %120 = vector.shape_cast %119 : vector<1x1x8x1xf32> to vector<8x1xf32>
    %121 = vector.extract_strided_slice %117 {offsets = [0, 0], sizes = [8, 16], strides = [1, 1]} : vector<8x64xf32> to vector<8x16xf32>
    %122 = arith.negf %121 : vector<8x16xf32>
    %123 = math.exp %122 : vector<8x16xf32>
    %cst_60 = arith.constant 1.000000e+00 : f32
    %124 = vector.broadcast %cst_60 : f32 to vector<8x16xf32>
    %125 = arith.addf %124, %123 : vector<8x16xf32>
    %126 = arith.divf %124, %125 : vector<8x16xf32>
    %127 = vector.extract_strided_slice %117 {offsets = [0, 16], sizes = [8, 16], strides = [1, 1]} : vector<8x64xf32> to vector<8x16xf32>
    %128 = arith.negf %127 : vector<8x16xf32>
    %129 = math.exp %128 : vector<8x16xf32>
    %cst_61 = arith.constant 1.000000e+00 : f32
    %130 = vector.broadcast %cst_61 : f32 to vector<8x16xf32>
    %131 = arith.addf %130, %129 : vector<8x16xf32>
    %132 = arith.divf %130, %131 : vector<8x16xf32>
    %133 = vector.extract_strided_slice %117 {offsets = [0, 32], sizes = [8, 16], strides = [1, 1]} : vector<8x64xf32> to vector<8x16xf32>
    %134 = math.tanh %133 : vector<8x16xf32>
    %135 = vector.extract_strided_slice %117 {offsets = [0, 48], sizes = [8, 16], strides = [1, 1]} : vector<8x64xf32> to vector<8x16xf32>
    %136 = arith.negf %135 : vector<8x16xf32>
    %137 = math.exp %136 : vector<8x16xf32>
    %cst_62 = arith.constant 1.000000e+00 : f32
    %138 = vector.broadcast %cst_62 : f32 to vector<8x16xf32>
    %139 = arith.addf %138, %137 : vector<8x16xf32>
    %140 = arith.divf %138, %139 : vector<8x16xf32>
    %141 = arith.mulf %132, %112 : vector<8x16xf32>
    %142 = arith.mulf %126, %134 : vector<8x16xf32>
    %143 = arith.addf %141, %142 : vector<8x16xf32>
    %144 = math.tanh %143 : vector<8x16xf32>
    %145 = arith.mulf %140, %144 : vector<8x16xf32>
    %cst_63 = arith.constant 5.000000e-01 : f32
    %146 = vector.broadcast %cst_63 : f32 to vector<8x1xf32>
    %147 = arith.cmpf ogt, %120, %146 : vector<8x1xf32>
    %148 = vector.shape_cast %147 : vector<8x1xi1> to vector<8x1xi1>
    %149 = vector.broadcast %148 : vector<8x1xi1> to vector<8x16xi1>
    %150 = arith.select %149, %145, %111 : vector<8x16xi1>, vector<8x16xf32>
    %c0_64 = arith.constant 0 : index
    %c0_65 = arith.constant 0 : index
    %151 = vector.load %arg6[%c0_64, %c0_65] : memref<8x16xf32, #tpu.memory_space<vmem>>, vector<8x16xf32>
    tpu.vector_store %arg6[%c0_64, %c0_65], %150 {strides = array<i32>} : memref<8x16xf32, #tpu.memory_space<vmem>>, vector<8x16xf32>,
    %152 = vector.shape_cast %147 : vector<8x1xi1> to vector<8x1xi1>
    %153 = vector.broadcast %152 : vector<8x1xi1> to vector<8x16xi1>
    %154 = arith.select %153, %143, %112 : vector<8x16xi1>, vector<8x16xf32>
    %c0_66 = arith.constant 0 : index
    %c0_67 = arith.constant 0 : index
    %155 = vector.load %arg7[%c0_66, %c0_67] : memref<8x16xf32, #tpu.memory_space<vmem>>, vector<8x16xf32>
    tpu.vector_store %arg7[%c0_66, %c0_67], %154 {strides = array<i32>} : memref<8x16xf32, #tpu.memory_space<vmem>>, vector<8x16xf32>,
    %cst_68 = arith.constant 0.000000e+00 : f32
    %156 = vector.shape_cast %147 : vector<8x1xi1> to vector<8x1xi1>
    %157 = vector.broadcast %156 : vector<8x1xi1> to vector<8x16xi1>
    %158 = vector.broadcast %cst_68 : f32 to vector<8x16xf32>
    %159 = arith.select %157, %145, %158 : vector<8x16xi1>, vector<8x16xf32>
    %c0_69 = arith.constant 0 : index
    %160 = arith.index_cast %c2_i32 : i32 to index
    %c0_70 = arith.constant 0 : index
    %c0_71 = arith.constant 0 : index
    %161 = vector.load %arg5[%c0_69, %160, %c0_70, %c0_71] : memref<1x8x8x16xf32, #tpu.memory_space<vmem>>, vector<1x1x8x16xf32>
    %162 = vector.shape_cast %161 : vector<1x1x8x16xf32> to vector<8x16xf32>
    %163 = vector.shape_cast %159 : vector<8x16xf32> to vector<1x1x8x16xf32>
    tpu.vector_store %arg5[%c0_69, %160, %c0_70, %c0_71], %163 {strides = array<i32>} : memref<1x8x8x16xf32, #tpu.memory_space<vmem>>, vector<1x1x8x16xf32>,
    %c3_i32 = arith.constant 3 : i32
    %c0_72 = arith.constant 0 : index
    %c0_73 = arith.constant 0 : index
    %164 = vector.load %arg6[%c0_72, %c0_73] : memref<8x16xf32, #tpu.memory_space<vmem>>, vector<8x16xf32>
    %c0_74 = arith.constant 0 : index
    %c0_75 = arith.constant 0 : index
    %165 = vector.load %arg7[%c0_74, %c0_75] : memref<8x16xf32, #tpu.memory_space<vmem>>, vector<8x16xf32>
    %c0_76 = arith.constant 0 : index
    %166 = arith.index_cast %c3_i32 : i32 to index
    %c0_77 = arith.constant 0 : index
    %c0_78 = arith.constant 0 : index
    %167 = vector.load %arg2[%c0_76, %166, %c0_77, %c0_78] : memref<1x8x8x64xf32, #tpu.memory_space<vmem>>, vector<1x1x8x64xf32>
    %168 = vector.shape_cast %167 : vector<1x1x8x64xf32> to vector<8x64xf32>
    %cst_79 = arith.constant dense<0.000000e+00> : vector<8x64xf32>
    %169 = tpu.matmul %164, %4, %cst_79 {dimension_numbers = #tpu.dot_dimension_numbers<[1], [0], [0], [1], [0, 0, 1, 1], [], []>} : vector<8x16xf32>, vector<16x64xf32>, vector<8x64xf32> -> vector<8x64xf32>
    %170 = arith.addf %168, %169 : vector<8x64xf32>
    %c0_80 = arith.constant 0 : index
    %171 = arith.index_cast %c3_i32 : i32 to index
    %c0_81 = arith.constant 0 : index
    %c0_82 = arith.constant 0 : index
    %172 = vector.load %arg3[%c0_80, %171, %c0_81, %c0_82] : memref<1x8x8x1xf32, #tpu.memory_space<vmem>>, vector<1x1x8x1xf32>
    %173 = vector.shape_cast %172 : vector<1x1x8x1xf32> to vector<8x1xf32>
    %174 = vector.extract_strided_slice %170 {offsets = [0, 0], sizes = [8, 16], strides = [1, 1]} : vector<8x64xf32> to vector<8x16xf32>
    %175 = arith.negf %174 : vector<8x16xf32>
    %176 = math.exp %175 : vector<8x16xf32>
    %cst_83 = arith.constant 1.000000e+00 : f32
    %177 = vector.broadcast %cst_83 : f32 to vector<8x16xf32>
    %178 = arith.addf %177, %176 : vector<8x16xf32>
    %179 = arith.divf %177, %178 : vector<8x16xf32>
    %180 = vector.extract_strided_slice %170 {offsets = [0, 16], sizes = [8, 16], strides = [1, 1]} : vector<8x64xf32> to vector<8x16xf32>
    %181 = arith.negf %180 : vector<8x16xf32>
    %182 = math.exp %181 : vector<8x16xf32>
    %cst_84 = arith.constant 1.000000e+00 : f32
    %183 = vector.broadcast %cst_84 : f32 to vector<8x16xf32>
    %184 = arith.addf %183, %182 : vector<8x16xf32>
    %185 = arith.divf %183, %184 : vector<8x16xf32>
    %186 = vector.extract_strided_slice %170 {offsets = [0, 32], sizes = [8, 16], strides = [1, 1]} : vector<8x64xf32> to vector<8x16xf32>
    %187 = math.tanh %186 : vector<8x16xf32>
    %188 = vector.extract_strided_slice %170 {offsets = [0, 48], sizes = [8, 16], strides = [1, 1]} : vector<8x64xf32> to vector<8x16xf32>
    %189 = arith.negf %188 : vector<8x16xf32>
    %190 = math.exp %189 : vector<8x16xf32>
    %cst_85 = arith.constant 1.000000e+00 : f32
    %191 = vector.broadcast %cst_85 : f32 to vector<8x16xf32>
    %192 = arith.addf %191, %190 : vector<8x16xf32>
    %193 = arith.divf %191, %192 : vector<8x16xf32>
    %194 = arith.mulf %185, %165 : vector<8x16xf32>
    %195 = arith.mulf %179, %187 : vector<8x16xf32>
    %196 = arith.addf %194, %195 : vector<8x16xf32>
    %197 = math.tanh %196 : vector<8x16xf32>
    %198 = arith.mulf %193, %197 : vector<8x16xf32>
    %cst_86 = arith.constant 5.000000e-01 : f32
    %199 = vector.broadcast %cst_86 : f32 to vector<8x1xf32>
    %200 = arith.cmpf ogt, %173, %199 : vector<8x1xf32>
    %201 = vector.shape_cast %200 : vector<8x1xi1> to vector<8x1xi1>
    %202 = vector.broadcast %201 : vector<8x1xi1> to vector<8x16xi1>
    %203 = arith.select %202, %198, %164 : vector<8x16xi1>, vector<8x16xf32>
    %c0_87 = arith.constant 0 : index
    %c0_88 = arith.constant 0 : index
    %204 = vector.load %arg6[%c0_87, %c0_88] : memref<8x16xf32, #tpu.memory_space<vmem>>, vector<8x16xf32>
    tpu.vector_store %arg6[%c0_87, %c0_88], %203 {strides = array<i32>} : memref<8x16xf32, #tpu.memory_space<vmem>>, vector<8x16xf32>,
    %205 = vector.shape_cast %200 : vector<8x1xi1> to vector<8x1xi1>
    %206 = vector.broadcast %205 : vector<8x1xi1> to vector<8x16xi1>
    %207 = arith.select %206, %196, %165 : vector<8x16xi1>, vector<8x16xf32>
    %c0_89 = arith.constant 0 : index
    %c0_90 = arith.constant 0 : index
    %208 = vector.load %arg7[%c0_89, %c0_90] : memref<8x16xf32, #tpu.memory_space<vmem>>, vector<8x16xf32>
    tpu.vector_store %arg7[%c0_89, %c0_90], %207 {strides = array<i32>} : memref<8x16xf32, #tpu.memory_space<vmem>>, vector<8x16xf32>,
    %cst_91 = arith.constant 0.000000e+00 : f32
    %209 = vector.shape_cast %200 : vector<8x1xi1> to vector<8x1xi1>
    %210 = vector.broadcast %209 : vector<8x1xi1> to vector<8x16xi1>
    %211 = vector.broadcast %cst_91 : f32 to vector<8x16xf32>
    %212 = arith.select %210, %198, %211 : vector<8x16xi1>, vector<8x16xf32>
    %c0_92 = arith.constant 0 : index
    %213 = arith.index_cast %c3_i32 : i32 to index
    %c0_93 = arith.constant 0 : index
    %c0_94 = arith.constant 0 : index
    %214 = vector.load %arg5[%c0_92, %213, %c0_93, %c0_94] : memref<1x8x8x16xf32, #tpu.memory_space<vmem>>, vector<1x1x8x16xf32>
    %215 = vector.shape_cast %214 : vector<1x1x8x16xf32> to vector<8x16xf32>
    %216 = vector.shape_cast %212 : vector<8x16xf32> to vector<1x1x8x16xf32>
    tpu.vector_store %arg5[%c0_92, %213, %c0_93, %c0_94], %216 {strides = array<i32>} : memref<1x8x8x16xf32, #tpu.memory_space<vmem>>, vector<1x1x8x16xf32>,
    %c4_i32 = arith.constant 4 : i32
    %c0_95 = arith.constant 0 : index
    %c0_96 = arith.constant 0 : index
    %217 = vector.load %arg6[%c0_95, %c0_96] : memref<8x16xf32, #tpu.memory_space<vmem>>, vector<8x16xf32>
    %c0_97 = arith.constant 0 : index
    %c0_98 = arith.constant 0 : index
    %218 = vector.load %arg7[%c0_97, %c0_98] : memref<8x16xf32, #tpu.memory_space<vmem>>, vector<8x16xf32>
    %c0_99 = arith.constant 0 : index
    %219 = arith.index_cast %c4_i32 : i32 to index
    %c0_100 = arith.constant 0 : index
    %c0_101 = arith.constant 0 : index
    %220 = vector.load %arg2[%c0_99, %219, %c0_100, %c0_101] : memref<1x8x8x64xf32, #tpu.memory_space<vmem>>, vector<1x1x8x64xf32>
    %221 = vector.shape_cast %220 : vector<1x1x8x64xf32> to vector<8x64xf32>
    %cst_102 = arith.constant dense<0.000000e+00> : vector<8x64xf32>
    %222 = tpu.matmul %217, %4, %cst_102 {dimension_numbers = #tpu.dot_dimension_numbers<[1], [0], [0], [1], [0, 0, 1, 1], [], []>} : vector<8x16xf32>, vector<16x64xf32>, vector<8x64xf32> -> vector<8x64xf32>
    %223 = arith.addf %221, %222 : vector<8x64xf32>
    %c0_103 = arith.constant 0 : index
    %224 = arith.index_cast %c4_i32 : i32 to index
    %c0_104 = arith.constant 0 : index
    %c0_105 = arith.constant 0 : index
    %225 = vector.load %arg3[%c0_103, %224, %c0_104, %c0_105] : memref<1x8x8x1xf32, #tpu.memory_space<vmem>>, vector<1x1x8x1xf32>
    %226 = vector.shape_cast %225 : vector<1x1x8x1xf32> to vector<8x1xf32>
    %227 = vector.extract_strided_slice %223 {offsets = [0, 0], sizes = [8, 16], strides = [1, 1]} : vector<8x64xf32> to vector<8x16xf32>
    %228 = arith.negf %227 : vector<8x16xf32>
    %229 = math.exp %228 : vector<8x16xf32>
    %cst_106 = arith.constant 1.000000e+00 : f32
    %230 = vector.broadcast %cst_106 : f32 to vector<8x16xf32>
    %231 = arith.addf %230, %229 : vector<8x16xf32>
    %232 = arith.divf %230, %231 : vector<8x16xf32>
    %233 = vector.extract_strided_slice %223 {offsets = [0, 16], sizes = [8, 16], strides = [1, 1]} : vector<8x64xf32> to vector<8x16xf32>
    %234 = arith.negf %233 : vector<8x16xf32>
    %235 = math.exp %234 : vector<8x16xf32>
    %cst_107 = arith.constant 1.000000e+00 : f32
    %236 = vector.broadcast %cst_107 : f32 to vector<8x16xf32>
    %237 = arith.addf %236, %235 : vector<8x16xf32>
    %238 = arith.divf %236, %237 : vector<8x16xf32>
    %239 = vector.extract_strided_slice %223 {offsets = [0, 32], sizes = [8, 16], strides = [1, 1]} : vector<8x64xf32> to vector<8x16xf32>
    %240 = math.tanh %239 : vector<8x16xf32>
    %241 = vector.extract_strided_slice %223 {offsets = [0, 48], sizes = [8, 16], strides = [1, 1]} : vector<8x64xf32> to vector<8x16xf32>
    %242 = arith.negf %241 : vector<8x16xf32>
    %243 = math.exp %242 : vector<8x16xf32>
    %cst_108 = arith.constant 1.000000e+00 : f32
    %244 = vector.broadcast %cst_108 : f32 to vector<8x16xf32>
    %245 = arith.addf %244, %243 : vector<8x16xf32>
    %246 = arith.divf %244, %245 : vector<8x16xf32>
    %247 = arith.mulf %238, %218 : vector<8x16xf32>
    %248 = arith.mulf %232, %240 : vector<8x16xf32>
    %249 = arith.addf %247, %248 : vector<8x16xf32>
    %250 = math.tanh %249 : vector<8x16xf32>
    %251 = arith.mulf %246, %250 : vector<8x16xf32>
    %cst_109 = arith.constant 5.000000e-01 : f32
    %252 = vector.broadcast %cst_109 : f32 to vector<8x1xf32>
    %253 = arith.cmpf ogt, %226, %252 : vector<8x1xf32>
    %254 = vector.shape_cast %253 : vector<8x1xi1> to vector<8x1xi1>
    %255 = vector.broadcast %254 : vector<8x1xi1> to vector<8x16xi1>
    %256 = arith.select %255, %251, %217 : vector<8x16xi1>, vector<8x16xf32>
    %c0_110 = arith.constant 0 : index
    %c0_111 = arith.constant 0 : index
    %257 = vector.load %arg6[%c0_110, %c0_111] : memref<8x16xf32, #tpu.memory_space<vmem>>, vector<8x16xf32>
    tpu.vector_store %arg6[%c0_110, %c0_111], %256 {strides = array<i32>} : memref<8x16xf32, #tpu.memory_space<vmem>>, vector<8x16xf32>,
    %258 = vector.shape_cast %253 : vector<8x1xi1> to vector<8x1xi1>
    %259 = vector.broadcast %258 : vector<8x1xi1> to vector<8x16xi1>
    %260 = arith.select %259, %249, %218 : vector<8x16xi1>, vector<8x16xf32>
    %c0_112 = arith.constant 0 : index
    %c0_113 = arith.constant 0 : index
    %261 = vector.load %arg7[%c0_112, %c0_113] : memref<8x16xf32, #tpu.memory_space<vmem>>, vector<8x16xf32>
    tpu.vector_store %arg7[%c0_112, %c0_113], %260 {strides = array<i32>} : memref<8x16xf32, #tpu.memory_space<vmem>>, vector<8x16xf32>,
    %cst_114 = arith.constant 0.000000e+00 : f32
    %262 = vector.shape_cast %253 : vector<8x1xi1> to vector<8x1xi1>
    %263 = vector.broadcast %262 : vector<8x1xi1> to vector<8x16xi1>
    %264 = vector.broadcast %cst_114 : f32 to vector<8x16xf32>
    %265 = arith.select %263, %251, %264 : vector<8x16xi1>, vector<8x16xf32>
    %c0_115 = arith.constant 0 : index
    %266 = arith.index_cast %c4_i32 : i32 to index
    %c0_116 = arith.constant 0 : index
    %c0_117 = arith.constant 0 : index
    %267 = vector.load %arg5[%c0_115, %266, %c0_116, %c0_117] : memref<1x8x8x16xf32, #tpu.memory_space<vmem>>, vector<1x1x8x16xf32>
    %268 = vector.shape_cast %267 : vector<1x1x8x16xf32> to vector<8x16xf32>
    %269 = vector.shape_cast %265 : vector<8x16xf32> to vector<1x1x8x16xf32>
    tpu.vector_store %arg5[%c0_115, %266, %c0_116, %c0_117], %269 {strides = array<i32>} : memref<1x8x8x16xf32, #tpu.memory_space<vmem>>, vector<1x1x8x16xf32>,
    %c5_i32 = arith.constant 5 : i32
    %c0_118 = arith.constant 0 : index
    %c0_119 = arith.constant 0 : index
    %270 = vector.load %arg6[%c0_118, %c0_119] : memref<8x16xf32, #tpu.memory_space<vmem>>, vector<8x16xf32>
    %c0_120 = arith.constant 0 : index
    %c0_121 = arith.constant 0 : index
    %271 = vector.load %arg7[%c0_120, %c0_121] : memref<8x16xf32, #tpu.memory_space<vmem>>, vector<8x16xf32>
    %c0_122 = arith.constant 0 : index
    %272 = arith.index_cast %c5_i32 : i32 to index
    %c0_123 = arith.constant 0 : index
    %c0_124 = arith.constant 0 : index
    %273 = vector.load %arg2[%c0_122, %272, %c0_123, %c0_124] : memref<1x8x8x64xf32, #tpu.memory_space<vmem>>, vector<1x1x8x64xf32>
    %274 = vector.shape_cast %273 : vector<1x1x8x64xf32> to vector<8x64xf32>
    %cst_125 = arith.constant dense<0.000000e+00> : vector<8x64xf32>
    %275 = tpu.matmul %270, %4, %cst_125 {dimension_numbers = #tpu.dot_dimension_numbers<[1], [0], [0], [1], [0, 0, 1, 1], [], []>} : vector<8x16xf32>, vector<16x64xf32>, vector<8x64xf32> -> vector<8x64xf32>
    %276 = arith.addf %274, %275 : vector<8x64xf32>
    %c0_126 = arith.constant 0 : index
    %277 = arith.index_cast %c5_i32 : i32 to index
    %c0_127 = arith.constant 0 : index
    %c0_128 = arith.constant 0 : index
    %278 = vector.load %arg3[%c0_126, %277, %c0_127, %c0_128] : memref<1x8x8x1xf32, #tpu.memory_space<vmem>>, vector<1x1x8x1xf32>
    %279 = vector.shape_cast %278 : vector<1x1x8x1xf32> to vector<8x1xf32>
    %280 = vector.extract_strided_slice %276 {offsets = [0, 0], sizes = [8, 16], strides = [1, 1]} : vector<8x64xf32> to vector<8x16xf32>
    %281 = arith.negf %280 : vector<8x16xf32>
    %282 = math.exp %281 : vector<8x16xf32>
    %cst_129 = arith.constant 1.000000e+00 : f32
    %283 = vector.broadcast %cst_129 : f32 to vector<8x16xf32>
    %284 = arith.addf %283, %282 : vector<8x16xf32>
    %285 = arith.divf %283, %284 : vector<8x16xf32>
    %286 = vector.extract_strided_slice %276 {offsets = [0, 16], sizes = [8, 16], strides = [1, 1]} : vector<8x64xf32> to vector<8x16xf32>
    %287 = arith.negf %286 : vector<8x16xf32>
    %288 = math.exp %287 : vector<8x16xf32>
    %cst_130 = arith.constant 1.000000e+00 : f32
    %289 = vector.broadcast %cst_130 : f32 to vector<8x16xf32>
    %290 = arith.addf %289, %288 : vector<8x16xf32>
    %291 = arith.divf %289, %290 : vector<8x16xf32>
    %292 = vector.extract_strided_slice %276 {offsets = [0, 32], sizes = [8, 16], strides = [1, 1]} : vector<8x64xf32> to vector<8x16xf32>
    %293 = math.tanh %292 : vector<8x16xf32>
    %294 = vector.extract_strided_slice %276 {offsets = [0, 48], sizes = [8, 16], strides = [1, 1]} : vector<8x64xf32> to vector<8x16xf32>
    %295 = arith.negf %294 : vector<8x16xf32>
    %296 = math.exp %295 : vector<8x16xf32>
    %cst_131 = arith.constant 1.000000e+00 : f32
    %297 = vector.broadcast %cst_131 : f32 to vector<8x16xf32>
    %298 = arith.addf %297, %296 : vector<8x16xf32>
    %299 = arith.divf %297, %298 : vector<8x16xf32>
    %300 = arith.mulf %291, %271 : vector<8x16xf32>
    %301 = arith.mulf %285, %293 : vector<8x16xf32>
    %302 = arith.addf %300, %301 : vector<8x16xf32>
    %303 = math.tanh %302 : vector<8x16xf32>
    %304 = arith.mulf %299, %303 : vector<8x16xf32>
    %cst_132 = arith.constant 5.000000e-01 : f32
    %305 = vector.broadcast %cst_132 : f32 to vector<8x1xf32>
    %306 = arith.cmpf ogt, %279, %305 : vector<8x1xf32>
    %307 = vector.shape_cast %306 : vector<8x1xi1> to vector<8x1xi1>
    %308 = vector.broadcast %307 : vector<8x1xi1> to vector<8x16xi1>
    %309 = arith.select %308, %304, %270 : vector<8x16xi1>, vector<8x16xf32>
    %c0_133 = arith.constant 0 : index
    %c0_134 = arith.constant 0 : index
    %310 = vector.load %arg6[%c0_133, %c0_134] : memref<8x16xf32, #tpu.memory_space<vmem>>, vector<8x16xf32>
    tpu.vector_store %arg6[%c0_133, %c0_134], %309 {strides = array<i32>} : memref<8x16xf32, #tpu.memory_space<vmem>>, vector<8x16xf32>,
    %311 = vector.shape_cast %306 : vector<8x1xi1> to vector<8x1xi1>
    %312 = vector.broadcast %311 : vector<8x1xi1> to vector<8x16xi1>
    %313 = arith.select %312, %302, %271 : vector<8x16xi1>, vector<8x16xf32>
    %c0_135 = arith.constant 0 : index
    %c0_136 = arith.constant 0 : index
    %314 = vector.load %arg7[%c0_135, %c0_136] : memref<8x16xf32, #tpu.memory_space<vmem>>, vector<8x16xf32>
    tpu.vector_store %arg7[%c0_135, %c0_136], %313 {strides = array<i32>} : memref<8x16xf32, #tpu.memory_space<vmem>>, vector<8x16xf32>,
    %cst_137 = arith.constant 0.000000e+00 : f32
    %315 = vector.shape_cast %306 : vector<8x1xi1> to vector<8x1xi1>
    %316 = vector.broadcast %315 : vector<8x1xi1> to vector<8x16xi1>
    %317 = vector.broadcast %cst_137 : f32 to vector<8x16xf32>
    %318 = arith.select %316, %304, %317 : vector<8x16xi1>, vector<8x16xf32>
    %c0_138 = arith.constant 0 : index
    %319 = arith.index_cast %c5_i32 : i32 to index
    %c0_139 = arith.constant 0 : index
    %c0_140 = arith.constant 0 : index
    %320 = vector.load %arg5[%c0_138, %319, %c0_139, %c0_140] : memref<1x8x8x16xf32, #tpu.memory_space<vmem>>, vector<1x1x8x16xf32>
    %321 = vector.shape_cast %320 : vector<1x1x8x16xf32> to vector<8x16xf32>
    %322 = vector.shape_cast %318 : vector<8x16xf32> to vector<1x1x8x16xf32>
    tpu.vector_store %arg5[%c0_138, %319, %c0_139, %c0_140], %322 {strides = array<i32>} : memref<1x8x8x16xf32, #tpu.memory_space<vmem>>, vector<1x1x8x16xf32>,
    %c6_i32 = arith.constant 6 : i32
    %c0_141 = arith.constant 0 : index
    %c0_142 = arith.constant 0 : index
    %323 = vector.load %arg6[%c0_141, %c0_142] : memref<8x16xf32, #tpu.memory_space<vmem>>, vector<8x16xf32>
    %c0_143 = arith.constant 0 : index
    %c0_144 = arith.constant 0 : index
    %324 = vector.load %arg7[%c0_143, %c0_144] : memref<8x16xf32, #tpu.memory_space<vmem>>, vector<8x16xf32>
    %c0_145 = arith.constant 0 : index
    %325 = arith.index_cast %c6_i32 : i32 to index
    %c0_146 = arith.constant 0 : index
    %c0_147 = arith.constant 0 : index
    %326 = vector.load %arg2[%c0_145, %325, %c0_146, %c0_147] : memref<1x8x8x64xf32, #tpu.memory_space<vmem>>, vector<1x1x8x64xf32>
    %327 = vector.shape_cast %326 : vector<1x1x8x64xf32> to vector<8x64xf32>
    %cst_148 = arith.constant dense<0.000000e+00> : vector<8x64xf32>
    %328 = tpu.matmul %323, %4, %cst_148 {dimension_numbers = #tpu.dot_dimension_numbers<[1], [0], [0], [1], [0, 0, 1, 1], [], []>} : vector<8x16xf32>, vector<16x64xf32>, vector<8x64xf32> -> vector<8x64xf32>
    %329 = arith.addf %327, %328 : vector<8x64xf32>
    %c0_149 = arith.constant 0 : index
    %330 = arith.index_cast %c6_i32 : i32 to index
    %c0_150 = arith.constant 0 : index
    %c0_151 = arith.constant 0 : index
    %331 = vector.load %arg3[%c0_149, %330, %c0_150, %c0_151] : memref<1x8x8x1xf32, #tpu.memory_space<vmem>>, vector<1x1x8x1xf32>
    %332 = vector.shape_cast %331 : vector<1x1x8x1xf32> to vector<8x1xf32>
    %333 = vector.extract_strided_slice %329 {offsets = [0, 0], sizes = [8, 16], strides = [1, 1]} : vector<8x64xf32> to vector<8x16xf32>
    %334 = arith.negf %333 : vector<8x16xf32>
    %335 = math.exp %334 : vector<8x16xf32>
    %cst_152 = arith.constant 1.000000e+00 : f32
    %336 = vector.broadcast %cst_152 : f32 to vector<8x16xf32>
    %337 = arith.addf %336, %335 : vector<8x16xf32>
    %338 = arith.divf %336, %337 : vector<8x16xf32>
    %339 = vector.extract_strided_slice %329 {offsets = [0, 16], sizes = [8, 16], strides = [1, 1]} : vector<8x64xf32> to vector<8x16xf32>
    %340 = arith.negf %339 : vector<8x16xf32>
    %341 = math.exp %340 : vector<8x16xf32>
    %cst_153 = arith.constant 1.000000e+00 : f32
    %342 = vector.broadcast %cst_153 : f32 to vector<8x16xf32>
    %343 = arith.addf %342, %341 : vector<8x16xf32>
    %344 = arith.divf %342, %343 : vector<8x16xf32>
    %345 = vector.extract_strided_slice %329 {offsets = [0, 32], sizes = [8, 16], strides = [1, 1]} : vector<8x64xf32> to vector<8x16xf32>
    %346 = math.tanh %345 : vector<8x16xf32>
    %347 = vector.extract_strided_slice %329 {offsets = [0, 48], sizes = [8, 16], strides = [1, 1]} : vector<8x64xf32> to vector<8x16xf32>
    %348 = arith.negf %347 : vector<8x16xf32>
    %349 = math.exp %348 : vector<8x16xf32>
    %cst_154 = arith.constant 1.000000e+00 : f32
    %350 = vector.broadcast %cst_154 : f32 to vector<8x16xf32>
    %351 = arith.addf %350, %349 : vector<8x16xf32>
    %352 = arith.divf %350, %351 : vector<8x16xf32>
    %353 = arith.mulf %344, %324 : vector<8x16xf32>
    %354 = arith.mulf %338, %346 : vector<8x16xf32>
    %355 = arith.addf %353, %354 : vector<8x16xf32>
    %356 = math.tanh %355 : vector<8x16xf32>
    %357 = arith.mulf %352, %356 : vector<8x16xf32>
    %cst_155 = arith.constant 5.000000e-01 : f32
    %358 = vector.broadcast %cst_155 : f32 to vector<8x1xf32>
    %359 = arith.cmpf ogt, %332, %358 : vector<8x1xf32>
    %360 = vector.shape_cast %359 : vector<8x1xi1> to vector<8x1xi1>
    %361 = vector.broadcast %360 : vector<8x1xi1> to vector<8x16xi1>
    %362 = arith.select %361, %357, %323 : vector<8x16xi1>, vector<8x16xf32>
    %c0_156 = arith.constant 0 : index
    %c0_157 = arith.constant 0 : index
    %363 = vector.load %arg6[%c0_156, %c0_157] : memref<8x16xf32, #tpu.memory_space<vmem>>, vector<8x16xf32>
    tpu.vector_store %arg6[%c0_156, %c0_157], %362 {strides = array<i32>} : memref<8x16xf32, #tpu.memory_space<vmem>>, vector<8x16xf32>,
    %364 = vector.shape_cast %359 : vector<8x1xi1> to vector<8x1xi1>
    %365 = vector.broadcast %364 : vector<8x1xi1> to vector<8x16xi1>
    %366 = arith.select %365, %355, %324 : vector<8x16xi1>, vector<8x16xf32>
    %c0_158 = arith.constant 0 : index
    %c0_159 = arith.constant 0 : index
    %367 = vector.load %arg7[%c0_158, %c0_159] : memref<8x16xf32, #tpu.memory_space<vmem>>, vector<8x16xf32>
    tpu.vector_store %arg7[%c0_158, %c0_159], %366 {strides = array<i32>} : memref<8x16xf32, #tpu.memory_space<vmem>>, vector<8x16xf32>,
    %cst_160 = arith.constant 0.000000e+00 : f32
    %368 = vector.shape_cast %359 : vector<8x1xi1> to vector<8x1xi1>
    %369 = vector.broadcast %368 : vector<8x1xi1> to vector<8x16xi1>
    %370 = vector.broadcast %cst_160 : f32 to vector<8x16xf32>
    %371 = arith.select %369, %357, %370 : vector<8x16xi1>, vector<8x16xf32>
    %c0_161 = arith.constant 0 : index
    %372 = arith.index_cast %c6_i32 : i32 to index
    %c0_162 = arith.constant 0 : index
    %c0_163 = arith.constant 0 : index
    %373 = vector.load %arg5[%c0_161, %372, %c0_162, %c0_163] : memref<1x8x8x16xf32, #tpu.memory_space<vmem>>, vector<1x1x8x16xf32>
    %374 = vector.shape_cast %373 : vector<1x1x8x16xf32> to vector<8x16xf32>
    %375 = vector.shape_cast %371 : vector<8x16xf32> to vector<1x1x8x16xf32>
    tpu.vector_store %arg5[%c0_161, %372, %c0_162, %c0_163], %375 {strides = array<i32>} : memref<1x8x8x16xf32, #tpu.memory_space<vmem>>, vector<1x1x8x16xf32>,
    %c7_i32 = arith.constant 7 : i32
    %c0_164 = arith.constant 0 : index
    %c0_165 = arith.constant 0 : index
    %376 = vector.load %arg6[%c0_164, %c0_165] : memref<8x16xf32, #tpu.memory_space<vmem>>, vector<8x16xf32>
    %c0_166 = arith.constant 0 : index
    %c0_167 = arith.constant 0 : index
    %377 = vector.load %arg7[%c0_166, %c0_167] : memref<8x16xf32, #tpu.memory_space<vmem>>, vector<8x16xf32>
    %c0_168 = arith.constant 0 : index
    %378 = arith.index_cast %c7_i32 : i32 to index
    %c0_169 = arith.constant 0 : index
    %c0_170 = arith.constant 0 : index
    %379 = vector.load %arg2[%c0_168, %378, %c0_169, %c0_170] : memref<1x8x8x64xf32, #tpu.memory_space<vmem>>, vector<1x1x8x64xf32>
    %380 = vector.shape_cast %379 : vector<1x1x8x64xf32> to vector<8x64xf32>
    %cst_171 = arith.constant dense<0.000000e+00> : vector<8x64xf32>
    %381 = tpu.matmul %376, %4, %cst_171 {dimension_numbers = #tpu.dot_dimension_numbers<[1], [0], [0], [1], [0, 0, 1, 1], [], []>} : vector<8x16xf32>, vector<16x64xf32>, vector<8x64xf32> -> vector<8x64xf32>
    %382 = arith.addf %380, %381 : vector<8x64xf32>
    %c0_172 = arith.constant 0 : index
    %383 = arith.index_cast %c7_i32 : i32 to index
    %c0_173 = arith.constant 0 : index
    %c0_174 = arith.constant 0 : index
    %384 = vector.load %arg3[%c0_172, %383, %c0_173, %c0_174] : memref<1x8x8x1xf32, #tpu.memory_space<vmem>>, vector<1x1x8x1xf32>
    %385 = vector.shape_cast %384 : vector<1x1x8x1xf32> to vector<8x1xf32>
    %386 = vector.extract_strided_slice %382 {offsets = [0, 0], sizes = [8, 16], strides = [1, 1]} : vector<8x64xf32> to vector<8x16xf32>
    %387 = arith.negf %386 : vector<8x16xf32>
    %388 = math.exp %387 : vector<8x16xf32>
    %cst_175 = arith.constant 1.000000e+00 : f32
    %389 = vector.broadcast %cst_175 : f32 to vector<8x16xf32>
    %390 = arith.addf %389, %388 : vector<8x16xf32>
    %391 = arith.divf %389, %390 : vector<8x16xf32>
    %392 = vector.extract_strided_slice %382 {offsets = [0, 16], sizes = [8, 16], strides = [1, 1]} : vector<8x64xf32> to vector<8x16xf32>
    %393 = arith.negf %392 : vector<8x16xf32>
    %394 = math.exp %393 : vector<8x16xf32>
    %cst_176 = arith.constant 1.000000e+00 : f32
    %395 = vector.broadcast %cst_176 : f32 to vector<8x16xf32>
    %396 = arith.addf %395, %394 : vector<8x16xf32>
    %397 = arith.divf %395, %396 : vector<8x16xf32>
    %398 = vector.extract_strided_slice %382 {offsets = [0, 32], sizes = [8, 16], strides = [1, 1]} : vector<8x64xf32> to vector<8x16xf32>
    %399 = math.tanh %398 : vector<8x16xf32>
    %400 = vector.extract_strided_slice %382 {offsets = [0, 48], sizes = [8, 16], strides = [1, 1]} : vector<8x64xf32> to vector<8x16xf32>
    %401 = arith.negf %400 : vector<8x16xf32>
    %402 = math.exp %401 : vector<8x16xf32>
    %cst_177 = arith.constant 1.000000e+00 : f32
    %403 = vector.broadcast %cst_177 : f32 to vector<8x16xf32>
    %404 = arith.addf %403, %402 : vector<8x16xf32>
    %405 = arith.divf %403, %404 : vector<8x16xf32>
    %406 = arith.mulf %397, %377 : vector<8x16xf32>
    %407 = arith.mulf %391, %399 : vector<8x16xf32>
    %408 = arith.addf %406, %407 : vector<8x16xf32>
    %409 = math.tanh %408 : vector<8x16xf32>
    %410 = arith.mulf %405, %409 : vector<8x16xf32>
    %cst_178 = arith.constant 5.000000e-01 : f32
    %411 = vector.broadcast %cst_178 : f32 to vector<8x1xf32>
    %412 = arith.cmpf ogt, %385, %411 : vector<8x1xf32>
    %413 = vector.shape_cast %412 : vector<8x1xi1> to vector<8x1xi1>
    %414 = vector.broadcast %413 : vector<8x1xi1> to vector<8x16xi1>
    %415 = arith.select %414, %410, %376 : vector<8x16xi1>, vector<8x16xf32>
    %c0_179 = arith.constant 0 : index
    %c0_180 = arith.constant 0 : index
    %416 = vector.load %arg6[%c0_179, %c0_180] : memref<8x16xf32, #tpu.memory_space<vmem>>, vector<8x16xf32>
    tpu.vector_store %arg6[%c0_179, %c0_180], %415 {strides = array<i32>} : memref<8x16xf32, #tpu.memory_space<vmem>>, vector<8x16xf32>,
    %417 = vector.shape_cast %412 : vector<8x1xi1> to vector<8x1xi1>
    %418 = vector.broadcast %417 : vector<8x1xi1> to vector<8x16xi1>
    %419 = arith.select %418, %408, %377 : vector<8x16xi1>, vector<8x16xf32>
    %c0_181 = arith.constant 0 : index
    %c0_182 = arith.constant 0 : index
    %420 = vector.load %arg7[%c0_181, %c0_182] : memref<8x16xf32, #tpu.memory_space<vmem>>, vector<8x16xf32>
    tpu.vector_store %arg7[%c0_181, %c0_182], %419 {strides = array<i32>} : memref<8x16xf32, #tpu.memory_space<vmem>>, vector<8x16xf32>,
    %cst_183 = arith.constant 0.000000e+00 : f32
    %421 = vector.shape_cast %412 : vector<8x1xi1> to vector<8x1xi1>
    %422 = vector.broadcast %421 : vector<8x1xi1> to vector<8x16xi1>
    %423 = vector.broadcast %cst_183 : f32 to vector<8x16xf32>
    %424 = arith.select %422, %410, %423 : vector<8x16xi1>, vector<8x16xf32>
    %c0_184 = arith.constant 0 : index
    %425 = arith.index_cast %c7_i32 : i32 to index
    %c0_185 = arith.constant 0 : index
    %c0_186 = arith.constant 0 : index
    %426 = vector.load %arg5[%c0_184, %425, %c0_185, %c0_186] : memref<1x8x8x16xf32, #tpu.memory_space<vmem>>, vector<1x1x8x16xf32>
    %427 = vector.shape_cast %426 : vector<1x1x8x16xf32> to vector<8x16xf32>
    %428 = vector.shape_cast %424 : vector<8x16xf32> to vector<1x1x8x16xf32>
    tpu.vector_store %arg5[%c0_184, %425, %c0_185, %c0_186], %428 {strides = array<i32>} : memref<1x8x8x16xf32, #tpu.memory_space<vmem>>, vector<1x1x8x16xf32>,
    %c8_i32 = arith.constant 8 : i32
    return
  }
  func.func @transform_0(%arg0: i32, %arg1: i32) -> (i32, i32, i32, i32) {
    %c0_i32 = arith.constant 0 : i32
    %c0_i32_0 = arith.constant 0 : i32
    %c0_i32_1 = arith.constant 0 : i32
    return %arg0, %arg1, %c0_i32, %c0_i32_0 : i32, i32, i32, i32
  }
  func.func @transform_1(%arg0: i32, %arg1: i32) -> (i32, i32, i32, i32) {
    %c0_i32 = arith.constant 0 : i32
    %c0_i32_0 = arith.constant 0 : i32
    %c0_i32_1 = arith.constant 0 : i32
    return %arg0, %arg1, %c0_i32, %c0_i32_0 : i32, i32, i32, i32
  }
  func.func @transform_2(%arg0: i32, %arg1: i32) -> (i32, i32, i32) {
    %c0_i32 = arith.constant 0 : i32
    %c0_i32_0 = arith.constant 0 : i32
    %c0_i32_1 = arith.constant 0 : i32
    return %arg0, %c0_i32, %c0_i32_0 : i32, i32, i32
  }
  func.func @transform_3(%arg0: i32, %arg1: i32) -> (i32, i32, i32, i32) {
    %c0_i32 = arith.constant 0 : i32
    %c0_i32_0 = arith.constant 0 : i32
    %c0_i32_1 = arith.constant 0 : i32
    return %arg0, %arg1, %c0_i32, %c0_i32_0 : i32, i32, i32, i32
  }
}

module attributes {stable_mosaic.version = 11 : i64} {
  func.func @_linear_kernel(%arg0: i32, %arg1: memref<32x64xf32, #tpu.memory_space<vmem>>, %arg2: memref<64x128xf32, #tpu.memory_space<vmem>>, %arg3: memref<1x128xf32, #tpu.memory_space<vmem>>, %arg4: memref<32x128xf32, #tpu.memory_space<vmem>>) attributes {dimension_semantics = [#tpu.dimension_semantics<parallel>], iteration_bounds = array<i64: 1>, scalar_prefetch = 0 : i64, scratch_operands = 0 : i64, tpu.core_type = #tpu.core_type<tc>, window_params = [{transform_indices = @transform_0, window_bounds = array<i64: 32, 64>}, {pipeline_mode = #tpu.pipeline_mode<synchronous>, transform_indices = @transform_1, window_bounds = array<i64: 64, 128>}, {pipeline_mode = #tpu.pipeline_mode<synchronous>, transform_indices = @transform_2, window_bounds = array<i64: 1, 128>}, {transform_indices = @transform_3, window_bounds = array<i64: 32, 128>}]} {
    %c0 = arith.constant 0 : index
    %c0_0 = arith.constant 0 : index
    %0 = vector.load %arg1[%c0, %c0_0] : memref<32x64xf32, #tpu.memory_space<vmem>>, vector<32x64xf32>
    %c0_1 = arith.constant 0 : index
    %c0_2 = arith.constant 0 : index
    %1 = vector.load %arg2[%c0_1, %c0_2] : memref<64x128xf32, #tpu.memory_space<vmem>>, vector<64x128xf32>
    %cst = arith.constant dense<0.000000e+00> : vector<32x128xf32>
    %2 = tpu.matmul %0, %1, %cst {dimension_numbers = #tpu.dot_dimension_numbers<[1], [0], [0], [1], [0, 0, 1, 1], [], []>} : vector<32x64xf32>, vector<64x128xf32>, vector<32x128xf32> -> vector<32x128xf32>
    %c0_3 = arith.constant 0 : index
    %c0_4 = arith.constant 0 : index
    %3 = vector.load %arg3[%c0_3, %c0_4] : memref<1x128xf32, #tpu.memory_space<vmem>>, vector<1x128xf32>
    %4 = vector.broadcast %3 : vector<1x128xf32> to vector<32x128xf32>
    %5 = arith.addf %2, %4 : vector<32x128xf32>
    %c0_5 = arith.constant 0 : index
    %c0_6 = arith.constant 0 : index
    %6 = vector.load %arg4[%c0_5, %c0_6] : memref<32x128xf32, #tpu.memory_space<vmem>>, vector<32x128xf32>
    tpu.vector_store %arg4[%c0_5, %c0_6], %5 {strides = array<i32>} : memref<32x128xf32, #tpu.memory_space<vmem>>, vector<32x128xf32>,
    return
  }
  func.func @transform_0(%arg0: i32) -> (i32, i32) {
    %c0_i32 = arith.constant 0 : i32
    %c0_i32_0 = arith.constant 0 : i32
    return %arg0, %c0_i32 : i32, i32
  }
  func.func @transform_1(%arg0: i32) -> (i32, i32) {
    %c0_i32 = arith.constant 0 : i32
    %c0_i32_0 = arith.constant 0 : i32
    %c0_i32_1 = arith.constant 0 : i32
    return %c0_i32, %c0_i32_0 : i32, i32
  }
  func.func @transform_2(%arg0: i32) -> (i32, i32) {
    %c0_i32 = arith.constant 0 : i32
    %c0_i32_0 = arith.constant 0 : i32
    %c0_i32_1 = arith.constant 0 : i32
    return %c0_i32, %c0_i32_0 : i32, i32
  }
  func.func @transform_3(%arg0: i32) -> (i32, i32) {
    %c0_i32 = arith.constant 0 : i32
    %c0_i32_0 = arith.constant 0 : i32
    return %arg0, %c0_i32 : i32, i32
  }
}

module attributes {stable_mosaic.version = 11 : i64} {
  func.func @_linear_kernel(%arg0: i32, %arg1: memref<16x64xf32, #tpu.memory_space<vmem>>, %arg2: memref<64x128xf32, #tpu.memory_space<vmem>>, %arg3: memref<1x128xf32, #tpu.memory_space<vmem>>, %arg4: memref<16x128xf32, #tpu.memory_space<vmem>>) attributes {dimension_semantics = [#tpu.dimension_semantics<parallel>], iteration_bounds = array<i64: 1>, scalar_prefetch = 0 : i64, scratch_operands = 0 : i64, tpu.core_type = #tpu.core_type<tc>, window_params = [{transform_indices = @transform_0, window_bounds = array<i64: 16, 64>}, {pipeline_mode = #tpu.pipeline_mode<synchronous>, transform_indices = @transform_1, window_bounds = array<i64: 64, 128>}, {pipeline_mode = #tpu.pipeline_mode<synchronous>, transform_indices = @transform_2, window_bounds = array<i64: 1, 128>}, {transform_indices = @transform_3, window_bounds = array<i64: 16, 128>}]} {
    %c0 = arith.constant 0 : index
    %c0_0 = arith.constant 0 : index
    %0 = vector.load %arg1[%c0, %c0_0] : memref<16x64xf32, #tpu.memory_space<vmem>>, vector<16x64xf32>
    %c0_1 = arith.constant 0 : index
    %c0_2 = arith.constant 0 : index
    %1 = vector.load %arg2[%c0_1, %c0_2] : memref<64x128xf32, #tpu.memory_space<vmem>>, vector<64x128xf32>
    %cst = arith.constant dense<0.000000e+00> : vector<16x128xf32>
    %2 = tpu.matmul %0, %1, %cst {dimension_numbers = #tpu.dot_dimension_numbers<[1], [0], [0], [1], [0, 0, 1, 1], [], []>} : vector<16x64xf32>, vector<64x128xf32>, vector<16x128xf32> -> vector<16x128xf32>
    %c0_3 = arith.constant 0 : index
    %c0_4 = arith.constant 0 : index
    %3 = vector.load %arg3[%c0_3, %c0_4] : memref<1x128xf32, #tpu.memory_space<vmem>>, vector<1x128xf32>
    %4 = vector.broadcast %3 : vector<1x128xf32> to vector<16x128xf32>
    %5 = arith.addf %2, %4 : vector<16x128xf32>
    %c0_5 = arith.constant 0 : index
    %c0_6 = arith.constant 0 : index
    %6 = vector.load %arg4[%c0_5, %c0_6] : memref<16x128xf32, #tpu.memory_space<vmem>>, vector<16x128xf32>
    tpu.vector_store %arg4[%c0_5, %c0_6], %5 {strides = array<i32>} : memref<16x128xf32, #tpu.memory_space<vmem>>, vector<16x128xf32>,
    return
  }
  func.func @transform_0(%arg0: i32) -> (i32, i32) {
    %c0_i32 = arith.constant 0 : i32
    %c0_i32_0 = arith.constant 0 : i32
    return %arg0, %c0_i32 : i32, i32
  }
  func.func @transform_1(%arg0: i32) -> (i32, i32) {
    %c0_i32 = arith.constant 0 : i32
    %c0_i32_0 = arith.constant 0 : i32
    %c0_i32_1 = arith.constant 0 : i32
    return %c0_i32, %c0_i32_0 : i32, i32
  }
  func.func @transform_2(%arg0: i32) -> (i32, i32) {
    %c0_i32 = arith.constant 0 : i32
    %c0_i32_0 = arith.constant 0 : i32
    %c0_i32_1 = arith.constant 0 : i32
    return %c0_i32, %c0_i32_0 : i32, i32
  }
  func.func @transform_3(%arg0: i32) -> (i32, i32) {
    %c0_i32 = arith.constant 0 : i32
    %c0_i32_0 = arith.constant 0 : i32
    return %arg0, %c0_i32 : i32, i32
  }
}

module attributes {stable_mosaic.version = 11 : i64} {
  func.func @_linear_kernel(%arg0: i32, %arg1: memref<16x32xf32, #tpu.memory_space<vmem>>, %arg2: memref<32x64xf32, #tpu.memory_space<vmem>>, %arg3: memref<1x64xf32, #tpu.memory_space<vmem>>, %arg4: memref<16x64xf32, #tpu.memory_space<vmem>>) attributes {dimension_semantics = [#tpu.dimension_semantics<parallel>], iteration_bounds = array<i64: 1>, scalar_prefetch = 0 : i64, scratch_operands = 0 : i64, tpu.core_type = #tpu.core_type<tc>, window_params = [{transform_indices = @transform_0, window_bounds = array<i64: 16, 32>}, {pipeline_mode = #tpu.pipeline_mode<synchronous>, transform_indices = @transform_1, window_bounds = array<i64: 32, 64>}, {pipeline_mode = #tpu.pipeline_mode<synchronous>, transform_indices = @transform_2, window_bounds = array<i64: 1, 64>}, {transform_indices = @transform_3, window_bounds = array<i64: 16, 64>}]} {
    %c0 = arith.constant 0 : index
    %c0_0 = arith.constant 0 : index
    %0 = vector.load %arg1[%c0, %c0_0] : memref<16x32xf32, #tpu.memory_space<vmem>>, vector<16x32xf32>
    %c0_1 = arith.constant 0 : index
    %c0_2 = arith.constant 0 : index
    %1 = vector.load %arg2[%c0_1, %c0_2] : memref<32x64xf32, #tpu.memory_space<vmem>>, vector<32x64xf32>
    %cst = arith.constant dense<0.000000e+00> : vector<16x64xf32>
    %2 = tpu.matmul %0, %1, %cst {dimension_numbers = #tpu.dot_dimension_numbers<[1], [0], [0], [1], [0, 0, 1, 1], [], []>} : vector<16x32xf32>, vector<32x64xf32>, vector<16x64xf32> -> vector<16x64xf32>
    %c0_3 = arith.constant 0 : index
    %c0_4 = arith.constant 0 : index
    %3 = vector.load %arg3[%c0_3, %c0_4] : memref<1x64xf32, #tpu.memory_space<vmem>>, vector<1x64xf32>
    %4 = vector.broadcast %3 : vector<1x64xf32> to vector<16x64xf32>
    %5 = arith.addf %2, %4 : vector<16x64xf32>
    %c0_5 = arith.constant 0 : index
    %c0_6 = arith.constant 0 : index
    %6 = vector.load %arg4[%c0_5, %c0_6] : memref<16x64xf32, #tpu.memory_space<vmem>>, vector<16x64xf32>
    tpu.vector_store %arg4[%c0_5, %c0_6], %5 {strides = array<i32>} : memref<16x64xf32, #tpu.memory_space<vmem>>, vector<16x64xf32>,
    return
  }
  func.func @transform_0(%arg0: i32) -> (i32, i32) {
    %c0_i32 = arith.constant 0 : i32
    %c0_i32_0 = arith.constant 0 : i32
    return %arg0, %c0_i32 : i32, i32
  }
  func.func @transform_1(%arg0: i32) -> (i32, i32) {
    %c0_i32 = arith.constant 0 : i32
    %c0_i32_0 = arith.constant 0 : i32
    %c0_i32_1 = arith.constant 0 : i32
    return %c0_i32, %c0_i32_0 : i32, i32
  }
  func.func @transform_2(%arg0: i32) -> (i32, i32) {
    %c0_i32 = arith.constant 0 : i32
    %c0_i32_0 = arith.constant 0 : i32
    %c0_i32_1 = arith.constant 0 : i32
    return %c0_i32, %c0_i32_0 : i32, i32
  }
  func.func @transform_3(%arg0: i32) -> (i32, i32) {
    %c0_i32 = arith.constant 0 : i32
    %c0_i32_0 = arith.constant 0 : i32
    return %arg0, %c0_i32 : i32, i32
  }
}

module attributes {stable_mosaic.version = 11 : i64} {
  func.func @_linear_kernel(%arg0: i32, %arg1: memref<48x16xf32, #tpu.memory_space<vmem>>, %arg2: memref<16x128xf32, #tpu.memory_space<vmem>>, %arg3: memref<1x128xf32, #tpu.memory_space<vmem>>, %arg4: memref<48x128xf32, #tpu.memory_space<vmem>>) attributes {dimension_semantics = [#tpu.dimension_semantics<parallel>], iteration_bounds = array<i64: 1>, scalar_prefetch = 0 : i64, scratch_operands = 0 : i64, tpu.core_type = #tpu.core_type<tc>, window_params = [{transform_indices = @transform_0, window_bounds = array<i64: 48, 16>}, {pipeline_mode = #tpu.pipeline_mode<synchronous>, transform_indices = @transform_1, window_bounds = array<i64: 16, 128>}, {pipeline_mode = #tpu.pipeline_mode<synchronous>, transform_indices = @transform_2, window_bounds = array<i64: 1, 128>}, {transform_indices = @transform_3, window_bounds = array<i64: 48, 128>}]} {
    %c0 = arith.constant 0 : index
    %c0_0 = arith.constant 0 : index
    %0 = vector.load %arg1[%c0, %c0_0] : memref<48x16xf32, #tpu.memory_space<vmem>>, vector<48x16xf32>
    %c0_1 = arith.constant 0 : index
    %c0_2 = arith.constant 0 : index
    %1 = vector.load %arg2[%c0_1, %c0_2] : memref<16x128xf32, #tpu.memory_space<vmem>>, vector<16x128xf32>
    %cst = arith.constant dense<0.000000e+00> : vector<48x128xf32>
    %2 = tpu.matmul %0, %1, %cst {dimension_numbers = #tpu.dot_dimension_numbers<[1], [0], [0], [1], [0, 0, 1, 1], [], []>} : vector<48x16xf32>, vector<16x128xf32>, vector<48x128xf32> -> vector<48x128xf32>
    %c0_3 = arith.constant 0 : index
    %c0_4 = arith.constant 0 : index
    %3 = vector.load %arg3[%c0_3, %c0_4] : memref<1x128xf32, #tpu.memory_space<vmem>>, vector<1x128xf32>
    %4 = vector.broadcast %3 : vector<1x128xf32> to vector<48x128xf32>
    %5 = arith.addf %2, %4 : vector<48x128xf32>
    %c0_5 = arith.constant 0 : index
    %c0_6 = arith.constant 0 : index
    %6 = vector.load %arg4[%c0_5, %c0_6] : memref<48x128xf32, #tpu.memory_space<vmem>>, vector<48x128xf32>
    tpu.vector_store %arg4[%c0_5, %c0_6], %5 {strides = array<i32>} : memref<48x128xf32, #tpu.memory_space<vmem>>, vector<48x128xf32>,
    return
  }
  func.func @transform_0(%arg0: i32) -> (i32, i32) {
    %c0_i32 = arith.constant 0 : i32
    %c0_i32_0 = arith.constant 0 : i32
    return %arg0, %c0_i32 : i32, i32
  }
  func.func @transform_1(%arg0: i32) -> (i32, i32) {
    %c0_i32 = arith.constant 0 : i32
    %c0_i32_0 = arith.constant 0 : i32
    %c0_i32_1 = arith.constant 0 : i32
    return %c0_i32, %c0_i32_0 : i32, i32
  }
  func.func @transform_2(%arg0: i32) -> (i32, i32) {
    %c0_i32 = arith.constant 0 : i32
    %c0_i32_0 = arith.constant 0 : i32
    %c0_i32_1 = arith.constant 0 : i32
    return %c0_i32, %c0_i32_0 : i32, i32
  }
  func.func @transform_3(%arg0: i32) -> (i32, i32) {
    %c0_i32 = arith.constant 0 : i32
    %c0_i32_0 = arith.constant 0 : i32
    return %arg0, %c0_i32 : i32, i32
  }
}

module attributes {stable_mosaic.version = 11 : i64} {
  func.func @_decoder_kernel(%arg0: i32, %arg1: memref<8x8x128xf32, #tpu.memory_space<vmem>>, %arg2: memref<8x2x32xf32, #tpu.memory_space<vmem>>, %arg3: memref<8x2x32xf32, #tpu.memory_space<vmem>>, %arg4: memref<8x2xf32, #tpu.memory_space<vmem>>, %arg5: memref<64x128xf32, #tpu.memory_space<vmem>>, %arg6: memref<64x128xf32, #tpu.memory_space<vmem>>, %arg7: memref<1x128xf32, #tpu.memory_space<vmem>>, %arg8: memref<64x40xf32, #tpu.memory_space<vmem>>, %arg9: memref<1x40xf32, #tpu.memory_space<vmem>>, %arg10: memref<8x8x40xf32, #tpu.memory_space<vmem>>, %arg11: memref<8x32xf32, #tpu.memory_space<vmem>>, %arg12: memref<8x32xf32, #tpu.memory_space<vmem>>, %arg13: memref<8x32xf32, #tpu.memory_space<vmem>>, %arg14: memref<8x32xf32, #tpu.memory_space<vmem>>) attributes {dimension_semantics = [#tpu.dimension_semantics<arbitrary>], iteration_bounds = array<i64: 1>, scalar_prefetch = 0 : i64, scratch_operands = 4 : i64, tpu.core_type = #tpu.core_type<tc>, window_params = [{transform_indices = @transform_0, window_bounds = array<i64: 8, 8, 128>}, {pipeline_mode = #tpu.pipeline_mode<synchronous>, transform_indices = @transform_1, window_bounds = array<i64: 8, 2, 32>}, {pipeline_mode = #tpu.pipeline_mode<synchronous>, transform_indices = @transform_2, window_bounds = array<i64: 8, 2, 32>}, {pipeline_mode = #tpu.pipeline_mode<synchronous>, transform_indices = @transform_3, window_bounds = array<i64: 8, 2>}, {pipeline_mode = #tpu.pipeline_mode<synchronous>, transform_indices = @transform_4, window_bounds = array<i64: 64, 128>}, {pipeline_mode = #tpu.pipeline_mode<synchronous>, transform_indices = @transform_5, window_bounds = array<i64: 64, 128>}, {pipeline_mode = #tpu.pipeline_mode<synchronous>, transform_indices = @transform_6, window_bounds = array<i64: 1, 128>}, {pipeline_mode = #tpu.pipeline_mode<synchronous>, transform_indices = @transform_7, window_bounds = array<i64: 64, 40>}, {pipeline_mode = #tpu.pipeline_mode<synchronous>, transform_indices = @transform_8, window_bounds = array<i64: 1, 40>}, {transform_indices = @transform_9, window_bounds = array<i64: 8, 8, 40>}]} {
    %c0_i32 = arith.constant 0 : i32
    %0 = arith.cmpi eq, %arg0, %c0_i32 : i32
    %1 = arith.extui %0 : i1 to i32
    %c0_i32_0 = arith.constant 0 : i32
    %2 = arith.cmpi ne, %1, %c0_i32_0 : i32
    scf.if %2 {
      %cst_307 = arith.constant 0.000000e+00 : f32
      %773 = vector.broadcast %cst_307 : f32 to vector<8x32xf32>
      %c0_308 = arith.constant 0 : index
      %c0_309 = arith.constant 0 : index
      %774 = vector.load %arg11[%c0_308, %c0_309] : memref<8x32xf32, #tpu.memory_space<vmem>>, vector<8x32xf32>
      tpu.vector_store %arg11[%c0_308, %c0_309], %773 {strides = array<i32>} : memref<8x32xf32, #tpu.memory_space<vmem>>, vector<8x32xf32>,
      %cst_310 = arith.constant 0.000000e+00 : f32
      %775 = vector.broadcast %cst_310 : f32 to vector<8x32xf32>
      %c0_311 = arith.constant 0 : index
      %c0_312 = arith.constant 0 : index
      %776 = vector.load %arg12[%c0_311, %c0_312] : memref<8x32xf32, #tpu.memory_space<vmem>>, vector<8x32xf32>
      tpu.vector_store %arg12[%c0_311, %c0_312], %775 {strides = array<i32>} : memref<8x32xf32, #tpu.memory_space<vmem>>, vector<8x32xf32>,
      %cst_313 = arith.constant 0.000000e+00 : f32
      %777 = vector.broadcast %cst_313 : f32 to vector<8x32xf32>
      %c0_314 = arith.constant 0 : index
      %c0_315 = arith.constant 0 : index
      %778 = vector.load %arg13[%c0_314, %c0_315] : memref<8x32xf32, #tpu.memory_space<vmem>>, vector<8x32xf32>
      tpu.vector_store %arg13[%c0_314, %c0_315], %777 {strides = array<i32>} : memref<8x32xf32, #tpu.memory_space<vmem>>, vector<8x32xf32>,
      %cst_316 = arith.constant 0.000000e+00 : f32
      %779 = vector.broadcast %cst_316 : f32 to vector<8x32xf32>
      %c0_317 = arith.constant 0 : index
      %c0_318 = arith.constant 0 : index
      %780 = vector.load %arg14[%c0_317, %c0_318] : memref<8x32xf32, #tpu.memory_space<vmem>>, vector<8x32xf32>
      tpu.vector_store %arg14[%c0_317, %c0_318], %779 {strides = array<i32>} : memref<8x32xf32, #tpu.memory_space<vmem>>, vector<8x32xf32>,
    } else {
    }
    %c0 = arith.constant 0 : index
    %c0_1 = arith.constant 0 : index
    %c0_2 = arith.constant 0 : index
    %3 = vector.load %arg2[%c0, %c0_1, %c0_2] : memref<8x2x32xf32, #tpu.memory_space<vmem>>, vector<8x2x32xf32>
    %c0_3 = arith.constant 0 : index
    %c0_4 = arith.constant 0 : index
    %c0_5 = arith.constant 0 : index
    %4 = vector.load %arg3[%c0_3, %c0_4, %c0_5] : memref<8x2x32xf32, #tpu.memory_space<vmem>>, vector<8x2x32xf32>
    %c0_6 = arith.constant 0 : index
    %c0_7 = arith.constant 0 : index
    %5 = vector.load %arg4[%c0_6, %c0_7] : memref<8x2xf32, #tpu.memory_space<vmem>>, vector<8x2xf32>
    %cst = arith.constant 5.000000e-01 : f32
    %6 = vector.broadcast %cst : f32 to vector<8x2xf32>
    %7 = arith.cmpf ogt, %5, %6 : vector<8x2xf32>
    %c0_8 = arith.constant 0 : index
    %c0_9 = arith.constant 0 : index
    %8 = vector.load %arg5[%c0_8, %c0_9] : memref<64x128xf32, #tpu.memory_space<vmem>>, vector<64x128xf32>
    %c0_10 = arith.constant 0 : index
    %c0_11 = arith.constant 0 : index
    %9 = vector.load %arg6[%c0_10, %c0_11] : memref<64x128xf32, #tpu.memory_space<vmem>>, vector<64x128xf32>
    %c0_12 = arith.constant 0 : index
    %c0_13 = arith.constant 0 : index
    %10 = vector.load %arg7[%c0_12, %c0_13] : memref<1x128xf32, #tpu.memory_space<vmem>>, vector<1x128xf32>
    %c0_14 = arith.constant 0 : index
    %c0_15 = arith.constant 0 : index
    %11 = vector.load %arg8[%c0_14, %c0_15] : memref<64x40xf32, #tpu.memory_space<vmem>>, vector<64x40xf32>
    %c0_16 = arith.constant 0 : index
    %c0_17 = arith.constant 0 : index
    %12 = vector.load %arg9[%c0_16, %c0_17] : memref<1x40xf32, #tpu.memory_space<vmem>>, vector<1x40xf32>
    %c0_i32_18 = arith.constant 0 : i32
    %c0_19 = arith.constant 0 : index
    %c0_20 = arith.constant 0 : index
    %13 = vector.load %arg13[%c0_19, %c0_20] : memref<8x32xf32, #tpu.memory_space<vmem>>, vector<8x32xf32>
    %14 = vector.shape_cast %13 : vector<8x32xf32> to vector<8x1x32xf32>
    "tpu.trace_start"() <{level = 10 : i32, message = "ntk,nok->nto"}> : () -> ()
    %cst_21 = arith.constant dense<0.000000e+00> : vector<8x2x1xf32>
    %15 = tpu.matmul %3, %14, %cst_21 {dimension_numbers = #tpu.dot_dimension_numbers<[2], [2], [1], [1], [0, 0, 0, 1, 1, 1], [0], [0]>} : vector<8x2x32xf32>, vector<8x1x32xf32>, vector<8x2x1xf32> -> vector<8x2x1xf32>
    "tpu.trace_stop"() : () -> ()
    %16 = vector.shape_cast %15 : vector<8x2x1xf32> to vector<8x2xf32>
    %cst_22 = arith.constant -1.000000e+09 : f32
    %17 = vector.broadcast %cst_22 : f32 to vector<8x2xf32>
    %18 = arith.select %7, %16, %17 : vector<8x2xi1>, vector<8x2xf32>
    %cst_23 = arith.constant dense<0xFF800000> : vector<8xf32>
    %19 = vector.multi_reduction <maximumf>, %18, %cst_23 [1] : vector<8x2xf32> to vector<8xf32>
    %20 = vector.shape_cast %19 : vector<8xf32> to vector<8x1xf32>
    %21 = vector.broadcast %20 : vector<8x1xf32> to vector<8x2xf32>
    %22 = arith.subf %18, %21 : vector<8x2xf32>
    %23 = math.exp %22 : vector<8x2xf32>
    %cst_24 = arith.constant dense<0.000000e+00> : vector<8xf32>
    %24 = vector.multi_reduction <add>, %23, %cst_24 [1] : vector<8x2xf32> to vector<8xf32>
    %25 = vector.shape_cast %24 : vector<8xf32> to vector<8x1xf32>
    %26 = tpu.reciprocal %25 {approx = true} : vector<8x1xf32> -> vector<8x1xf32>
    %27 = vector.broadcast %26 : vector<8x1xf32> to vector<8x2xf32>
    %28 = arith.mulf %23, %27 : vector<8x2xf32>
    %29 = vector.shape_cast %28 : vector<8x2xf32> to vector<8x1x2xf32>
    "tpu.trace_start"() <{level = 10 : i32, message = "not,ntv->nov"}> : () -> ()
    %cst_25 = arith.constant dense<0.000000e+00> : vector<8x1x32xf32>
    %30 = tpu.matmul %29, %4, %cst_25 {dimension_numbers = #tpu.dot_dimension_numbers<[2], [1], [1], [2], [0, 0, 0, 1, 1, 2], [0], [0]>} : vector<8x1x2xf32>, vector<8x2x32xf32>, vector<8x1x32xf32> -> vector<8x1x32xf32>
    "tpu.trace_stop"() : () -> ()
    %31 = vector.shape_cast %30 : vector<8x1x32xf32> to vector<8x32xf32>
    %c0_26 = arith.constant 0 : index
    %c0_27 = arith.constant 0 : index
    %32 = vector.load %arg11[%c0_26, %c0_27] : memref<8x32xf32, #tpu.memory_space<vmem>>, vector<8x32xf32>
    %33 = tpu.concatenate %31, %32 in 1 : vector<8x32xf32>, vector<8x32xf32> -> vector<8x64xf32>
    %34 = arith.index_cast %c0_i32_18 : i32 to index
    %c0_28 = arith.constant 0 : index
    %c0_29 = arith.constant 0 : index
    %35 = vector.load %arg1[%34, %c0_28, %c0_29] : memref<8x8x128xf32, #tpu.memory_space<vmem>>, vector<1x8x128xf32>
    %36 = vector.shape_cast %35 : vector<1x8x128xf32> to vector<8x128xf32>
    %cst_30 = arith.constant dense<0.000000e+00> : vector<8x128xf32>
    %37 = tpu.matmul %33, %8, %cst_30 {dimension_numbers = #tpu.dot_dimension_numbers<[1], [0], [0], [1], [0, 0, 1, 1], [], []>} : vector<8x64xf32>, vector<64x128xf32>, vector<8x128xf32> -> vector<8x128xf32>
    %38 = arith.addf %36, %37 : vector<8x128xf32>
    %39 = vector.extract_strided_slice %38 {offsets = [0, 0], sizes = [8, 32], strides = [1, 1]} : vector<8x128xf32> to vector<8x32xf32>
    %40 = arith.negf %39 : vector<8x32xf32>
    %41 = math.exp %40 : vector<8x32xf32>
    %cst_31 = arith.constant 1.000000e+00 : f32
    %42 = vector.broadcast %cst_31 : f32 to vector<8x32xf32>
    %43 = arith.addf %42, %41 : vector<8x32xf32>
    %44 = arith.divf %42, %43 : vector<8x32xf32>
    %45 = vector.extract_strided_slice %38 {offsets = [0, 32], sizes = [8, 32], strides = [1, 1]} : vector<8x128xf32> to vector<8x32xf32>
    %46 = arith.negf %45 : vector<8x32xf32>
    %47 = math.exp %46 : vector<8x32xf32>
    %cst_32 = arith.constant 1.000000e+00 : f32
    %48 = vector.broadcast %cst_32 : f32 to vector<8x32xf32>
    %49 = arith.addf %48, %47 : vector<8x32xf32>
    %50 = arith.divf %48, %49 : vector<8x32xf32>
    %51 = vector.extract_strided_slice %38 {offsets = [0, 64], sizes = [8, 32], strides = [1, 1]} : vector<8x128xf32> to vector<8x32xf32>
    %52 = math.tanh %51 : vector<8x32xf32>
    %53 = vector.extract_strided_slice %38 {offsets = [0, 96], sizes = [8, 32], strides = [1, 1]} : vector<8x128xf32> to vector<8x32xf32>
    %54 = arith.negf %53 : vector<8x32xf32>
    %55 = math.exp %54 : vector<8x32xf32>
    %cst_33 = arith.constant 1.000000e+00 : f32
    %56 = vector.broadcast %cst_33 : f32 to vector<8x32xf32>
    %57 = arith.addf %56, %55 : vector<8x32xf32>
    %58 = arith.divf %56, %57 : vector<8x32xf32>
    %c0_34 = arith.constant 0 : index
    %c0_35 = arith.constant 0 : index
    %59 = vector.load %arg12[%c0_34, %c0_35] : memref<8x32xf32, #tpu.memory_space<vmem>>, vector<8x32xf32>
    %60 = arith.mulf %50, %59 : vector<8x32xf32>
    %61 = arith.mulf %44, %52 : vector<8x32xf32>
    %62 = arith.addf %60, %61 : vector<8x32xf32>
    %63 = math.tanh %62 : vector<8x32xf32>
    %64 = arith.mulf %58, %63 : vector<8x32xf32>
    %c0_36 = arith.constant 0 : index
    %c0_37 = arith.constant 0 : index
    %65 = vector.load %arg13[%c0_36, %c0_37] : memref<8x32xf32, #tpu.memory_space<vmem>>, vector<8x32xf32>
    %66 = tpu.concatenate %64, %65 in 1 : vector<8x32xf32>, vector<8x32xf32> -> vector<8x64xf32>
    %cst_38 = arith.constant dense<0.000000e+00> : vector<8x128xf32>
    %67 = tpu.matmul %66, %9, %cst_38 {dimension_numbers = #tpu.dot_dimension_numbers<[1], [0], [0], [1], [0, 0, 1, 1], [], []>} : vector<8x64xf32>, vector<64x128xf32>, vector<8x128xf32> -> vector<8x128xf32>
    %68 = vector.broadcast %10 : vector<1x128xf32> to vector<8x128xf32>
    %69 = arith.addf %67, %68 : vector<8x128xf32>
    %70 = vector.extract_strided_slice %69 {offsets = [0, 0], sizes = [8, 32], strides = [1, 1]} : vector<8x128xf32> to vector<8x32xf32>
    %71 = arith.negf %70 : vector<8x32xf32>
    %72 = math.exp %71 : vector<8x32xf32>
    %cst_39 = arith.constant 1.000000e+00 : f32
    %73 = vector.broadcast %cst_39 : f32 to vector<8x32xf32>
    %74 = arith.addf %73, %72 : vector<8x32xf32>
    %75 = arith.divf %73, %74 : vector<8x32xf32>
    %76 = vector.extract_strided_slice %69 {offsets = [0, 32], sizes = [8, 32], strides = [1, 1]} : vector<8x128xf32> to vector<8x32xf32>
    %77 = arith.negf %76 : vector<8x32xf32>
    %78 = math.exp %77 : vector<8x32xf32>
    %cst_40 = arith.constant 1.000000e+00 : f32
    %79 = vector.broadcast %cst_40 : f32 to vector<8x32xf32>
    %80 = arith.addf %79, %78 : vector<8x32xf32>
    %81 = arith.divf %79, %80 : vector<8x32xf32>
    %82 = vector.extract_strided_slice %69 {offsets = [0, 64], sizes = [8, 32], strides = [1, 1]} : vector<8x128xf32> to vector<8x32xf32>
    %83 = math.tanh %82 : vector<8x32xf32>
    %84 = vector.extract_strided_slice %69 {offsets = [0, 96], sizes = [8, 32], strides = [1, 1]} : vector<8x128xf32> to vector<8x32xf32>
    %85 = arith.negf %84 : vector<8x32xf32>
    %86 = math.exp %85 : vector<8x32xf32>
    %cst_41 = arith.constant 1.000000e+00 : f32
    %87 = vector.broadcast %cst_41 : f32 to vector<8x32xf32>
    %88 = arith.addf %87, %86 : vector<8x32xf32>
    %89 = arith.divf %87, %88 : vector<8x32xf32>
    %c0_42 = arith.constant 0 : index
    %c0_43 = arith.constant 0 : index
    %90 = vector.load %arg14[%c0_42, %c0_43] : memref<8x32xf32, #tpu.memory_space<vmem>>, vector<8x32xf32>
    %91 = arith.mulf %81, %90 : vector<8x32xf32>
    %92 = arith.mulf %75, %83 : vector<8x32xf32>
    %93 = arith.addf %91, %92 : vector<8x32xf32>
    %94 = math.tanh %93 : vector<8x32xf32>
    %95 = arith.mulf %89, %94 : vector<8x32xf32>
    %96 = tpu.concatenate %95, %31 in 1 : vector<8x32xf32>, vector<8x32xf32> -> vector<8x64xf32>
    %cst_44 = arith.constant dense<0.000000e+00> : vector<8x40xf32>
    %97 = tpu.matmul %96, %11, %cst_44 {dimension_numbers = #tpu.dot_dimension_numbers<[1], [0], [0], [1], [0, 0, 1, 1], [], []>} : vector<8x64xf32>, vector<64x40xf32>, vector<8x40xf32> -> vector<8x40xf32>
    %98 = vector.broadcast %12 : vector<1x40xf32> to vector<8x40xf32>
    %99 = arith.addf %97, %98 : vector<8x40xf32>
    %100 = arith.index_cast %c0_i32_18 : i32 to index
    %c0_45 = arith.constant 0 : index
    %c0_46 = arith.constant 0 : index
    %101 = vector.load %arg10[%100, %c0_45, %c0_46] : memref<8x8x40xf32, #tpu.memory_space<vmem>>, vector<1x8x40xf32>
    %102 = vector.shape_cast %101 : vector<1x8x40xf32> to vector<8x40xf32>
    %103 = vector.shape_cast %99 : vector<8x40xf32> to vector<1x8x40xf32>
    tpu.vector_store %arg10[%100, %c0_45, %c0_46], %103 {strides = array<i32>} : memref<8x8x40xf32, #tpu.memory_space<vmem>>, vector<1x8x40xf32>,
    %c0_47 = arith.constant 0 : index
    %c0_48 = arith.constant 0 : index
    %104 = vector.load %arg11[%c0_47, %c0_48] : memref<8x32xf32, #tpu.memory_space<vmem>>, vector<8x32xf32>
    tpu.vector_store %arg11[%c0_47, %c0_48], %64 {strides = array<i32>} : memref<8x32xf32, #tpu.memory_space<vmem>>, vector<8x32xf32>,
    %c0_49 = arith.constant 0 : index
    %c0_50 = arith.constant 0 : index
    %105 = vector.load %arg12[%c0_49, %c0_50] : memref<8x32xf32, #tpu.memory_space<vmem>>, vector<8x32xf32>
    tpu.vector_store %arg12[%c0_49, %c0_50], %62 {strides = array<i32>} : memref<8x32xf32, #tpu.memory_space<vmem>>, vector<8x32xf32>,
    %c0_51 = arith.constant 0 : index
    %c0_52 = arith.constant 0 : index
    %106 = vector.load %arg13[%c0_51, %c0_52] : memref<8x32xf32, #tpu.memory_space<vmem>>, vector<8x32xf32>
    tpu.vector_store %arg13[%c0_51, %c0_52], %95 {strides = array<i32>} : memref<8x32xf32, #tpu.memory_space<vmem>>, vector<8x32xf32>,
    %c0_53 = arith.constant 0 : index
    %c0_54 = arith.constant 0 : index
    %107 = vector.load %arg14[%c0_53, %c0_54] : memref<8x32xf32, #tpu.memory_space<vmem>>, vector<8x32xf32>
    tpu.vector_store %arg14[%c0_53, %c0_54], %93 {strides = array<i32>} : memref<8x32xf32, #tpu.memory_space<vmem>>, vector<8x32xf32>,
    %c1_i32 = arith.constant 1 : i32
    %c0_55 = arith.constant 0 : index
    %c0_56 = arith.constant 0 : index
    %108 = vector.load %arg13[%c0_55, %c0_56] : memref<8x32xf32, #tpu.memory_space<vmem>>, vector<8x32xf32>
    %109 = vector.shape_cast %108 : vector<8x32xf32> to vector<8x1x32xf32>
    "tpu.trace_start"() <{level = 10 : i32, message = "ntk,nok->nto"}> : () -> ()
    %cst_57 = arith.constant dense<0.000000e+00> : vector<8x2x1xf32>
    %110 = tpu.matmul %3, %109, %cst_57 {dimension_numbers = #tpu.dot_dimension_numbers<[2], [2], [1], [1], [0, 0, 0, 1, 1, 1], [0], [0]>} : vector<8x2x32xf32>, vector<8x1x32xf32>, vector<8x2x1xf32> -> vector<8x2x1xf32>
    "tpu.trace_stop"() : () -> ()
    %111 = vector.shape_cast %110 : vector<8x2x1xf32> to vector<8x2xf32>
    %cst_58 = arith.constant -1.000000e+09 : f32
    %112 = vector.broadcast %cst_58 : f32 to vector<8x2xf32>
    %113 = arith.select %7, %111, %112 : vector<8x2xi1>, vector<8x2xf32>
    %cst_59 = arith.constant dense<0xFF800000> : vector<8xf32>
    %114 = vector.multi_reduction <maximumf>, %113, %cst_59 [1] : vector<8x2xf32> to vector<8xf32>
    %115 = vector.shape_cast %114 : vector<8xf32> to vector<8x1xf32>
    %116 = vector.broadcast %115 : vector<8x1xf32> to vector<8x2xf32>
    %117 = arith.subf %113, %116 : vector<8x2xf32>
    %118 = math.exp %117 : vector<8x2xf32>
    %cst_60 = arith.constant dense<0.000000e+00> : vector<8xf32>
    %119 = vector.multi_reduction <add>, %118, %cst_60 [1] : vector<8x2xf32> to vector<8xf32>
    %120 = vector.shape_cast %119 : vector<8xf32> to vector<8x1xf32>
    %121 = tpu.reciprocal %120 {approx = true} : vector<8x1xf32> -> vector<8x1xf32>
    %122 = vector.broadcast %121 : vector<8x1xf32> to vector<8x2xf32>
    %123 = arith.mulf %118, %122 : vector<8x2xf32>
    %124 = vector.shape_cast %123 : vector<8x2xf32> to vector<8x1x2xf32>
    "tpu.trace_start"() <{level = 10 : i32, message = "not,ntv->nov"}> : () -> ()
    %cst_61 = arith.constant dense<0.000000e+00> : vector<8x1x32xf32>
    %125 = tpu.matmul %124, %4, %cst_61 {dimension_numbers = #tpu.dot_dimension_numbers<[2], [1], [1], [2], [0, 0, 0, 1, 1, 2], [0], [0]>} : vector<8x1x2xf32>, vector<8x2x32xf32>, vector<8x1x32xf32> -> vector<8x1x32xf32>
    "tpu.trace_stop"() : () -> ()
    %126 = vector.shape_cast %125 : vector<8x1x32xf32> to vector<8x32xf32>
    %c0_62 = arith.constant 0 : index
    %c0_63 = arith.constant 0 : index
    %127 = vector.load %arg11[%c0_62, %c0_63] : memref<8x32xf32, #tpu.memory_space<vmem>>, vector<8x32xf32>
    %128 = tpu.concatenate %126, %127 in 1 : vector<8x32xf32>, vector<8x32xf32> -> vector<8x64xf32>
    %129 = arith.index_cast %c1_i32 : i32 to index
    %c0_64 = arith.constant 0 : index
    %c0_65 = arith.constant 0 : index
    %130 = vector.load %arg1[%129, %c0_64, %c0_65] : memref<8x8x128xf32, #tpu.memory_space<vmem>>, vector<1x8x128xf32>
    %131 = vector.shape_cast %130 : vector<1x8x128xf32> to vector<8x128xf32>
    %cst_66 = arith.constant dense<0.000000e+00> : vector<8x128xf32>
    %132 = tpu.matmul %128, %8, %cst_66 {dimension_numbers = #tpu.dot_dimension_numbers<[1], [0], [0], [1], [0, 0, 1, 1], [], []>} : vector<8x64xf32>, vector<64x128xf32>, vector<8x128xf32> -> vector<8x128xf32>
    %133 = arith.addf %131, %132 : vector<8x128xf32>
    %134 = vector.extract_strided_slice %133 {offsets = [0, 0], sizes = [8, 32], strides = [1, 1]} : vector<8x128xf32> to vector<8x32xf32>
    %135 = arith.negf %134 : vector<8x32xf32>
    %136 = math.exp %135 : vector<8x32xf32>
    %cst_67 = arith.constant 1.000000e+00 : f32
    %137 = vector.broadcast %cst_67 : f32 to vector<8x32xf32>
    %138 = arith.addf %137, %136 : vector<8x32xf32>
    %139 = arith.divf %137, %138 : vector<8x32xf32>
    %140 = vector.extract_strided_slice %133 {offsets = [0, 32], sizes = [8, 32], strides = [1, 1]} : vector<8x128xf32> to vector<8x32xf32>
    %141 = arith.negf %140 : vector<8x32xf32>
    %142 = math.exp %141 : vector<8x32xf32>
    %cst_68 = arith.constant 1.000000e+00 : f32
    %143 = vector.broadcast %cst_68 : f32 to vector<8x32xf32>
    %144 = arith.addf %143, %142 : vector<8x32xf32>
    %145 = arith.divf %143, %144 : vector<8x32xf32>
    %146 = vector.extract_strided_slice %133 {offsets = [0, 64], sizes = [8, 32], strides = [1, 1]} : vector<8x128xf32> to vector<8x32xf32>
    %147 = math.tanh %146 : vector<8x32xf32>
    %148 = vector.extract_strided_slice %133 {offsets = [0, 96], sizes = [8, 32], strides = [1, 1]} : vector<8x128xf32> to vector<8x32xf32>
    %149 = arith.negf %148 : vector<8x32xf32>
    %150 = math.exp %149 : vector<8x32xf32>
    %cst_69 = arith.constant 1.000000e+00 : f32
    %151 = vector.broadcast %cst_69 : f32 to vector<8x32xf32>
    %152 = arith.addf %151, %150 : vector<8x32xf32>
    %153 = arith.divf %151, %152 : vector<8x32xf32>
    %c0_70 = arith.constant 0 : index
    %c0_71 = arith.constant 0 : index
    %154 = vector.load %arg12[%c0_70, %c0_71] : memref<8x32xf32, #tpu.memory_space<vmem>>, vector<8x32xf32>
    %155 = arith.mulf %145, %154 : vector<8x32xf32>
    %156 = arith.mulf %139, %147 : vector<8x32xf32>
    %157 = arith.addf %155, %156 : vector<8x32xf32>
    %158 = math.tanh %157 : vector<8x32xf32>
    %159 = arith.mulf %153, %158 : vector<8x32xf32>
    %c0_72 = arith.constant 0 : index
    %c0_73 = arith.constant 0 : index
    %160 = vector.load %arg13[%c0_72, %c0_73] : memref<8x32xf32, #tpu.memory_space<vmem>>, vector<8x32xf32>
    %161 = tpu.concatenate %159, %160 in 1 : vector<8x32xf32>, vector<8x32xf32> -> vector<8x64xf32>
    %cst_74 = arith.constant dense<0.000000e+00> : vector<8x128xf32>
    %162 = tpu.matmul %161, %9, %cst_74 {dimension_numbers = #tpu.dot_dimension_numbers<[1], [0], [0], [1], [0, 0, 1, 1], [], []>} : vector<8x64xf32>, vector<64x128xf32>, vector<8x128xf32> -> vector<8x128xf32>
    %163 = vector.broadcast %10 : vector<1x128xf32> to vector<8x128xf32>
    %164 = arith.addf %162, %163 : vector<8x128xf32>
    %165 = vector.extract_strided_slice %164 {offsets = [0, 0], sizes = [8, 32], strides = [1, 1]} : vector<8x128xf32> to vector<8x32xf32>
    %166 = arith.negf %165 : vector<8x32xf32>
    %167 = math.exp %166 : vector<8x32xf32>
    %cst_75 = arith.constant 1.000000e+00 : f32
    %168 = vector.broadcast %cst_75 : f32 to vector<8x32xf32>
    %169 = arith.addf %168, %167 : vector<8x32xf32>
    %170 = arith.divf %168, %169 : vector<8x32xf32>
    %171 = vector.extract_strided_slice %164 {offsets = [0, 32], sizes = [8, 32], strides = [1, 1]} : vector<8x128xf32> to vector<8x32xf32>
    %172 = arith.negf %171 : vector<8x32xf32>
    %173 = math.exp %172 : vector<8x32xf32>
    %cst_76 = arith.constant 1.000000e+00 : f32
    %174 = vector.broadcast %cst_76 : f32 to vector<8x32xf32>
    %175 = arith.addf %174, %173 : vector<8x32xf32>
    %176 = arith.divf %174, %175 : vector<8x32xf32>
    %177 = vector.extract_strided_slice %164 {offsets = [0, 64], sizes = [8, 32], strides = [1, 1]} : vector<8x128xf32> to vector<8x32xf32>
    %178 = math.tanh %177 : vector<8x32xf32>
    %179 = vector.extract_strided_slice %164 {offsets = [0, 96], sizes = [8, 32], strides = [1, 1]} : vector<8x128xf32> to vector<8x32xf32>
    %180 = arith.negf %179 : vector<8x32xf32>
    %181 = math.exp %180 : vector<8x32xf32>
    %cst_77 = arith.constant 1.000000e+00 : f32
    %182 = vector.broadcast %cst_77 : f32 to vector<8x32xf32>
    %183 = arith.addf %182, %181 : vector<8x32xf32>
    %184 = arith.divf %182, %183 : vector<8x32xf32>
    %c0_78 = arith.constant 0 : index
    %c0_79 = arith.constant 0 : index
    %185 = vector.load %arg14[%c0_78, %c0_79] : memref<8x32xf32, #tpu.memory_space<vmem>>, vector<8x32xf32>
    %186 = arith.mulf %176, %185 : vector<8x32xf32>
    %187 = arith.mulf %170, %178 : vector<8x32xf32>
    %188 = arith.addf %186, %187 : vector<8x32xf32>
    %189 = math.tanh %188 : vector<8x32xf32>
    %190 = arith.mulf %184, %189 : vector<8x32xf32>
    %191 = tpu.concatenate %190, %126 in 1 : vector<8x32xf32>, vector<8x32xf32> -> vector<8x64xf32>
    %cst_80 = arith.constant dense<0.000000e+00> : vector<8x40xf32>
    %192 = tpu.matmul %191, %11, %cst_80 {dimension_numbers = #tpu.dot_dimension_numbers<[1], [0], [0], [1], [0, 0, 1, 1], [], []>} : vector<8x64xf32>, vector<64x40xf32>, vector<8x40xf32> -> vector<8x40xf32>
    %193 = vector.broadcast %12 : vector<1x40xf32> to vector<8x40xf32>
    %194 = arith.addf %192, %193 : vector<8x40xf32>
    %195 = arith.index_cast %c1_i32 : i32 to index
    %c0_81 = arith.constant 0 : index
    %c0_82 = arith.constant 0 : index
    %196 = vector.load %arg10[%195, %c0_81, %c0_82] : memref<8x8x40xf32, #tpu.memory_space<vmem>>, vector<1x8x40xf32>
    %197 = vector.shape_cast %196 : vector<1x8x40xf32> to vector<8x40xf32>
    %198 = vector.shape_cast %194 : vector<8x40xf32> to vector<1x8x40xf32>
    tpu.vector_store %arg10[%195, %c0_81, %c0_82], %198 {strides = array<i32>} : memref<8x8x40xf32, #tpu.memory_space<vmem>>, vector<1x8x40xf32>,
    %c0_83 = arith.constant 0 : index
    %c0_84 = arith.constant 0 : index
    %199 = vector.load %arg11[%c0_83, %c0_84] : memref<8x32xf32, #tpu.memory_space<vmem>>, vector<8x32xf32>
    tpu.vector_store %arg11[%c0_83, %c0_84], %159 {strides = array<i32>} : memref<8x32xf32, #tpu.memory_space<vmem>>, vector<8x32xf32>,
    %c0_85 = arith.constant 0 : index
    %c0_86 = arith.constant 0 : index
    %200 = vector.load %arg12[%c0_85, %c0_86] : memref<8x32xf32, #tpu.memory_space<vmem>>, vector<8x32xf32>
    tpu.vector_store %arg12[%c0_85, %c0_86], %157 {strides = array<i32>} : memref<8x32xf32, #tpu.memory_space<vmem>>, vector<8x32xf32>,
    %c0_87 = arith.constant 0 : index
    %c0_88 = arith.constant 0 : index
    %201 = vector.load %arg13[%c0_87, %c0_88] : memref<8x32xf32, #tpu.memory_space<vmem>>, vector<8x32xf32>
    tpu.vector_store %arg13[%c0_87, %c0_88], %190 {strides = array<i32>} : memref<8x32xf32, #tpu.memory_space<vmem>>, vector<8x32xf32>,
    %c0_89 = arith.constant 0 : index
    %c0_90 = arith.constant 0 : index
    %202 = vector.load %arg14[%c0_89, %c0_90] : memref<8x32xf32, #tpu.memory_space<vmem>>, vector<8x32xf32>
    tpu.vector_store %arg14[%c0_89, %c0_90], %188 {strides = array<i32>} : memref<8x32xf32, #tpu.memory_space<vmem>>, vector<8x32xf32>,
    %c2_i32 = arith.constant 2 : i32
    %c0_91 = arith.constant 0 : index
    %c0_92 = arith.constant 0 : index
    %203 = vector.load %arg13[%c0_91, %c0_92] : memref<8x32xf32, #tpu.memory_space<vmem>>, vector<8x32xf32>
    %204 = vector.shape_cast %203 : vector<8x32xf32> to vector<8x1x32xf32>
    "tpu.trace_start"() <{level = 10 : i32, message = "ntk,nok->nto"}> : () -> ()
    %cst_93 = arith.constant dense<0.000000e+00> : vector<8x2x1xf32>
    %205 = tpu.matmul %3, %204, %cst_93 {dimension_numbers = #tpu.dot_dimension_numbers<[2], [2], [1], [1], [0, 0, 0, 1, 1, 1], [0], [0]>} : vector<8x2x32xf32>, vector<8x1x32xf32>, vector<8x2x1xf32> -> vector<8x2x1xf32>
    "tpu.trace_stop"() : () -> ()
    %206 = vector.shape_cast %205 : vector<8x2x1xf32> to vector<8x2xf32>
    %cst_94 = arith.constant -1.000000e+09 : f32
    %207 = vector.broadcast %cst_94 : f32 to vector<8x2xf32>
    %208 = arith.select %7, %206, %207 : vector<8x2xi1>, vector<8x2xf32>
    %cst_95 = arith.constant dense<0xFF800000> : vector<8xf32>
    %209 = vector.multi_reduction <maximumf>, %208, %cst_95 [1] : vector<8x2xf32> to vector<8xf32>
    %210 = vector.shape_cast %209 : vector<8xf32> to vector<8x1xf32>
    %211 = vector.broadcast %210 : vector<8x1xf32> to vector<8x2xf32>
    %212 = arith.subf %208, %211 : vector<8x2xf32>
    %213 = math.exp %212 : vector<8x2xf32>
    %cst_96 = arith.constant dense<0.000000e+00> : vector<8xf32>
    %214 = vector.multi_reduction <add>, %213, %cst_96 [1] : vector<8x2xf32> to vector<8xf32>
    %215 = vector.shape_cast %214 : vector<8xf32> to vector<8x1xf32>
    %216 = tpu.reciprocal %215 {approx = true} : vector<8x1xf32> -> vector<8x1xf32>
    %217 = vector.broadcast %216 : vector<8x1xf32> to vector<8x2xf32>
    %218 = arith.mulf %213, %217 : vector<8x2xf32>
    %219 = vector.shape_cast %218 : vector<8x2xf32> to vector<8x1x2xf32>
    "tpu.trace_start"() <{level = 10 : i32, message = "not,ntv->nov"}> : () -> ()
    %cst_97 = arith.constant dense<0.000000e+00> : vector<8x1x32xf32>
    %220 = tpu.matmul %219, %4, %cst_97 {dimension_numbers = #tpu.dot_dimension_numbers<[2], [1], [1], [2], [0, 0, 0, 1, 1, 2], [0], [0]>} : vector<8x1x2xf32>, vector<8x2x32xf32>, vector<8x1x32xf32> -> vector<8x1x32xf32>
    "tpu.trace_stop"() : () -> ()
    %221 = vector.shape_cast %220 : vector<8x1x32xf32> to vector<8x32xf32>
    %c0_98 = arith.constant 0 : index
    %c0_99 = arith.constant 0 : index
    %222 = vector.load %arg11[%c0_98, %c0_99] : memref<8x32xf32, #tpu.memory_space<vmem>>, vector<8x32xf32>
    %223 = tpu.concatenate %221, %222 in 1 : vector<8x32xf32>, vector<8x32xf32> -> vector<8x64xf32>
    %224 = arith.index_cast %c2_i32 : i32 to index
    %c0_100 = arith.constant 0 : index
    %c0_101 = arith.constant 0 : index
    %225 = vector.load %arg1[%224, %c0_100, %c0_101] : memref<8x8x128xf32, #tpu.memory_space<vmem>>, vector<1x8x128xf32>
    %226 = vector.shape_cast %225 : vector<1x8x128xf32> to vector<8x128xf32>
    %cst_102 = arith.constant dense<0.000000e+00> : vector<8x128xf32>
    %227 = tpu.matmul %223, %8, %cst_102 {dimension_numbers = #tpu.dot_dimension_numbers<[1], [0], [0], [1], [0, 0, 1, 1], [], []>} : vector<8x64xf32>, vector<64x128xf32>, vector<8x128xf32> -> vector<8x128xf32>
    %228 = arith.addf %226, %227 : vector<8x128xf32>
    %229 = vector.extract_strided_slice %228 {offsets = [0, 0], sizes = [8, 32], strides = [1, 1]} : vector<8x128xf32> to vector<8x32xf32>
    %230 = arith.negf %229 : vector<8x32xf32>
    %231 = math.exp %230 : vector<8x32xf32>
    %cst_103 = arith.constant 1.000000e+00 : f32
    %232 = vector.broadcast %cst_103 : f32 to vector<8x32xf32>
    %233 = arith.addf %232, %231 : vector<8x32xf32>
    %234 = arith.divf %232, %233 : vector<8x32xf32>
    %235 = vector.extract_strided_slice %228 {offsets = [0, 32], sizes = [8, 32], strides = [1, 1]} : vector<8x128xf32> to vector<8x32xf32>
    %236 = arith.negf %235 : vector<8x32xf32>
    %237 = math.exp %236 : vector<8x32xf32>
    %cst_104 = arith.constant 1.000000e+00 : f32
    %238 = vector.broadcast %cst_104 : f32 to vector<8x32xf32>
    %239 = arith.addf %238, %237 : vector<8x32xf32>
    %240 = arith.divf %238, %239 : vector<8x32xf32>
    %241 = vector.extract_strided_slice %228 {offsets = [0, 64], sizes = [8, 32], strides = [1, 1]} : vector<8x128xf32> to vector<8x32xf32>
    %242 = math.tanh %241 : vector<8x32xf32>
    %243 = vector.extract_strided_slice %228 {offsets = [0, 96], sizes = [8, 32], strides = [1, 1]} : vector<8x128xf32> to vector<8x32xf32>
    %244 = arith.negf %243 : vector<8x32xf32>
    %245 = math.exp %244 : vector<8x32xf32>
    %cst_105 = arith.constant 1.000000e+00 : f32
    %246 = vector.broadcast %cst_105 : f32 to vector<8x32xf32>
    %247 = arith.addf %246, %245 : vector<8x32xf32>
    %248 = arith.divf %246, %247 : vector<8x32xf32>
    %c0_106 = arith.constant 0 : index
    %c0_107 = arith.constant 0 : index
    %249 = vector.load %arg12[%c0_106, %c0_107] : memref<8x32xf32, #tpu.memory_space<vmem>>, vector<8x32xf32>
    %250 = arith.mulf %240, %249 : vector<8x32xf32>
    %251 = arith.mulf %234, %242 : vector<8x32xf32>
    %252 = arith.addf %250, %251 : vector<8x32xf32>
    %253 = math.tanh %252 : vector<8x32xf32>
    %254 = arith.mulf %248, %253 : vector<8x32xf32>
    %c0_108 = arith.constant 0 : index
    %c0_109 = arith.constant 0 : index
    %255 = vector.load %arg13[%c0_108, %c0_109] : memref<8x32xf32, #tpu.memory_space<vmem>>, vector<8x32xf32>
    %256 = tpu.concatenate %254, %255 in 1 : vector<8x32xf32>, vector<8x32xf32> -> vector<8x64xf32>
    %cst_110 = arith.constant dense<0.000000e+00> : vector<8x128xf32>
    %257 = tpu.matmul %256, %9, %cst_110 {dimension_numbers = #tpu.dot_dimension_numbers<[1], [0], [0], [1], [0, 0, 1, 1], [], []>} : vector<8x64xf32>, vector<64x128xf32>, vector<8x128xf32> -> vector<8x128xf32>
    %258 = vector.broadcast %10 : vector<1x128xf32> to vector<8x128xf32>
    %259 = arith.addf %257, %258 : vector<8x128xf32>
    %260 = vector.extract_strided_slice %259 {offsets = [0, 0], sizes = [8, 32], strides = [1, 1]} : vector<8x128xf32> to vector<8x32xf32>
    %261 = arith.negf %260 : vector<8x32xf32>
    %262 = math.exp %261 : vector<8x32xf32>
    %cst_111 = arith.constant 1.000000e+00 : f32
    %263 = vector.broadcast %cst_111 : f32 to vector<8x32xf32>
    %264 = arith.addf %263, %262 : vector<8x32xf32>
    %265 = arith.divf %263, %264 : vector<8x32xf32>
    %266 = vector.extract_strided_slice %259 {offsets = [0, 32], sizes = [8, 32], strides = [1, 1]} : vector<8x128xf32> to vector<8x32xf32>
    %267 = arith.negf %266 : vector<8x32xf32>
    %268 = math.exp %267 : vector<8x32xf32>
    %cst_112 = arith.constant 1.000000e+00 : f32
    %269 = vector.broadcast %cst_112 : f32 to vector<8x32xf32>
    %270 = arith.addf %269, %268 : vector<8x32xf32>
    %271 = arith.divf %269, %270 : vector<8x32xf32>
    %272 = vector.extract_strided_slice %259 {offsets = [0, 64], sizes = [8, 32], strides = [1, 1]} : vector<8x128xf32> to vector<8x32xf32>
    %273 = math.tanh %272 : vector<8x32xf32>
    %274 = vector.extract_strided_slice %259 {offsets = [0, 96], sizes = [8, 32], strides = [1, 1]} : vector<8x128xf32> to vector<8x32xf32>
    %275 = arith.negf %274 : vector<8x32xf32>
    %276 = math.exp %275 : vector<8x32xf32>
    %cst_113 = arith.constant 1.000000e+00 : f32
    %277 = vector.broadcast %cst_113 : f32 to vector<8x32xf32>
    %278 = arith.addf %277, %276 : vector<8x32xf32>
    %279 = arith.divf %277, %278 : vector<8x32xf32>
    %c0_114 = arith.constant 0 : index
    %c0_115 = arith.constant 0 : index
    %280 = vector.load %arg14[%c0_114, %c0_115] : memref<8x32xf32, #tpu.memory_space<vmem>>, vector<8x32xf32>
    %281 = arith.mulf %271, %280 : vector<8x32xf32>
    %282 = arith.mulf %265, %273 : vector<8x32xf32>
    %283 = arith.addf %281, %282 : vector<8x32xf32>
    %284 = math.tanh %283 : vector<8x32xf32>
    %285 = arith.mulf %279, %284 : vector<8x32xf32>
    %286 = tpu.concatenate %285, %221 in 1 : vector<8x32xf32>, vector<8x32xf32> -> vector<8x64xf32>
    %cst_116 = arith.constant dense<0.000000e+00> : vector<8x40xf32>
    %287 = tpu.matmul %286, %11, %cst_116 {dimension_numbers = #tpu.dot_dimension_numbers<[1], [0], [0], [1], [0, 0, 1, 1], [], []>} : vector<8x64xf32>, vector<64x40xf32>, vector<8x40xf32> -> vector<8x40xf32>
    %288 = vector.broadcast %12 : vector<1x40xf32> to vector<8x40xf32>
    %289 = arith.addf %287, %288 : vector<8x40xf32>
    %290 = arith.index_cast %c2_i32 : i32 to index
    %c0_117 = arith.constant 0 : index
    %c0_118 = arith.constant 0 : index
    %291 = vector.load %arg10[%290, %c0_117, %c0_118] : memref<8x8x40xf32, #tpu.memory_space<vmem>>, vector<1x8x40xf32>
    %292 = vector.shape_cast %291 : vector<1x8x40xf32> to vector<8x40xf32>
    %293 = vector.shape_cast %289 : vector<8x40xf32> to vector<1x8x40xf32>
    tpu.vector_store %arg10[%290, %c0_117, %c0_118], %293 {strides = array<i32>} : memref<8x8x40xf32, #tpu.memory_space<vmem>>, vector<1x8x40xf32>,
    %c0_119 = arith.constant 0 : index
    %c0_120 = arith.constant 0 : index
    %294 = vector.load %arg11[%c0_119, %c0_120] : memref<8x32xf32, #tpu.memory_space<vmem>>, vector<8x32xf32>
    tpu.vector_store %arg11[%c0_119, %c0_120], %254 {strides = array<i32>} : memref<8x32xf32, #tpu.memory_space<vmem>>, vector<8x32xf32>,
    %c0_121 = arith.constant 0 : index
    %c0_122 = arith.constant 0 : index
    %295 = vector.load %arg12[%c0_121, %c0_122] : memref<8x32xf32, #tpu.memory_space<vmem>>, vector<8x32xf32>
    tpu.vector_store %arg12[%c0_121, %c0_122], %252 {strides = array<i32>} : memref<8x32xf32, #tpu.memory_space<vmem>>, vector<8x32xf32>,
    %c0_123 = arith.constant 0 : index
    %c0_124 = arith.constant 0 : index
    %296 = vector.load %arg13[%c0_123, %c0_124] : memref<8x32xf32, #tpu.memory_space<vmem>>, vector<8x32xf32>
    tpu.vector_store %arg13[%c0_123, %c0_124], %285 {strides = array<i32>} : memref<8x32xf32, #tpu.memory_space<vmem>>, vector<8x32xf32>,
    %c0_125 = arith.constant 0 : index
    %c0_126 = arith.constant 0 : index
    %297 = vector.load %arg14[%c0_125, %c0_126] : memref<8x32xf32, #tpu.memory_space<vmem>>, vector<8x32xf32>
    tpu.vector_store %arg14[%c0_125, %c0_126], %283 {strides = array<i32>} : memref<8x32xf32, #tpu.memory_space<vmem>>, vector<8x32xf32>,
    %c3_i32 = arith.constant 3 : i32
    %c0_127 = arith.constant 0 : index
    %c0_128 = arith.constant 0 : index
    %298 = vector.load %arg13[%c0_127, %c0_128] : memref<8x32xf32, #tpu.memory_space<vmem>>, vector<8x32xf32>
    %299 = vector.shape_cast %298 : vector<8x32xf32> to vector<8x1x32xf32>
    "tpu.trace_start"() <{level = 10 : i32, message = "ntk,nok->nto"}> : () -> ()
    %cst_129 = arith.constant dense<0.000000e+00> : vector<8x2x1xf32>
    %300 = tpu.matmul %3, %299, %cst_129 {dimension_numbers = #tpu.dot_dimension_numbers<[2], [2], [1], [1], [0, 0, 0, 1, 1, 1], [0], [0]>} : vector<8x2x32xf32>, vector<8x1x32xf32>, vector<8x2x1xf32> -> vector<8x2x1xf32>
    "tpu.trace_stop"() : () -> ()
    %301 = vector.shape_cast %300 : vector<8x2x1xf32> to vector<8x2xf32>
    %cst_130 = arith.constant -1.000000e+09 : f32
    %302 = vector.broadcast %cst_130 : f32 to vector<8x2xf32>
    %303 = arith.select %7, %301, %302 : vector<8x2xi1>, vector<8x2xf32>
    %cst_131 = arith.constant dense<0xFF800000> : vector<8xf32>
    %304 = vector.multi_reduction <maximumf>, %303, %cst_131 [1] : vector<8x2xf32> to vector<8xf32>
    %305 = vector.shape_cast %304 : vector<8xf32> to vector<8x1xf32>
    %306 = vector.broadcast %305 : vector<8x1xf32> to vector<8x2xf32>
    %307 = arith.subf %303, %306 : vector<8x2xf32>
    %308 = math.exp %307 : vector<8x2xf32>
    %cst_132 = arith.constant dense<0.000000e+00> : vector<8xf32>
    %309 = vector.multi_reduction <add>, %308, %cst_132 [1] : vector<8x2xf32> to vector<8xf32>
    %310 = vector.shape_cast %309 : vector<8xf32> to vector<8x1xf32>
    %311 = tpu.reciprocal %310 {approx = true} : vector<8x1xf32> -> vector<8x1xf32>
    %312 = vector.broadcast %311 : vector<8x1xf32> to vector<8x2xf32>
    %313 = arith.mulf %308, %312 : vector<8x2xf32>
    %314 = vector.shape_cast %313 : vector<8x2xf32> to vector<8x1x2xf32>
    "tpu.trace_start"() <{level = 10 : i32, message = "not,ntv->nov"}> : () -> ()
    %cst_133 = arith.constant dense<0.000000e+00> : vector<8x1x32xf32>
    %315 = tpu.matmul %314, %4, %cst_133 {dimension_numbers = #tpu.dot_dimension_numbers<[2], [1], [1], [2], [0, 0, 0, 1, 1, 2], [0], [0]>} : vector<8x1x2xf32>, vector<8x2x32xf32>, vector<8x1x32xf32> -> vector<8x1x32xf32>
    "tpu.trace_stop"() : () -> ()
    %316 = vector.shape_cast %315 : vector<8x1x32xf32> to vector<8x32xf32>
    %c0_134 = arith.constant 0 : index
    %c0_135 = arith.constant 0 : index
    %317 = vector.load %arg11[%c0_134, %c0_135] : memref<8x32xf32, #tpu.memory_space<vmem>>, vector<8x32xf32>
    %318 = tpu.concatenate %316, %317 in 1 : vector<8x32xf32>, vector<8x32xf32> -> vector<8x64xf32>
    %319 = arith.index_cast %c3_i32 : i32 to index
    %c0_136 = arith.constant 0 : index
    %c0_137 = arith.constant 0 : index
    %320 = vector.load %arg1[%319, %c0_136, %c0_137] : memref<8x8x128xf32, #tpu.memory_space<vmem>>, vector<1x8x128xf32>
    %321 = vector.shape_cast %320 : vector<1x8x128xf32> to vector<8x128xf32>
    %cst_138 = arith.constant dense<0.000000e+00> : vector<8x128xf32>
    %322 = tpu.matmul %318, %8, %cst_138 {dimension_numbers = #tpu.dot_dimension_numbers<[1], [0], [0], [1], [0, 0, 1, 1], [], []>} : vector<8x64xf32>, vector<64x128xf32>, vector<8x128xf32> -> vector<8x128xf32>
    %323 = arith.addf %321, %322 : vector<8x128xf32>
    %324 = vector.extract_strided_slice %323 {offsets = [0, 0], sizes = [8, 32], strides = [1, 1]} : vector<8x128xf32> to vector<8x32xf32>
    %325 = arith.negf %324 : vector<8x32xf32>
    %326 = math.exp %325 : vector<8x32xf32>
    %cst_139 = arith.constant 1.000000e+00 : f32
    %327 = vector.broadcast %cst_139 : f32 to vector<8x32xf32>
    %328 = arith.addf %327, %326 : vector<8x32xf32>
    %329 = arith.divf %327, %328 : vector<8x32xf32>
    %330 = vector.extract_strided_slice %323 {offsets = [0, 32], sizes = [8, 32], strides = [1, 1]} : vector<8x128xf32> to vector<8x32xf32>
    %331 = arith.negf %330 : vector<8x32xf32>
    %332 = math.exp %331 : vector<8x32xf32>
    %cst_140 = arith.constant 1.000000e+00 : f32
    %333 = vector.broadcast %cst_140 : f32 to vector<8x32xf32>
    %334 = arith.addf %333, %332 : vector<8x32xf32>
    %335 = arith.divf %333, %334 : vector<8x32xf32>
    %336 = vector.extract_strided_slice %323 {offsets = [0, 64], sizes = [8, 32], strides = [1, 1]} : vector<8x128xf32> to vector<8x32xf32>
    %337 = math.tanh %336 : vector<8x32xf32>
    %338 = vector.extract_strided_slice %323 {offsets = [0, 96], sizes = [8, 32], strides = [1, 1]} : vector<8x128xf32> to vector<8x32xf32>
    %339 = arith.negf %338 : vector<8x32xf32>
    %340 = math.exp %339 : vector<8x32xf32>
    %cst_141 = arith.constant 1.000000e+00 : f32
    %341 = vector.broadcast %cst_141 : f32 to vector<8x32xf32>
    %342 = arith.addf %341, %340 : vector<8x32xf32>
    %343 = arith.divf %341, %342 : vector<8x32xf32>
    %c0_142 = arith.constant 0 : index
    %c0_143 = arith.constant 0 : index
    %344 = vector.load %arg12[%c0_142, %c0_143] : memref<8x32xf32, #tpu.memory_space<vmem>>, vector<8x32xf32>
    %345 = arith.mulf %335, %344 : vector<8x32xf32>
    %346 = arith.mulf %329, %337 : vector<8x32xf32>
    %347 = arith.addf %345, %346 : vector<8x32xf32>
    %348 = math.tanh %347 : vector<8x32xf32>
    %349 = arith.mulf %343, %348 : vector<8x32xf32>
    %c0_144 = arith.constant 0 : index
    %c0_145 = arith.constant 0 : index
    %350 = vector.load %arg13[%c0_144, %c0_145] : memref<8x32xf32, #tpu.memory_space<vmem>>, vector<8x32xf32>
    %351 = tpu.concatenate %349, %350 in 1 : vector<8x32xf32>, vector<8x32xf32> -> vector<8x64xf32>
    %cst_146 = arith.constant dense<0.000000e+00> : vector<8x128xf32>
    %352 = tpu.matmul %351, %9, %cst_146 {dimension_numbers = #tpu.dot_dimension_numbers<[1], [0], [0], [1], [0, 0, 1, 1], [], []>} : vector<8x64xf32>, vector<64x128xf32>, vector<8x128xf32> -> vector<8x128xf32>
    %353 = vector.broadcast %10 : vector<1x128xf32> to vector<8x128xf32>
    %354 = arith.addf %352, %353 : vector<8x128xf32>
    %355 = vector.extract_strided_slice %354 {offsets = [0, 0], sizes = [8, 32], strides = [1, 1]} : vector<8x128xf32> to vector<8x32xf32>
    %356 = arith.negf %355 : vector<8x32xf32>
    %357 = math.exp %356 : vector<8x32xf32>
    %cst_147 = arith.constant 1.000000e+00 : f32
    %358 = vector.broadcast %cst_147 : f32 to vector<8x32xf32>
    %359 = arith.addf %358, %357 : vector<8x32xf32>
    %360 = arith.divf %358, %359 : vector<8x32xf32>
    %361 = vector.extract_strided_slice %354 {offsets = [0, 32], sizes = [8, 32], strides = [1, 1]} : vector<8x128xf32> to vector<8x32xf32>
    %362 = arith.negf %361 : vector<8x32xf32>
    %363 = math.exp %362 : vector<8x32xf32>
    %cst_148 = arith.constant 1.000000e+00 : f32
    %364 = vector.broadcast %cst_148 : f32 to vector<8x32xf32>
    %365 = arith.addf %364, %363 : vector<8x32xf32>
    %366 = arith.divf %364, %365 : vector<8x32xf32>
    %367 = vector.extract_strided_slice %354 {offsets = [0, 64], sizes = [8, 32], strides = [1, 1]} : vector<8x128xf32> to vector<8x32xf32>
    %368 = math.tanh %367 : vector<8x32xf32>
    %369 = vector.extract_strided_slice %354 {offsets = [0, 96], sizes = [8, 32], strides = [1, 1]} : vector<8x128xf32> to vector<8x32xf32>
    %370 = arith.negf %369 : vector<8x32xf32>
    %371 = math.exp %370 : vector<8x32xf32>
    %cst_149 = arith.constant 1.000000e+00 : f32
    %372 = vector.broadcast %cst_149 : f32 to vector<8x32xf32>
    %373 = arith.addf %372, %371 : vector<8x32xf32>
    %374 = arith.divf %372, %373 : vector<8x32xf32>
    %c0_150 = arith.constant 0 : index
    %c0_151 = arith.constant 0 : index
    %375 = vector.load %arg14[%c0_150, %c0_151] : memref<8x32xf32, #tpu.memory_space<vmem>>, vector<8x32xf32>
    %376 = arith.mulf %366, %375 : vector<8x32xf32>
    %377 = arith.mulf %360, %368 : vector<8x32xf32>
    %378 = arith.addf %376, %377 : vector<8x32xf32>
    %379 = math.tanh %378 : vector<8x32xf32>
    %380 = arith.mulf %374, %379 : vector<8x32xf32>
    %381 = tpu.concatenate %380, %316 in 1 : vector<8x32xf32>, vector<8x32xf32> -> vector<8x64xf32>
    %cst_152 = arith.constant dense<0.000000e+00> : vector<8x40xf32>
    %382 = tpu.matmul %381, %11, %cst_152 {dimension_numbers = #tpu.dot_dimension_numbers<[1], [0], [0], [1], [0, 0, 1, 1], [], []>} : vector<8x64xf32>, vector<64x40xf32>, vector<8x40xf32> -> vector<8x40xf32>
    %383 = vector.broadcast %12 : vector<1x40xf32> to vector<8x40xf32>
    %384 = arith.addf %382, %383 : vector<8x40xf32>
    %385 = arith.index_cast %c3_i32 : i32 to index
    %c0_153 = arith.constant 0 : index
    %c0_154 = arith.constant 0 : index
    %386 = vector.load %arg10[%385, %c0_153, %c0_154] : memref<8x8x40xf32, #tpu.memory_space<vmem>>, vector<1x8x40xf32>
    %387 = vector.shape_cast %386 : vector<1x8x40xf32> to vector<8x40xf32>
    %388 = vector.shape_cast %384 : vector<8x40xf32> to vector<1x8x40xf32>
    tpu.vector_store %arg10[%385, %c0_153, %c0_154], %388 {strides = array<i32>} : memref<8x8x40xf32, #tpu.memory_space<vmem>>, vector<1x8x40xf32>,
    %c0_155 = arith.constant 0 : index
    %c0_156 = arith.constant 0 : index
    %389 = vector.load %arg11[%c0_155, %c0_156] : memref<8x32xf32, #tpu.memory_space<vmem>>, vector<8x32xf32>
    tpu.vector_store %arg11[%c0_155, %c0_156], %349 {strides = array<i32>} : memref<8x32xf32, #tpu.memory_space<vmem>>, vector<8x32xf32>,
    %c0_157 = arith.constant 0 : index
    %c0_158 = arith.constant 0 : index
    %390 = vector.load %arg12[%c0_157, %c0_158] : memref<8x32xf32, #tpu.memory_space<vmem>>, vector<8x32xf32>
    tpu.vector_store %arg12[%c0_157, %c0_158], %347 {strides = array<i32>} : memref<8x32xf32, #tpu.memory_space<vmem>>, vector<8x32xf32>,
    %c0_159 = arith.constant 0 : index
    %c0_160 = arith.constant 0 : index
    %391 = vector.load %arg13[%c0_159, %c0_160] : memref<8x32xf32, #tpu.memory_space<vmem>>, vector<8x32xf32>
    tpu.vector_store %arg13[%c0_159, %c0_160], %380 {strides = array<i32>} : memref<8x32xf32, #tpu.memory_space<vmem>>, vector<8x32xf32>,
    %c0_161 = arith.constant 0 : index
    %c0_162 = arith.constant 0 : index
    %392 = vector.load %arg14[%c0_161, %c0_162] : memref<8x32xf32, #tpu.memory_space<vmem>>, vector<8x32xf32>
    tpu.vector_store %arg14[%c0_161, %c0_162], %378 {strides = array<i32>} : memref<8x32xf32, #tpu.memory_space<vmem>>, vector<8x32xf32>,
    %c4_i32 = arith.constant 4 : i32
    %c0_163 = arith.constant 0 : index
    %c0_164 = arith.constant 0 : index
    %393 = vector.load %arg13[%c0_163, %c0_164] : memref<8x32xf32, #tpu.memory_space<vmem>>, vector<8x32xf32>
    %394 = vector.shape_cast %393 : vector<8x32xf32> to vector<8x1x32xf32>
    "tpu.trace_start"() <{level = 10 : i32, message = "ntk,nok->nto"}> : () -> ()
    %cst_165 = arith.constant dense<0.000000e+00> : vector<8x2x1xf32>
    %395 = tpu.matmul %3, %394, %cst_165 {dimension_numbers = #tpu.dot_dimension_numbers<[2], [2], [1], [1], [0, 0, 0, 1, 1, 1], [0], [0]>} : vector<8x2x32xf32>, vector<8x1x32xf32>, vector<8x2x1xf32> -> vector<8x2x1xf32>
    "tpu.trace_stop"() : () -> ()
    %396 = vector.shape_cast %395 : vector<8x2x1xf32> to vector<8x2xf32>
    %cst_166 = arith.constant -1.000000e+09 : f32
    %397 = vector.broadcast %cst_166 : f32 to vector<8x2xf32>
    %398 = arith.select %7, %396, %397 : vector<8x2xi1>, vector<8x2xf32>
    %cst_167 = arith.constant dense<0xFF800000> : vector<8xf32>
    %399 = vector.multi_reduction <maximumf>, %398, %cst_167 [1] : vector<8x2xf32> to vector<8xf32>
    %400 = vector.shape_cast %399 : vector<8xf32> to vector<8x1xf32>
    %401 = vector.broadcast %400 : vector<8x1xf32> to vector<8x2xf32>
    %402 = arith.subf %398, %401 : vector<8x2xf32>
    %403 = math.exp %402 : vector<8x2xf32>
    %cst_168 = arith.constant dense<0.000000e+00> : vector<8xf32>
    %404 = vector.multi_reduction <add>, %403, %cst_168 [1] : vector<8x2xf32> to vector<8xf32>
    %405 = vector.shape_cast %404 : vector<8xf32> to vector<8x1xf32>
    %406 = tpu.reciprocal %405 {approx = true} : vector<8x1xf32> -> vector<8x1xf32>
    %407 = vector.broadcast %406 : vector<8x1xf32> to vector<8x2xf32>
    %408 = arith.mulf %403, %407 : vector<8x2xf32>
    %409 = vector.shape_cast %408 : vector<8x2xf32> to vector<8x1x2xf32>
    "tpu.trace_start"() <{level = 10 : i32, message = "not,ntv->nov"}> : () -> ()
    %cst_169 = arith.constant dense<0.000000e+00> : vector<8x1x32xf32>
    %410 = tpu.matmul %409, %4, %cst_169 {dimension_numbers = #tpu.dot_dimension_numbers<[2], [1], [1], [2], [0, 0, 0, 1, 1, 2], [0], [0]>} : vector<8x1x2xf32>, vector<8x2x32xf32>, vector<8x1x32xf32> -> vector<8x1x32xf32>
    "tpu.trace_stop"() : () -> ()
    %411 = vector.shape_cast %410 : vector<8x1x32xf32> to vector<8x32xf32>
    %c0_170 = arith.constant 0 : index
    %c0_171 = arith.constant 0 : index
    %412 = vector.load %arg11[%c0_170, %c0_171] : memref<8x32xf32, #tpu.memory_space<vmem>>, vector<8x32xf32>
    %413 = tpu.concatenate %411, %412 in 1 : vector<8x32xf32>, vector<8x32xf32> -> vector<8x64xf32>
    %414 = arith.index_cast %c4_i32 : i32 to index
    %c0_172 = arith.constant 0 : index
    %c0_173 = arith.constant 0 : index
    %415 = vector.load %arg1[%414, %c0_172, %c0_173] : memref<8x8x128xf32, #tpu.memory_space<vmem>>, vector<1x8x128xf32>
    %416 = vector.shape_cast %415 : vector<1x8x128xf32> to vector<8x128xf32>
    %cst_174 = arith.constant dense<0.000000e+00> : vector<8x128xf32>
    %417 = tpu.matmul %413, %8, %cst_174 {dimension_numbers = #tpu.dot_dimension_numbers<[1], [0], [0], [1], [0, 0, 1, 1], [], []>} : vector<8x64xf32>, vector<64x128xf32>, vector<8x128xf32> -> vector<8x128xf32>
    %418 = arith.addf %416, %417 : vector<8x128xf32>
    %419 = vector.extract_strided_slice %418 {offsets = [0, 0], sizes = [8, 32], strides = [1, 1]} : vector<8x128xf32> to vector<8x32xf32>
    %420 = arith.negf %419 : vector<8x32xf32>
    %421 = math.exp %420 : vector<8x32xf32>
    %cst_175 = arith.constant 1.000000e+00 : f32
    %422 = vector.broadcast %cst_175 : f32 to vector<8x32xf32>
    %423 = arith.addf %422, %421 : vector<8x32xf32>
    %424 = arith.divf %422, %423 : vector<8x32xf32>
    %425 = vector.extract_strided_slice %418 {offsets = [0, 32], sizes = [8, 32], strides = [1, 1]} : vector<8x128xf32> to vector<8x32xf32>
    %426 = arith.negf %425 : vector<8x32xf32>
    %427 = math.exp %426 : vector<8x32xf32>
    %cst_176 = arith.constant 1.000000e+00 : f32
    %428 = vector.broadcast %cst_176 : f32 to vector<8x32xf32>
    %429 = arith.addf %428, %427 : vector<8x32xf32>
    %430 = arith.divf %428, %429 : vector<8x32xf32>
    %431 = vector.extract_strided_slice %418 {offsets = [0, 64], sizes = [8, 32], strides = [1, 1]} : vector<8x128xf32> to vector<8x32xf32>
    %432 = math.tanh %431 : vector<8x32xf32>
    %433 = vector.extract_strided_slice %418 {offsets = [0, 96], sizes = [8, 32], strides = [1, 1]} : vector<8x128xf32> to vector<8x32xf32>
    %434 = arith.negf %433 : vector<8x32xf32>
    %435 = math.exp %434 : vector<8x32xf32>
    %cst_177 = arith.constant 1.000000e+00 : f32
    %436 = vector.broadcast %cst_177 : f32 to vector<8x32xf32>
    %437 = arith.addf %436, %435 : vector<8x32xf32>
    %438 = arith.divf %436, %437 : vector<8x32xf32>
    %c0_178 = arith.constant 0 : index
    %c0_179 = arith.constant 0 : index
    %439 = vector.load %arg12[%c0_178, %c0_179] : memref<8x32xf32, #tpu.memory_space<vmem>>, vector<8x32xf32>
    %440 = arith.mulf %430, %439 : vector<8x32xf32>
    %441 = arith.mulf %424, %432 : vector<8x32xf32>
    %442 = arith.addf %440, %441 : vector<8x32xf32>
    %443 = math.tanh %442 : vector<8x32xf32>
    %444 = arith.mulf %438, %443 : vector<8x32xf32>
    %c0_180 = arith.constant 0 : index
    %c0_181 = arith.constant 0 : index
    %445 = vector.load %arg13[%c0_180, %c0_181] : memref<8x32xf32, #tpu.memory_space<vmem>>, vector<8x32xf32>
    %446 = tpu.concatenate %444, %445 in 1 : vector<8x32xf32>, vector<8x32xf32> -> vector<8x64xf32>
    %cst_182 = arith.constant dense<0.000000e+00> : vector<8x128xf32>
    %447 = tpu.matmul %446, %9, %cst_182 {dimension_numbers = #tpu.dot_dimension_numbers<[1], [0], [0], [1], [0, 0, 1, 1], [], []>} : vector<8x64xf32>, vector<64x128xf32>, vector<8x128xf32> -> vector<8x128xf32>
    %448 = vector.broadcast %10 : vector<1x128xf32> to vector<8x128xf32>
    %449 = arith.addf %447, %448 : vector<8x128xf32>
    %450 = vector.extract_strided_slice %449 {offsets = [0, 0], sizes = [8, 32], strides = [1, 1]} : vector<8x128xf32> to vector<8x32xf32>
    %451 = arith.negf %450 : vector<8x32xf32>
    %452 = math.exp %451 : vector<8x32xf32>
    %cst_183 = arith.constant 1.000000e+00 : f32
    %453 = vector.broadcast %cst_183 : f32 to vector<8x32xf32>
    %454 = arith.addf %453, %452 : vector<8x32xf32>
    %455 = arith.divf %453, %454 : vector<8x32xf32>
    %456 = vector.extract_strided_slice %449 {offsets = [0, 32], sizes = [8, 32], strides = [1, 1]} : vector<8x128xf32> to vector<8x32xf32>
    %457 = arith.negf %456 : vector<8x32xf32>
    %458 = math.exp %457 : vector<8x32xf32>
    %cst_184 = arith.constant 1.000000e+00 : f32
    %459 = vector.broadcast %cst_184 : f32 to vector<8x32xf32>
    %460 = arith.addf %459, %458 : vector<8x32xf32>
    %461 = arith.divf %459, %460 : vector<8x32xf32>
    %462 = vector.extract_strided_slice %449 {offsets = [0, 64], sizes = [8, 32], strides = [1, 1]} : vector<8x128xf32> to vector<8x32xf32>
    %463 = math.tanh %462 : vector<8x32xf32>
    %464 = vector.extract_strided_slice %449 {offsets = [0, 96], sizes = [8, 32], strides = [1, 1]} : vector<8x128xf32> to vector<8x32xf32>
    %465 = arith.negf %464 : vector<8x32xf32>
    %466 = math.exp %465 : vector<8x32xf32>
    %cst_185 = arith.constant 1.000000e+00 : f32
    %467 = vector.broadcast %cst_185 : f32 to vector<8x32xf32>
    %468 = arith.addf %467, %466 : vector<8x32xf32>
    %469 = arith.divf %467, %468 : vector<8x32xf32>
    %c0_186 = arith.constant 0 : index
    %c0_187 = arith.constant 0 : index
    %470 = vector.load %arg14[%c0_186, %c0_187] : memref<8x32xf32, #tpu.memory_space<vmem>>, vector<8x32xf32>
    %471 = arith.mulf %461, %470 : vector<8x32xf32>
    %472 = arith.mulf %455, %463 : vector<8x32xf32>
    %473 = arith.addf %471, %472 : vector<8x32xf32>
    %474 = math.tanh %473 : vector<8x32xf32>
    %475 = arith.mulf %469, %474 : vector<8x32xf32>
    %476 = tpu.concatenate %475, %411 in 1 : vector<8x32xf32>, vector<8x32xf32> -> vector<8x64xf32>
    %cst_188 = arith.constant dense<0.000000e+00> : vector<8x40xf32>
    %477 = tpu.matmul %476, %11, %cst_188 {dimension_numbers = #tpu.dot_dimension_numbers<[1], [0], [0], [1], [0, 0, 1, 1], [], []>} : vector<8x64xf32>, vector<64x40xf32>, vector<8x40xf32> -> vector<8x40xf32>
    %478 = vector.broadcast %12 : vector<1x40xf32> to vector<8x40xf32>
    %479 = arith.addf %477, %478 : vector<8x40xf32>
    %480 = arith.index_cast %c4_i32 : i32 to index
    %c0_189 = arith.constant 0 : index
    %c0_190 = arith.constant 0 : index
    %481 = vector.load %arg10[%480, %c0_189, %c0_190] : memref<8x8x40xf32, #tpu.memory_space<vmem>>, vector<1x8x40xf32>
    %482 = vector.shape_cast %481 : vector<1x8x40xf32> to vector<8x40xf32>
    %483 = vector.shape_cast %479 : vector<8x40xf32> to vector<1x8x40xf32>
    tpu.vector_store %arg10[%480, %c0_189, %c0_190], %483 {strides = array<i32>} : memref<8x8x40xf32, #tpu.memory_space<vmem>>, vector<1x8x40xf32>,
    %c0_191 = arith.constant 0 : index
    %c0_192 = arith.constant 0 : index
    %484 = vector.load %arg11[%c0_191, %c0_192] : memref<8x32xf32, #tpu.memory_space<vmem>>, vector<8x32xf32>
    tpu.vector_store %arg11[%c0_191, %c0_192], %444 {strides = array<i32>} : memref<8x32xf32, #tpu.memory_space<vmem>>, vector<8x32xf32>,
    %c0_193 = arith.constant 0 : index
    %c0_194 = arith.constant 0 : index
    %485 = vector.load %arg12[%c0_193, %c0_194] : memref<8x32xf32, #tpu.memory_space<vmem>>, vector<8x32xf32>
    tpu.vector_store %arg12[%c0_193, %c0_194], %442 {strides = array<i32>} : memref<8x32xf32, #tpu.memory_space<vmem>>, vector<8x32xf32>,
    %c0_195 = arith.constant 0 : index
    %c0_196 = arith.constant 0 : index
    %486 = vector.load %arg13[%c0_195, %c0_196] : memref<8x32xf32, #tpu.memory_space<vmem>>, vector<8x32xf32>
    tpu.vector_store %arg13[%c0_195, %c0_196], %475 {strides = array<i32>} : memref<8x32xf32, #tpu.memory_space<vmem>>, vector<8x32xf32>,
    %c0_197 = arith.constant 0 : index
    %c0_198 = arith.constant 0 : index
    %487 = vector.load %arg14[%c0_197, %c0_198] : memref<8x32xf32, #tpu.memory_space<vmem>>, vector<8x32xf32>
    tpu.vector_store %arg14[%c0_197, %c0_198], %473 {strides = array<i32>} : memref<8x32xf32, #tpu.memory_space<vmem>>, vector<8x32xf32>,
    %c5_i32 = arith.constant 5 : i32
    %c0_199 = arith.constant 0 : index
    %c0_200 = arith.constant 0 : index
    %488 = vector.load %arg13[%c0_199, %c0_200] : memref<8x32xf32, #tpu.memory_space<vmem>>, vector<8x32xf32>
    %489 = vector.shape_cast %488 : vector<8x32xf32> to vector<8x1x32xf32>
    "tpu.trace_start"() <{level = 10 : i32, message = "ntk,nok->nto"}> : () -> ()
    %cst_201 = arith.constant dense<0.000000e+00> : vector<8x2x1xf32>
    %490 = tpu.matmul %3, %489, %cst_201 {dimension_numbers = #tpu.dot_dimension_numbers<[2], [2], [1], [1], [0, 0, 0, 1, 1, 1], [0], [0]>} : vector<8x2x32xf32>, vector<8x1x32xf32>, vector<8x2x1xf32> -> vector<8x2x1xf32>
    "tpu.trace_stop"() : () -> ()
    %491 = vector.shape_cast %490 : vector<8x2x1xf32> to vector<8x2xf32>
    %cst_202 = arith.constant -1.000000e+09 : f32
    %492 = vector.broadcast %cst_202 : f32 to vector<8x2xf32>
    %493 = arith.select %7, %491, %492 : vector<8x2xi1>, vector<8x2xf32>
    %cst_203 = arith.constant dense<0xFF800000> : vector<8xf32>
    %494 = vector.multi_reduction <maximumf>, %493, %cst_203 [1] : vector<8x2xf32> to vector<8xf32>
    %495 = vector.shape_cast %494 : vector<8xf32> to vector<8x1xf32>
    %496 = vector.broadcast %495 : vector<8x1xf32> to vector<8x2xf32>
    %497 = arith.subf %493, %496 : vector<8x2xf32>
    %498 = math.exp %497 : vector<8x2xf32>
    %cst_204 = arith.constant dense<0.000000e+00> : vector<8xf32>
    %499 = vector.multi_reduction <add>, %498, %cst_204 [1] : vector<8x2xf32> to vector<8xf32>
    %500 = vector.shape_cast %499 : vector<8xf32> to vector<8x1xf32>
    %501 = tpu.reciprocal %500 {approx = true} : vector<8x1xf32> -> vector<8x1xf32>
    %502 = vector.broadcast %501 : vector<8x1xf32> to vector<8x2xf32>
    %503 = arith.mulf %498, %502 : vector<8x2xf32>
    %504 = vector.shape_cast %503 : vector<8x2xf32> to vector<8x1x2xf32>
    "tpu.trace_start"() <{level = 10 : i32, message = "not,ntv->nov"}> : () -> ()
    %cst_205 = arith.constant dense<0.000000e+00> : vector<8x1x32xf32>
    %505 = tpu.matmul %504, %4, %cst_205 {dimension_numbers = #tpu.dot_dimension_numbers<[2], [1], [1], [2], [0, 0, 0, 1, 1, 2], [0], [0]>} : vector<8x1x2xf32>, vector<8x2x32xf32>, vector<8x1x32xf32> -> vector<8x1x32xf32>
    "tpu.trace_stop"() : () -> ()
    %506 = vector.shape_cast %505 : vector<8x1x32xf32> to vector<8x32xf32>
    %c0_206 = arith.constant 0 : index
    %c0_207 = arith.constant 0 : index
    %507 = vector.load %arg11[%c0_206, %c0_207] : memref<8x32xf32, #tpu.memory_space<vmem>>, vector<8x32xf32>
    %508 = tpu.concatenate %506, %507 in 1 : vector<8x32xf32>, vector<8x32xf32> -> vector<8x64xf32>
    %509 = arith.index_cast %c5_i32 : i32 to index
    %c0_208 = arith.constant 0 : index
    %c0_209 = arith.constant 0 : index
    %510 = vector.load %arg1[%509, %c0_208, %c0_209] : memref<8x8x128xf32, #tpu.memory_space<vmem>>, vector<1x8x128xf32>
    %511 = vector.shape_cast %510 : vector<1x8x128xf32> to vector<8x128xf32>
    %cst_210 = arith.constant dense<0.000000e+00> : vector<8x128xf32>
    %512 = tpu.matmul %508, %8, %cst_210 {dimension_numbers = #tpu.dot_dimension_numbers<[1], [0], [0], [1], [0, 0, 1, 1], [], []>} : vector<8x64xf32>, vector<64x128xf32>, vector<8x128xf32> -> vector<8x128xf32>
    %513 = arith.addf %511, %512 : vector<8x128xf32>
    %514 = vector.extract_strided_slice %513 {offsets = [0, 0], sizes = [8, 32], strides = [1, 1]} : vector<8x128xf32> to vector<8x32xf32>
    %515 = arith.negf %514 : vector<8x32xf32>
    %516 = math.exp %515 : vector<8x32xf32>
    %cst_211 = arith.constant 1.000000e+00 : f32
    %517 = vector.broadcast %cst_211 : f32 to vector<8x32xf32>
    %518 = arith.addf %517, %516 : vector<8x32xf32>
    %519 = arith.divf %517, %518 : vector<8x32xf32>
    %520 = vector.extract_strided_slice %513 {offsets = [0, 32], sizes = [8, 32], strides = [1, 1]} : vector<8x128xf32> to vector<8x32xf32>
    %521 = arith.negf %520 : vector<8x32xf32>
    %522 = math.exp %521 : vector<8x32xf32>
    %cst_212 = arith.constant 1.000000e+00 : f32
    %523 = vector.broadcast %cst_212 : f32 to vector<8x32xf32>
    %524 = arith.addf %523, %522 : vector<8x32xf32>
    %525 = arith.divf %523, %524 : vector<8x32xf32>
    %526 = vector.extract_strided_slice %513 {offsets = [0, 64], sizes = [8, 32], strides = [1, 1]} : vector<8x128xf32> to vector<8x32xf32>
    %527 = math.tanh %526 : vector<8x32xf32>
    %528 = vector.extract_strided_slice %513 {offsets = [0, 96], sizes = [8, 32], strides = [1, 1]} : vector<8x128xf32> to vector<8x32xf32>
    %529 = arith.negf %528 : vector<8x32xf32>
    %530 = math.exp %529 : vector<8x32xf32>
    %cst_213 = arith.constant 1.000000e+00 : f32
    %531 = vector.broadcast %cst_213 : f32 to vector<8x32xf32>
    %532 = arith.addf %531, %530 : vector<8x32xf32>
    %533 = arith.divf %531, %532 : vector<8x32xf32>
    %c0_214 = arith.constant 0 : index
    %c0_215 = arith.constant 0 : index
    %534 = vector.load %arg12[%c0_214, %c0_215] : memref<8x32xf32, #tpu.memory_space<vmem>>, vector<8x32xf32>
    %535 = arith.mulf %525, %534 : vector<8x32xf32>
    %536 = arith.mulf %519, %527 : vector<8x32xf32>
    %537 = arith.addf %535, %536 : vector<8x32xf32>
    %538 = math.tanh %537 : vector<8x32xf32>
    %539 = arith.mulf %533, %538 : vector<8x32xf32>
    %c0_216 = arith.constant 0 : index
    %c0_217 = arith.constant 0 : index
    %540 = vector.load %arg13[%c0_216, %c0_217] : memref<8x32xf32, #tpu.memory_space<vmem>>, vector<8x32xf32>
    %541 = tpu.concatenate %539, %540 in 1 : vector<8x32xf32>, vector<8x32xf32> -> vector<8x64xf32>
    %cst_218 = arith.constant dense<0.000000e+00> : vector<8x128xf32>
    %542 = tpu.matmul %541, %9, %cst_218 {dimension_numbers = #tpu.dot_dimension_numbers<[1], [0], [0], [1], [0, 0, 1, 1], [], []>} : vector<8x64xf32>, vector<64x128xf32>, vector<8x128xf32> -> vector<8x128xf32>
    %543 = vector.broadcast %10 : vector<1x128xf32> to vector<8x128xf32>
    %544 = arith.addf %542, %543 : vector<8x128xf32>
    %545 = vector.extract_strided_slice %544 {offsets = [0, 0], sizes = [8, 32], strides = [1, 1]} : vector<8x128xf32> to vector<8x32xf32>
    %546 = arith.negf %545 : vector<8x32xf32>
    %547 = math.exp %546 : vector<8x32xf32>
    %cst_219 = arith.constant 1.000000e+00 : f32
    %548 = vector.broadcast %cst_219 : f32 to vector<8x32xf32>
    %549 = arith.addf %548, %547 : vector<8x32xf32>
    %550 = arith.divf %548, %549 : vector<8x32xf32>
    %551 = vector.extract_strided_slice %544 {offsets = [0, 32], sizes = [8, 32], strides = [1, 1]} : vector<8x128xf32> to vector<8x32xf32>
    %552 = arith.negf %551 : vector<8x32xf32>
    %553 = math.exp %552 : vector<8x32xf32>
    %cst_220 = arith.constant 1.000000e+00 : f32
    %554 = vector.broadcast %cst_220 : f32 to vector<8x32xf32>
    %555 = arith.addf %554, %553 : vector<8x32xf32>
    %556 = arith.divf %554, %555 : vector<8x32xf32>
    %557 = vector.extract_strided_slice %544 {offsets = [0, 64], sizes = [8, 32], strides = [1, 1]} : vector<8x128xf32> to vector<8x32xf32>
    %558 = math.tanh %557 : vector<8x32xf32>
    %559 = vector.extract_strided_slice %544 {offsets = [0, 96], sizes = [8, 32], strides = [1, 1]} : vector<8x128xf32> to vector<8x32xf32>
    %560 = arith.negf %559 : vector<8x32xf32>
    %561 = math.exp %560 : vector<8x32xf32>
    %cst_221 = arith.constant 1.000000e+00 : f32
    %562 = vector.broadcast %cst_221 : f32 to vector<8x32xf32>
    %563 = arith.addf %562, %561 : vector<8x32xf32>
    %564 = arith.divf %562, %563 : vector<8x32xf32>
    %c0_222 = arith.constant 0 : index
    %c0_223 = arith.constant 0 : index
    %565 = vector.load %arg14[%c0_222, %c0_223] : memref<8x32xf32, #tpu.memory_space<vmem>>, vector<8x32xf32>
    %566 = arith.mulf %556, %565 : vector<8x32xf32>
    %567 = arith.mulf %550, %558 : vector<8x32xf32>
    %568 = arith.addf %566, %567 : vector<8x32xf32>
    %569 = math.tanh %568 : vector<8x32xf32>
    %570 = arith.mulf %564, %569 : vector<8x32xf32>
    %571 = tpu.concatenate %570, %506 in 1 : vector<8x32xf32>, vector<8x32xf32> -> vector<8x64xf32>
    %cst_224 = arith.constant dense<0.000000e+00> : vector<8x40xf32>
    %572 = tpu.matmul %571, %11, %cst_224 {dimension_numbers = #tpu.dot_dimension_numbers<[1], [0], [0], [1], [0, 0, 1, 1], [], []>} : vector<8x64xf32>, vector<64x40xf32>, vector<8x40xf32> -> vector<8x40xf32>
    %573 = vector.broadcast %12 : vector<1x40xf32> to vector<8x40xf32>
    %574 = arith.addf %572, %573 : vector<8x40xf32>
    %575 = arith.index_cast %c5_i32 : i32 to index
    %c0_225 = arith.constant 0 : index
    %c0_226 = arith.constant 0 : index
    %576 = vector.load %arg10[%575, %c0_225, %c0_226] : memref<8x8x40xf32, #tpu.memory_space<vmem>>, vector<1x8x40xf32>
    %577 = vector.shape_cast %576 : vector<1x8x40xf32> to vector<8x40xf32>
    %578 = vector.shape_cast %574 : vector<8x40xf32> to vector<1x8x40xf32>
    tpu.vector_store %arg10[%575, %c0_225, %c0_226], %578 {strides = array<i32>} : memref<8x8x40xf32, #tpu.memory_space<vmem>>, vector<1x8x40xf32>,
    %c0_227 = arith.constant 0 : index
    %c0_228 = arith.constant 0 : index
    %579 = vector.load %arg11[%c0_227, %c0_228] : memref<8x32xf32, #tpu.memory_space<vmem>>, vector<8x32xf32>
    tpu.vector_store %arg11[%c0_227, %c0_228], %539 {strides = array<i32>} : memref<8x32xf32, #tpu.memory_space<vmem>>, vector<8x32xf32>,
    %c0_229 = arith.constant 0 : index
    %c0_230 = arith.constant 0 : index
    %580 = vector.load %arg12[%c0_229, %c0_230] : memref<8x32xf32, #tpu.memory_space<vmem>>, vector<8x32xf32>
    tpu.vector_store %arg12[%c0_229, %c0_230], %537 {strides = array<i32>} : memref<8x32xf32, #tpu.memory_space<vmem>>, vector<8x32xf32>,
    %c0_231 = arith.constant 0 : index
    %c0_232 = arith.constant 0 : index
    %581 = vector.load %arg13[%c0_231, %c0_232] : memref<8x32xf32, #tpu.memory_space<vmem>>, vector<8x32xf32>
    tpu.vector_store %arg13[%c0_231, %c0_232], %570 {strides = array<i32>} : memref<8x32xf32, #tpu.memory_space<vmem>>, vector<8x32xf32>,
    %c0_233 = arith.constant 0 : index
    %c0_234 = arith.constant 0 : index
    %582 = vector.load %arg14[%c0_233, %c0_234] : memref<8x32xf32, #tpu.memory_space<vmem>>, vector<8x32xf32>
    tpu.vector_store %arg14[%c0_233, %c0_234], %568 {strides = array<i32>} : memref<8x32xf32, #tpu.memory_space<vmem>>, vector<8x32xf32>,
    %c6_i32 = arith.constant 6 : i32
    %c0_235 = arith.constant 0 : index
    %c0_236 = arith.constant 0 : index
    %583 = vector.load %arg13[%c0_235, %c0_236] : memref<8x32xf32, #tpu.memory_space<vmem>>, vector<8x32xf32>
    %584 = vector.shape_cast %583 : vector<8x32xf32> to vector<8x1x32xf32>
    "tpu.trace_start"() <{level = 10 : i32, message = "ntk,nok->nto"}> : () -> ()
    %cst_237 = arith.constant dense<0.000000e+00> : vector<8x2x1xf32>
    %585 = tpu.matmul %3, %584, %cst_237 {dimension_numbers = #tpu.dot_dimension_numbers<[2], [2], [1], [1], [0, 0, 0, 1, 1, 1], [0], [0]>} : vector<8x2x32xf32>, vector<8x1x32xf32>, vector<8x2x1xf32> -> vector<8x2x1xf32>
    "tpu.trace_stop"() : () -> ()
    %586 = vector.shape_cast %585 : vector<8x2x1xf32> to vector<8x2xf32>
    %cst_238 = arith.constant -1.000000e+09 : f32
    %587 = vector.broadcast %cst_238 : f32 to vector<8x2xf32>
    %588 = arith.select %7, %586, %587 : vector<8x2xi1>, vector<8x2xf32>
    %cst_239 = arith.constant dense<0xFF800000> : vector<8xf32>
    %589 = vector.multi_reduction <maximumf>, %588, %cst_239 [1] : vector<8x2xf32> to vector<8xf32>
    %590 = vector.shape_cast %589 : vector<8xf32> to vector<8x1xf32>
    %591 = vector.broadcast %590 : vector<8x1xf32> to vector<8x2xf32>
    %592 = arith.subf %588, %591 : vector<8x2xf32>
    %593 = math.exp %592 : vector<8x2xf32>
    %cst_240 = arith.constant dense<0.000000e+00> : vector<8xf32>
    %594 = vector.multi_reduction <add>, %593, %cst_240 [1] : vector<8x2xf32> to vector<8xf32>
    %595 = vector.shape_cast %594 : vector<8xf32> to vector<8x1xf32>
    %596 = tpu.reciprocal %595 {approx = true} : vector<8x1xf32> -> vector<8x1xf32>
    %597 = vector.broadcast %596 : vector<8x1xf32> to vector<8x2xf32>
    %598 = arith.mulf %593, %597 : vector<8x2xf32>
    %599 = vector.shape_cast %598 : vector<8x2xf32> to vector<8x1x2xf32>
    "tpu.trace_start"() <{level = 10 : i32, message = "not,ntv->nov"}> : () -> ()
    %cst_241 = arith.constant dense<0.000000e+00> : vector<8x1x32xf32>
    %600 = tpu.matmul %599, %4, %cst_241 {dimension_numbers = #tpu.dot_dimension_numbers<[2], [1], [1], [2], [0, 0, 0, 1, 1, 2], [0], [0]>} : vector<8x1x2xf32>, vector<8x2x32xf32>, vector<8x1x32xf32> -> vector<8x1x32xf32>
    "tpu.trace_stop"() : () -> ()
    %601 = vector.shape_cast %600 : vector<8x1x32xf32> to vector<8x32xf32>
    %c0_242 = arith.constant 0 : index
    %c0_243 = arith.constant 0 : index
    %602 = vector.load %arg11[%c0_242, %c0_243] : memref<8x32xf32, #tpu.memory_space<vmem>>, vector<8x32xf32>
    %603 = tpu.concatenate %601, %602 in 1 : vector<8x32xf32>, vector<8x32xf32> -> vector<8x64xf32>
    %604 = arith.index_cast %c6_i32 : i32 to index
    %c0_244 = arith.constant 0 : index
    %c0_245 = arith.constant 0 : index
    %605 = vector.load %arg1[%604, %c0_244, %c0_245] : memref<8x8x128xf32, #tpu.memory_space<vmem>>, vector<1x8x128xf32>
    %606 = vector.shape_cast %605 : vector<1x8x128xf32> to vector<8x128xf32>
    %cst_246 = arith.constant dense<0.000000e+00> : vector<8x128xf32>
    %607 = tpu.matmul %603, %8, %cst_246 {dimension_numbers = #tpu.dot_dimension_numbers<[1], [0], [0], [1], [0, 0, 1, 1], [], []>} : vector<8x64xf32>, vector<64x128xf32>, vector<8x128xf32> -> vector<8x128xf32>
    %608 = arith.addf %606, %607 : vector<8x128xf32>
    %609 = vector.extract_strided_slice %608 {offsets = [0, 0], sizes = [8, 32], strides = [1, 1]} : vector<8x128xf32> to vector<8x32xf32>
    %610 = arith.negf %609 : vector<8x32xf32>
    %611 = math.exp %610 : vector<8x32xf32>
    %cst_247 = arith.constant 1.000000e+00 : f32
    %612 = vector.broadcast %cst_247 : f32 to vector<8x32xf32>
    %613 = arith.addf %612, %611 : vector<8x32xf32>
    %614 = arith.divf %612, %613 : vector<8x32xf32>
    %615 = vector.extract_strided_slice %608 {offsets = [0, 32], sizes = [8, 32], strides = [1, 1]} : vector<8x128xf32> to vector<8x32xf32>
    %616 = arith.negf %615 : vector<8x32xf32>
    %617 = math.exp %616 : vector<8x32xf32>
    %cst_248 = arith.constant 1.000000e+00 : f32
    %618 = vector.broadcast %cst_248 : f32 to vector<8x32xf32>
    %619 = arith.addf %618, %617 : vector<8x32xf32>
    %620 = arith.divf %618, %619 : vector<8x32xf32>
    %621 = vector.extract_strided_slice %608 {offsets = [0, 64], sizes = [8, 32], strides = [1, 1]} : vector<8x128xf32> to vector<8x32xf32>
    %622 = math.tanh %621 : vector<8x32xf32>
    %623 = vector.extract_strided_slice %608 {offsets = [0, 96], sizes = [8, 32], strides = [1, 1]} : vector<8x128xf32> to vector<8x32xf32>
    %624 = arith.negf %623 : vector<8x32xf32>
    %625 = math.exp %624 : vector<8x32xf32>
    %cst_249 = arith.constant 1.000000e+00 : f32
    %626 = vector.broadcast %cst_249 : f32 to vector<8x32xf32>
    %627 = arith.addf %626, %625 : vector<8x32xf32>
    %628 = arith.divf %626, %627 : vector<8x32xf32>
    %c0_250 = arith.constant 0 : index
    %c0_251 = arith.constant 0 : index
    %629 = vector.load %arg12[%c0_250, %c0_251] : memref<8x32xf32, #tpu.memory_space<vmem>>, vector<8x32xf32>
    %630 = arith.mulf %620, %629 : vector<8x32xf32>
    %631 = arith.mulf %614, %622 : vector<8x32xf32>
    %632 = arith.addf %630, %631 : vector<8x32xf32>
    %633 = math.tanh %632 : vector<8x32xf32>
    %634 = arith.mulf %628, %633 : vector<8x32xf32>
    %c0_252 = arith.constant 0 : index
    %c0_253 = arith.constant 0 : index
    %635 = vector.load %arg13[%c0_252, %c0_253] : memref<8x32xf32, #tpu.memory_space<vmem>>, vector<8x32xf32>
    %636 = tpu.concatenate %634, %635 in 1 : vector<8x32xf32>, vector<8x32xf32> -> vector<8x64xf32>
    %cst_254 = arith.constant dense<0.000000e+00> : vector<8x128xf32>
    %637 = tpu.matmul %636, %9, %cst_254 {dimension_numbers = #tpu.dot_dimension_numbers<[1], [0], [0], [1], [0, 0, 1, 1], [], []>} : vector<8x64xf32>, vector<64x128xf32>, vector<8x128xf32> -> vector<8x128xf32>
    %638 = vector.broadcast %10 : vector<1x128xf32> to vector<8x128xf32>
    %639 = arith.addf %637, %638 : vector<8x128xf32>
    %640 = vector.extract_strided_slice %639 {offsets = [0, 0], sizes = [8, 32], strides = [1, 1]} : vector<8x128xf32> to vector<8x32xf32>
    %641 = arith.negf %640 : vector<8x32xf32>
    %642 = math.exp %641 : vector<8x32xf32>
    %cst_255 = arith.constant 1.000000e+00 : f32
    %643 = vector.broadcast %cst_255 : f32 to vector<8x32xf32>
    %644 = arith.addf %643, %642 : vector<8x32xf32>
    %645 = arith.divf %643, %644 : vector<8x32xf32>
    %646 = vector.extract_strided_slice %639 {offsets = [0, 32], sizes = [8, 32], strides = [1, 1]} : vector<8x128xf32> to vector<8x32xf32>
    %647 = arith.negf %646 : vector<8x32xf32>
    %648 = math.exp %647 : vector<8x32xf32>
    %cst_256 = arith.constant 1.000000e+00 : f32
    %649 = vector.broadcast %cst_256 : f32 to vector<8x32xf32>
    %650 = arith.addf %649, %648 : vector<8x32xf32>
    %651 = arith.divf %649, %650 : vector<8x32xf32>
    %652 = vector.extract_strided_slice %639 {offsets = [0, 64], sizes = [8, 32], strides = [1, 1]} : vector<8x128xf32> to vector<8x32xf32>
    %653 = math.tanh %652 : vector<8x32xf32>
    %654 = vector.extract_strided_slice %639 {offsets = [0, 96], sizes = [8, 32], strides = [1, 1]} : vector<8x128xf32> to vector<8x32xf32>
    %655 = arith.negf %654 : vector<8x32xf32>
    %656 = math.exp %655 : vector<8x32xf32>
    %cst_257 = arith.constant 1.000000e+00 : f32
    %657 = vector.broadcast %cst_257 : f32 to vector<8x32xf32>
    %658 = arith.addf %657, %656 : vector<8x32xf32>
    %659 = arith.divf %657, %658 : vector<8x32xf32>
    %c0_258 = arith.constant 0 : index
    %c0_259 = arith.constant 0 : index
    %660 = vector.load %arg14[%c0_258, %c0_259] : memref<8x32xf32, #tpu.memory_space<vmem>>, vector<8x32xf32>
    %661 = arith.mulf %651, %660 : vector<8x32xf32>
    %662 = arith.mulf %645, %653 : vector<8x32xf32>
    %663 = arith.addf %661, %662 : vector<8x32xf32>
    %664 = math.tanh %663 : vector<8x32xf32>
    %665 = arith.mulf %659, %664 : vector<8x32xf32>
    %666 = tpu.concatenate %665, %601 in 1 : vector<8x32xf32>, vector<8x32xf32> -> vector<8x64xf32>
    %cst_260 = arith.constant dense<0.000000e+00> : vector<8x40xf32>
    %667 = tpu.matmul %666, %11, %cst_260 {dimension_numbers = #tpu.dot_dimension_numbers<[1], [0], [0], [1], [0, 0, 1, 1], [], []>} : vector<8x64xf32>, vector<64x40xf32>, vector<8x40xf32> -> vector<8x40xf32>
    %668 = vector.broadcast %12 : vector<1x40xf32> to vector<8x40xf32>
    %669 = arith.addf %667, %668 : vector<8x40xf32>
    %670 = arith.index_cast %c6_i32 : i32 to index
    %c0_261 = arith.constant 0 : index
    %c0_262 = arith.constant 0 : index
    %671 = vector.load %arg10[%670, %c0_261, %c0_262] : memref<8x8x40xf32, #tpu.memory_space<vmem>>, vector<1x8x40xf32>
    %672 = vector.shape_cast %671 : vector<1x8x40xf32> to vector<8x40xf32>
    %673 = vector.shape_cast %669 : vector<8x40xf32> to vector<1x8x40xf32>
    tpu.vector_store %arg10[%670, %c0_261, %c0_262], %673 {strides = array<i32>} : memref<8x8x40xf32, #tpu.memory_space<vmem>>, vector<1x8x40xf32>,
    %c0_263 = arith.constant 0 : index
    %c0_264 = arith.constant 0 : index
    %674 = vector.load %arg11[%c0_263, %c0_264] : memref<8x32xf32, #tpu.memory_space<vmem>>, vector<8x32xf32>
    tpu.vector_store %arg11[%c0_263, %c0_264], %634 {strides = array<i32>} : memref<8x32xf32, #tpu.memory_space<vmem>>, vector<8x32xf32>,
    %c0_265 = arith.constant 0 : index
    %c0_266 = arith.constant 0 : index
    %675 = vector.load %arg12[%c0_265, %c0_266] : memref<8x32xf32, #tpu.memory_space<vmem>>, vector<8x32xf32>
    tpu.vector_store %arg12[%c0_265, %c0_266], %632 {strides = array<i32>} : memref<8x32xf32, #tpu.memory_space<vmem>>, vector<8x32xf32>,
    %c0_267 = arith.constant 0 : index
    %c0_268 = arith.constant 0 : index
    %676 = vector.load %arg13[%c0_267, %c0_268] : memref<8x32xf32, #tpu.memory_space<vmem>>, vector<8x32xf32>
    tpu.vector_store %arg13[%c0_267, %c0_268], %665 {strides = array<i32>} : memref<8x32xf32, #tpu.memory_space<vmem>>, vector<8x32xf32>,
    %c0_269 = arith.constant 0 : index
    %c0_270 = arith.constant 0 : index
    %677 = vector.load %arg14[%c0_269, %c0_270] : memref<8x32xf32, #tpu.memory_space<vmem>>, vector<8x32xf32>
    tpu.vector_store %arg14[%c0_269, %c0_270], %663 {strides = array<i32>} : memref<8x32xf32, #tpu.memory_space<vmem>>, vector<8x32xf32>,
    %c7_i32 = arith.constant 7 : i32
    %c0_271 = arith.constant 0 : index
    %c0_272 = arith.constant 0 : index
    %678 = vector.load %arg13[%c0_271, %c0_272] : memref<8x32xf32, #tpu.memory_space<vmem>>, vector<8x32xf32>
    %679 = vector.shape_cast %678 : vector<8x32xf32> to vector<8x1x32xf32>
    "tpu.trace_start"() <{level = 10 : i32, message = "ntk,nok->nto"}> : () -> ()
    %cst_273 = arith.constant dense<0.000000e+00> : vector<8x2x1xf32>
    %680 = tpu.matmul %3, %679, %cst_273 {dimension_numbers = #tpu.dot_dimension_numbers<[2], [2], [1], [1], [0, 0, 0, 1, 1, 1], [0], [0]>} : vector<8x2x32xf32>, vector<8x1x32xf32>, vector<8x2x1xf32> -> vector<8x2x1xf32>
    "tpu.trace_stop"() : () -> ()
    %681 = vector.shape_cast %680 : vector<8x2x1xf32> to vector<8x2xf32>
    %cst_274 = arith.constant -1.000000e+09 : f32
    %682 = vector.broadcast %cst_274 : f32 to vector<8x2xf32>
    %683 = arith.select %7, %681, %682 : vector<8x2xi1>, vector<8x2xf32>
    %cst_275 = arith.constant dense<0xFF800000> : vector<8xf32>
    %684 = vector.multi_reduction <maximumf>, %683, %cst_275 [1] : vector<8x2xf32> to vector<8xf32>
    %685 = vector.shape_cast %684 : vector<8xf32> to vector<8x1xf32>
    %686 = vector.broadcast %685 : vector<8x1xf32> to vector<8x2xf32>
    %687 = arith.subf %683, %686 : vector<8x2xf32>
    %688 = math.exp %687 : vector<8x2xf32>
    %cst_276 = arith.constant dense<0.000000e+00> : vector<8xf32>
    %689 = vector.multi_reduction <add>, %688, %cst_276 [1] : vector<8x2xf32> to vector<8xf32>
    %690 = vector.shape_cast %689 : vector<8xf32> to vector<8x1xf32>
    %691 = tpu.reciprocal %690 {approx = true} : vector<8x1xf32> -> vector<8x1xf32>
    %692 = vector.broadcast %691 : vector<8x1xf32> to vector<8x2xf32>
    %693 = arith.mulf %688, %692 : vector<8x2xf32>
    %694 = vector.shape_cast %693 : vector<8x2xf32> to vector<8x1x2xf32>
    "tpu.trace_start"() <{level = 10 : i32, message = "not,ntv->nov"}> : () -> ()
    %cst_277 = arith.constant dense<0.000000e+00> : vector<8x1x32xf32>
    %695 = tpu.matmul %694, %4, %cst_277 {dimension_numbers = #tpu.dot_dimension_numbers<[2], [1], [1], [2], [0, 0, 0, 1, 1, 2], [0], [0]>} : vector<8x1x2xf32>, vector<8x2x32xf32>, vector<8x1x32xf32> -> vector<8x1x32xf32>
    "tpu.trace_stop"() : () -> ()
    %696 = vector.shape_cast %695 : vector<8x1x32xf32> to vector<8x32xf32>
    %c0_278 = arith.constant 0 : index
    %c0_279 = arith.constant 0 : index
    %697 = vector.load %arg11[%c0_278, %c0_279] : memref<8x32xf32, #tpu.memory_space<vmem>>, vector<8x32xf32>
    %698 = tpu.concatenate %696, %697 in 1 : vector<8x32xf32>, vector<8x32xf32> -> vector<8x64xf32>
    %699 = arith.index_cast %c7_i32 : i32 to index
    %c0_280 = arith.constant 0 : index
    %c0_281 = arith.constant 0 : index
    %700 = vector.load %arg1[%699, %c0_280, %c0_281] : memref<8x8x128xf32, #tpu.memory_space<vmem>>, vector<1x8x128xf32>
    %701 = vector.shape_cast %700 : vector<1x8x128xf32> to vector<8x128xf32>
    %cst_282 = arith.constant dense<0.000000e+00> : vector<8x128xf32>
    %702 = tpu.matmul %698, %8, %cst_282 {dimension_numbers = #tpu.dot_dimension_numbers<[1], [0], [0], [1], [0, 0, 1, 1], [], []>} : vector<8x64xf32>, vector<64x128xf32>, vector<8x128xf32> -> vector<8x128xf32>
    %703 = arith.addf %701, %702 : vector<8x128xf32>
    %704 = vector.extract_strided_slice %703 {offsets = [0, 0], sizes = [8, 32], strides = [1, 1]} : vector<8x128xf32> to vector<8x32xf32>
    %705 = arith.negf %704 : vector<8x32xf32>
    %706 = math.exp %705 : vector<8x32xf32>
    %cst_283 = arith.constant 1.000000e+00 : f32
    %707 = vector.broadcast %cst_283 : f32 to vector<8x32xf32>
    %708 = arith.addf %707, %706 : vector<8x32xf32>
    %709 = arith.divf %707, %708 : vector<8x32xf32>
    %710 = vector.extract_strided_slice %703 {offsets = [0, 32], sizes = [8, 32], strides = [1, 1]} : vector<8x128xf32> to vector<8x32xf32>
    %711 = arith.negf %710 : vector<8x32xf32>
    %712 = math.exp %711 : vector<8x32xf32>
    %cst_284 = arith.constant 1.000000e+00 : f32
    %713 = vector.broadcast %cst_284 : f32 to vector<8x32xf32>
    %714 = arith.addf %713, %712 : vector<8x32xf32>
    %715 = arith.divf %713, %714 : vector<8x32xf32>
    %716 = vector.extract_strided_slice %703 {offsets = [0, 64], sizes = [8, 32], strides = [1, 1]} : vector<8x128xf32> to vector<8x32xf32>
    %717 = math.tanh %716 : vector<8x32xf32>
    %718 = vector.extract_strided_slice %703 {offsets = [0, 96], sizes = [8, 32], strides = [1, 1]} : vector<8x128xf32> to vector<8x32xf32>
    %719 = arith.negf %718 : vector<8x32xf32>
    %720 = math.exp %719 : vector<8x32xf32>
    %cst_285 = arith.constant 1.000000e+00 : f32
    %721 = vector.broadcast %cst_285 : f32 to vector<8x32xf32>
    %722 = arith.addf %721, %720 : vector<8x32xf32>
    %723 = arith.divf %721, %722 : vector<8x32xf32>
    %c0_286 = arith.constant 0 : index
    %c0_287 = arith.constant 0 : index
    %724 = vector.load %arg12[%c0_286, %c0_287] : memref<8x32xf32, #tpu.memory_space<vmem>>, vector<8x32xf32>
    %725 = arith.mulf %715, %724 : vector<8x32xf32>
    %726 = arith.mulf %709, %717 : vector<8x32xf32>
    %727 = arith.addf %725, %726 : vector<8x32xf32>
    %728 = math.tanh %727 : vector<8x32xf32>
    %729 = arith.mulf %723, %728 : vector<8x32xf32>
    %c0_288 = arith.constant 0 : index
    %c0_289 = arith.constant 0 : index
    %730 = vector.load %arg13[%c0_288, %c0_289] : memref<8x32xf32, #tpu.memory_space<vmem>>, vector<8x32xf32>
    %731 = tpu.concatenate %729, %730 in 1 : vector<8x32xf32>, vector<8x32xf32> -> vector<8x64xf32>
    %cst_290 = arith.constant dense<0.000000e+00> : vector<8x128xf32>
    %732 = tpu.matmul %731, %9, %cst_290 {dimension_numbers = #tpu.dot_dimension_numbers<[1], [0], [0], [1], [0, 0, 1, 1], [], []>} : vector<8x64xf32>, vector<64x128xf32>, vector<8x128xf32> -> vector<8x128xf32>
    %733 = vector.broadcast %10 : vector<1x128xf32> to vector<8x128xf32>
    %734 = arith.addf %732, %733 : vector<8x128xf32>
    %735 = vector.extract_strided_slice %734 {offsets = [0, 0], sizes = [8, 32], strides = [1, 1]} : vector<8x128xf32> to vector<8x32xf32>
    %736 = arith.negf %735 : vector<8x32xf32>
    %737 = math.exp %736 : vector<8x32xf32>
    %cst_291 = arith.constant 1.000000e+00 : f32
    %738 = vector.broadcast %cst_291 : f32 to vector<8x32xf32>
    %739 = arith.addf %738, %737 : vector<8x32xf32>
    %740 = arith.divf %738, %739 : vector<8x32xf32>
    %741 = vector.extract_strided_slice %734 {offsets = [0, 32], sizes = [8, 32], strides = [1, 1]} : vector<8x128xf32> to vector<8x32xf32>
    %742 = arith.negf %741 : vector<8x32xf32>
    %743 = math.exp %742 : vector<8x32xf32>
    %cst_292 = arith.constant 1.000000e+00 : f32
    %744 = vector.broadcast %cst_292 : f32 to vector<8x32xf32>
    %745 = arith.addf %744, %743 : vector<8x32xf32>
    %746 = arith.divf %744, %745 : vector<8x32xf32>
    %747 = vector.extract_strided_slice %734 {offsets = [0, 64], sizes = [8, 32], strides = [1, 1]} : vector<8x128xf32> to vector<8x32xf32>
    %748 = math.tanh %747 : vector<8x32xf32>
    %749 = vector.extract_strided_slice %734 {offsets = [0, 96], sizes = [8, 32], strides = [1, 1]} : vector<8x128xf32> to vector<8x32xf32>
    %750 = arith.negf %749 : vector<8x32xf32>
    %751 = math.exp %750 : vector<8x32xf32>
    %cst_293 = arith.constant 1.000000e+00 : f32
    %752 = vector.broadcast %cst_293 : f32 to vector<8x32xf32>
    %753 = arith.addf %752, %751 : vector<8x32xf32>
    %754 = arith.divf %752, %753 : vector<8x32xf32>
    %c0_294 = arith.constant 0 : index
    %c0_295 = arith.constant 0 : index
    %755 = vector.load %arg14[%c0_294, %c0_295] : memref<8x32xf32, #tpu.memory_space<vmem>>, vector<8x32xf32>
    %756 = arith.mulf %746, %755 : vector<8x32xf32>
    %757 = arith.mulf %740, %748 : vector<8x32xf32>
    %758 = arith.addf %756, %757 : vector<8x32xf32>
    %759 = math.tanh %758 : vector<8x32xf32>
    %760 = arith.mulf %754, %759 : vector<8x32xf32>
    %761 = tpu.concatenate %760, %696 in 1 : vector<8x32xf32>, vector<8x32xf32> -> vector<8x64xf32>
    %cst_296 = arith.constant dense<0.000000e+00> : vector<8x40xf32>
    %762 = tpu.matmul %761, %11, %cst_296 {dimension_numbers = #tpu.dot_dimension_numbers<[1], [0], [0], [1], [0, 0, 1, 1], [], []>} : vector<8x64xf32>, vector<64x40xf32>, vector<8x40xf32> -> vector<8x40xf32>
    %763 = vector.broadcast %12 : vector<1x40xf32> to vector<8x40xf32>
    %764 = arith.addf %762, %763 : vector<8x40xf32>
    %765 = arith.index_cast %c7_i32 : i32 to index
    %c0_297 = arith.constant 0 : index
    %c0_298 = arith.constant 0 : index
    %766 = vector.load %arg10[%765, %c0_297, %c0_298] : memref<8x8x40xf32, #tpu.memory_space<vmem>>, vector<1x8x40xf32>
    %767 = vector.shape_cast %766 : vector<1x8x40xf32> to vector<8x40xf32>
    %768 = vector.shape_cast %764 : vector<8x40xf32> to vector<1x8x40xf32>
    tpu.vector_store %arg10[%765, %c0_297, %c0_298], %768 {strides = array<i32>} : memref<8x8x40xf32, #tpu.memory_space<vmem>>, vector<1x8x40xf32>,
    %c0_299 = arith.constant 0 : index
    %c0_300 = arith.constant 0 : index
    %769 = vector.load %arg11[%c0_299, %c0_300] : memref<8x32xf32, #tpu.memory_space<vmem>>, vector<8x32xf32>
    tpu.vector_store %arg11[%c0_299, %c0_300], %729 {strides = array<i32>} : memref<8x32xf32, #tpu.memory_space<vmem>>, vector<8x32xf32>,
    %c0_301 = arith.constant 0 : index
    %c0_302 = arith.constant 0 : index
    %770 = vector.load %arg12[%c0_301, %c0_302] : memref<8x32xf32, #tpu.memory_space<vmem>>, vector<8x32xf32>
    tpu.vector_store %arg12[%c0_301, %c0_302], %727 {strides = array<i32>} : memref<8x32xf32, #tpu.memory_space<vmem>>, vector<8x32xf32>,
    %c0_303 = arith.constant 0 : index
    %c0_304 = arith.constant 0 : index
    %771 = vector.load %arg13[%c0_303, %c0_304] : memref<8x32xf32, #tpu.memory_space<vmem>>, vector<8x32xf32>
    tpu.vector_store %arg13[%c0_303, %c0_304], %760 {strides = array<i32>} : memref<8x32xf32, #tpu.memory_space<vmem>>, vector<8x32xf32>,
    %c0_305 = arith.constant 0 : index
    %c0_306 = arith.constant 0 : index
    %772 = vector.load %arg14[%c0_305, %c0_306] : memref<8x32xf32, #tpu.memory_space<vmem>>, vector<8x32xf32>
    tpu.vector_store %arg14[%c0_305, %c0_306], %758 {strides = array<i32>} : memref<8x32xf32, #tpu.memory_space<vmem>>, vector<8x32xf32>,
    %c8_i32 = arith.constant 8 : i32
    return
  }
  func.func @transform_0(%arg0: i32) -> (i32, i32, i32) {
    %c0_i32 = arith.constant 0 : i32
    %c0_i32_0 = arith.constant 0 : i32
    %c0_i32_1 = arith.constant 0 : i32
    return %arg0, %c0_i32, %c0_i32_0 : i32, i32, i32
  }
  func.func @transform_1(%arg0: i32) -> (i32, i32, i32) {
    %c0_i32 = arith.constant 0 : i32
    %c0_i32_0 = arith.constant 0 : i32
    %c0_i32_1 = arith.constant 0 : i32
    %c0_i32_2 = arith.constant 0 : i32
    return %c0_i32, %c0_i32_0, %c0_i32_1 : i32, i32, i32
  }
  func.func @transform_2(%arg0: i32) -> (i32, i32, i32) {
    %c0_i32 = arith.constant 0 : i32
    %c0_i32_0 = arith.constant 0 : i32
    %c0_i32_1 = arith.constant 0 : i32
    %c0_i32_2 = arith.constant 0 : i32
    return %c0_i32, %c0_i32_0, %c0_i32_1 : i32, i32, i32
  }
  func.func @transform_3(%arg0: i32) -> (i32, i32) {
    %c0_i32 = arith.constant 0 : i32
    %c0_i32_0 = arith.constant 0 : i32
    %c0_i32_1 = arith.constant 0 : i32
    return %c0_i32, %c0_i32_0 : i32, i32
  }
  func.func @transform_4(%arg0: i32) -> (i32, i32) {
    %c0_i32 = arith.constant 0 : i32
    %c0_i32_0 = arith.constant 0 : i32
    %c0_i32_1 = arith.constant 0 : i32
    return %c0_i32, %c0_i32_0 : i32, i32
  }
  func.func @transform_5(%arg0: i32) -> (i32, i32) {
    %c0_i32 = arith.constant 0 : i32
    %c0_i32_0 = arith.constant 0 : i32
    %c0_i32_1 = arith.constant 0 : i32
    return %c0_i32, %c0_i32_0 : i32, i32
  }
  func.func @transform_6(%arg0: i32) -> (i32, i32) {
    %c0_i32 = arith.constant 0 : i32
    %c0_i32_0 = arith.constant 0 : i32
    %c0_i32_1 = arith.constant 0 : i32
    return %c0_i32, %c0_i32_0 : i32, i32
  }
  func.func @transform_7(%arg0: i32) -> (i32, i32) {
    %c0_i32 = arith.constant 0 : i32
    %c0_i32_0 = arith.constant 0 : i32
    %c0_i32_1 = arith.constant 0 : i32
    return %c0_i32, %c0_i32_0 : i32, i32
  }
  func.func @transform_8(%arg0: i32) -> (i32, i32) {
    %c0_i32 = arith.constant 0 : i32
    %c0_i32_0 = arith.constant 0 : i32
    %c0_i32_1 = arith.constant 0 : i32
    return %c0_i32, %c0_i32_0 : i32, i32
  }
  func.func @transform_9(%arg0: i32) -> (i32, i32, i32) {
    %c0_i32 = arith.constant 0 : i32
    %c0_i32_0 = arith.constant 0 : i32
    %c0_i32_1 = arith.constant 0 : i32
    return %arg0, %c0_i32, %c0_i32_0 : i32, i32, i32
  }
}

</mosaic_0001>

<bundles_post_ra>
// kernel: reverse
= control target key start
LH: loop header
LB: loop body
LE: loop exit
PB: predicated region body
PF: predicated region fallthrough
CT: control target
= control target key end

     0   :  { %v2_v0 = vlaneseq  ;;  %s97_s0 = inlined_call_operand.vmem [shape: f32[16,8], index: 0, kind: input, shape index: {}]   ;;  %s98_s1 = inlined_call_operand.vmem [shape: f32[16,8], index: 1, kind: output, shape index: {}]  }
   0x1   :  { %v32_v2 = vld [vmem:[%s97_s0] sm:$0xff] }
   0x2   :  { %v3_v1 = vsub.s32 15, %v2_v0 }
   0x4   :  { %4 = vset.pattern.permute.xlu0 %v3_v1 }
   0x5   :  { %38 = vperm.xlu0 %4, %v32_v2  }
  0x84   :  { %v39_v3 = vpop.permute.xlu0 %38 }
  0x85   :  { %69 = vst [vmem:[%s98_s1] sm:$0xff] %v39_v3 }

// kernel: reverse.1
= control target key start
LH: loop header
LB: loop body
LE: loop exit
PB: predicated region body
PF: predicated region fallthrough
CT: control target
= control target key end

     0   :  { %s93_s0 = inlined_call_operand.vmem [shape: f32[8,8], index: 0, kind: input, shape index: {}]   ;;  %s94_s1 = inlined_call_operand.vmem [shape: f32[8,8], index: 1, kind: output, shape index: {}]  }
   0x1   :  { %v29_v0 = vld [vmem:[%s93_s0] sm:$0xff] }
   0x2   :  { %30 = vst [vmem:[#allocation0] sm:$0xff] %v29_v0 }
   0x9   :  { %v35_v1 = vld [vmem:[#allocation0 + $0x7] ss:$-1 sm:$0xff] }
   0xa   :  { %65 = vst [vmem:[%s94_s1] sm:$0xff] %v35_v1 }

// kernel: seq2seq_forward.11
= control target key start
LH: loop header
LB: loop body
LE: loop exit
PB: predicated region body
PF: predicated region fallthrough
CT: control target
= control target key end

     0   :  { %vm38_vm0 = vcmask 64512   ;;  %s452_s1 = inlined_call_operand.vmem [shape: f32[8,128], index: 1, kind: input, shape index: {}]   ;;  %s453_s0 = inlined_call_operand.vmem [shape: f32[128,8], index: 0, kind: input, shape index: {}]   ;;  %s454_s2 = inlined_call_operand.vmem [shape: f32[1,128], index: 2, kind: input, shape index: {}]   ;;  %s455_s3 = inlined_call_operand.vmem [shape: f32[128,128], index: 3, kind: output, shape index: {}]  }
   0x1   :  { %v30_v0 = vld [vmem:[%s452_s1] sm:$0xff]  ;;  %v15_v3 = vld [vmem:[%s453_s0 + $0x8] sm:$0xff]  ;;  %v16_v5 = vld [vmem:[%s453_s0 + $0x10] sm:$0xff] }
   0x2   :  { %v14_v1 = vld [vmem:[%s453_s0] sm:$0xff]  ;;  %286 = vmatprep.subr.mxu0 %v30_v0  ;;  %312 = vmatprep.subr.mxu1 %v30_v0  ;;  %v23_v4 = vld [vmem:[%s453_s0 + $0x48] sm:$0xff]  ;;  %v24_v6 = vld [vmem:[%s453_s0 + $0x50] sm:$0xff] }
   0x3   :  { %v22_v2 = vld [vmem:[%s453_s0 + $0x40] sm:$0xff]  ;;  %287 = vmatpush3.msra.mxu0 %v30_v0  ;;  %313 = vmatpush3.msra.mxu1 %v30_v0  ;;  %v17_v7 = vld [vmem:[%s453_s0 + $0x18] sm:$0xff]  ;;  %v19_v11 = vld [vmem:[%s453_s0 + $0x28] sm:$0xff] }
   0x4   :  { %288 = vmatprep.mubr.msk.f32.mxu0 %vm38_vm0, %v14_v1  ;;  %300 = vmatprep.mubr.msk.f32.mxu1 %vm38_vm0, %v22_v2  ;;  %v25_v8 = vld [vmem:[%s453_s0 + $0x58] sm:$0xff]  ;;  %v18_v9 = vld [vmem:[%s453_s0 + $0x20] sm:$0xff]  ;;  %v27_v12 = vld [vmem:[%s453_s0 + $0x68] sm:$0xff] }
   0x5   :  { %289 = vmatmul.mubr.msk.f32.vlgmr.msra.gmra.mrb[0].mxu0 %vm38_vm0, %v15_v3  ;;  %301 = vmatmul.mubr.msk.f32.vlgmr.msra.gmra.mrb[0].mxu1 %vm38_vm0, %v23_v4  ;;  %v26_v10 = vld [vmem:[%s453_s0 + $0x60] sm:$0xff]  ;;  %v20_v13 = vld [vmem:[%s453_s0 + $0x30] sm:$0xff]  ;;  %v21_v15 = vld [vmem:[%s453_s0 + $0x38] sm:$0xff] }
   0x6   :  { %291 = vmatprep.mubr.msk.f32.mxu0 %vm38_vm0, %v16_v5  ;;  %303 = vmatprep.mubr.msk.f32.mxu1 %vm38_vm0, %v24_v6  ;;  %v28_v14 = vld [vmem:[%s453_s0 + $0x70] sm:$0xff]  ;;  %v29_v16 = vld [vmem:[%s453_s0 + $0x78] sm:$0xff]  ;;  %v252_v17 = vld [vmem:[%s454_s2] ss:$0 sm:$0xff] }
   0x9   :  { %292 = vmatmul.mubr.msk.f32.gmra.mrb[2].mxu0 %vm38_vm0, %v17_v7  ;;  %304 = vmatmul.mubr.msk.f32.gmra.mrb[2].mxu1 %vm38_vm0, %v25_v8 }
   0xa   :  { %294 = vmatprep.mubr.msk.f32.mxu0 %vm38_vm0, %v18_v9  ;;  %306 = vmatprep.mubr.msk.f32.mxu1 %vm38_vm0, %v26_v10 }
   0xd   :  { %295 = vmatmul.mubr.msk.f32.gmra.mrb[4].mxu0 %vm38_vm0, %v19_v11  ;;  %307 = vmatmul.mubr.msk.f32.gmra.mrb[4].mxu1 %vm38_vm0, %v27_v12 }
   0xe   :  { %297 = vmatprep.mubr.msk.f32.mxu0 %vm38_vm0, %v20_v13  ;;  %309 = vmatprep.mubr.msk.f32.mxu1 %vm38_vm0, %v28_v14 }
  0x11   :  { %298 = vmatmul.mubr.msk.f32.gmra.mrb[6].mxu0 %vm38_vm0, %v21_v15  ;;  %310 = vmatmul.mubr.msk.f32.gmra.mrb[6].mxu1 %vm38_vm0, %v29_v16 }
  0xd8   :  { %v290_v18 = vpop.f32.mrb[0].mxu0  ;;  %v302_v19 = vpop.f32.mrb[0].mxu1 }
  0xd9   :  { %v159_v20 = vadd.f32 %v290_v18, %v252_v17  ;;  %v199_v21 = vadd.f32 %v302_v19, %v252_v17  ;;  %v153_v22 = vpop.f32.mrb[1].mxu0  ;;  %v193_v23 = vpop.f32.mrb[1].mxu1 }
  0xda   :  { %v154_v24 = vadd.f32 %v252_v17, %v153_v22  ;;  %v194_v25 = vadd.f32 %v252_v17, %v193_v23 }
  0xdb   :  { %233 = vst [vmem:[%s455_s3 + $0x8] sm:$0xff] %v159_v20  ;;  %241 = vst [vmem:[%s455_s3 + $0x48] sm:$0xff] %v199_v21 }
  0xdc   :  { %232 = vst [vmem:[%s455_s3] sm:$0xff] %v154_v24  ;;  %240 = vst [vmem:[%s455_s3 + $0x40] sm:$0xff] %v194_v25  ;;  %v293_v26 = vpop.f32.mrb[2].mxu0  ;;  %v305_v27 = vpop.f32.mrb[2].mxu1 }
  0xdd   :  { %v169_v28 = vadd.f32 %v293_v26, %v252_v17  ;;  %v209_v29 = vadd.f32 %v305_v27, %v252_v17  ;;  %v163_v30 = vpop.f32.mrb[3].mxu0  ;;  %v203_v31 = vpop.f32.mrb[3].mxu1 }
  0xde   :  { %v164_v32 = vadd.f32 %v252_v17, %v163_v30  ;;  %v204_v33 = vadd.f32 %v252_v17, %v203_v31 }
  0xdf   :  { %235 = vst [vmem:[%s455_s3 + $0x18] sm:$0xff] %v169_v28  ;;  %243 = vst [vmem:[%s455_s3 + $0x58] sm:$0xff] %v209_v29 }
  0xe0   :  { %234 = vst [vmem:[%s455_s3 + $0x10] sm:$0xff] %v164_v32  ;;  %242 = vst [vmem:[%s455_s3 + $0x50] sm:$0xff] %v204_v33  ;;  %v296_v34 = vpop.f32.mrb[4].mxu0  ;;  %v308_v35 = vpop.f32.mrb[4].mxu1 }
  0xe1   :  { %v179_v36 = vadd.f32 %v296_v34, %v252_v17  ;;  %v219_v37 = vadd.f32 %v308_v35, %v252_v17  ;;  %v173_v38 = vpop.f32.mrb[5].mxu0  ;;  %v213_v39 = vpop.f32.mrb[5].mxu1 }
  0xe2   :  { %v174_v40 = vadd.f32 %v252_v17, %v173_v38  ;;  %v214_v41 = vadd.f32 %v252_v17, %v213_v39 }
  0xe3   :  { %237 = vst [vmem:[%s455_s3 + $0x28] sm:$0xff] %v179_v36  ;;  %245 = vst [vmem:[%s455_s3 + $0x68] sm:$0xff] %v219_v37 }
  0xe4   :  { %236 = vst [vmem:[%s455_s3 + $0x20] sm:$0xff] %v174_v40  ;;  %244 = vst [vmem:[%s455_s3 + $0x60] sm:$0xff] %v214_v41  ;;  %v299_v42 = vpop.f32.mrb[6].mxu0  ;;  %v311_v43 = vpop.f32.mrb[6].mxu1 }
  0xe5   :  { %v189_v44 = vadd.f32 %v299_v42, %v252_v17  ;;  %v229_v45 = vadd.f32 %v311_v43, %v252_v17  ;;  %v183_v46 = vpop.f32.mrb[7].mxu0  ;;  %v223_v47 = vpop.f32.mrb[7].mxu1 }
  0xe6   :  { %v184_v48 = vadd.f32 %v252_v17, %v183_v46  ;;  %v224_v49 = vadd.f32 %v252_v17, %v223_v47 }
  0xe7   :  { %239 = vst [vmem:[%s455_s3 + $0x38] sm:$0xff] %v189_v44  ;;  %247 = vst [vmem:[%s455_s3 + $0x78] sm:$0xff] %v229_v45 }
  0xe8   :  { %238 = vst [vmem:[%s455_s3 + $0x30] sm:$0xff] %v184_v48  ;;  %246 = vst [vmem:[%s455_s3 + $0x70] sm:$0xff] %v224_v49 }

// kernel: seq2seq_forward.13
= control target key start
LH: loop header
LB: loop body
LE: loop exit
PB: predicated region body
PF: predicated region fallthrough
CT: control target
= control target key end

     0   :  { %vm37_vm0 = vcmask 523264   ;;  %s359_s1 = inlined_call_operand.vmem [shape: f32[64,128], index: 1, kind: input, shape index: {}]   ;;  %s360_s0 = inlined_call_operand.vmem [shape: f32[64,64], index: 0, kind: input, shape index: {}]   ;;  %s361_s2 = inlined_call_operand.vmem [shape: f32[1,128], index: 2, kind: input, shape index: {}]   ;;  %s362_s3 = inlined_call_operand.vmem [shape: f32[64,128], index: 3, kind: output, shape index: {}]  }
   0x1   :  { %v22_v0 = vld [vmem:[%s359_s1] sm:$0xff]  ;;  %v23_v1 = vld [vmem:[%s359_s1 + $0x8] sm:$0xff]  ;;  %v24_v2 = vld [vmem:[%s359_s1 + $0x10] sm:$0xff] }
   0x2   :  { %v232_v3 = vpack.c.bf16 %v23_v1, %v22_v0  ;;  %v25_v4 = vld [vmem:[%s359_s1 + $0x18] sm:$0xff]  ;;  %v26_v6 = vld [vmem:[%s359_s1 + $0x20] sm:$0xff]  ;;  %v27_v7 = vld [vmem:[%s359_s1 + $0x28] sm:$0xff] }
   0x3   :  { %v236_v5 = vpack.c.bf16 %v25_v4, %v24_v2  ;;  %v14_v8 = vld [vmem:[%s360_s0] sm:$0xff]  ;;  %v240_v10 = vpack.c.bf16 %v27_v7, %v26_v6  ;;  %v28_v11 = vld [vmem:[%s359_s1 + $0x30] sm:$0xff]  ;;  %v29_v12 = vld [vmem:[%s359_s1 + $0x38] sm:$0xff] }
   0x4   :  { %233 = vmatprep.subr.bf16.mxu0 %v232_v3  ;;  %248 = vmatprep.subr.bf16.mxu1 %v232_v3  ;;  %v18_v9 = vld [vmem:[%s360_s0 + $0x20] sm:$0xff]  ;;  %v244_v13 = vpack.c.bf16 %v29_v12, %v28_v11  ;;  %v15_v14 = vld [vmem:[%s360_s0 + $0x8] sm:$0xff]  ;;  %v16_v16 = vld [vmem:[%s360_s0 + $0x10] sm:$0xff] }
   0x5   :  { %235 = vmatpush3.bf16.msra.mxu0 %v232_v3  ;;  %252 = vmatpush3.bf16.msra.mxu1 %v232_v3  ;;  %v19_v15 = vld [vmem:[%s360_s0 + $0x28] sm:$0xff]  ;;  %v20_v17 = vld [vmem:[%s360_s0 + $0x30] sm:$0xff]  ;;  %v17_v18 = vld [vmem:[%s360_s0 + $0x18] sm:$0xff] }
   0x6   :  { %237 = vmatprep.subr.bf16.mxu0 %v236_v5  ;;  %249 = vmatprep.subr.bf16.mxu1 %v236_v5  ;;  %v21_v19 = vld [vmem:[%s360_s0 + $0x38] sm:$0xff]  ;;  %v179_v20 = vld [vmem:[%s361_s2] ss:$0 sm:$0xff] }
   0x7   :  { %220 = vmatprep.mubr.msk.f32.mxu0 %vm37_vm0, %v14_v8  ;;  %226 = vmatprep.mubr.msk.f32.mxu1 %vm37_vm0, %v18_v9 }
   0x9   :  { %239 = vmatpush3.bf16.msra.mxu0 %v236_v5  ;;  %253 = vmatpush3.bf16.msra.mxu1 %v236_v5 }
   0xa   :  { %241 = vmatprep.subr.bf16.mxu0 %v240_v10  ;;  %250 = vmatprep.subr.bf16.mxu1 %v240_v10 }
   0xd   :  { %243 = vmatpush3.bf16.msra.mxu0 %v240_v10  ;;  %254 = vmatpush3.bf16.msra.mxu1 %v240_v10 }
   0xe   :  { %245 = vmatprep.subr.bf16.mxu0 %v244_v13  ;;  %251 = vmatprep.subr.bf16.mxu1 %v244_v13 }
  0x11   :  { %247 = vmatpush3.bf16.msra.mxu0 %v244_v13  ;;  %255 = vmatpush3.bf16.msra.mxu1 %v244_v13 }
  0x14   :  { %221 = vmatmul.mubr.msk.f32.vlgmr.msra.gmra.mrb[0].mxu0 %vm37_vm0, %v15_v14  ;;  %227 = vmatmul.mubr.msk.f32.vlgmr.msra.gmra.mrb[0].mxu1 %vm37_vm0, %v19_v15 }
  0x15   :  { %223 = vmatprep.mubr.msk.f32.mxu0 %vm37_vm0, %v16_v16  ;;  %229 = vmatprep.mubr.msk.f32.mxu1 %vm37_vm0, %v20_v17 }
  0x18   :  { %224 = vmatmul.mubr.msk.f32.gmra.mrb[2].mxu0 %vm37_vm0, %v17_v18  ;;  %230 = vmatmul.mubr.msk.f32.gmra.mrb[2].mxu1 %vm37_vm0, %v21_v19 }
  0xe7   :  { %v222_v21 = vpop.f32.mrb[0].mxu0  ;;  %v228_v22 = vpop.f32.mrb[0].mxu1 }
  0xe8   :  { %v134_v23 = vadd.f32 %v222_v21, %v179_v20  ;;  %v154_v24 = vadd.f32 %v228_v22, %v179_v20  ;;  %v128_v25 = vpop.f32.mrb[1].mxu0  ;;  %v148_v26 = vpop.f32.mrb[1].mxu1 }
  0xe9   :  { %v129_v27 = vadd.f32 %v179_v20, %v128_v25  ;;  %v149_v28 = vadd.f32 %v179_v20, %v148_v26 }
  0xea   :  { %168 = vst [vmem:[%s362_s3 + $0x8] sm:$0xff] %v134_v23  ;;  %172 = vst [vmem:[%s362_s3 + $0x28] sm:$0xff] %v154_v24 }
  0xeb   :  { %167 = vst [vmem:[%s362_s3] sm:$0xff] %v129_v27  ;;  %171 = vst [vmem:[%s362_s3 + $0x20] sm:$0xff] %v149_v28  ;;  %v225_v29 = vpop.f32.mrb[2].mxu0  ;;  %v231_v30 = vpop.f32.mrb[2].mxu1 }
  0xec   :  { %v144_v31 = vadd.f32 %v225_v29, %v179_v20  ;;  %v164_v32 = vadd.f32 %v231_v30, %v179_v20  ;;  %v138_v33 = vpop.f32.mrb[3].mxu0  ;;  %v158_v34 = vpop.f32.mrb[3].mxu1 }
  0xed   :  { %v139_v35 = vadd.f32 %v179_v20, %v138_v33  ;;  %v159_v36 = vadd.f32 %v179_v20, %v158_v34 }
  0xee   :  { %170 = vst [vmem:[%s362_s3 + $0x18] sm:$0xff] %v144_v31  ;;  %174 = vst [vmem:[%s362_s3 + $0x38] sm:$0xff] %v164_v32 }
  0xef   :  { %169 = vst [vmem:[%s362_s3 + $0x10] sm:$0xff] %v139_v35  ;;  %173 = vst [vmem:[%s362_s3 + $0x30] sm:$0xff] %v159_v36 }

// kernel: seq2seq_forward.15
= control target key start
LH: loop header
LB: loop body
LE: loop exit
PB: predicated region body
PF: predicated region fallthrough
CT: control target
= control target key end

     0   :  { %vm33_vm0 = vcmask 523264   ;;  %s277_s1 = inlined_call_operand.vmem [shape: f32[64,128], index: 1, kind: input, shape index: {}]   ;;  %s278_s0 = inlined_call_operand.vmem [shape: f32[32,64], index: 0, kind: input, shape index: {}]   ;;  %s279_s2 = inlined_call_operand.vmem [shape: f32[1,128], index: 2, kind: input, shape index: {}]   ;;  %s280_s3 = inlined_call_operand.vmem [shape: f32[32,128], index: 3, kind: output, shape index: {}]  }
   0x1   :  { %v18_v0 = vld [vmem:[%s277_s1] sm:$0xff]  ;;  %v19_v1 = vld [vmem:[%s277_s1 + $0x8] sm:$0xff]  ;;  %v20_v2 = vld [vmem:[%s277_s1 + $0x10] sm:$0xff] }
   0x2   :  { %v178_v3 = vpack.c.bf16 %v19_v1, %v18_v0  ;;  %v21_v4 = vld [vmem:[%s277_s1 + $0x18] sm:$0xff]  ;;  %v22_v6 = vld [vmem:[%s277_s1 + $0x20] sm:$0xff]  ;;  %v23_v7 = vld [vmem:[%s277_s1 + $0x28] sm:$0xff] }
   0x3   :  { %v182_v5 = vpack.c.bf16 %v21_v4, %v20_v2  ;;  %v14_v8 = vld [vmem:[%s278_s0] sm:$0xff]  ;;  %v16_v9 = vld [vmem:[%s278_s0 + $0x10] sm:$0xff]  ;;  %v186_v10 = vpack.c.bf16 %v23_v7, %v22_v6  ;;  %v25_v12 = vld [vmem:[%s277_s1 + $0x38] sm:$0xff] }
   0x4   :  { %179 = vmatprep.subr.bf16.mxu0 %v178_v3  ;;  %194 = vmatprep.subr.bf16.mxu1 %v178_v3  ;;  %v24_v11 = vld [vmem:[%s277_s1 + $0x30] sm:$0xff]  ;;  %v15_v14 = vld [vmem:[%s278_s0 + $0x8] sm:$0xff]  ;;  %v17_v15 = vld [vmem:[%s278_s0 + $0x18] sm:$0xff] }
   0x5   :  { %181 = vmatpush3.bf16.msra.mxu0 %v178_v3  ;;  %198 = vmatpush3.bf16.msra.mxu1 %v178_v3  ;;  %v190_v13 = vpack.c.bf16 %v25_v12, %v24_v11  ;;  %v139_v16 = vld [vmem:[%s279_s2] ss:$0 sm:$0xff] }
   0x6   :  { %183 = vmatprep.subr.bf16.mxu0 %v182_v5  ;;  %195 = vmatprep.subr.bf16.mxu1 %v182_v5 }
   0x7   :  { %172 = vmatprep.mubr.msk.f32.mxu0 %vm33_vm0, %v14_v8  ;;  %175 = vmatprep.mubr.msk.f32.mxu1 %vm33_vm0, %v16_v9 }
   0x9   :  { %185 = vmatpush3.bf16.msra.mxu0 %v182_v5  ;;  %199 = vmatpush3.bf16.msra.mxu1 %v182_v5 }
   0xa   :  { %187 = vmatprep.subr.bf16.mxu0 %v186_v10  ;;  %196 = vmatprep.subr.bf16.mxu1 %v186_v10 }
   0xd   :  { %189 = vmatpush3.bf16.msra.mxu0 %v186_v10  ;;  %200 = vmatpush3.bf16.msra.mxu1 %v186_v10 }
   0xe   :  { %191 = vmatprep.subr.bf16.mxu0 %v190_v13  ;;  %197 = vmatprep.subr.bf16.mxu1 %v190_v13 }
  0x11   :  { %193 = vmatpush3.bf16.msra.mxu0 %v190_v13  ;;  %201 = vmatpush3.bf16.msra.mxu1 %v190_v13 }
  0x14   :  { %173 = vmatmul.mubr.msk.f32.vlgmr.msra.gmra.mrb[0].mxu0 %vm33_vm0, %v15_v14  ;;  %176 = vmatmul.mubr.msk.f32.vlgmr.msra.gmra.mrb[0].mxu1 %vm33_vm0, %v17_v15 }
  0xe7   :  { %v174_v17 = vpop.f32.mrb[0].mxu0  ;;  %v177_v18 = vpop.f32.mrb[0].mxu1 }
  0xe8   :  { %v118_v19 = vadd.f32 %v174_v17, %v139_v16  ;;  %v128_v20 = vadd.f32 %v177_v18, %v139_v16  ;;  %v112_v21 = vpop.f32.mrb[1].mxu0  ;;  %v122_v22 = vpop.f32.mrb[1].mxu1 }
  0xe9   :  { %v113_v23 = vadd.f32 %v139_v16, %v112_v21  ;;  %v123_v24 = vadd.f32 %v139_v16, %v122_v22 }
  0xea   :  { %132 = vst [vmem:[%s280_s3 + $0x8] sm:$0xff] %v118_v19  ;;  %134 = vst [vmem:[%s280_s3 + $0x18] sm:$0xff] %v128_v20 }
  0xeb   :  { %131 = vst [vmem:[%s280_s3] sm:$0xff] %v113_v23  ;;  %133 = vst [vmem:[%s280_s3 + $0x10] sm:$0xff] %v123_v24 }

// kernel: seq2seq_forward.12
= control target key start
LH: loop header
LB: loop body
LE: loop exit
PB: predicated region body
PF: predicated region fallthrough
CT: control target
= control target key end

     0   :  { %s1830_s12 = smov 0   ;;  %s1832_s13 = smov 0   ;;  %s2140_s0 = inlined_call_operand.vmem [shape: f32[2,16,8,64], index: 0, kind: input, shape index: {}]   ;;  %s2141_s1 = inlined_call_operand.vmem [shape: f32[2,16,8,1], index: 1, kind: input, shape index: {}]   ;;  %s2142_s2 = inlined_call_operand.vmem [shape: f32[2,16,64], index: 2, kind: input, shape index: {}]   ;;  %s2143_s3 = inlined_call_operand.vmem [shape: f32[2,16,8,16], index: 3, kind: output, shape index: {}]  }
   0x1   :  { %s1834_s14 = smov 0   ;;  %s1836_s15 = smov 0  }
   0x2   :  { %s1838_s16 = smov 0  }
   0x3 LB: > { %s22_s17 = sadd.s32 1, %s1789_s14  ;;  %s25_s18 = sadd.s32 1, %s1793_s15  ;;  %s1797_s16 = sphi %s1838_s16, %s13_s16   ;;  %s1793_s15 = sphi %s1836_s15, %s2147_s15   ;;  %s1789_s14 = sphi %s1834_s14, %s2146_s14   ;;  %s1785_s13 = sphi %s1832_s13, %s2145_s13   ;;  %s1781_s12 = sphi %s1830_s12, %s2144_s12  }
   0x4   : > { %p23_p0 = scmp.ge.s32.totalorder %s22_s17, 2  ;;  %p1485_p1 = scmp.ge.s32.totalorder %s1797_s16, 1 }
   0x5   : > { %p185_p2 = scmp.lt.s32.totalorder %s1797_s16, 5 }
   0x6   : > { %s2149_s17 = smov (%p23_p0, %s22_s17), 0  ;;  %s2151_s18 = smov (!%p23_p0, %s25_s18), %s1793_s15 }
   0x7   : > { %p186_p3 = pnand %p1485_p1, %p185_p2  ;;  %p27_p4 = scmp.ge.s32.totalorder %s2151_s18, 2 }
   0x8   : > { %s1486_s19 = sshll.u32 (!%p186_p3), %s1781_s12, 3  ;;  %p232_p5 = scmp.lt.s32.totalorder (!%p186_p3), %s1785_s13, 1 }
   0x9   : > { %s2153_s18 = smov (%p27_p4, %s2151_s18), 0  ;;  %189 = sbr.rel (%p186_p3) target bundleno = 5715 (0x1653), region = 32 }
   0xa   : > { %p234_p6 = scmp.lt.s32.totalorder (!%p186_p3), %s1486_s19, 15  ;;  %p1497_p7 = scmp.ne.s32.totalorder (!%p186_p3), %s1781_s12, 0 }
  0x10   : > { %s2155_s13 = smov (!%p232_p5, %s1785_s13), 1  ;;  %s2157_s19 = smov (!%p234_p6, %s1486_s19), 15 }
  0x11   : > { %s1487_s20 = sshll.u32 %s2155_s13, 4  ;;  %269 = sbr.rel (%p1497_p7) target bundleno = 24 (0x18), region = 36  ;;  %vm270_vm0 = vcmask (!%p1497_p7), 130048   ;;  %v1799_v0 = vmov (!%p1497_p7), 0.0  }
  0x12   : > { %s237_s21 = sadd.s32 %s1487_s20, %s2157_s19  ;;  %s255_s24 = scalar_lea.vmem %s2142_s2, %s1487_s20  ;;  %271 = vst.msk [vmem:[#allocation2] sm:$0xff] (!%p1497_p7), %vm270_vm0, %v1799_v0  ;;  %272 = vst.msk [vmem:[#allocation3] sm:$0xff] (!%p1497_p7), %vm270_vm0, %v1799_v0 }
  0x13   : > { %s1488_s25 = sshll.u32 %s237_s21, 3 }
  0x14   : > { %s1866_s28 = scalar_lea.vmem %s2140_s0, %s1488_s25  ;;  %s1871_s4 = scalar_lea.vmem %s2141_s1, %s1488_s25 }
  0x15   : > { %s1876_s7 = scalar_lea.vmem %s2143_s3, %s1488_s25 }
  0x18 PF: > { %v273_v1 = vld [vmem:[%s255_s24] sm:$0xff]  ;;  %v274_v2 = vld [vmem:[%s255_s24 + $0x8] sm:$0xff]  ;;  %v1800_v3 = vmov 0.0|0.0   ;;  %vm1801_vm1 = vmmov 0   ;;  %v1802_v5 = vmov 0.0   ;;  %vm278_vm2 = vcmask 130048  }
  0x19   : > { %1618 = vmatprep.subr.bf16.mxu0 %v1800_v3  ;;  %v1879_v4 = vpack.c.bf16 %v274_v2, %v273_v1  ;;  %1566 = vmatprep.mubr.msk.f32.mxu0 %vm1801_vm1, %v1802_v5  ;;  %v275_v6 = vld [vmem:[#allocation2] sm:$0xff]  ;;  %v1803_v11 = vmov 0   ;;  %s1804_s8 = smov 96   ;;  %v276_v13 = vld [vmem:[#allocation3] sm:$0xff]  ;;  %s1805_s9 = smov 16   ;;  %v1507_v59 = vld [vmem:[%s1871_s4 + $0x10] sm:$0xff] }
  0x1a   : > { %1621 = vmatprep.subr.bf16.mxu1 %v1800_v3  ;;  %1573 = vmatprep.mubr.msk.f32.mxu1 %vm1801_vm1, %v1802_v5  ;;  %v277_v7 = vld [vmem:[%s1866_s28] sm:$0xff]  ;;  %s1806_s10 = smov 48   ;;  %s1807_s11 = smov 32   ;;  %v1502_v34 = vld [vmem:[%s1871_s4 + $0x8] sm:$0xff]  ;;  %vm653_vm7 = vcmp.gt.f32.partialorder %v1507_v59, 0.5 }
  0x1b   : > { %1620 = vmatpush3.bf16.msra.mxu0 %v1879_v4  ;;  %1623 = vmatpush3.bf16.msra.mxu1 %v1879_v4  ;;  %v353_v17 = vld [vmem:[%s1871_s4] sm:$0xff]  ;;  %s1808_s12 = smov 112   ;;  %s1809_s13 = smov 80   ;;  %vm517_vm5 = vcmp.gt.f32.partialorder %v1502_v34, 0.5  ;;  %v1500_v39 = vld [vmem:[%s1866_s28 + $0x8] sm:$0xff]  ;;  %v654_v62 = vsel %vm653_vm7, 1, %v1803_v11 }
  0x1c   : > { %1624 = vmatprep.subr.bf16.mxu0 %v1800_v3  ;;  %1627 = vmatprep.subr.bf16.mxu1 %v1800_v3  ;;  %vm382_vm3 = vcmp.gt.f32.partialorder %v353_v17, 0.5  ;;  %v518_v36 = vsel %vm517_vm5, 1, %v1803_v11 }
  0x1d   : > { %1693 = vset.pattern.permute.xlu1 %v1803_v11  ;;  %1694 = vset.pattern.permute.xlu0 %v1803_v11  ;;  %v383_v21 = vsel %vm382_vm3, 1, %v1803_v11 }
  0x1e   : > { %1567 = vmatmul.mubr.msk.f32.vlgmr.msra.gmra.mrb[0].mxu0 %vm278_vm2, %v275_v6 }
  0x1f   : > { %1626 = vmatpush3.bf16.msra.mxu0 %v1879_v4  ;;  %1580 = vmatprep.mubr.msk.f32.mxu0 %vm1801_vm1, %v1802_v5 }
  0x20   : > { %1630 = vmatprep.subr.bf16.mxu0 %v1800_v3 }
  0xf1   : > { %v348_v8 = vpop.f32.mrb[0].mxu0 }
  0xf2   : > { %v352_v9 = vadd.f32 %v348_v8, %v277_v7  ;;  %v1568_v10 = vpop.f32.mrb[1].mxu0 }
  0xf4   : > { %1695 = vtanh.f32 %v352_v9  ;;  %v1499_v14 = vmul.f32 -1.442695, %v352_v9 }
  0xf6   : > { %1697 = vpow2.f32 %v1499_v14 }
  0xfe   : > { %v1696_v12 = vpop.eup %1695 }
  0xff   : > { %367 = vrot.lane.b32.xlu0 %v1696_v12, %s1804_s8 }
 0x100   : > { %v1698_v15 = vpop.eup %1697 }
 0x101   : > { %v357_v16 = vadd.f32 1.0, %v1698_v15 }
 0x103   : > { %362 = vrot.lane.b32.xlu0 %v276_v13, %s1805_s9  ;;  %1699 = vrcp.f32 %v357_v16 }
 0x10d   : > { %v1700_v18 = vpop.eup %1699 }
 0x171   : > { %v368_v19 = vpop.permute.xlu0 %367 }
 0x172   : > { %v370_v20 = vmul.f32 %v1700_v18, %v368_v19 }
 0x174   : > { %372 = vrot.lane.b32.xlu1 %v370_v20, %s1805_s9 }
 0x175   : > { %v363_v22 = vpop.permute.xlu0 %362 }
 0x176   : > { %v365_v23 = vmul.f32 %v1700_v18, %v363_v22 }
 0x178   : > { %385 = vperm.xlu1 %1693, %v383_v21  }
 0x17c   : > { %388 = vrot.lane.b32.xlu1 %v275_v6, %s1806_s10  ;;  %v1505_v6 = vld [vmem:[%s1866_s28 + $0x10] sm:$0xff] }
 0x1e6   : > { %v373_v24 = vpop.permute.xlu1 %372 }
 0x1e7   : > { %v375_v25 = vadd.f32 %v373_v24, %v365_v23 }
 0x1e9   : > { %1701 = vtanh.f32 %v375_v25 }
 0x1f3   : > { %v1702_v26 = vpop.eup %1701 }
 0x1f4   : > { %378 = vrot.lane.b32.xlu0 %v1702_v26, %s1807_s11 }
 0x1f7   : > { %v1905_v27 = vpop.permute.xlu1 %385 }
 0x1f8   : > { %vm387_vm4 = vcmp.eq.s32.totalorder %v1905_v27, 1 }
 0x1f9   : > { %v397_v28 = vsel %vm387_vm4, %v375_v25, %v363_v22 }
 0x1fa   : > { %399 = vrot.lane.b32.xlu1 %v397_v28, %s1808_s12  ;;  %v1512_v28 = vld [vmem:[%s1871_s4 + $0x18] sm:$0xff] }
 0x1fb   : > { %v389_v30 = vpop.permute.xlu1 %388  ;;  %vm789_vm9 = vcmp.gt.f32.partialorder %v1512_v28, 0.5  ;;  %v1522_v28 = vld [vmem:[%s1871_s4 + $0x28] sm:$0xff] }
 0x1fc   : > { %vm1061_vm13 = vcmp.gt.f32.partialorder %v1522_v28, 0.5 }
 0x266   : > { %v379_v29 = vpop.permute.xlu0 %378 }
 0x267   : > { %v1911_v31 = vmul.f32 %v1700_v18, %v379_v29 }
 0x269   : > { %v391_v32 = vsel %vm387_vm4, %v1911_v31, %v389_v30 }
 0x26a   : > { %393 = vrot.lane.b32.xlu0 %v391_v32, %s1809_s13  ;;  %v790_v32 = vsel %vm789_vm9, 1, %v1803_v11 }
 0x26c   : > { %v400_v33 = vpop.permute.xlu1 %399 }
 0x26d   : > { %402 = vst.msk [vmem:[#allocation3] sm:$0xff] %vm278_vm2, %v400_v33 }
 0x274   : > { %v410_v35 = vld [vmem:[#allocation3] sm:$0xff] }
 0x275   : > { %497 = vrot.lane.b32.xlu1 %v410_v35, %s1805_s9 }
 0x279   : > { %520 = vperm.xlu1 %1693, %v518_v36  }
 0x2dc   : > { %v394_v37 = vpop.permute.xlu0 %393 }
 0x2dd   : > { %396 = vst.msk [vmem:[#allocation2] sm:$0xff] %vm278_vm2, %v394_v37  ;;  %v1510_v37 = vld [vmem:[%s1866_s28 + $0x18] sm:$0xff] }
 0x2e4   : > { %v409_v38 = vld [vmem:[#allocation2] sm:$0xff] }
 0x2e5   : > { %523 = vrot.lane.b32.xlu1 %v409_v38, %s1806_s10  ;;  %1574 = vmatmul.mubr.msk.f32.vlgmr.msra.gmra.mrb[0].mxu1 %vm278_vm2, %v409_v38 }
 0x2e6   : > { %1629 = vmatpush3.bf16.msra.mxu1 %v1879_v4  ;;  %1587 = vmatprep.mubr.msk.f32.mxu1 %vm1801_vm1, %v1802_v5 }
 0x2e7   : > { %1633 = vmatprep.subr.bf16.mxu1 %v1800_v3  ;;  %v498_v50 = vpop.permute.xlu1 %497 }
 0x2f8   : > { %v1931_v51 = vpop.permute.xlu1 %520 }
 0x2f9   : > { %vm522_vm6 = vcmp.eq.s32.totalorder %v1931_v51, 1 }
 0x357   : > { %v524_v57 = vpop.permute.xlu1 %523 }
 0x3b8   : > { %v482_v40 = vpop.f32.mrb[0].mxu1 }
 0x3b9   : > { %v486_v41 = vadd.f32 %v1500_v39, %v482_v40  ;;  %v1575_v42 = vpop.f32.mrb[1].mxu1 }
 0x3bb   : > { %1703 = vtanh.f32 %v486_v41  ;;  %v1503_v44 = vmul.f32 -1.442695, %v486_v41 }
 0x3bd   : > { %1705 = vpow2.f32 %v1503_v44 }
 0x3c5   : > { %v1704_v43 = vpop.eup %1703 }
 0x3c6   : > { %502 = vrot.lane.b32.xlu0 %v1704_v43, %s1804_s8 }
 0x3c7   : > { %v1706_v45 = vpop.eup %1705 }
 0x3c8   : > { %v492_v46 = vadd.f32 1.0, %v1706_v45 }
 0x3ca   : > { %1707 = vrcp.f32 %v492_v46 }
 0x3d4   : > { %v1708_v47 = vpop.eup %1707 }
 0x3d5   : > { %v500_v52 = vmul.f32 %v1708_v47, %v498_v50 }
 0x438   : > { %v503_v48 = vpop.permute.xlu0 %502 }
 0x439   : > { %v505_v49 = vmul.f32 %v1708_v47, %v503_v48 }
 0x43b   : > { %507 = vrot.lane.b32.xlu0 %v505_v49, %s1805_s9 }
 0x4ad   : > { %v508_v53 = vpop.permute.xlu0 %507 }
 0x4ae   : > { %v510_v54 = vadd.f32 %v508_v53, %v500_v52 }
 0x4b0   : > { %1709 = vtanh.f32 %v510_v54  ;;  %v532_v55 = vsel %vm522_vm6, %v510_v54, %v498_v50 }
 0x4b1   : > { %534 = vrot.lane.b32.xlu1 %v532_v55, %s1808_s12 }
 0x4ba   : > { %v1710_v56 = vpop.eup %1709 }
 0x4bb   : > { %513 = vrot.lane.b32.xlu0 %v1710_v56, %s1807_s11 }
 0x523   : > { %v535_v58 = vpop.permute.xlu1 %534 }
 0x524   : > { %537 = vst.msk [vmem:[#allocation3] sm:$0xff] %vm278_vm2, %v535_v58 }
 0x52b   : > { %v546_v60 = vld [vmem:[#allocation3] sm:$0xff] }
 0x52c   : > { %633 = vrot.lane.b32.xlu1 %v546_v60, %s1805_s9 }
 0x52d   : > { %v514_v61 = vpop.permute.xlu0 %513 }
 0x52e   : > { %v1942_v63 = vmul.f32 %v1708_v47, %v514_v61 }
 0x530   : > { %656 = vperm.xlu1 %1693, %v654_v62   ;;  %v526_v0 = vsel %vm522_vm6, %v1942_v63, %v524_v57  ;;  %v1517_v57 = vld [vmem:[%s1871_s4 + $0x20] sm:$0xff] }
 0x531   : > { %528 = vrot.lane.b32.xlu0 %v526_v0, %s1809_s13  ;;  %vm925_vm11 = vcmp.gt.f32.partialorder %v1517_v57, 0.5  ;;  %v1527_v57 = vld [vmem:[%s1871_s4 + $0x30] sm:$0xff] }
 0x532   : > { %v926_v60 = vsel %vm925_vm11, 1, %v1803_v11  ;;  %vm1197_vm15 = vcmp.gt.f32.partialorder %v1527_v57, 0.5 }
 0x59e   : > { %v634_v18 = vpop.permute.xlu1 %633 }
 0x5a3   : > { %v529_v1 = vpop.permute.xlu0 %528 }
 0x5a4   : > { %531 = vst.msk [vmem:[#allocation2] sm:$0xff] %vm278_vm2, %v529_v1 }
 0x5ab   : > { %v545_v2 = vld [vmem:[#allocation2] sm:$0xff] }
 0x5ac   : > { %659 = vrot.lane.b32.xlu1 %v545_v2, %s1806_s10  ;;  %1581 = vmatmul.mubr.msk.f32.vlgmr.msra.gmra.mrb[2].mxu0 %vm278_vm2, %v545_v2  ;;  %v1515_v2 = vld [vmem:[%s1866_s28 + $0x20] sm:$0xff] }
 0x5ad   : > { %1632 = vmatpush3.bf16.msra.mxu0 %v1879_v4  ;;  %1594 = vmatprep.mubr.msk.f32.mxu0 %vm1801_vm1, %v1802_v5 }
 0x5ae   : > { %1636 = vmatprep.subr.bf16.mxu0 %v1800_v3 }
 0x5af   : > { %v1958_v19 = vpop.permute.xlu1 %656 }
 0x5b0   : > { %vm658_vm8 = vcmp.eq.s32.totalorder %v1958_v19, 1 }
 0x61e   : > { %v660_v25 = vpop.permute.xlu1 %659 }
 0x67f   : > { %v618_v7 = vpop.f32.mrb[2].mxu0 }
 0x680   : > { %v622_v8 = vadd.f32 %v1505_v6, %v618_v7  ;;  %v1582_v9 = vpop.f32.mrb[3].mxu0 }
 0x682   : > { %1711 = vtanh.f32 %v622_v8  ;;  %v1508_v12 = vmul.f32 -1.442695, %v622_v8 }
 0x684   : > { %1713 = vpow2.f32 %v1508_v12 }
 0x68c   : > { %v1712_v10 = vpop.eup %1711 }
 0x68d   : > { %638 = vrot.lane.b32.xlu0 %v1712_v10, %s1804_s8 }
 0x68e   : > { %v1714_v13 = vpop.eup %1713 }
 0x68f   : > { %v628_v14 = vadd.f32 1.0, %v1714_v13 }
 0x691   : > { %1715 = vrcp.f32 %v628_v14 }
 0x69b   : > { %v1716_v15 = vpop.eup %1715 }
 0x69c   : > { %v636_v20 = vmul.f32 %v1716_v15, %v634_v18 }
 0x6ff   : > { %v639_v16 = vpop.permute.xlu0 %638 }
 0x700   : > { %v641_v17 = vmul.f32 %v1716_v15, %v639_v16 }
 0x702   : > { %643 = vrot.lane.b32.xlu0 %v641_v17, %s1805_s9 }
 0x774   : > { %v644_v21 = vpop.permute.xlu0 %643 }
 0x775   : > { %v646_v22 = vadd.f32 %v644_v21, %v636_v20 }
 0x777   : > { %1717 = vtanh.f32 %v646_v22  ;;  %v668_v23 = vsel %vm658_vm8, %v646_v22, %v634_v18 }
 0x778   : > { %670 = vrot.lane.b32.xlu1 %v668_v23, %s1808_s12 }
 0x781   : > { %v1718_v24 = vpop.eup %1717 }
 0x782   : > { %649 = vrot.lane.b32.xlu0 %v1718_v24, %s1807_s11 }
 0x7ea   : > { %v671_v26 = vpop.permute.xlu1 %670 }
 0x7eb   : > { %673 = vst.msk [vmem:[#allocation3] sm:$0xff] %vm278_vm2, %v671_v26 }
 0x7f2   : > { %v682_v29 = vld [vmem:[#allocation3] sm:$0xff] }
 0x7f3   : > { %769 = vrot.lane.b32.xlu1 %v682_v29, %s1805_s9 }
 0x7f4   : > { %v650_v30 = vpop.permute.xlu0 %649 }
 0x7f5   : > { %v1969_v33 = vmul.f32 %v1716_v15, %v650_v30 }
 0x7f7   : > { %792 = vperm.xlu1 %1693, %v790_v32   ;;  %v662_v34 = vsel %vm658_vm8, %v1969_v33, %v660_v25  ;;  %v1062_v32 = vsel %vm1061_vm13, 1, %v1803_v11 }
 0x7f8   : > { %664 = vrot.lane.b32.xlu0 %v662_v34, %s1809_s13 }
 0x86a   : > { %v665_v35 = vpop.permute.xlu0 %664 }
 0x86b   : > { %667 = vst.msk [vmem:[#allocation2] sm:$0xff] %vm278_vm2, %v665_v35 }
 0x872   : > { %v681_v36 = vld [vmem:[#allocation2] sm:$0xff] }
 0x873   : > { %795 = vrot.lane.b32.xlu1 %v681_v36, %s1806_s10  ;;  %1588 = vmatmul.mubr.msk.f32.vlgmr.msra.gmra.mrb[2].mxu1 %vm278_vm2, %v681_v36 }
 0x874   : > { %1635 = vmatpush3.bf16.msra.mxu1 %v1879_v4  ;;  %1601 = vmatprep.mubr.msk.f32.mxu1 %vm1801_vm1, %v1802_v5 }
 0x875   : > { %1639 = vmatprep.subr.bf16.mxu1 %v1800_v3  ;;  %v770_v3 = vpop.permute.xlu1 %769 }
 0x879   : > { %v1985_v48 = vpop.permute.xlu1 %792 }
 0x87a   : > { %vm794_vm10 = vcmp.eq.s32.totalorder %v1985_v48, 1  ;;  %v1530_v48 = vld [vmem:[%s1866_s28 + $0x38] sm:$0xff] }
 0x8e5   : > { %v796_v55 = vpop.permute.xlu1 %795 }
 0x946   : > { %v754_v38 = vpop.f32.mrb[2].mxu1 }
 0x947   : > { %v758_v39 = vadd.f32 %v1510_v37, %v754_v38  ;;  %v1589_v40 = vpop.f32.mrb[3].mxu1  ;;  %v1520_v38 = vld [vmem:[%s1866_s28 + $0x28] sm:$0xff] }
 0x949   : > { %1719 = vtanh.f32 %v758_v39  ;;  %v1513_v42 = vmul.f32 -1.442695, %v758_v39 }
 0x94b   : > { %1721 = vpow2.f32 %v1513_v42 }
 0x953   : > { %v1720_v41 = vpop.eup %1719 }
 0x954   : > { %774 = vrot.lane.b32.xlu0 %v1720_v41, %s1804_s8 }
 0x955   : > { %v1722_v43 = vpop.eup %1721 }
 0x956   : > { %v764_v44 = vadd.f32 1.0, %v1722_v43 }
 0x958   : > { %1723 = vrcp.f32 %v764_v44 }
 0x962   : > { %v1724_v45 = vpop.eup %1723 }
 0x963   : > { %v772_v49 = vmul.f32 %v1724_v45, %v770_v3 }
 0x9c6   : > { %v775_v46 = vpop.permute.xlu0 %774 }
 0x9c7   : > { %v777_v47 = vmul.f32 %v1724_v45, %v775_v46 }
 0x9c9   : > { %779 = vrot.lane.b32.xlu0 %v777_v47, %s1805_s9 }
 0xa3b   : > { %v780_v50 = vpop.permute.xlu0 %779 }
 0xa3c   : > { %v782_v52 = vadd.f32 %v780_v50, %v772_v49 }
 0xa3e   : > { %1725 = vtanh.f32 %v782_v52  ;;  %v804_v53 = vsel %vm794_vm10, %v782_v52, %v770_v3 }
 0xa3f   : > { %806 = vrot.lane.b32.xlu1 %v804_v53, %s1808_s12 }
 0xa48   : > { %v1726_v54 = vpop.eup %1725 }
 0xa49   : > { %785 = vrot.lane.b32.xlu0 %v1726_v54, %s1807_s11 }
 0xab1   : > { %v807_v56 = vpop.permute.xlu1 %806 }
 0xab2   : > { %809 = vst.msk [vmem:[#allocation3] sm:$0xff] %vm278_vm2, %v807_v56 }
 0xab9   : > { %v818_v58 = vld [vmem:[#allocation3] sm:$0xff] }
 0xaba   : > { %905 = vrot.lane.b32.xlu1 %v818_v58, %s1805_s9 }
 0xabb   : > { %v786_v59 = vpop.permute.xlu0 %785 }
 0xabc   : > { %v1996_v61 = vmul.f32 %v1724_v45, %v786_v59 }
 0xabe   : > { %928 = vperm.xlu1 %1693, %v926_v60   ;;  %v798_v62 = vsel %vm794_vm10, %v1996_v61, %v796_v55  ;;  %v1198_v60 = vsel %vm1197_vm15, 1, %v1803_v11 }
 0xabf   : > { %800 = vrot.lane.b32.xlu0 %v798_v62, %s1809_s13 }
 0xb2c   : > { %v906_v17 = vpop.permute.xlu1 %905 }
 0xb31   : > { %v801_v0 = vpop.permute.xlu0 %800 }
 0xb32   : > { %803 = vst.msk [vmem:[#allocation2] sm:$0xff] %vm278_vm2, %v801_v0 }
 0xb39   : > { %v817_v1 = vld [vmem:[#allocation2] sm:$0xff] }
 0xb3a   : > { %931 = vrot.lane.b32.xlu1 %v817_v1, %s1806_s10  ;;  %1595 = vmatmul.mubr.msk.f32.vlgmr.msra.gmra.mrb[4].mxu0 %vm278_vm2, %v817_v1 }
 0xb3b   : > { %1638 = vmatpush3.bf16.msra.mxu0 %v1879_v4  ;;  %1608 = vmatprep.mubr.msk.f32.mxu0 %vm1801_vm1, %v1802_v5 }
 0xb3d   : > { %v2011_v18 = vpop.permute.xlu1 %928 }
 0xb3e   : > { %vm930_vm12 = vcmp.eq.s32.totalorder %v2011_v18, 1 }
 0xbac   : > { %v932_v25 = vpop.permute.xlu1 %931 }
 0xc0d   : > { %v890_v6 = vpop.f32.mrb[4].mxu0 }
 0xc0e   : > { %v894_v7 = vadd.f32 %v1515_v2, %v890_v6  ;;  %v1596_v8 = vpop.f32.mrb[5].mxu0  ;;  %v1525_v6 = vld [vmem:[%s1866_s28 + $0x30] sm:$0xff] }
 0xc10   : > { %1727 = vtanh.f32 %v894_v7  ;;  %v1518_v10 = vmul.f32 -1.442695, %v894_v7 }
 0xc12   : > { %1729 = vpow2.f32 %v1518_v10 }
 0xc1a   : > { %v1728_v9 = vpop.eup %1727 }
 0xc1b   : > { %910 = vrot.lane.b32.xlu0 %v1728_v9, %s1804_s8 }
 0xc1c   : > { %v1730_v12 = vpop.eup %1729 }
 0xc1d   : > { %v900_v13 = vadd.f32 1.0, %v1730_v12 }
 0xc1f   : > { %1731 = vrcp.f32 %v900_v13 }
 0xc29   : > { %v1732_v14 = vpop.eup %1731 }
 0xc2a   : > { %v908_v20 = vmul.f32 %v1732_v14, %v906_v17 }
 0xc8d   : > { %v911_v15 = vpop.permute.xlu0 %910 }
 0xc8e   : > { %v913_v16 = vmul.f32 %v1732_v14, %v911_v15 }
 0xc90   : > { %915 = vrot.lane.b32.xlu0 %v913_v16, %s1805_s9 }
 0xd02   : > { %v916_v21 = vpop.permute.xlu0 %915 }
 0xd03   : > { %v918_v22 = vadd.f32 %v916_v21, %v908_v20 }
 0xd05   : > { %1733 = vtanh.f32 %v918_v22  ;;  %v940_v23 = vsel %vm930_vm12, %v918_v22, %v906_v17 }
 0xd06   : > { %942 = vrot.lane.b32.xlu1 %v940_v23, %s1808_s12 }
 0xd0f   : > { %v1734_v24 = vpop.eup %1733 }
 0xd10   : > { %921 = vrot.lane.b32.xlu0 %v1734_v24, %s1807_s11 }
 0xd78   : > { %v943_v26 = vpop.permute.xlu1 %942 }
 0xd79   : > { %945 = vst.msk [vmem:[#allocation3] sm:$0xff] %vm278_vm2, %v943_v26 }
 0xd80   : > { %v954_v29 = vld [vmem:[#allocation3] sm:$0xff] }
 0xd81   : > { %1041 = vrot.lane.b32.xlu1 %v954_v29, %s1805_s9 }
 0xd82   : > { %v922_v30 = vpop.permute.xlu0 %921 }
 0xd83   : > { %v2022_v34 = vmul.f32 %v1732_v14, %v922_v30  ;;  %v1532_v30 = vld [vmem:[%s1871_s4 + $0x38] sm:$0xff] }
 0xd85   : > { %1064 = vperm.xlu1 %1693, %v1062_v32   ;;  %v934_v35 = vsel %vm930_vm12, %v2022_v34, %v932_v25 }
 0xd86   : > { %936 = vrot.lane.b32.xlu0 %v934_v35, %s1809_s13 }
 0xdf8   : > { %v937_v36 = vpop.permute.xlu0 %936 }
 0xdf9   : > { %939 = vst.msk [vmem:[#allocation2] sm:$0xff] %vm278_vm2, %v937_v36 }
 0xe00   : > { %v953_v37 = vld [vmem:[#allocation2] sm:$0xff] }
 0xe01   : > { %1067 = vrot.lane.b32.xlu1 %v953_v37, %s1806_s10  ;;  %1602 = vmatmul.mubr.msk.f32.vlgmr.msra.gmra.mrb[4].mxu1 %vm278_vm2, %v953_v37 }
 0xe02   : > { %1641 = vmatpush3.bf16.msra.mxu1 %v1879_v4  ;;  %1615 = vmatprep.mubr.msk.f32.mxu1 %vm1801_vm1, %v1802_v5  ;;  %v1042_v4 = vpop.permute.xlu1 %1041  ;;  %vm1333_vm1 = vcmp.gt.f32.partialorder %v1532_v30, 0.5 }
 0xe03   : > { %v1334_v36 = vsel %vm1333_vm1, 1, %v1803_v11  ;;  %v538_v11 = vsel %vm522_vm6, %v1942_v63, 0.0 }
 0xe06   : > { %v2037_v5 = vpop.permute.xlu1 %1064 }
 0xe07   : > { %vm1066_vm14 = vcmp.eq.s32.totalorder %v2037_v5, 1 }
 0xe73   : > { %v1068_v55 = vpop.permute.xlu1 %1067 }
 0xed4   : > { %v1026_v39 = vpop.f32.mrb[4].mxu1 }
 0xed5   : > { %v1030_v40 = vadd.f32 %v1520_v38, %v1026_v39  ;;  %v1603_v41 = vpop.f32.mrb[5].mxu1 }
 0xed6   : > { %v810_v41 = vsel %vm794_vm10, %v1996_v61, 0.0 }
 0xed7   : > { %1735 = vtanh.f32 %v1030_v40  ;;  %v1523_v43 = vmul.f32 -1.442695, %v1030_v40 }
 0xed9   : > { %1737 = vpow2.f32 %v1523_v43 }
 0xee1   : > { %v1736_v42 = vpop.eup %1735 }
 0xee2   : > { %1046 = vrot.lane.b32.xlu0 %v1736_v42, %s1804_s8 }
 0xee3   : > { %v1738_v44 = vpop.eup %1737 }
 0xee4   : > { %v1036_v45 = vadd.f32 1.0, %v1738_v44 }
 0xee6   : > { %1739 = vrcp.f32 %v1036_v45 }
 0xef0   : > { %v1740_v46 = vpop.eup %1739 }
 0xef1   : > { %v1044_v49 = vmul.f32 %v1740_v46, %v1042_v4 }
 0xf54   : > { %v1047_v47 = vpop.permute.xlu0 %1046 }
 0xf55   : > { %v1049_v3 = vmul.f32 %v1740_v46, %v1047_v47 }
 0xf57   : > { %1051 = vrot.lane.b32.xlu0 %v1049_v3, %s1805_s9 }
 0xfc9   : > { %v1052_v50 = vpop.permute.xlu0 %1051 }
 0xfca   : > { %v1054_v52 = vadd.f32 %v1052_v50, %v1044_v49 }
 0xfcc   : > { %1741 = vtanh.f32 %v1054_v52  ;;  %v1076_v53 = vsel %vm1066_vm14, %v1054_v52, %v1042_v4 }
 0xfcd   : > { %1078 = vrot.lane.b32.xlu1 %v1076_v53, %s1808_s12 }
 0xfd6   : > { %v1742_v54 = vpop.eup %1741 }
 0xfd7   : > { %1057 = vrot.lane.b32.xlu0 %v1742_v54, %s1807_s11 }
0x103f   : > { %v1079_v56 = vpop.permute.xlu1 %1078 }
0x1040   : > { %1081 = vst.msk [vmem:[#allocation3] sm:$0xff] %vm278_vm2, %v1079_v56 }
0x1047   : > { %v1090_v58 = vld [vmem:[#allocation3] sm:$0xff] }
0x1048   : > { %1177 = vrot.lane.b32.xlu1 %v1090_v58, %s1805_s9 }
0x1049   : > { %v1058_v59 = vpop.permute.xlu0 %1057 }
0x104a   : > { %v1060_v62 = vmul.f32 %v1740_v46, %v1058_v59  ;;  %v403_v59 = vsel %vm387_vm4, %v1911_v31, 0.0 }
0x104c   : > { %1200 = vperm.xlu1 %1693, %v1198_v60   ;;  %v1070_v0 = vsel %vm1066_vm14, %v1060_v62, %v1068_v55  ;;  %v1082_v42 = vsel %vm1066_vm14, %v1060_v62, 0.0  ;;  %v674_v60 = vsel %vm658_vm8, %v1969_v33, 0.0  ;;  %v946_v62 = vsel %vm930_vm12, %v2022_v34, 0.0 }
0x104d   : > { %1072 = vrot.lane.b32.xlu0 %v1070_v0, %s1809_s13 }
0x10ba   : > { %v1178_v20 = vpop.permute.xlu1 %1177 }
0x10bf   : > { %v1073_v1 = vpop.permute.xlu0 %1072 }
0x10c0   : > { %1075 = vst.msk [vmem:[#allocation2] sm:$0xff] %vm278_vm2, %v1073_v1 }
0x10c7   : > { %v1089_v2 = vld [vmem:[#allocation2] sm:$0xff] }
0x10c8   : > { %1203 = vrot.lane.b32.xlu1 %v1089_v2, %s1806_s10  ;;  %1609 = vmatmul.mubr.msk.f32.vlgmr.msra.gmra.mrb[6].mxu0 %vm278_vm2, %v1089_v2 }
0x10cb   : > { %v2057_v21 = vpop.permute.xlu1 %1200 }
0x10cc   : > { %vm1202_vm0 = vcmp.eq.s32.totalorder %v2057_v21, 1 }
0x113a   : > { %v1204_v28 = vpop.permute.xlu1 %1203 }
0x119b   : > { %v1162_v7 = vpop.f32.mrb[6].mxu0 }
0x119c   : > { %v1166_v8 = vadd.f32 %v1525_v6, %v1162_v7  ;;  %v1610_v9 = vpop.f32.mrb[7].mxu0 }
0x119e   : > { %1743 = vtanh.f32 %v1166_v8  ;;  %v1528_v12 = vmul.f32 -1.442695, %v1166_v8 }
0x11a0   : > { %1745 = vpow2.f32 %v1528_v12 }
0x11a8   : > { %v1744_v10 = vpop.eup %1743 }
0x11a9   : > { %1182 = vrot.lane.b32.xlu0 %v1744_v10, %s1804_s8 }
0x11aa   : > { %v1746_v13 = vpop.eup %1745 }
0x11ab   : > { %v1172_v14 = vadd.f32 1.0, %v1746_v13 }
0x11ad   : > { %1747 = vrcp.f32 %v1172_v14 }
0x11b7   : > { %v1748_v15 = vpop.eup %1747 }
0x11b8   : > { %v1180_v22 = vmul.f32 %v1748_v15, %v1178_v20 }
0x121b   : > { %v1183_v16 = vpop.permute.xlu0 %1182 }
0x121c   : > { %v1185_v17 = vmul.f32 %v1748_v15, %v1183_v16 }
0x121e   : > { %1187 = vrot.lane.b32.xlu0 %v1185_v17, %s1805_s9 }
0x1290   : > { %v1188_v23 = vpop.permute.xlu0 %1187 }
0x1291   : > { %v1190_v24 = vadd.f32 %v1188_v23, %v1180_v22 }
0x1293   : > { %1749 = vtanh.f32 %v1190_v24  ;;  %v1212_v25 = vsel %vm1202_vm0, %v1190_v24, %v1178_v20 }
0x1294   : > { %1214 = vrot.lane.b32.xlu1 %v1212_v25, %s1808_s12 }
0x129d   : > { %v1750_v26 = vpop.eup %1749 }
0x129e   : > { %1193 = vrot.lane.b32.xlu0 %v1750_v26, %s1807_s11 }
0x1306   : > { %v1215_v29 = vpop.permute.xlu1 %1214 }
0x1307   : > { %1217 = vst.msk [vmem:[#allocation3] sm:$0xff] %vm278_vm2, %v1215_v29 }
0x130e   : > { %v1226_v32 = vld [vmem:[#allocation3] sm:$0xff] }
0x130f   : > { %1313 = vrot.lane.b32.xlu1 %v1226_v32, %s1805_s9 }
0x1310   : > { %v1194_v35 = vpop.permute.xlu0 %1193 }
0x1311   : > { %v1196_v37 = vmul.f32 %v1748_v15, %v1194_v35 }
0x1313   : > { %1336 = vperm.xlu1 %1693, %v1334_v36   ;;  %v1206_v38 = vsel %vm1202_vm0, %v1196_v37, %v1204_v28  ;;  %v1218_v27 = vsel %vm1202_vm0, %v1196_v37, 0.0 }
0x1314   : > { %1208 = vrot.lane.b32.xlu0 %v1206_v38, %s1809_s13 }
0x1381   : > { %v1314_v43 = vpop.permute.xlu1 %1313 }
0x1386   : > { %v1209_v39 = vpop.permute.xlu0 %1208 }
0x1387   : > { %1211 = vst.msk [vmem:[#allocation2] sm:$0xff] %vm278_vm2, %v1209_v39 }
0x138e   : > { %v1225_v40 = vld [vmem:[#allocation2] sm:$0xff] }
0x138f   : > { %1339 = vrot.lane.b32.xlu1 %v1225_v40, %s1806_s10  ;;  %1616 = vmatmul.mubr.msk.f32.vlgmr.msra.gmra.mrb[6].mxu1 %vm278_vm2, %v1225_v40 }
0x1392   : > { %v1337_v44 = vpop.permute.xlu1 %1336 }
0x1393   : > { %540 = vrot.lane.b32.xlu1 %v538_v11, %s1809_s13  ;;  %vm1338_vm3 = vcmp.eq.s32.totalorder %v1337_v44, 1 }
0x1397   : > { %812 = vrot.lane.b32.xlu1 %v810_v41, %s1809_s13 }
0x139b   : > { %1084 = vrot.lane.b32.xlu1 %v1082_v42, %s1809_s13 }
0x1401   : > { %v1340_v45 = vpop.permute.xlu1 %1339 }
0x1405   : > { %v541_v46 = vpop.permute.xlu1 %540 }
0x1406   : > { %1504 = vst.msk [vmem:[%s1876_s7 + $0x8] sm:$0xff] %vm278_vm2, %v541_v46 }
0x1409   : > { %v813_v51 = vpop.permute.xlu1 %812 }
0x140a   : > { %1514 = vst.msk [vmem:[%s1876_s7 + $0x18] sm:$0xff] %vm278_vm2, %v813_v51 }
0x140d   : > { %v1085_v63 = vpop.permute.xlu1 %1084 }
0x140e   : > { %1524 = vst.msk [vmem:[%s1876_s7 + $0x28] sm:$0xff] %vm278_vm2, %v1085_v63 }
0x1462   : > { %v1298_v61 = vpop.f32.mrb[6].mxu1 }
0x1463   : > { %v1302_v47 = vadd.f32 %v1530_v48, %v1298_v61  ;;  %v1617_v3 = vpop.f32.mrb[7].mxu1 }
0x1465   : > { %1751 = vtanh.f32 %v1302_v47  ;;  %v1533_v5 = vmul.f32 -1.442695, %v1302_v47 }
0x1467   : > { %1753 = vpow2.f32 %v1533_v5 }
0x146f   : > { %v1752_v4 = vpop.eup %1751 }
0x1470   : > { %1318 = vrot.lane.b32.xlu0 %v1752_v4, %s1804_s8 }
0x1471   : > { %v1754_v49 = vpop.eup %1753 }
0x1472   : > { %v1308_v50 = vadd.f32 1.0, %v1754_v49 }
0x1474   : > { %1755 = vrcp.f32 %v1308_v50 }
0x147e   : > { %v1756_v52 = vpop.eup %1755 }
0x147f   : > { %v1316_v55 = vmul.f32 %v1756_v52, %v1314_v43 }
0x14e2   : > { %v1319_v53 = vpop.permute.xlu0 %1318 }
0x14e3   : > { %v1321_v54 = vmul.f32 %v1756_v52, %v1319_v53 }
0x14e5   : > { %1323 = vrot.lane.b32.xlu0 %v1321_v54, %s1805_s9 }
0x1557   : > { %v1324_v56 = vpop.permute.xlu0 %1323 }
0x1558   : > { %v1326_v57 = vadd.f32 %v1324_v56, %v1316_v55 }
0x155a   : > { %1757 = vtanh.f32 %v1326_v57  ;;  %v1348_v31 = vsel %vm1338_vm3, %v1326_v57, %v1314_v43 }
0x1564   : > { %v1758_v58 = vpop.eup %1757 }
0x1565   : > { %1329 = vrot.lane.b32.xlu0 %v1758_v58, %s1807_s11 }
0x1569   : > { %405 = vrot.lane.b32.xlu0 %v403_v59, %s1809_s13 }
0x156d   : > { %676 = vrot.lane.b32.xlu0 %v674_v60, %s1809_s13 }
0x1571   : > { %948 = vrot.lane.b32.xlu0 %v946_v62, %s1809_s13 }
0x1575   : > { %1220 = vrot.lane.b32.xlu0 %v1218_v27, %s1809_s13 }
0x1579   : > { %1350 = vrot.lane.b32.xlu0 %v1348_v31, %s1808_s12 }
0x15d7   : > { %v1330_v19 = vpop.permute.xlu0 %1329 }
0x15d8   : > { %v1332_v33 = vmul.f32 %v1756_v52, %v1330_v19 }
0x15da   : > { %v1342_v0 = vsel %vm1338_vm3, %v1332_v33, %v1340_v45  ;;  %v1354_v34 = vsel %vm1338_vm3, %v1332_v33, 0.0 }
0x15db   : > { %1344 = vrot.lane.b32.xlu1 %v1342_v0, %s1809_s13  ;;  %v406_v18 = vpop.permute.xlu0 %405 }
0x15dc   : > { %408 = vst.msk [vmem:[%s1876_s7] sm:$0xff] %vm278_vm2, %v406_v18 }
0x15df   : > { %1356 = vrot.lane.b32.xlu1 %v1354_v34, %s1809_s13  ;;  %v677_v1 = vpop.permute.xlu0 %676 }
0x15e0   : > { %1509 = vst.msk [vmem:[%s1876_s7 + $0x10] sm:$0xff] %vm278_vm2, %v677_v1 }
0x15e3   : > { %v949_v2 = vpop.permute.xlu0 %948 }
0x15e4   : > { %1519 = vst.msk [vmem:[%s1876_s7 + $0x20] sm:$0xff] %vm278_vm2, %v949_v2 }
0x15e7   : > { %v1221_v6 = vpop.permute.xlu0 %1220 }
0x15e8   : > { %1529 = vst.msk [vmem:[%s1876_s7 + $0x30] sm:$0xff] %vm278_vm2, %v1221_v6 }
0x15eb   : > { %v1351_v7 = vpop.permute.xlu0 %1350 }
0x15ec   : > { %1353 = vst.msk [vmem:[#allocation3] sm:$0xff] %vm278_vm2, %v1351_v7 }
0x164d   : > { %v1345_v8 = vpop.permute.xlu1 %1344 }
0x164e   : > { %1347 = vst.msk [vmem:[#allocation2] sm:$0xff] %vm278_vm2, %v1345_v8 }
0x1651   : > { %v1357_v9 = vpop.permute.xlu1 %1356 }
0x1652   : > { %1534 = vst.msk [vmem:[%s1876_s7 + $0x38] sm:$0xff] %vm278_vm2, %v1357_v9 }
0x1653 PF: > { %s13_s16 = sadd.s32 1, %s1797_s16   ;;  %s2144_s12 = smov %s1789_s14 }
0x1654   : > { %p10_p8 = scmp.ge.s32.totalorder %s13_s16, 6   ;;  %s2145_s13 = smov %s1793_s15 }
0x1655   : > { %s2146_s14 = smov %s2149_s17  ;;  %s2147_s15 = smov %s2153_s18 }
0x1656   :  { %12 = sbr.rel (!%p10_p8) target bundleno = 3 (0x3), region = 93 }

// kernel: seq2seq_forward.14
= control target key start
LH: loop header
LB: loop body
LE: loop exit
PB: predicated region body
PF: predicated region fallthrough
CT: control target
= control target key end

     0   :  { %s1792_s12 = smov 0   ;;  %s1794_s13 = smov 0   ;;  %s2093_s0 = inlined_call_operand.vmem [shape: f32[2,8,8,64], index: 0, kind: input, shape index: {}]   ;;  %s2094_s1 = inlined_call_operand.vmem [shape: f32[2,8,8,1], index: 1, kind: input, shape index: {}]   ;;  %s2095_s2 = inlined_call_operand.vmem [shape: f32[2,16,64], index: 2, kind: input, shape index: {}]   ;;  %s2096_s3 = inlined_call_operand.vmem [shape: f32[2,8,8,16], index: 3, kind: output, shape index: {}]  }
   0x1   :  { %s1796_s14 = smov 0  }
   0x2 LB: > { %s25_s15 = sadd.s32 1, %s1756_s13  ;;  %p1482_p0 = scmp.ge.s32.totalorder %s1760_s14, 1  ;;  %s1760_s14 = sphi %s1796_s14, %s13_s14   ;;  %s1756_s13 = sphi %s1794_s13, %s2098_s13   ;;  %s1752_s12 = sphi %s1792_s12, %s2097_s12  }
   0x3   : > { %p27_p1 = scmp.ge.s32.totalorder %s25_s15, 2  ;;  %p185_p2 = scmp.lt.s32.totalorder %s1760_s14, 3 }
   0x5   : > { %s2100_s15 = smov (%p27_p1, %s25_s15), 0  ;;  %p186_p3 = pnand %p1482_p0, %p185_p2 }
   0x6   : > { %p232_p4 = scmp.lt.s32.totalorder (!%p186_p3), %s1752_s12, 1  ;;  %vm270_vm0 = vcmask (!%p186_p3), 130048   ;;  %v1762_v0 = vmov (!%p186_p3), 0.0|0.0   ;;  %vm1763_vm1 = vmmov (!%p186_p3), 0   ;;  %v1764_v1 = vmov (!%p186_p3), 0.0   ;;  %s1766_s24 = smov (!%p186_p3), 96  }
   0x7   : > { %189 = sbr.rel (%p186_p3) target bundleno = 5708 (0x164c), region = 32  ;;  %1614 = vmatprep.subr.bf16.mxu0 (!%p186_p3), %v1762_v0  ;;  %1562 = vmatprep.mubr.msk.f32.mxu0 (!%p186_p3), %vm1763_vm1, %v1764_v1  ;;  %271 = vst.msk [vmem:[#allocation2] sm:$0xff] (!%p186_p3), %vm270_vm0, %v1764_v1  ;;  %272 = vst.msk [vmem:[#allocation3] sm:$0xff] (!%p186_p3), %vm270_vm0, %v1764_v1  ;;  %v1765_v10 = vmov (!%p186_p3), 0   ;;  %s1767_s25 = smov (!%p186_p3), 16  }
   0x8   : > { %1617 = vmatprep.subr.bf16.mxu1 (!%p186_p3), %v1762_v0  ;;  %1569 = vmatprep.mubr.msk.f32.mxu1 (!%p186_p3), %vm1763_vm1, %v1764_v1  ;;  %s1768_s29 = smov (!%p186_p3), 48   ;;  %s1769_s30 = smov (!%p186_p3), 32  }
   0x9   : > { %1672 = vset.pattern.permute.xlu1 (!%p186_p3), %v1765_v10  ;;  %1673 = vset.pattern.permute.xlu0 (!%p186_p3), %v1765_v10  ;;  %s1770_s4 = smov (!%p186_p3), 112   ;;  %s1771_s5 = smov (!%p186_p3), 80  }
   0xe   : > { %s2102_s12 = smov (!%p232_p4, %s1752_s12), 1  ;;  %v275_v5 = vld [vmem:[#allocation2] sm:$0xff]  ;;  %v276_v12 = vld [vmem:[#allocation3] sm:$0xff] }
   0xf   : > { %s1532_s16 = sshll.u32 %s2102_s12, 4  ;;  %s1834_s20 = sshll.u32 %s2102_s12, 6 }
  0x10   : > { %s255_s19 = scalar_lea.vmem %s2095_s2, %s1532_s16  ;;  %s1840_s23 = scalar_lea.vmem %s2093_s0, %s1834_s20 }
  0x11   : > { %v273_v2 = vld [vmem:[%s255_s19] sm:$0xff]  ;;  %v274_v3 = vld [vmem:[%s255_s19 + $0x8] sm:$0xff]  ;;  %s1851_s28 = scalar_lea.vmem %s2094_s1, %s1834_s20  ;;  %s2042_s8 = scalar_lea.vmem %s2096_s3, %s1834_s20 }
  0x12   : > { %v1823_v4 = vpack.c.bf16 %v274_v3, %v273_v2  ;;  %v277_v6 = vld [vmem:[%s1840_s23] sm:$0xff]  ;;  %v1495_v33 = vld [vmem:[%s1851_s28 + $0x8] sm:$0xff]  ;;  %v1500_v58 = vld [vmem:[%s1851_s28 + $0x10] sm:$0xff] }
  0x13   : > { %v353_v16 = vld [vmem:[%s1851_s28] sm:$0xff]  ;;  %vm517_vm4 = vcmp.gt.f32.partialorder %v1495_v33, 0.5  ;;  %v1493_v38 = vld [vmem:[%s1840_s23 + $0x8] sm:$0xff]  ;;  %vm653_vm6 = vcmp.gt.f32.partialorder %v1500_v58, 0.5 }
  0x14   : > { %1616 = vmatpush3.bf16.msra.mxu0 %v1823_v4  ;;  %1619 = vmatpush3.bf16.msra.mxu1 %v1823_v4  ;;  %vm382_vm2 = vcmp.gt.f32.partialorder %v353_v16, 0.5  ;;  %v518_v35 = vsel %vm517_vm4, 1, %v1765_v10  ;;  %v654_v61 = vsel %vm653_vm6, 1, %v1765_v10 }
  0x15   : > { %1620 = vmatprep.subr.bf16.mxu0 %v1762_v0  ;;  %1623 = vmatprep.subr.bf16.mxu1 %v1762_v0  ;;  %v383_v20 = vsel %vm382_vm2, 1, %v1765_v10 }
  0x17   : > { %1563 = vmatmul.mubr.msk.f32.vlgmr.msra.gmra.mrb[0].mxu0 %vm270_vm0, %v275_v5 }
  0x18   : > { %1622 = vmatpush3.bf16.msra.mxu0 %v1823_v4  ;;  %1576 = vmatprep.mubr.msk.f32.mxu0 %vm1763_vm1, %v1764_v1 }
  0x19   : > { %1626 = vmatprep.subr.bf16.mxu0 %v1762_v0 }
  0xea   : > { %v348_v7 = vpop.f32.mrb[0].mxu0 }
  0xeb   : > { %v352_v8 = vadd.f32 %v348_v7, %v277_v6  ;;  %v1564_v9 = vpop.f32.mrb[1].mxu0 }
  0xed   : > { %1674 = vtanh.f32 %v352_v8  ;;  %v1492_v13 = vmul.f32 -1.442695, %v352_v8 }
  0xef   : > { %1676 = vpow2.f32 %v1492_v13 }
  0xf7   : > { %v1675_v11 = vpop.eup %1674 }
  0xf8   : > { %367 = vrot.lane.b32.xlu0 %v1675_v11, %s1766_s24 }
  0xf9   : > { %v1677_v14 = vpop.eup %1676 }
  0xfa   : > { %v357_v15 = vadd.f32 1.0, %v1677_v14 }
  0xfc   : > { %362 = vrot.lane.b32.xlu0 %v276_v12, %s1767_s25  ;;  %1678 = vrcp.f32 %v357_v15 }
 0x106   : > { %v1679_v17 = vpop.eup %1678 }
 0x16a   : > { %v368_v18 = vpop.permute.xlu0 %367 }
 0x16b   : > { %v370_v19 = vmul.f32 %v1679_v17, %v368_v18 }
 0x16d   : > { %372 = vrot.lane.b32.xlu1 %v370_v19, %s1767_s25 }
 0x16e   : > { %v363_v21 = vpop.permute.xlu0 %362 }
 0x16f   : > { %v365_v22 = vmul.f32 %v1679_v17, %v363_v21 }
 0x171   : > { %385 = vperm.xlu1 %1672, %v383_v20  }
 0x175   : > { %388 = vrot.lane.b32.xlu1 %v275_v5, %s1768_s29  ;;  %v1498_v5 = vld [vmem:[%s1840_s23 + $0x10] sm:$0xff] }
 0x1df   : > { %v373_v23 = vpop.permute.xlu1 %372 }
 0x1e0   : > { %v375_v24 = vadd.f32 %v373_v23, %v365_v22 }
 0x1e2   : > { %1680 = vtanh.f32 %v375_v24 }
 0x1ec   : > { %v1681_v25 = vpop.eup %1680 }
 0x1ed   : > { %378 = vrot.lane.b32.xlu0 %v1681_v25, %s1769_s30 }
 0x1f0   : > { %v1858_v26 = vpop.permute.xlu1 %385 }
 0x1f1   : > { %vm387_vm3 = vcmp.eq.s32.totalorder %v1858_v26, 1 }
 0x1f2   : > { %v397_v27 = vsel %vm387_vm3, %v375_v24, %v363_v21 }
 0x1f3   : > { %399 = vrot.lane.b32.xlu1 %v397_v27, %s1770_s4  ;;  %v1505_v27 = vld [vmem:[%s1851_s28 + $0x18] sm:$0xff] }
 0x1f4   : > { %v389_v29 = vpop.permute.xlu1 %388  ;;  %vm789_vm8 = vcmp.gt.f32.partialorder %v1505_v27, 0.5  ;;  %v1515_v27 = vld [vmem:[%s1851_s28 + $0x28] sm:$0xff] }
 0x1f5   : > { %vm1061_vm12 = vcmp.gt.f32.partialorder %v1515_v27, 0.5 }
 0x25f   : > { %v379_v28 = vpop.permute.xlu0 %378 }
 0x260   : > { %v1864_v30 = vmul.f32 %v1679_v17, %v379_v28 }
 0x262   : > { %v391_v31 = vsel %vm387_vm3, %v1864_v30, %v389_v29 }
 0x263   : > { %393 = vrot.lane.b32.xlu0 %v391_v31, %s1771_s5  ;;  %v790_v31 = vsel %vm789_vm8, 1, %v1765_v10 }
 0x265   : > { %v400_v32 = vpop.permute.xlu1 %399 }
 0x266   : > { %402 = vst.msk [vmem:[#allocation3] sm:$0xff] %vm270_vm0, %v400_v32 }
 0x26d   : > { %v410_v34 = vld [vmem:[#allocation3] sm:$0xff] }
 0x26e   : > { %497 = vrot.lane.b32.xlu1 %v410_v34, %s1767_s25 }
 0x272   : > { %520 = vperm.xlu1 %1672, %v518_v35  }
 0x2d5   : > { %v394_v36 = vpop.permute.xlu0 %393 }
 0x2d6   : > { %396 = vst.msk [vmem:[#allocation2] sm:$0xff] %vm270_vm0, %v394_v36  ;;  %v1503_v36 = vld [vmem:[%s1840_s23 + $0x18] sm:$0xff] }
 0x2dd   : > { %v409_v37 = vld [vmem:[#allocation2] sm:$0xff] }
 0x2de   : > { %523 = vrot.lane.b32.xlu1 %v409_v37, %s1768_s29  ;;  %1570 = vmatmul.mubr.msk.f32.vlgmr.msra.gmra.mrb[0].mxu1 %vm270_vm0, %v409_v37 }
 0x2df   : > { %1625 = vmatpush3.bf16.msra.mxu1 %v1823_v4  ;;  %1583 = vmatprep.mubr.msk.f32.mxu1 %vm1763_vm1, %v1764_v1 }
 0x2e0   : > { %1629 = vmatprep.subr.bf16.mxu1 %v1762_v0  ;;  %v498_v49 = vpop.permute.xlu1 %497 }
 0x2f1   : > { %v1884_v50 = vpop.permute.xlu1 %520 }
 0x2f2   : > { %vm522_vm5 = vcmp.eq.s32.totalorder %v1884_v50, 1 }
 0x350   : > { %v524_v56 = vpop.permute.xlu1 %523 }
 0x3b1   : > { %v482_v39 = vpop.f32.mrb[0].mxu1 }
 0x3b2   : > { %v486_v40 = vadd.f32 %v1493_v38, %v482_v39  ;;  %v1571_v41 = vpop.f32.mrb[1].mxu1 }
 0x3b4   : > { %1682 = vtanh.f32 %v486_v40  ;;  %v1496_v43 = vmul.f32 -1.442695, %v486_v40 }
 0x3b6   : > { %1684 = vpow2.f32 %v1496_v43 }
 0x3be   : > { %v1683_v42 = vpop.eup %1682 }
 0x3bf   : > { %502 = vrot.lane.b32.xlu0 %v1683_v42, %s1766_s24 }
 0x3c0   : > { %v1685_v44 = vpop.eup %1684 }
 0x3c1   : > { %v492_v45 = vadd.f32 1.0, %v1685_v44 }
 0x3c3   : > { %1686 = vrcp.f32 %v492_v45 }
 0x3cd   : > { %v1687_v46 = vpop.eup %1686 }
 0x3ce   : > { %v500_v51 = vmul.f32 %v1687_v46, %v498_v49 }
 0x431   : > { %v503_v47 = vpop.permute.xlu0 %502 }
 0x432   : > { %v505_v48 = vmul.f32 %v1687_v46, %v503_v47 }
 0x434   : > { %507 = vrot.lane.b32.xlu0 %v505_v48, %s1767_s25 }
 0x4a6   : > { %v508_v52 = vpop.permute.xlu0 %507 }
 0x4a7   : > { %v510_v53 = vadd.f32 %v508_v52, %v500_v51 }
 0x4a9   : > { %1688 = vtanh.f32 %v510_v53  ;;  %v532_v54 = vsel %vm522_vm5, %v510_v53, %v498_v49 }
 0x4aa   : > { %534 = vrot.lane.b32.xlu1 %v532_v54, %s1770_s4 }
 0x4b3   : > { %v1689_v55 = vpop.eup %1688 }
 0x4b4   : > { %513 = vrot.lane.b32.xlu0 %v1689_v55, %s1769_s30 }
 0x51c   : > { %v535_v57 = vpop.permute.xlu1 %534 }
 0x51d   : > { %537 = vst.msk [vmem:[#allocation3] sm:$0xff] %vm270_vm0, %v535_v57 }
 0x524   : > { %v546_v59 = vld [vmem:[#allocation3] sm:$0xff] }
 0x525   : > { %633 = vrot.lane.b32.xlu1 %v546_v59, %s1767_s25 }
 0x526   : > { %v514_v60 = vpop.permute.xlu0 %513 }
 0x527   : > { %v1895_v62 = vmul.f32 %v1687_v46, %v514_v60 }
 0x529   : > { %656 = vperm.xlu1 %1672, %v654_v61   ;;  %v526_v63 = vsel %vm522_vm5, %v1895_v62, %v524_v56  ;;  %v1510_v56 = vld [vmem:[%s1851_s28 + $0x20] sm:$0xff] }
 0x52a   : > { %528 = vrot.lane.b32.xlu0 %v526_v63, %s1771_s5  ;;  %vm925_vm10 = vcmp.gt.f32.partialorder %v1510_v56, 0.5  ;;  %v1520_v56 = vld [vmem:[%s1851_s28 + $0x30] sm:$0xff] }
 0x52b   : > { %v926_v59 = vsel %vm925_vm10, 1, %v1765_v10  ;;  %vm1197_vm14 = vcmp.gt.f32.partialorder %v1520_v56, 0.5 }
 0x597   : > { %v634_v17 = vpop.permute.xlu1 %633 }
 0x59c   : > { %v529_v2 = vpop.permute.xlu0 %528 }
 0x59d   : > { %531 = vst.msk [vmem:[#allocation2] sm:$0xff] %vm270_vm0, %v529_v2 }
 0x5a4   : > { %v545_v3 = vld [vmem:[#allocation2] sm:$0xff] }
 0x5a5   : > { %659 = vrot.lane.b32.xlu1 %v545_v3, %s1768_s29  ;;  %1577 = vmatmul.mubr.msk.f32.vlgmr.msra.gmra.mrb[2].mxu0 %vm270_vm0, %v545_v3  ;;  %v1508_v3 = vld [vmem:[%s1840_s23 + $0x20] sm:$0xff] }
 0x5a6   : > { %1628 = vmatpush3.bf16.msra.mxu0 %v1823_v4  ;;  %1590 = vmatprep.mubr.msk.f32.mxu0 %vm1763_vm1, %v1764_v1 }
 0x5a7   : > { %1632 = vmatprep.subr.bf16.mxu0 %v1762_v0 }
 0x5a8   : > { %v1911_v18 = vpop.permute.xlu1 %656 }
 0x5a9   : > { %vm658_vm7 = vcmp.eq.s32.totalorder %v1911_v18, 1 }
 0x617   : > { %v660_v24 = vpop.permute.xlu1 %659 }
 0x678   : > { %v618_v6 = vpop.f32.mrb[2].mxu0 }
 0x679   : > { %v622_v7 = vadd.f32 %v1498_v5, %v618_v6  ;;  %v1578_v8 = vpop.f32.mrb[3].mxu0 }
 0x67b   : > { %1690 = vtanh.f32 %v622_v7  ;;  %v1501_v11 = vmul.f32 -1.442695, %v622_v7 }
 0x67d   : > { %1692 = vpow2.f32 %v1501_v11 }
 0x685   : > { %v1691_v9 = vpop.eup %1690 }
 0x686   : > { %638 = vrot.lane.b32.xlu0 %v1691_v9, %s1766_s24 }
 0x687   : > { %v1693_v12 = vpop.eup %1692 }
 0x688   : > { %v628_v13 = vadd.f32 1.0, %v1693_v12 }
 0x68a   : > { %1694 = vrcp.f32 %v628_v13 }
 0x694   : > { %v1695_v14 = vpop.eup %1694 }
 0x695   : > { %v636_v19 = vmul.f32 %v1695_v14, %v634_v17 }
 0x6f8   : > { %v639_v15 = vpop.permute.xlu0 %638 }
 0x6f9   : > { %v641_v16 = vmul.f32 %v1695_v14, %v639_v15 }
 0x6fb   : > { %643 = vrot.lane.b32.xlu0 %v641_v16, %s1767_s25 }
 0x76d   : > { %v644_v20 = vpop.permute.xlu0 %643 }
 0x76e   : > { %v646_v21 = vadd.f32 %v644_v20, %v636_v19 }
 0x770   : > { %1696 = vtanh.f32 %v646_v21  ;;  %v668_v22 = vsel %vm658_vm7, %v646_v21, %v634_v17 }
 0x771   : > { %670 = vrot.lane.b32.xlu1 %v668_v22, %s1770_s4 }
 0x77a   : > { %v1697_v23 = vpop.eup %1696 }
 0x77b   : > { %649 = vrot.lane.b32.xlu0 %v1697_v23, %s1769_s30 }
 0x7e3   : > { %v671_v25 = vpop.permute.xlu1 %670 }
 0x7e4   : > { %673 = vst.msk [vmem:[#allocation3] sm:$0xff] %vm270_vm0, %v671_v25 }
 0x7eb   : > { %v682_v28 = vld [vmem:[#allocation3] sm:$0xff] }
 0x7ec   : > { %769 = vrot.lane.b32.xlu1 %v682_v28, %s1767_s25 }
 0x7ed   : > { %v650_v29 = vpop.permute.xlu0 %649 }
 0x7ee   : > { %v1922_v32 = vmul.f32 %v1695_v14, %v650_v29 }
 0x7f0   : > { %792 = vperm.xlu1 %1672, %v790_v31   ;;  %v662_v33 = vsel %vm658_vm7, %v1922_v32, %v660_v24  ;;  %v1062_v31 = vsel %vm1061_vm12, 1, %v1765_v10 }
 0x7f1   : > { %664 = vrot.lane.b32.xlu0 %v662_v33, %s1771_s5 }
 0x863   : > { %v665_v34 = vpop.permute.xlu0 %664 }
 0x864   : > { %667 = vst.msk [vmem:[#allocation2] sm:$0xff] %vm270_vm0, %v665_v34 }
 0x86b   : > { %v681_v35 = vld [vmem:[#allocation2] sm:$0xff] }
 0x86c   : > { %795 = vrot.lane.b32.xlu1 %v681_v35, %s1768_s29  ;;  %1584 = vmatmul.mubr.msk.f32.vlgmr.msra.gmra.mrb[2].mxu1 %vm270_vm0, %v681_v35 }
 0x86d   : > { %1631 = vmatpush3.bf16.msra.mxu1 %v1823_v4  ;;  %1597 = vmatprep.mubr.msk.f32.mxu1 %vm1763_vm1, %v1764_v1 }
 0x86e   : > { %1635 = vmatprep.subr.bf16.mxu1 %v1762_v0  ;;  %v770_v0 = vpop.permute.xlu1 %769 }
 0x872   : > { %v1938_v47 = vpop.permute.xlu1 %792 }
 0x873   : > { %vm794_vm9 = vcmp.eq.s32.totalorder %v1938_v47, 1 }
 0x8de   : > { %v796_v54 = vpop.permute.xlu1 %795 }
 0x93f   : > { %v754_v37 = vpop.f32.mrb[2].mxu1 }
 0x940   : > { %v758_v38 = vadd.f32 %v1503_v36, %v754_v37  ;;  %v1585_v39 = vpop.f32.mrb[3].mxu1  ;;  %v1513_v37 = vld [vmem:[%s1840_s23 + $0x28] sm:$0xff] }
 0x942   : > { %1698 = vtanh.f32 %v758_v38  ;;  %v1506_v41 = vmul.f32 -1.442695, %v758_v38 }
 0x944   : > { %1700 = vpow2.f32 %v1506_v41 }
 0x94c   : > { %v1699_v40 = vpop.eup %1698 }
 0x94d   : > { %774 = vrot.lane.b32.xlu0 %v1699_v40, %s1766_s24 }
 0x94e   : > { %v1701_v42 = vpop.eup %1700 }
 0x94f   : > { %v764_v43 = vadd.f32 1.0, %v1701_v42 }
 0x951   : > { %1702 = vrcp.f32 %v764_v43 }
 0x95b   : > { %v1703_v44 = vpop.eup %1702 }
 0x95c   : > { %v772_v48 = vmul.f32 %v1703_v44, %v770_v0 }
 0x9bf   : > { %v775_v45 = vpop.permute.xlu0 %774 }
 0x9c0   : > { %v777_v46 = vmul.f32 %v1703_v44, %v775_v45 }
 0x9c2   : > { %779 = vrot.lane.b32.xlu0 %v777_v46, %s1767_s25 }
 0xa34   : > { %v780_v49 = vpop.permute.xlu0 %779 }
 0xa35   : > { %v782_v51 = vadd.f32 %v780_v49, %v772_v48 }
 0xa37   : > { %1704 = vtanh.f32 %v782_v51  ;;  %v804_v52 = vsel %vm794_vm9, %v782_v51, %v770_v0 }
 0xa38   : > { %806 = vrot.lane.b32.xlu1 %v804_v52, %s1770_s4 }
 0xa41   : > { %v1705_v53 = vpop.eup %1704 }
 0xa42   : > { %785 = vrot.lane.b32.xlu0 %v1705_v53, %s1769_s30 }
 0xaaa   : > { %v807_v55 = vpop.permute.xlu1 %806 }
 0xaab   : > { %809 = vst.msk [vmem:[#allocation3] sm:$0xff] %vm270_vm0, %v807_v55 }
 0xab2   : > { %v818_v57 = vld [vmem:[#allocation3] sm:$0xff] }
 0xab3   : > { %905 = vrot.lane.b32.xlu1 %v818_v57, %s1767_s25 }
 0xab4   : > { %v786_v58 = vpop.permute.xlu0 %785 }
 0xab5   : > { %v1949_v60 = vmul.f32 %v1703_v44, %v786_v58 }
 0xab7   : > { %928 = vperm.xlu1 %1672, %v926_v59   ;;  %v798_v61 = vsel %vm794_vm9, %v1949_v60, %v796_v54  ;;  %v1198_v59 = vsel %vm1197_vm14, 1, %v1765_v10 }
 0xab8   : > { %800 = vrot.lane.b32.xlu0 %v798_v61, %s1771_s5 }
 0xb25   : > { %v906_v16 = vpop.permute.xlu1 %905 }
 0xb2a   : > { %v801_v63 = vpop.permute.xlu0 %800 }
 0xb2b   : > { %803 = vst.msk [vmem:[#allocation2] sm:$0xff] %vm270_vm0, %v801_v63 }
 0xb32   : > { %v817_v2 = vld [vmem:[#allocation2] sm:$0xff] }
 0xb33   : > { %931 = vrot.lane.b32.xlu1 %v817_v2, %s1768_s29  ;;  %1591 = vmatmul.mubr.msk.f32.vlgmr.msra.gmra.mrb[4].mxu0 %vm270_vm0, %v817_v2 }
 0xb34   : > { %1634 = vmatpush3.bf16.msra.mxu0 %v1823_v4  ;;  %1604 = vmatprep.mubr.msk.f32.mxu0 %vm1763_vm1, %v1764_v1 }
 0xb36   : > { %v1964_v17 = vpop.permute.xlu1 %928 }
 0xb37   : > { %vm930_vm11 = vcmp.eq.s32.totalorder %v1964_v17, 1 }
 0xba5   : > { %v932_v24 = vpop.permute.xlu1 %931 }
 0xc06   : > { %v890_v5 = vpop.f32.mrb[4].mxu0 }
 0xc07   : > { %v894_v6 = vadd.f32 %v1508_v3, %v890_v5  ;;  %v1592_v7 = vpop.f32.mrb[5].mxu0  ;;  %v1518_v5 = vld [vmem:[%s1840_s23 + $0x30] sm:$0xff] }
 0xc09   : > { %1706 = vtanh.f32 %v894_v6  ;;  %v1511_v9 = vmul.f32 -1.442695, %v894_v6 }
 0xc0b   : > { %1708 = vpow2.f32 %v1511_v9 }
 0xc13   : > { %v1707_v8 = vpop.eup %1706 }
 0xc14   : > { %910 = vrot.lane.b32.xlu0 %v1707_v8, %s1766_s24 }
 0xc15   : > { %v1709_v11 = vpop.eup %1708 }
 0xc16   : > { %v900_v12 = vadd.f32 1.0, %v1709_v11 }
 0xc18   : > { %1710 = vrcp.f32 %v900_v12 }
 0xc22   : > { %v1711_v13 = vpop.eup %1710 }
 0xc23   : > { %v908_v19 = vmul.f32 %v1711_v13, %v906_v16 }
 0xc86   : > { %v911_v14 = vpop.permute.xlu0 %910 }
 0xc87   : > { %v913_v15 = vmul.f32 %v1711_v13, %v911_v14 }
 0xc89   : > { %915 = vrot.lane.b32.xlu0 %v913_v15, %s1767_s25 }
 0xcfb   : > { %v916_v20 = vpop.permute.xlu0 %915 }
 0xcfc   : > { %v918_v21 = vadd.f32 %v916_v20, %v908_v19 }
 0xcfe   : > { %1712 = vtanh.f32 %v918_v21  ;;  %v940_v22 = vsel %vm930_vm11, %v918_v21, %v906_v16 }
 0xcff   : > { %942 = vrot.lane.b32.xlu1 %v940_v22, %s1770_s4 }
 0xd08   : > { %v1713_v23 = vpop.eup %1712 }
 0xd09   : > { %921 = vrot.lane.b32.xlu0 %v1713_v23, %s1769_s30 }
 0xd71   : > { %v943_v25 = vpop.permute.xlu1 %942 }
 0xd72   : > { %945 = vst.msk [vmem:[#allocation3] sm:$0xff] %vm270_vm0, %v943_v25 }
 0xd79   : > { %v954_v28 = vld [vmem:[#allocation3] sm:$0xff] }
 0xd7a   : > { %1041 = vrot.lane.b32.xlu1 %v954_v28, %s1767_s25 }
 0xd7b   : > { %v922_v29 = vpop.permute.xlu0 %921 }
 0xd7c   : > { %v1975_v33 = vmul.f32 %v1711_v13, %v922_v29  ;;  %v1525_v29 = vld [vmem:[%s1851_s28 + $0x38] sm:$0xff] }
 0xd7e   : > { %1064 = vperm.xlu1 %1672, %v1062_v31   ;;  %v934_v34 = vsel %vm930_vm11, %v1975_v33, %v932_v24 }
 0xd7f   : > { %936 = vrot.lane.b32.xlu0 %v934_v34, %s1771_s5 }
 0xdf1   : > { %v937_v35 = vpop.permute.xlu0 %936 }
 0xdf2   : > { %939 = vst.msk [vmem:[#allocation2] sm:$0xff] %vm270_vm0, %v937_v35 }
 0xdf9   : > { %v953_v36 = vld [vmem:[#allocation2] sm:$0xff] }
 0xdfa   : > { %1067 = vrot.lane.b32.xlu1 %v953_v36, %s1768_s29  ;;  %1598 = vmatmul.mubr.msk.f32.vlgmr.msra.gmra.mrb[4].mxu1 %vm270_vm0, %v953_v36 }
 0xdfb   : > { %1637 = vmatpush3.bf16.msra.mxu1 %v1823_v4  ;;  %1611 = vmatprep.mubr.msk.f32.mxu1 %vm1763_vm1, %v1764_v1  ;;  %v1042_v1 = vpop.permute.xlu1 %1041  ;;  %vm1333_vm1 = vcmp.gt.f32.partialorder %v1525_v29, 0.5 }
 0xdfc   : > { %v1334_v35 = vsel %vm1333_vm1, 1, %v1765_v10  ;;  %v538_v10 = vsel %vm522_vm5, %v1895_v62, 0.0 }
 0xdff   : > { %v1990_v4 = vpop.permute.xlu1 %1064 }
 0xe00   : > { %vm1066_vm13 = vcmp.eq.s32.totalorder %v1990_v4, 1 }
 0xe6c   : > { %v1068_v54 = vpop.permute.xlu1 %1067 }
 0xecd   : > { %v1026_v38 = vpop.f32.mrb[4].mxu1 }
 0xece   : > { %v1030_v39 = vadd.f32 %v1513_v37, %v1026_v38  ;;  %v1599_v40 = vpop.f32.mrb[5].mxu1 }
 0xecf   : > { %v810_v40 = vsel %vm794_vm9, %v1949_v60, 0.0  ;;  %v1523_v60 = vld [vmem:[%s1840_s23 + $0x38] sm:$0xff] }
 0xed0   : > { %1714 = vtanh.f32 %v1030_v39  ;;  %v1516_v42 = vmul.f32 -1.442695, %v1030_v39 }
 0xed2   : > { %1716 = vpow2.f32 %v1516_v42 }
 0xeda   : > { %v1715_v41 = vpop.eup %1714 }
 0xedb   : > { %1046 = vrot.lane.b32.xlu0 %v1715_v41, %s1766_s24 }
 0xedc   : > { %v1717_v43 = vpop.eup %1716 }
 0xedd   : > { %v1036_v44 = vadd.f32 1.0, %v1717_v43 }
 0xedf   : > { %1718 = vrcp.f32 %v1036_v44 }
 0xee9   : > { %v1719_v45 = vpop.eup %1718 }
 0xeea   : > { %v1044_v48 = vmul.f32 %v1719_v45, %v1042_v1 }
 0xf4d   : > { %v1047_v46 = vpop.permute.xlu0 %1046 }
 0xf4e   : > { %v1049_v0 = vmul.f32 %v1719_v45, %v1047_v46 }
 0xf50   : > { %1051 = vrot.lane.b32.xlu0 %v1049_v0, %s1767_s25 }
 0xfc2   : > { %v1052_v49 = vpop.permute.xlu0 %1051 }
 0xfc3   : > { %v1054_v51 = vadd.f32 %v1052_v49, %v1044_v48 }
 0xfc5   : > { %1720 = vtanh.f32 %v1054_v51  ;;  %v1076_v52 = vsel %vm1066_vm13, %v1054_v51, %v1042_v1 }
 0xfc6   : > { %1078 = vrot.lane.b32.xlu1 %v1076_v52, %s1770_s4 }
 0xfcf   : > { %v1721_v53 = vpop.eup %1720 }
 0xfd0   : > { %1057 = vrot.lane.b32.xlu0 %v1721_v53, %s1769_s30 }
0x1038   : > { %v1079_v55 = vpop.permute.xlu1 %1078 }
0x1039   : > { %1081 = vst.msk [vmem:[#allocation3] sm:$0xff] %vm270_vm0, %v1079_v55 }
0x1040   : > { %v1090_v57 = vld [vmem:[#allocation3] sm:$0xff] }
0x1041   : > { %1177 = vrot.lane.b32.xlu1 %v1090_v57, %s1767_s25 }
0x1042   : > { %v1058_v58 = vpop.permute.xlu0 %1057 }
0x1043   : > { %v1060_v61 = vmul.f32 %v1719_v45, %v1058_v58  ;;  %v403_v58 = vsel %vm387_vm3, %v1864_v30, 0.0 }
0x1045   : > { %1200 = vperm.xlu1 %1672, %v1198_v59   ;;  %v1070_v63 = vsel %vm1066_vm13, %v1060_v61, %v1068_v54  ;;  %v1082_v41 = vsel %vm1066_vm13, %v1060_v61, 0.0  ;;  %v674_v59 = vsel %vm658_vm7, %v1922_v32, 0.0  ;;  %v946_v61 = vsel %vm930_vm11, %v1975_v33, 0.0 }
0x1046   : > { %1072 = vrot.lane.b32.xlu0 %v1070_v63, %s1771_s5 }
0x10b3   : > { %v1178_v19 = vpop.permute.xlu1 %1177 }
0x10b8   : > { %v1073_v2 = vpop.permute.xlu0 %1072 }
0x10b9   : > { %1075 = vst.msk [vmem:[#allocation2] sm:$0xff] %vm270_vm0, %v1073_v2 }
0x10c0   : > { %v1089_v3 = vld [vmem:[#allocation2] sm:$0xff] }
0x10c1   : > { %1203 = vrot.lane.b32.xlu1 %v1089_v3, %s1768_s29  ;;  %1605 = vmatmul.mubr.msk.f32.vlgmr.msra.gmra.mrb[6].mxu0 %vm270_vm0, %v1089_v3 }
0x10c4   : > { %v2010_v20 = vpop.permute.xlu1 %1200 }
0x10c5   : > { %vm1202_vm15 = vcmp.eq.s32.totalorder %v2010_v20, 1 }
0x1133   : > { %v1204_v27 = vpop.permute.xlu1 %1203 }
0x1194   : > { %v1162_v6 = vpop.f32.mrb[6].mxu0 }
0x1195   : > { %v1166_v7 = vadd.f32 %v1518_v5, %v1162_v6  ;;  %v1606_v8 = vpop.f32.mrb[7].mxu0 }
0x1197   : > { %1722 = vtanh.f32 %v1166_v7  ;;  %v1521_v11 = vmul.f32 -1.442695, %v1166_v7 }
0x1199   : > { %1724 = vpow2.f32 %v1521_v11 }
0x11a1   : > { %v1723_v9 = vpop.eup %1722 }
0x11a2   : > { %1182 = vrot.lane.b32.xlu0 %v1723_v9, %s1766_s24 }
0x11a3   : > { %v1725_v12 = vpop.eup %1724 }
0x11a4   : > { %v1172_v13 = vadd.f32 1.0, %v1725_v12 }
0x11a6   : > { %1726 = vrcp.f32 %v1172_v13 }
0x11b0   : > { %v1727_v14 = vpop.eup %1726 }
0x11b1   : > { %v1180_v21 = vmul.f32 %v1727_v14, %v1178_v19 }
0x1214   : > { %v1183_v15 = vpop.permute.xlu0 %1182 }
0x1215   : > { %v1185_v16 = vmul.f32 %v1727_v14, %v1183_v15 }
0x1217   : > { %1187 = vrot.lane.b32.xlu0 %v1185_v16, %s1767_s25 }
0x1289   : > { %v1188_v22 = vpop.permute.xlu0 %1187 }
0x128a   : > { %v1190_v23 = vadd.f32 %v1188_v22, %v1180_v21 }
0x128c   : > { %1728 = vtanh.f32 %v1190_v23  ;;  %v1212_v24 = vsel %vm1202_vm15, %v1190_v23, %v1178_v19 }
0x128d   : > { %1214 = vrot.lane.b32.xlu1 %v1212_v24, %s1770_s4 }
0x1296   : > { %v1729_v25 = vpop.eup %1728 }
0x1297   : > { %1193 = vrot.lane.b32.xlu0 %v1729_v25, %s1769_s30 }
0x12ff   : > { %v1215_v28 = vpop.permute.xlu1 %1214 }
0x1300   : > { %1217 = vst.msk [vmem:[#allocation3] sm:$0xff] %vm270_vm0, %v1215_v28 }
0x1307   : > { %v1226_v31 = vld [vmem:[#allocation3] sm:$0xff] }
0x1308   : > { %1313 = vrot.lane.b32.xlu1 %v1226_v31, %s1767_s25 }
0x1309   : > { %v1194_v34 = vpop.permute.xlu0 %1193 }
0x130a   : > { %v1196_v36 = vmul.f32 %v1727_v14, %v1194_v34 }
0x130c   : > { %1336 = vperm.xlu1 %1672, %v1334_v35   ;;  %v1206_v37 = vsel %vm1202_vm15, %v1196_v36, %v1204_v27  ;;  %v1218_v26 = vsel %vm1202_vm15, %v1196_v36, 0.0 }
0x130d   : > { %1208 = vrot.lane.b32.xlu0 %v1206_v37, %s1771_s5 }
0x137a   : > { %v1314_v42 = vpop.permute.xlu1 %1313 }
0x137f   : > { %v1209_v38 = vpop.permute.xlu0 %1208 }
0x1380   : > { %1211 = vst.msk [vmem:[#allocation2] sm:$0xff] %vm270_vm0, %v1209_v38 }
0x1387   : > { %v1225_v39 = vld [vmem:[#allocation2] sm:$0xff] }
0x1388   : > { %1339 = vrot.lane.b32.xlu1 %v1225_v39, %s1768_s29  ;;  %1612 = vmatmul.mubr.msk.f32.vlgmr.msra.gmra.mrb[6].mxu1 %vm270_vm0, %v1225_v39 }
0x138b   : > { %v1337_v43 = vpop.permute.xlu1 %1336 }
0x138c   : > { %540 = vrot.lane.b32.xlu1 %v538_v10, %s1771_s5  ;;  %vm1338_vm2 = vcmp.eq.s32.totalorder %v1337_v43, 1 }
0x1390   : > { %812 = vrot.lane.b32.xlu1 %v810_v40, %s1771_s5 }
0x1394   : > { %1084 = vrot.lane.b32.xlu1 %v1082_v41, %s1771_s5 }
0x13fa   : > { %v1340_v44 = vpop.permute.xlu1 %1339 }
0x13fe   : > { %v541_v50 = vpop.permute.xlu1 %540 }
0x13ff   : > { %1497 = vst.msk [vmem:[%s2042_s8 + $0x8] sm:$0xff] %vm270_vm0, %v541_v50 }
0x1402   : > { %v813_v62 = vpop.permute.xlu1 %812 }
0x1403   : > { %1507 = vst.msk [vmem:[%s2042_s8 + $0x18] sm:$0xff] %vm270_vm0, %v813_v62 }
0x1406   : > { %v1085_v47 = vpop.permute.xlu1 %1084 }
0x1407   : > { %1517 = vst.msk [vmem:[%s2042_s8 + $0x28] sm:$0xff] %vm270_vm0, %v1085_v47 }
0x145b   : > { %v1298_v45 = vpop.f32.mrb[6].mxu1 }
0x145c   : > { %v1302_v46 = vadd.f32 %v1523_v60, %v1298_v45  ;;  %v1613_v0 = vpop.f32.mrb[7].mxu1 }
0x145e   : > { %1730 = vtanh.f32 %v1302_v46  ;;  %v1526_v4 = vmul.f32 -1.442695, %v1302_v46 }
0x1460   : > { %1732 = vpow2.f32 %v1526_v4 }
0x1468   : > { %v1731_v1 = vpop.eup %1730 }
0x1469   : > { %1318 = vrot.lane.b32.xlu0 %v1731_v1, %s1766_s24 }
0x146a   : > { %v1733_v48 = vpop.eup %1732 }
0x146b   : > { %v1308_v49 = vadd.f32 1.0, %v1733_v48 }
0x146d   : > { %1734 = vrcp.f32 %v1308_v49 }
0x1477   : > { %v1735_v51 = vpop.eup %1734 }
0x1478   : > { %v1316_v54 = vmul.f32 %v1735_v51, %v1314_v42 }
0x14db   : > { %v1319_v52 = vpop.permute.xlu0 %1318 }
0x14dc   : > { %v1321_v53 = vmul.f32 %v1735_v51, %v1319_v52 }
0x14de   : > { %1323 = vrot.lane.b32.xlu0 %v1321_v53, %s1767_s25 }
0x1550   : > { %v1324_v55 = vpop.permute.xlu0 %1323 }
0x1551   : > { %v1326_v56 = vadd.f32 %v1324_v55, %v1316_v54 }
0x1553   : > { %1736 = vtanh.f32 %v1326_v56  ;;  %v1348_v30 = vsel %vm1338_vm2, %v1326_v56, %v1314_v42 }
0x155d   : > { %v1737_v57 = vpop.eup %1736 }
0x155e   : > { %1329 = vrot.lane.b32.xlu0 %v1737_v57, %s1769_s30 }
0x1562   : > { %405 = vrot.lane.b32.xlu0 %v403_v58, %s1771_s5 }
0x1566   : > { %676 = vrot.lane.b32.xlu0 %v674_v59, %s1771_s5 }
0x156a   : > { %948 = vrot.lane.b32.xlu0 %v946_v61, %s1771_s5 }
0x156e   : > { %1220 = vrot.lane.b32.xlu0 %v1218_v26, %s1771_s5 }
0x1572   : > { %1350 = vrot.lane.b32.xlu0 %v1348_v30, %s1770_s4 }
0x15d0   : > { %v1330_v18 = vpop.permute.xlu0 %1329 }
0x15d1   : > { %v1332_v32 = vmul.f32 %v1735_v51, %v1330_v18 }
0x15d3   : > { %v1342_v63 = vsel %vm1338_vm2, %v1332_v32, %v1340_v44  ;;  %v1354_v33 = vsel %vm1338_vm2, %v1332_v32, 0.0 }
0x15d4   : > { %1344 = vrot.lane.b32.xlu1 %v1342_v63, %s1771_s5  ;;  %v406_v17 = vpop.permute.xlu0 %405 }
0x15d5   : > { %408 = vst.msk [vmem:[%s2042_s8] sm:$0xff] %vm270_vm0, %v406_v17 }
0x15d8   : > { %1356 = vrot.lane.b32.xlu1 %v1354_v33, %s1771_s5  ;;  %v677_v2 = vpop.permute.xlu0 %676 }
0x15d9   : > { %1502 = vst.msk [vmem:[%s2042_s8 + $0x10] sm:$0xff] %vm270_vm0, %v677_v2 }
0x15dc   : > { %v949_v3 = vpop.permute.xlu0 %948 }
0x15dd   : > { %1512 = vst.msk [vmem:[%s2042_s8 + $0x20] sm:$0xff] %vm270_vm0, %v949_v3 }
0x15e0   : > { %v1221_v5 = vpop.permute.xlu0 %1220 }
0x15e1   : > { %1522 = vst.msk [vmem:[%s2042_s8 + $0x30] sm:$0xff] %vm270_vm0, %v1221_v5 }
0x15e4   : > { %v1351_v6 = vpop.permute.xlu0 %1350 }
0x15e5   : > { %1353 = vst.msk [vmem:[#allocation3] sm:$0xff] %vm270_vm0, %v1351_v6 }
0x1646   : > { %v1345_v7 = vpop.permute.xlu1 %1344 }
0x1647   : > { %1347 = vst.msk [vmem:[#allocation2] sm:$0xff] %vm270_vm0, %v1345_v7 }
0x164a   : > { %v1357_v8 = vpop.permute.xlu1 %1356 }
0x164b   : > { %1527 = vst.msk [vmem:[%s2042_s8 + $0x38] sm:$0xff] %vm270_vm0, %v1357_v8 }
0x164c PF: > { %s13_s14 = sadd.s32 1, %s1760_s14   ;;  %s2097_s12 = smov %s1756_s13 }
0x164d   : > { %p10_p5 = scmp.ge.s32.totalorder %s13_s14, 4   ;;  %s2098_s13 = smov %s2100_s15 }
0x164f   :  { %12 = sbr.rel (!%p10_p5) target bundleno = 2 (0x2), region = 93 }

// kernel: seq2seq_forward.17
= control target key start
LH: loop header
LB: loop body
LE: loop exit
PB: predicated region body
PF: predicated region fallthrough
CT: control target
= control target key end

     0   :  { %vm31_vm0 = vcmask 523264   ;;  %s228_s1 = inlined_call_operand.vmem [shape: f32[64,128], index: 1, kind: input, shape index: {}]   ;;  %s229_s0 = inlined_call_operand.vmem [shape: f32[16,64], index: 0, kind: input, shape index: {}]   ;;  %s230_s2 = inlined_call_operand.vmem [shape: f32[1,128], index: 2, kind: input, shape index: {}]   ;;  %s231_s3 = inlined_call_operand.vmem [shape: f32[16,128], index: 3, kind: output, shape index: {}]  }
   0x1   :  { %v16_v0 = vld [vmem:[%s228_s1] sm:$0xff]  ;;  %v17_v1 = vld [vmem:[%s228_s1 + $0x8] sm:$0xff]  ;;  %v18_v2 = vld [vmem:[%s228_s1 + $0x10] sm:$0xff] }
   0x2   :  { %v151_v3 = vpack.c.bf16 %v17_v1, %v16_v0  ;;  %v19_v4 = vld [vmem:[%s228_s1 + $0x18] sm:$0xff]  ;;  %v20_v6 = vld [vmem:[%s228_s1 + $0x20] sm:$0xff]  ;;  %v21_v7 = vld [vmem:[%s228_s1 + $0x28] sm:$0xff] }
   0x3   :  { %v155_v5 = vpack.c.bf16 %v19_v4, %v18_v2  ;;  %v14_v8 = vld [vmem:[%s229_s0] sm:$0xff]  ;;  %v159_v9 = vpack.c.bf16 %v21_v7, %v20_v6  ;;  %v22_v10 = vld [vmem:[%s228_s1 + $0x30] sm:$0xff]  ;;  %v23_v11 = vld [vmem:[%s228_s1 + $0x38] sm:$0xff] }
   0x4   :  { %152 = vmatprep.subr.bf16.mxu0 %v151_v3  ;;  %148 = vmatprep.mubr.msk.f32.mxu0 %vm31_vm0, %v14_v8  ;;  %v163_v12 = vpack.c.bf16 %v23_v11, %v22_v10  ;;  %v15_v13 = vld [vmem:[%s229_s0 + $0x8] sm:$0xff]  ;;  %v119_v14 = vld [vmem:[%s230_s2] ss:$0 sm:$0xff] }
   0x5   :  { %154 = vmatpush3.bf16.msra.mxu0 %v151_v3 }
   0x6   :  { %156 = vmatprep.subr.bf16.mxu0 %v155_v5 }
   0x9   :  { %158 = vmatpush3.bf16.msra.mxu0 %v155_v5 }
   0xa   :  { %160 = vmatprep.subr.bf16.mxu0 %v159_v9 }
   0xd   :  { %162 = vmatpush3.bf16.msra.mxu0 %v159_v9 }
   0xe   :  { %164 = vmatprep.subr.bf16.mxu0 %v163_v12 }
  0x11   :  { %166 = vmatpush3.bf16.msra.mxu0 %v163_v12 }
  0x14   :  { %149 = vmatmul.mubr.msk.f32.vlgmr.msra.gmra.mrb[0].mxu0 %vm31_vm0, %v15_v13 }
  0xe7   :  { %v150_v15 = vpop.f32.mrb[0].mxu0 }
  0xe8   :  { %v110_v16 = vadd.f32 %v150_v15, %v119_v14  ;;  %v104_v17 = vpop.f32.mrb[1].mxu0 }
  0xe9   :  { %v105_v18 = vadd.f32 %v119_v14, %v104_v17 }
  0xea   :  { %114 = vst [vmem:[%s231_s3 + $0x8] sm:$0xff] %v110_v16 }
  0xeb   :  { %113 = vst [vmem:[%s231_s3] sm:$0xff] %v105_v18 }

// kernel: seq2seq_forward.19
= control target key start
LH: loop header
LB: loop body
LE: loop exit
PB: predicated region body
PF: predicated region fallthrough
CT: control target
= control target key end

     0   :  { %vm27_vm0 = vcmask 261120   ;;  %vm109_vm1 = vcmask 523264   ;;  %s191_s1 = inlined_call_operand.vmem [shape: f32[32,64], index: 1, kind: input, shape index: {}]   ;;  %s192_s0 = inlined_call_operand.vmem [shape: f32[16,32], index: 0, kind: input, shape index: {}]   ;;  %s193_s2 = inlined_call_operand.vmem [shape: f32[1,64], index: 2, kind: input, shape index: {}]   ;;  %s194_s3 = inlined_call_operand.vmem [shape: f32[16,64], index: 3, kind: output, shape index: {}]  }
   0x1   :  { %v16_v0 = vld [vmem:[%s191_s1] sm:$0xff]  ;;  %v17_v1 = vld [vmem:[%s191_s1 + $0x8] sm:$0xff]  ;;  %v18_v2 = vld [vmem:[%s191_s1 + $0x10] sm:$0xff] }
   0x2   :  { %v136_v3 = vpack.c.bf16 %v17_v1, %v16_v0  ;;  %v19_v4 = vld [vmem:[%s191_s1 + $0x18] sm:$0xff]  ;;  %v14_v5 = vld [vmem:[%s192_s0] sm:$0xff]  ;;  %v15_v7 = vld [vmem:[%s192_s0 + $0x8] sm:$0xff] }
   0x3   :  { %v140_v6 = vpack.c.bf16 %v19_v4, %v18_v2  ;;  %133 = vmatprep.mubr.msk.f32.mxu0 %vm27_vm0, %v14_v5  ;;  %v116_v8 = vld [vmem:[%s193_s2] ss:$0 sm:$0xff] }
   0x4   :  { %137 = vmatprep.subr.bf16.mxu0 %v136_v3 }
   0x5   :  { %139 = vmatpush3.bf16.msra.mxu0 %v136_v3 }
   0x6   :  { %141 = vmatprep.subr.bf16.mxu0 %v140_v6 }
   0x9   :  { %143 = vmatpush3.bf16.msra.mxu0 %v140_v6 }
   0xc   :  { %134 = vmatmul.mubr.msk.f32.vlgmr.msra.gmra.mrb[0].mxu0 %vm27_vm0, %v15_v7 }
  0xdf   :  { %v135_v9 = vpop.f32.mrb[0].mxu0 }
  0xe0   :  { %v106_v10 = vadd.f32 %v135_v9, %v116_v8  ;;  %v100_v11 = vpop.f32.mrb[1].mxu0 }
  0xe1   :  { %v101_v12 = vadd.f32 %v116_v8, %v100_v11 }
  0xe2   :  { %111 = vst.msk [vmem:[%s194_s3 + $0x8] sm:$0xff] %vm109_vm1, %v106_v10 }
  0xe3   :  { %110 = vst.msk [vmem:[%s194_s3] sm:$0xff] %vm109_vm1, %v101_v12 }

// kernel: seq2seq_forward.20
= control target key start
LH: loop header
LB: loop body
LE: loop exit
PB: predicated region body
PF: predicated region fallthrough
CT: control target
= control target key end

     0   :  { %vm29_vm0 = vcmask 130048   ;;  %s258_s1 = inlined_call_operand.vmem [shape: f32[16,128], index: 1, kind: input, shape index: {}]   ;;  %s259_s0 = inlined_call_operand.vmem [shape: f32[48,16], index: 0, kind: input, shape index: {}]   ;;  %s260_s2 = inlined_call_operand.vmem [shape: f32[1,128], index: 2, kind: input, shape index: {}]   ;;  %s261_s3 = inlined_call_operand.vmem [shape: f32[48,128], index: 3, kind: output, shape index: {}]  }
   0x1   :  { %v20_v0 = vld [vmem:[%s258_s1] sm:$0xff]  ;;  %v21_v1 = vld [vmem:[%s258_s1 + $0x8] sm:$0xff]  ;;  %v16_v2 = vld [vmem:[%s259_s0 + $0x10] sm:$0xff] }
   0x2   :  { %v181_v3 = vpack.c.bf16 %v21_v1, %v20_v0  ;;  %175 = vmatprep.mubr.msk.f32.mxu1 %vm29_vm0, %v16_v2  ;;  %v14_v4 = vld [vmem:[%s259_s0] sm:$0xff]  ;;  %v17_v5 = vld [vmem:[%s259_s0 + $0x18] sm:$0xff]  ;;  %v15_v6 = vld [vmem:[%s259_s0 + $0x8] sm:$0xff] }
   0x3   :  { %172 = vmatprep.mubr.msk.f32.mxu0 %vm29_vm0, %v14_v4  ;;  %v18_v7 = vld [vmem:[%s259_s0 + $0x20] sm:$0xff]  ;;  %v19_v8 = vld [vmem:[%s259_s0 + $0x28] sm:$0xff] }
   0x4   :  { %185 = vmatprep.subr.bf16.mxu1 %v181_v3  ;;  %182 = vmatprep.subr.bf16.mxu0 %v181_v3  ;;  %v153_v9 = vld [vmem:[%s260_s2] ss:$0 sm:$0xff] }
   0x5   :  { %186 = vmatpush3.bf16.msra.mxu1 %v181_v3  ;;  %184 = vmatpush3.bf16.msra.mxu0 %v181_v3 }
   0x8   :  { %176 = vmatmul.mubr.msk.f32.vlgmr.msra.gmra.mrb[0].mxu1 %vm29_vm0, %v17_v5  ;;  %173 = vmatmul.mubr.msk.f32.vlgmr.msra.gmra.mrb[0].mxu0 %vm29_vm0, %v15_v6 }
   0x9   :  { %178 = vmatprep.mubr.msk.f32.mxu1 %vm29_vm0, %v18_v7 }
   0xc   :  { %179 = vmatmul.mubr.msk.f32.gmra.mrb[2].mxu1 %vm29_vm0, %v19_v8 }
  0xdb   :  { %v177_v10 = vpop.f32.mrb[0].mxu1  ;;  %v174_v11 = vpop.f32.mrb[0].mxu0 }
  0xdc   :  { %v130_v12 = vadd.f32 %v177_v10, %v153_v9  ;;  %v124_v13 = vpop.f32.mrb[1].mxu1  ;;  %v120_v14 = vadd.f32 %v174_v11, %v153_v9  ;;  %v114_v15 = vpop.f32.mrb[1].mxu0 }
  0xdd   :  { %v125_v16 = vadd.f32 %v153_v9, %v124_v13  ;;  %v115_v17 = vadd.f32 %v153_v9, %v114_v15 }
  0xde   :  { %146 = vst [vmem:[%s261_s3 + $0x18] sm:$0xff] %v130_v12  ;;  %144 = vst [vmem:[%s261_s3 + $0x8] sm:$0xff] %v120_v14 }
  0xdf   :  { %145 = vst [vmem:[%s261_s3 + $0x10] sm:$0xff] %v125_v16  ;;  %143 = vst [vmem:[%s261_s3] sm:$0xff] %v115_v17  ;;  %v180_v18 = vpop.f32.mrb[2].mxu1 }
  0xe0   :  { %v140_v19 = vadd.f32 %v180_v18, %v153_v9  ;;  %v134_v20 = vpop.f32.mrb[3].mxu1 }
  0xe1   :  { %v135_v21 = vadd.f32 %v153_v9, %v134_v20 }
  0xe2   :  { %148 = vst [vmem:[%s261_s3 + $0x28] sm:$0xff] %v140_v19 }
  0xe3   :  { %147 = vst [vmem:[%s261_s3 + $0x20] sm:$0xff] %v135_v21 }

// kernel: seq2seq_forward.21
= control target key start
LH: loop header
LB: loop body
LE: loop exit
PB: predicated region body
PF: predicated region fallthrough
CT: control target
= control target key end

     0   :  { %vm36_vm0 = vcmask 261120   ;;  %v91_v0 = vlaneseq  ;;  %v11353_v1 = vmov 0.0   ;;  %v11354_v2 = vmov 1966171168   ;;  %s11357_s30 = smov 32   ;;  %s11359_s18 = smov 64   ;;  %s13459_s1 = inlined_call_operand.vmem [shape: f32[8,2,32], index: 1, kind: input, shape index: {}]   ;;  %s13460_s3 = inlined_call_operand.vmem [shape: f32[8,2], index: 3, kind: input, shape index: {}]   ;;  %s13461_s2 = inlined_call_operand.vmem [shape: f32[8,2,32], index: 2, kind: input, shape index: {}]   ;;  %s13462_s4 = inlined_call_operand.vmem [shape: f32[64,128], index: 4, kind: input, shape index: {}]   ;;  %s13463_s0 = inlined_call_operand.vmem [shape: f32[8,8,128], index: 0, kind: input, shape index: {}]   ;;  %s13464_s5 = inlined_call_operand.vmem [shape: f32[64,128], index: 5, kind: input, shape index: {}]   ;;  %s13465_s6 = inlined_call_operand.vmem [shape: f32[1,128], index: 6, kind: input, shape index: {}]   ;;  %s13466_s7 = inlined_call_operand.vmem [shape: f32[64,40], index: 7, kind: input, shape index: {}]   ;;  %s13467_s8 = inlined_call_operand.vmem [shape: f32[1,40], index: 8, kind: input, shape index: {}]   ;;  %s13468_s9 = inlined_call_operand.vmem [shape: f32[8,8,40], index: 9, kind: output, shape index: {}]  }
   0x1   :  { %39 = vst.msk [vmem:[#allocation4] sm:$0xff] %vm36_vm0, %v11353_v1  ;;  %v89_v3 = vunpack.c.l.s4 %v11354_v2  ;;  %37 = vst.msk [vmem:[#allocation2] sm:$0xff] %vm36_vm0, %v11353_v1  ;;  %10058 = vmatprep.subr.mxu1 %v11353_v1  ;;  %10078 = vmatprep.subr.mxu0 %v11353_v1  ;;  %v11355_v5 = vmov 0   ;;  %v11441_v15 = vld [vmem:[%s13459_s1] sm:$0x3]  ;;  %vm142_vm1 = vcmask 254976  }
   0x2   :  { %38 = vst.msk [vmem:[#allocation3] sm:$0xff] %vm36_vm0, %v11353_v1  ;;  %40 = vst.msk [vmem:[#allocation5] sm:$0xff] %vm36_vm0, %v11353_v1  ;;  %v11422_v4 = vshrl.u32 %v91_v0, 7  ;;  %11130 = vset.pattern.permute.xlu0 %v11355_v5  ;;  %11131 = vset.pattern.permute.xlu1 %v11355_v5  ;;  %v11449_v20 = vld [vmem:[%s13459_s1 + $0x2] sm:$0x3]  ;;  %v242_v55 = vand.u32 127, %v91_v0 }
   0x3   :  { %v90_v6 = vunpack.c.0.s8 %v89_v3  ;;  %v11454_v21 = vld [vmem:[%s13459_s1 + $0x4] sm:$0x3]  ;;  %v11463_v27 = vld [vmem:[%s13459_s1 + $0x8] sm:$0x3]  ;;  %v11472_v34 = vld [vmem:[%s13459_s1 + $0x6] sm:$0x3] }
   0x4   :  { %v11432_v10 = vsub.s32 0, %v11422_v4  ;;  %v11478_v36 = vld [vmem:[%s13459_s1 + $0xa] sm:$0x3]  ;;  %v11489_v44 = vld [vmem:[%s13459_s1 + $0xc] sm:$0x3]  ;;  %v11507_v56 = vsub.s32 %v242_v55, %v11422_v4  ;;  %vm275_vm2 = vcmask 1041409  }
   0x5   :  { %v11425_v7 = vsub.s32 %v90_v6, %v11422_v4  ;;  %v11497_v48 = vld [vmem:[%s13459_s1 + $0xe] sm:$0x3]  ;;  %vm277_vm3 = vcmask 1042434   ;;  %vm279_vm4 = vcmask 1043459   ;;  %vm281_vm5 = vcmask 1044484   ;;  %s11360_s15 = smov 96  }
   0x6   :  { %vm283_vm6 = vcmask 1045509   ;;  %vm285_vm7 = vcmask 1046534   ;;  %vm287_vm8 = vcmask 1047559   ;;  %vm291_vm10 = vcmask 15360  }
   0x7   :  { %vm355_vm11 = vcmask 1041408   ;;  %vm11356_vm12 = vmmov 0   ;;  %vm985_vm13 = vcmask 523264   ;;  %vm1294_vm14 = vcmask 326656  }
   0x8   :  { %v11427_v8 = vld [vmem:[#allocation4] sm:$0xff]  ;;  %10060 = vmatprep.mubr.msk.f32.mxu1 %vm11356_vm12, %v11353_v1  ;;  %10080 = vmatprep.mubr.msk.f32.mxu0 %vm11356_vm12, %v11353_v1 }
   0x9   :  { %v94_v9 = vrot.slane %v11427_v8, %v11425_v7  ;;  %v87_v11 = vcombine.high %v11427_v8, %v11427_v8 }
   0xb   :  { %v110_v12 = vrot.slane %v94_v9, %v11425_v7  ;;  %v102_v13 = vcombine.high %v94_v9, %v94_v9  ;;  %v101_v14 = vrot.slane %v87_v11, %v11425_v7 }
   0xd   :  { %v139_v16 = vrot.slane %v110_v12, %v11432_v10  ;;  %v124_v17 = vrot.slane %v102_v13, %v11425_v7  ;;  %v132_v18 = vcombine.high %v110_v12, %v110_v12  ;;  %v117_v19 = vrot.slane %v101_v14, %v11425_v7 }
   0xe   :  { %v103_v22 = vcombine.high %v101_v14, %v101_v14 }
   0xf   :  { %v141_v23 = vmul.f32 %v139_v16, %v11441_v15  ;;  %v149_v24 = vrot.slane %v124_v17, %v11432_v10  ;;  %v158_v25 = vrot.slane %v132_v18, %v11432_v10  ;;  %v176_v26 = vrot.slane %v117_v19, %v11432_v10 }
  0x10   :  { %v134_v28 = vcombine.high %v124_v17, %v124_v17  ;;  %v131_v29 = vrot.slane %v103_v22, %v11425_v7  ;;  %v133_v30 = vcombine.high %v117_v19, %v117_v19 }
  0x11   :  { %v143_v31 = vsel %vm142_vm1, %v141_v23, 0.0  ;;  %v151_v32 = vmul.f32 %v149_v24, %v11449_v20  ;;  %v160_v33 = vmul.f32 %v158_v25, %v11454_v21  ;;  %v178_v41 = vmul.f32 %v176_v26, %v11463_v27  ;;  %v11522_v25 = vld [vmem:[%s13460_s3] sm:$0xff] }
  0x12   :  { %144 = vadd.xlane.f32.xlu0 %v143_v31  ;;  %v167_v35 = vrot.slane %v134_v28, %v11432_v10  ;;  %v185_v37 = vrot.slane %v131_v29, %v11432_v10  ;;  %v135_v38 = vcombine.high %v131_v29, %v131_v29  ;;  %v194_v42 = vrot.slane %v133_v30, %v11432_v10 }
  0x13   :  { %v152_v39 = vsel %vm142_vm1, %v151_v32, 0.0  ;;  %v161_v40 = vsel %vm142_vm1, %v160_v33, 0.0  ;;  %v179_v49 = vsel %vm142_vm1, %v178_v41, 0.0  ;;  %vm58_vm9 = vcmp.gt.f32.partialorder %v11522_v25, 0.5 }
  0x14   :  { %162 = vadd.xlane.f32.xlu1 %v161_v40  ;;  %v169_v43 = vmul.f32 %v167_v35, %v11472_v34  ;;  %v187_v45 = vmul.f32 %v185_v37, %v11478_v36  ;;  %v203_v46 = vrot.slane %v135_v38, %v11432_v10  ;;  %v196_v50 = vmul.f32 %v194_v42, %v11489_v44  ;;  %v11537_v42 = vld [vmem:[%s13461_s2] sm:$0x3] }
  0x15   :  { %10059 = vmatpush3.msk.msra.mxu1 %vm355_vm11, %v11537_v42 }
  0x16   :  { %153 = vadd.xlane.f32.xlu0 %v152_v39  ;;  %v170_v47 = vsel %vm142_vm1, %v169_v43, 0.0  ;;  %v188_v51 = vsel %vm142_vm1, %v187_v45, 0.0  ;;  %v205_v52 = vmul.f32 %v203_v46, %v11497_v48  ;;  %v197_v53 = vsel %vm142_vm1, %v196_v50, 0.0  ;;  %10063 = vmatprep.subr.mxu1 %v11353_v1  ;;  %v11549_v43 = vld [vmem:[%s13461_s2 + $0x8] sm:$0x3]  ;;  %v954_v45 = vld [vmem:[#allocation2] sm:$0xff] }
  0x17   :  { %10079 = vmatpush3.msk.msra.mxu0 %vm355_vm11, %v11549_v43 }
  0x18   :  { %171 = vadd.xlane.f32.xlu1 %v170_v47  ;;  %v206_v54 = vsel %vm142_vm1, %v205_v52, 0.0  ;;  %10088 = vmatprep.subr.mxu0 %v11353_v1 }
  0x1a   :  { %180 = vadd.xlane.f32.xlu0 %v179_v49 }
  0x1c   :  { %189 = vadd.xlane.f32.xlu1 %v188_v51 }
  0x1e   :  { %198 = vadd.xlane.f32.xlu0 %v197_v53 }
  0x20   :  { %207 = vadd.xlane.f32.xlu1 %v206_v54  ;;  %v11560_v54 = vld [vmem:[%s13461_s2 + $0x2] sm:$0x3] }
  0x9f   :  { %v145_v57 = vpop.xlane.xlu0 %144 }
  0xa0   :  { %218 = vperm.xlu0 %11130, %v145_v57  }
  0xa1   :  { %v163_v59 = vpop.xlane.xlu1 %162 }
  0xa3   :  { %v154_v58 = vpop.xlane.xlu0 %153 }
  0xa4   :  { %221 = vperm.xlu1 %11131, %v154_v58   ;;  %v11568_v58 = vld [vmem:[%s13461_s2 + $0xc] sm:$0x3] }
  0xa5   :  { %v172_v61 = vpop.xlane.xlu1 %171 }
  0xa7   :  { %v181_v60 = vpop.xlane.xlu0 %180 }
  0xa8   :  { %224 = vperm.xlu1 %11131, %v163_v59  }
  0xa9   :  { %v190_v62 = vpop.xlane.xlu1 %189 }
  0xab   :  { %v199_v63 = vpop.xlane.xlu0 %198 }
  0xac   :  { %230 = vperm.xlu1 %11131, %v181_v60   ;;  %v11580_v60 = vld [vmem:[%s13461_s2 + $0x4] sm:$0x3] }
  0xad   :  { %v208_v2 = vpop.xlane.xlu1 %207 }
  0xb0   :  { %227 = vperm.xlu1 %11131, %v172_v61  }
  0xb4   :  { %233 = vperm.xlu1 %11131, %v190_v62  }
  0xb8   :  { %236 = vperm.xlu1 %11131, %v199_v63   ;;  %v11596_v63 = vld [vmem:[%s13461_s2 + $0x6] sm:$0x3] }
  0xbc   :  { %239 = vperm.xlu1 %11131, %v208_v2  }
 0x11f   :  { %v219_v6 = vpop.permute.xlu0 %218 }
 0x120   :  { %v246_v13 = vrot.slane %v219_v6, %v11507_v56 }
 0x123   :  { %v222_v0 = vpop.permute.xlu1 %221 }
 0x124   :  { %v250_v9 = vrot.slane %v222_v0, %v11507_v56 }
 0x126   :  { %v276_v16 = vsel %vm275_vm2, %v250_v9, %v246_v13  ;;  %v59_v9 = vld [vmem:[%s13462_s4] sm:$0xff]  ;;  %v11358_v13 = vmov 0.0|0.0  }
 0x127   :  { %v225_v3 = vpop.permute.xlu1 %224 }
 0x128   :  { %v254_v11 = vrot.slane %v225_v3, %v11507_v56  ;;  %v11609_v3 = vld [vmem:[%s13461_s2 + $0xa] sm:$0x3] }
 0x12a   :  { %v278_v17 = vsel %vm277_vm3, %v254_v11, %v276_v16  ;;  %v60_v11 = vld [vmem:[%s13462_s4 + $0x8] sm:$0xff]  ;;  %v62_v16 = vld [vmem:[%s13462_s4 + $0x18] sm:$0xff] }
 0x12b   :  { %v231_v4 = vpop.permute.xlu1 %230 }
 0x12c   :  { %v262_v23 = vrot.slane %v231_v4, %v11507_v56 }
 0x12f   :  { %v228_v5 = vpop.permute.xlu1 %227 }
 0x130   :  { %v258_v14 = vrot.slane %v228_v5, %v11507_v56  ;;  %v11621_v5 = vld [vmem:[%s13461_s2 + $0xe] sm:$0x3] }
 0x132   :  { %v280_v19 = vsel %vm279_vm4, %v258_v14, %v278_v17  ;;  %v61_v14 = vld [vmem:[%s13462_s4 + $0x10] sm:$0xff] }
 0x133   :  { %v234_v12 = vpop.permute.xlu1 %233  ;;  %v282_v26 = vsel %vm281_vm5, %v262_v23, %v280_v19  ;;  %v11649_v17 = vpack.c.bf16 %v62_v16, %v61_v14  ;;  %v64_v19 = vld [vmem:[%s13462_s4 + $0x28] sm:$0xff]  ;;  %v65_v23 = vld [vmem:[%s13462_s4 + $0x30] sm:$0xff]  ;;  %v984_v16 = vld [vmem:[%s13463_s0] sm:$0xff] }
 0x134   :  { %v266_v22 = vrot.slane %v234_v12, %v11507_v56  ;;  %v11637_v12 = vpack.c.bf16 %v60_v11, %v59_v9 }
 0x136   :  { %v284_v29 = vsel %vm283_vm6, %v266_v22, %v282_v26 }
 0x137   :  { %v237_v18 = vpop.permute.xlu1 %236 }
 0x138   :  { %v270_v24 = vrot.slane %v237_v18, %v11507_v56  ;;  %v63_v18 = vld [vmem:[%s13462_s4 + $0x20] sm:$0xff] }
 0x139   :  { %v11659_v22 = vpack.c.bf16 %v64_v19, %v63_v18 }
 0x13a   :  { %v286_v31 = vsel %vm285_vm7, %v270_v24, %v284_v29  ;;  %v66_v24 = vld [vmem:[%s13462_s4 + $0x38] sm:$0xff] }
 0x13b   :  { %v240_v28 = vpop.permute.xlu1 %239  ;;  %v11669_v26 = vpack.c.bf16 %v66_v24, %v65_v23 }
 0x13c   :  { %v274_v30 = vrot.slane %v240_v28, %v11507_v56 }
 0x13e   :  { %v288_v32 = vsel %vm287_vm8, %v274_v30, %v286_v31 }
 0x13f   :  { %v290_v33 = vsel %vm58_vm9, %v288_v32, -1e+09 }
 0x140   :  { %v292_v35 = vsel %vm291_vm10, %v290_v33, -inf }
 0x141   :  { %293 = vmax.xlane.f32.xlu1 %v292_v35 }
 0x1ce   :  { %v294_v37 = vpop.xlane.xlu1 %293 }
 0x1cf   :  { %v295_v38 = vsub.f32 %v290_v33, %v294_v37 }
 0x1d1   :  { %v296_v39 = vmul.f32 1.442695, %v295_v38 }
 0x1d3   :  { %11139 = vpow2.f32 %v296_v39 }
 0x1dd   :  { %v11140_v40 = vpop.eup %11139 }
 0x1de   :  { %v298_v41 = vsel %vm291_vm10, %v11140_v40, 0.0 }
 0x1df   :  { %299 = vadd.xlane.f32.xlu0 %v298_v41 }
 0x1f5   :  { %979 = vrot.lane.b32.xlu0 %v954_v45, %s11357_s30 }
 0x26c   :  { %v300_v46 = vpop.xlane.xlu0 %299 }
 0x26d   :  { %11141 = vrcp.f32 %v300_v46 }
 0x270   :  { %v980_v9 = vpop.permute.xlu0 %979 }
 0x277   :  { %v11142_v47 = vpop.eup %11141 }
 0x278   :  { %v302_v49 = vmul.f32 %v11142_v47, %v11140_v40 }
 0x27a   :  { %v311_v50 = vrot.slane %v302_v49, %v11425_v7  ;;  %v304_v51 = vcombine.high %v302_v49, %v302_v49 }
 0x27c   :  { %v319_v52 = vcombine.high %v311_v50, %v311_v50  ;;  %v327_v53 = vrot.slane %v311_v50, %v11425_v7  ;;  %v318_v55 = vrot.slane %v304_v51, %v11425_v7 }
 0x27e   :  { %10061 = vmatmul.mubr.msk.f32.vlgmr.msra.gmra.mrb[0].mxu1 %vm291_vm10, %v327_v53  ;;  %v334_v57 = vrot.slane %v318_v55, %v11425_v7  ;;  %v341_v59 = vrot.slane %v319_v52, %v11425_v7  ;;  %v349_v62 = vcombine.high %v327_v53, %v327_v53  ;;  %v320_v2 = vcombine.high %v318_v55, %v318_v55 }
 0x27f   :  { %10064 = vmatpush3.msk.msra.mxu1 %vm355_vm11, %v11560_v54  ;;  %10065 = vmatprep.mubr.msk.f32.mxu1 %vm11356_vm12, %v11353_v1 }
 0x280   :  { %10081 = vmatmul.mubr.msk.f32.vlgmr.msra.gmra.mrb[0].mxu0 %vm291_vm10, %v334_v57  ;;  %10068 = vmatprep.subr.mxu1 %v11353_v1  ;;  %v350_v61 = vcombine.high %v334_v57, %v334_v57  ;;  %v351_v0 = vcombine.high %v341_v59, %v341_v59  ;;  %v348_v4 = vrot.slane %v320_v2, %v11425_v7 }
 0x281   :  { %10089 = vmatpush3.msk.msra.mxu0 %vm355_vm11, %v11568_v58  ;;  %10090 = vmatprep.mubr.msk.f32.mxu0 %vm11356_vm12, %v11353_v1 }
 0x282   :  { %10066 = vmatmul.mubr.msk.f32.vlgmr.msra.gmra.mrb[2].mxu1 %vm291_vm10, %v341_v59  ;;  %v352_v6 = vcombine.high %v348_v4, %v348_v4  ;;  %10834 = vmatprep.subr.bf16.mxu0 %v11358_v13 }
 0x283   :  { %10069 = vmatpush3.msk.msra.mxu1 %vm355_vm11, %v11580_v60  ;;  %10070 = vmatprep.mubr.msk.f32.mxu1 %vm11356_vm12, %v11353_v1 }
 0x284   :  { %10091 = vmatmul.mubr.msk.f32.vlgmr.msra.gmra.mrb[2].mxu0 %vm291_vm10, %v350_v61  ;;  %10073 = vmatprep.subr.mxu1 %v11353_v1 }
 0x285   :  { %10114 = vmatprep.mubr.msk.f32.mxu0 %vm11356_vm12, %v11353_v1  ;;  %10836 = vmatpush3.bf16.msra.mxu0 %v11637_v12 }
 0x286   :  { %10071 = vmatmul.mubr.msk.f32.vlgmr.msra.gmra.mrb[4].mxu1 %vm291_vm10, %v349_v62  ;;  %10837 = vmatprep.subr.bf16.mxu0 %v11358_v13 }
 0x287   :  { %10074 = vmatpush3.msk.msra.mxu1 %vm355_vm11, %v11596_v63  ;;  %10075 = vmatprep.mubr.msk.f32.mxu1 %vm11356_vm12, %v11353_v1 }
 0x288   :  { %10083 = vmatprep.subr.mxu1 %v11353_v1 }
 0x289   :  { %10839 = vmatpush3.bf16.msra.mxu0 %v11649_v17 }
 0x28a   :  { %10076 = vmatmul.mubr.msk.f32.vlgmr.msra.gmra.mrb[6].mxu1 %vm291_vm10, %v351_v0  ;;  %10840 = vmatprep.subr.bf16.mxu0 %v11358_v13 }
 0x28b   :  { %10084 = vmatpush3.msk.msra.mxu1 %vm355_vm11, %v11609_v3  ;;  %10085 = vmatprep.mubr.msk.f32.mxu1 %vm11356_vm12, %v11353_v1 }
 0x28c   :  { %10093 = vmatprep.subr.mxu1 %v11353_v1 }
 0x28d   :  { %10842 = vmatpush3.bf16.msra.mxu0 %v11659_v22 }
 0x28e   :  { %10086 = vmatmul.mubr.msk.f32.vlgmr.msra.gmra.mrb[8].mxu1 %vm291_vm10, %v348_v4  ;;  %10843 = vmatprep.subr.bf16.mxu0 %v11358_v13 }
 0x28f   :  { %10094 = vmatpush3.msk.msra.mxu1 %vm355_vm11, %v11621_v5  ;;  %10095 = vmatprep.mubr.msk.f32.mxu1 %vm11356_vm12, %v11353_v1 }
 0x290   :  { %10846 = vmatprep.subr.bf16.mxu1 %v11358_v13 }
 0x291   :  { %10845 = vmatpush3.bf16.msra.mxu0 %v11669_v26 }
 0x292   :  { %10096 = vmatmul.mubr.msk.f32.vlgmr.msra.gmra.mrb[10].mxu1 %vm291_vm10, %v352_v6  ;;  %10858 = vmatprep.subr.bf16.mxu0 %v11358_v13 }
 0x293   :  { %10133 = vmatprep.mubr.msk.f32.mxu1 %vm11356_vm12, %v11353_v1 }
 0x351   :  { %v425_v28 = vpop.f32.mrb[0].mxu1 }
 0x352   :  { %v10062_v29 = vpop.f32.mrb[1].mxu1 }
 0x353   :  { %v725_v30 = vpop.f32.mrb[0].mxu0 }
 0x354   :  { %v10082_v31 = vpop.f32.mrb[1].mxu0  ;;  %v969_v51 = vrot.slane %v725_v30, 4 }
 0x355   :  { %v500_v32 = vpop.f32.mrb[2].mxu1 }
 0x356   :  { %v963_v33 = vrot.slane %v500_v32, 7  ;;  %v10067_v35 = vpop.f32.mrb[3].mxu1 }
 0x357   :  { %v875_v37 = vpop.f32.mrb[2].mxu0 }
 0x358   :  { %v964_v38 = vsel %vm275_vm2, %v963_v33, %v425_v28  ;;  %v10092_v39 = vpop.f32.mrb[3].mxu0  ;;  %v973_v61 = vrot.slane %v875_v37, 2  ;;  %v1067_v28 = vld [vmem:[#allocation3] sm:$0xff] }
 0x359   :  { %v575_v40 = vpop.f32.mrb[4].mxu1 }
 0x35a   :  { %v965_v41 = vrot.slane %v575_v40, 6  ;;  %v10072_v45 = vpop.f32.mrb[5].mxu1 }
 0x35b   :  { %v68_v45 = vld [vmem:[%s13464_s5 + $0x8] sm:$0xff] }
 0x35c   :  { %v966_v46 = vsel %vm277_vm3, %v965_v41, %v964_v38  ;;  %v67_v41 = vld [vmem:[%s13464_s5] sm:$0xff] }
 0x35d   :  { %v650_v47 = vpop.f32.mrb[6].mxu1 }
 0x35e   :  { %v967_v49 = vrot.slane %v650_v47, 5  ;;  %v10077_v50 = vpop.f32.mrb[7].mxu1  ;;  %v11705_v47 = vpack.c.bf16 %v68_v45, %v67_v41 }
 0x360   :  { %v968_v52 = vsel %vm279_vm4, %v967_v49, %v966_v46  ;;  %v69_v46 = vld [vmem:[%s13464_s5 + $0x10] sm:$0xff]  ;;  %v70_v49 = vld [vmem:[%s13464_s5 + $0x18] sm:$0xff]  ;;  %10848 = vmatpush3.bf16.msra.mxu1 %v11705_v47 }
 0x361   :  { %v800_v53 = vpop.f32.mrb[8].mxu1  ;;  %v970_v55 = vsel %vm281_vm5, %v969_v51, %v968_v52  ;;  %v11711_v50 = vpack.c.bf16 %v70_v49, %v69_v46  ;;  %10849 = vmatprep.subr.bf16.mxu1 %v11358_v13  ;;  %v71_v51 = vld [vmem:[%s13464_s5 + $0x20] sm:$0xff]  ;;  %v72_v52 = vld [vmem:[%s13464_s5 + $0x28] sm:$0xff] }
 0x362   :  { %v971_v57 = vrot.slane %v800_v53, 3  ;;  %v10087_v59 = vpop.f32.mrb[9].mxu1  ;;  %v11721_v53 = vpack.c.bf16 %v72_v52, %v71_v51 }
 0x364   :  { %v972_v62 = vsel %vm283_vm6, %v971_v57, %v970_v55  ;;  %10851 = vmatpush3.bf16.msra.mxu1 %v11711_v50  ;;  %v73_v55 = vld [vmem:[%s13464_s5 + $0x30] sm:$0xff]  ;;  %v74_v57 = vld [vmem:[%s13464_s5 + $0x38] sm:$0xff] }
 0x365   :  { %v950_v2 = vpop.f32.mrb[10].mxu1  ;;  %v974_v0 = vsel %vm285_vm7, %v973_v61, %v972_v62  ;;  %10852 = vmatprep.subr.bf16.mxu1 %v11358_v13  ;;  %v11732_v61 = vpack.c.bf16 %v74_v57, %v73_v55  ;;  %v1185_v62 = vld [vmem:[#allocation5] sm:$0xff] }
 0x366   :  { %v975_v4 = vrot.slane %v950_v2, 1  ;;  %v10097_v6 = vpop.f32.mrb[11].mxu1 }
 0x368   :  { %v11680_v11 = vsel %vm287_vm8, %v975_v4, %v974_v0  ;;  %10854 = vmatpush3.bf16.msra.mxu1 %v11721_v53 }
 0x369   :  { %v983_v14 = vsel %vm36_vm0, %v11680_v11, %v980_v9  ;;  %10855 = vmatprep.subr.bf16.mxu1 %v11358_v13 }
 0x36a   :  { %10115 = vmatmul.mubr.msk.f32.vlgmr.msra.gmra.mrb[4].mxu0 %vm985_vm13, %v983_v14 }
 0x36b   :  { %10152 = vmatprep.mubr.msk.f32.mxu0 %vm11356_vm12, %v11353_v1 }
 0x36c   :  { %10857 = vmatpush3.bf16.msra.mxu1 %v11732_v61 }
 0x36d   :  { %10155 = vmatprep.subr.mxu1 %v11353_v1 }
 0x43d   :  { %v1055_v18 = vpop.f32.mrb[4].mxu0 }
 0x43e   :  { %v1059_v19 = vadd.f32 %v1055_v18, %v984_v16  ;;  %v10116_v23 = vpop.f32.mrb[5].mxu0 }
 0x440   :  { %11143 = vtanh.f32 %v1059_v19  ;;  %v9547_v29 = vmul.f32 -1.442695, %v1059_v19 }
 0x442   :  { %11145 = vpow2.f32 %v9547_v29 }
 0x44a   :  { %v11144_v24 = vpop.eup %11143 }
 0x44b   :  { %1074 = vrot.lane.b32.xlu1 %v11144_v24, %s11359_s18 }
 0x44c   :  { %v11146_v30 = vpop.eup %11145 }
 0x44d   :  { %v1063_v31 = vadd.f32 1.0, %v11146_v30 }
 0x44f   :  { %1069 = vrot.lane.b32.xlu1 %v1067_v28, %s11357_s30  ;;  %11147 = vrcp.f32 %v1063_v31 }
 0x459   :  { %v11148_v32 = vpop.eup %11147 }
 0x4bd   :  { %v1075_v33 = vpop.permute.xlu1 %1074 }
 0x4be   :  { %v1077_v35 = vmul.f32 %v11148_v32, %v1075_v33 }
 0x4c0   :  { %1079 = vrot.lane.b32.xlu0 %v1077_v35, %s11357_s30 }
 0x4c1   :  { %v1070_v37 = vpop.permute.xlu1 %1069 }
 0x4c2   :  { %v1072_v38 = vmul.f32 %v11148_v32, %v1070_v37 }
 0x532   :  { %v1080_v39 = vpop.permute.xlu0 %1079 }
 0x533   :  { %v11693_v40 = vadd.f32 %v1080_v39, %v1072_v38 }
 0x535   :  { %11149 = vtanh.f32 %v11693_v40 }
 0x53f   :  { %v11150_v59 = vpop.eup %11149 }
 0x540   :  { %1085 = vrot.lane.b32.xlu1 %v11150_v59, %s11359_s18 }
 0x544   :  { %1095 = vrot.lane.b32.xlu1 %v11427_v8, %s11357_s30  ;;  %v11752_v8 = vld [vmem:[%s13465_s6] ss:$0 sm:$0xff] }
 0x548   :  { %1187 = vrot.lane.b32.xlu1 %v1185_v62, %s11357_s30 }
 0x5b2   :  { %v1086_v2 = vpop.permute.xlu1 %1085 }
 0x5b3   :  { %v1088_v0 = vmul.f32 %v11148_v32, %v1086_v2 }
 0x5b5   :  { %1091 = vrot.lane.b32.xlu0 %v1088_v0, %s11357_s30 }
 0x5b6   :  { %v1096_v4 = vpop.permute.xlu1 %1095 }
 0x5ba   :  { %v1188_v32 = vpop.permute.xlu1 %1187 }
 0x627   :  { %v1092_v6 = vpop.permute.xlu0 %1091 }
 0x628   :  { %1296 = vst.msk [vmem:[#allocation2] sm:$0xff] %vm36_vm0, %v1092_v6  ;;  %v1098_v9 = vsel %vm36_vm0, %v1092_v6, %v1096_v4 }
 0x629   :  { %10134 = vmatmul.mubr.msk.f32.vlgmr.msra.gmra.mrb[12].mxu1 %vm985_vm13, %v1098_v9 }
 0x62a   :  { %10156 = vmatpush3.msk.msra.mxu1 %vm355_vm11, %v11537_v42  ;;  %10157 = vmatprep.mubr.msk.f32.mxu1 %vm11356_vm12, %v11353_v1 }
 0x62b   :  { %10160 = vmatprep.subr.mxu1 %v11353_v1 }
 0x6fc   :  { %v1174_v14 = vpop.f32.mrb[12].mxu1 }
 0x6fd   :  { %v1175_v16 = vadd.f32 %v11752_v8, %v1174_v14  ;;  %v10135_v18 = vpop.f32.mrb[13].mxu1 }
 0x6ff   :  { %11151 = vtanh.f32 %v1175_v16  ;;  %v9550_v23 = vmul.f32 -1.442695, %v1175_v16 }
 0x701   :  { %11153 = vpow2.f32 %v9550_v23 }
 0x709   :  { %v11152_v19 = vpop.eup %11151 }
 0x70a   :  { %1192 = vrot.lane.b32.xlu0 %v11152_v19, %s11359_s18 }
 0x70b   :  { %v11154_v24 = vpop.eup %11153 }
 0x70c   :  { %v1181_v28 = vadd.f32 1.0, %v11154_v24 }
 0x70e   :  { %11155 = vrcp.f32 %v1181_v28 }
 0x718   :  { %v11156_v29 = vpop.eup %11155 }
 0x719   :  { %v1190_v33 = vmul.f32 %v11156_v29, %v1188_v32 }
 0x77c   :  { %v1193_v30 = vpop.permute.xlu0 %1192 }
 0x77d   :  { %v1195_v31 = vmul.f32 %v11156_v29, %v1193_v30 }
 0x77f   :  { %1197 = vrot.lane.b32.xlu0 %v1195_v31, %s11357_s30 }
 0x7f1   :  { %v1198_v35 = vpop.permute.xlu0 %1197 }
 0x7f2   :  { %v11757_v37 = vadd.f32 %v1198_v35, %v1190_v33 }
 0x7f4   :  { %11157 = vtanh.f32 %v11757_v37 }
 0x7fe   :  { %v11158_v38 = vpop.eup %11157 }
 0x7ff   :  { %1203 = vrot.lane.b32.xlu1 %v11158_v38, %s11359_s18 }
 0x871   :  { %v1204_v39 = vpop.permute.xlu1 %1203 }
 0x872   :  { %v1206_v41 = vmul.f32 %v11156_v29, %v1204_v39 }
 0x874   :  { %1208 = vrot.lane.b32.xlu0 %v1206_v41, %s11357_s30 }
 0x8e6   :  { %v11762_v45 = vpop.permute.xlu0 %1208 }
 0x8e7   :  { %1302 = vst.msk [vmem:[#allocation4] sm:$0xff] %vm36_vm0, %v11762_v45 }
 0x8ee   :  { %v11766_v46 = vld [vmem:[#allocation4] sm:$0xff] }
 0x8ef   :  { %v1317_v49 = vrot.slane %v11766_v46, %v11425_v7  ;;  %v1310_v51 = vcombine.high %v11766_v46, %v11766_v46 }
 0x8f1   :  { %v1333_v52 = vrot.slane %v1317_v49, %v11425_v7  ;;  %v1325_v55 = vcombine.high %v1317_v49, %v1317_v49  ;;  %v1324_v57 = vrot.slane %v1310_v51, %v11425_v7 }
 0x8f3   :  { %v1362_v59 = vrot.slane %v1333_v52, %v11432_v10  ;;  %v1347_v62 = vrot.slane %v1325_v55, %v11425_v7  ;;  %v1355_v2 = vcombine.high %v1333_v52, %v1333_v52  ;;  %v1326_v0 = vcombine.high %v1324_v57, %v1324_v57 }
 0x8f4   :  { %v1340_v4 = vrot.slane %v1324_v57, %v11425_v7 }
 0x8f5   :  { %v1364_v6 = vmul.f32 %v1362_v59, %v11441_v15  ;;  %v1371_v9 = vrot.slane %v1347_v62, %v11432_v10  ;;  %v1357_v14 = vcombine.high %v1347_v62, %v1347_v62  ;;  %v1380_v16 = vrot.slane %v1355_v2, %v11432_v10 }
 0x8f6   :  { %v1354_v18 = vrot.slane %v1326_v0, %v11425_v7  ;;  %v1398_v29 = vrot.slane %v1340_v4, %v11432_v10  ;;  %v1356_v33 = vcombine.high %v1340_v4, %v1340_v4 }
 0x8f7   :  { %v1365_v19 = vsel %vm142_vm1, %v1364_v6, 0.0  ;;  %v1373_v23 = vmul.f32 %v1371_v9, %v11449_v20  ;;  %v1389_v24 = vrot.slane %v1357_v14, %v11432_v10  ;;  %v1382_v32 = vmul.f32 %v1380_v16, %v11454_v21 }
 0x8f8   :  { %1366 = vadd.xlane.f32.xlu1 %v1365_v19  ;;  %v1407_v28 = vrot.slane %v1354_v18, %v11432_v10  ;;  %v1358_v30 = vcombine.high %v1354_v18, %v1354_v18  ;;  %v1400_v41 = vmul.f32 %v1398_v29, %v11463_v27  ;;  %v1416_v49 = vrot.slane %v1356_v33, %v11432_v10 }
 0x8f9   :  { %v1374_v15 = vsel %vm142_vm1, %v1373_v23, 0.0  ;;  %v1391_v31 = vmul.f32 %v1389_v24, %v11472_v34  ;;  %v1383_v39 = vsel %vm142_vm1, %v1382_v32, 0.0 }
 0x8fa   :  { %1375 = vadd.xlane.f32.xlu0 %v1374_v15  ;;  %v1409_v20 = vmul.f32 %v1407_v28, %v11478_v36  ;;  %v1425_v38 = vrot.slane %v1358_v30, %v11432_v10  ;;  %v1401_v51 = vsel %vm142_vm1, %v1400_v41, 0.0  ;;  %v1418_v52 = vmul.f32 %v1416_v49, %v11489_v44 }
 0x8fb   :  { %v1392_v35 = vsel %vm142_vm1, %v1391_v31, 0.0 }
 0x8fc   :  { %1393 = vadd.xlane.f32.xlu1 %v1392_v35  ;;  %v1410_v34 = vsel %vm142_vm1, %v1409_v20, 0.0  ;;  %v1427_v21 = vmul.f32 %v1425_v38, %v11497_v48  ;;  %v1419_v55 = vsel %vm142_vm1, %v1418_v52, 0.0  ;;  %v2141_v52 = vld [vmem:[#allocation2] sm:$0xff] }
 0x8fe   :  { %1384 = vadd.xlane.f32.xlu0 %v1383_v39  ;;  %v1428_v36 = vsel %vm142_vm1, %v1427_v21, 0.0 }
 0x900   :  { %1411 = vadd.xlane.f32.xlu1 %v1410_v34 }
 0x902   :  { %1402 = vadd.xlane.f32.xlu0 %v1401_v51 }
 0x904   :  { %1429 = vadd.xlane.f32.xlu1 %v1428_v36 }
 0x906   :  { %1420 = vadd.xlane.f32.xlu0 %v1419_v55 }
 0x985   :  { %v1367_v27 = vpop.xlane.xlu1 %1366 }
 0x986   :  { %1440 = vperm.xlu0 %11130, %v1367_v27  }
 0x987   :  { %v1376_v57 = vpop.xlane.xlu0 %1375 }
 0x988   :  { %1443 = vperm.xlu1 %11131, %v1376_v57  }
 0x989   :  { %v1394_v59 = vpop.xlane.xlu1 %1393 }
 0x98a   :  { %1449 = vperm.xlu0 %11130, %v1394_v59   ;;  %v76_v59 = vld [vmem:[%s13466_s7] sm:$0xff] }
 0x98b   :  { %v1385_v62 = vpop.xlane.xlu0 %1384 }
 0x98c   :  { %1446 = vperm.xlu1 %11131, %v1385_v62   ;;  %v77_v62 = vld [vmem:[%s13466_s7 + $0x8] sm:$0xff] }
 0x98d   :  { %v1412_v48 = vpop.xlane.xlu1 %1411 }
 0x98e   :  { %1455 = vperm.xlu0 %11130, %v1412_v48   ;;  %v78_v48 = vld [vmem:[%s13466_s7 + $0x10] sm:$0xff] }
 0x98f   :  { %v1403_v2 = vpop.xlane.xlu0 %1402 }
 0x990   :  { %1452 = vperm.xlu1 %11131, %v1403_v2   ;;  %v11833_v2 = vpack.c.bf16 %v77_v62, %v76_v59 }
 0x991   :  { %v1430_v44 = vpop.xlane.xlu1 %1429 }
 0x992   :  { %1461 = vperm.xlu0 %11130, %v1430_v44   ;;  %10860 = vmatpush3.bf16.msra.mxu0 %v11833_v2 }
 0x993   :  { %v1421_v0 = vpop.xlane.xlu0 %1420  ;;  %10861 = vmatprep.subr.bf16.mxu0 %v11358_v13 }
 0x994   :  { %1458 = vperm.xlu1 %11131, %v1421_v0  }
 0xa05   :  { %v1441_v4 = vpop.permute.xlu0 %1440 }
 0xa06   :  { %v1466_v16 = vrot.slane %v1441_v4, %v11507_v56  ;;  %v80_v4 = vld [vmem:[%s13466_s7 + $0x20] sm:$0xff] }
 0xa07   :  { %v1444_v6 = vpop.permute.xlu1 %1443 }
 0xa08   :  { %v1470_v9 = vrot.slane %v1444_v6, %v11507_v56  ;;  %v81_v6 = vld [vmem:[%s13466_s7 + $0x28] sm:$0xff] }
 0xa09   :  { %v1450_v14 = vpop.permute.xlu0 %1449 }
 0xa0a   :  { %v1495_v23 = vsel %vm275_vm2, %v1470_v9, %v1466_v16  ;;  %v1478_v29 = vrot.slane %v1450_v14, %v11507_v56  ;;  %v11850_v9 = vpack.c.bf16 %v81_v6, %v80_v4 }
 0xa0b   :  { %v1447_v18 = vpop.permute.xlu1 %1446 }
 0xa0c   :  { %v1474_v19 = vrot.slane %v1447_v18, %v11507_v56 }
 0xa0d   :  { %v1456_v24 = vpop.permute.xlu0 %1455 }
 0xa0e   :  { %v1496_v28 = vsel %vm277_vm3, %v1474_v19, %v1495_v23  ;;  %v1486_v35 = vrot.slane %v1456_v24, %v11507_v56  ;;  %v82_v19 = vld [vmem:[%s13466_s7 + $0x30] sm:$0xff]  ;;  %v83_v23 = vld [vmem:[%s13466_s7 + $0x38] sm:$0xff] }
 0xa0f   :  { %v1453_v30 = vpop.permute.xlu1 %1452  ;;  %v1497_v31 = vsel %vm279_vm4, %v1478_v29, %v1496_v28  ;;  %v11863_v24 = vpack.c.bf16 %v83_v23, %v82_v19 }
 0xa10   :  { %v1482_v15 = vrot.slane %v1453_v30, %v11507_v56 }
 0xa11   :  { %v1462_v33 = vpop.permute.xlu0 %1461 }
 0xa12   :  { %v1498_v32 = vsel %vm281_vm5, %v1482_v15, %v1497_v31  ;;  %v1494_v39 = vrot.slane %v1462_v33, %v11507_v56 }
 0xa13   :  { %v1459_v20 = vpop.permute.xlu1 %1458  ;;  %v1499_v41 = vsel %vm283_vm6, %v1486_v35, %v1498_v32 }
 0xa14   :  { %v1490_v38 = vrot.slane %v1459_v20, %v11507_v56 }
 0xa16   :  { %v1500_v49 = vsel %vm285_vm7, %v1490_v38, %v1499_v41 }
 0xa17   :  { %v1501_v34 = vsel %vm287_vm8, %v1494_v39, %v1500_v49 }
 0xa18   :  { %v1503_v21 = vsel %vm58_vm9, %v1501_v34, -1e+09 }
 0xa19   :  { %v1504_v51 = vsel %vm291_vm10, %v1503_v21, -inf }
 0xa1a   :  { %1505 = vmax.xlane.f32.xlu1 %v1504_v51 }
 0xa2b   :  { %2166 = vrot.lane.b32.xlu1 %v2141_v52, %s11357_s30 }
 0xa2f   :  { %1298 = vrot.lane.b32.xlu1 %v11693_v40, %s11360_s15  ;;  %v79_v40 = vld [vmem:[%s13466_s7 + $0x18] sm:$0xff] }
 0xa30   :  { %v11839_v44 = vpack.c.bf16 %v79_v40, %v78_v48 }
 0xa32   :  { %10863 = vmatpush3.bf16.msra.mxu0 %v11839_v44 }
 0xa33   :  { %10864 = vmatprep.subr.bf16.mxu0 %v11358_v13 }
 0xa36   :  { %10866 = vmatpush3.bf16.msra.mxu0 %v11850_v9 }
 0xa37   :  { %10867 = vmatprep.subr.bf16.mxu0 %v11358_v13 }
 0xa3a   :  { %10869 = vmatpush3.bf16.msra.mxu0 %v11863_v24 }
 0xa3b   :  { %10175 = vmatprep.subr.mxu0 %v11353_v1 }
 0xaa7   :  { %v1506_v36 = vpop.xlane.xlu1 %1505 }
 0xaa8   :  { %v1507_v55 = vsub.f32 %v1503_v21, %v1506_v36 }
 0xaaa   :  { %v1508_v27 = vmul.f32 1.442695, %v1507_v55 }
 0xaab   :  { %v11822_v57 = vpop.permute.xlu1 %2166 }
 0xaac   :  { %11159 = vpow2.f32 %v1508_v27 }
 0xaaf   :  { %v1299_v0 = vpop.permute.xlu1 %1298 }
 0xab0   :  { %1301 = vst.msk [vmem:[#allocation3] sm:$0xff] %vm36_vm0, %v1299_v0 }
 0xab6   :  { %v11160_v14 = vpop.eup %11159 }
 0xab7   :  { %v1510_v16 = vsel %vm291_vm10, %v11160_v14, 0.0  ;;  %v2253_v18 = vld [vmem:[#allocation3] sm:$0xff] }
 0xab8   :  { %1511 = vadd.xlane.f32.xlu0 %v1510_v16  ;;  %2255 = vrot.lane.b32.xlu1 %v2253_v18, %s11357_s30 }
 0xace   :  { %1211 = vrot.lane.b32.xlu0 %v11680_v11, %s11357_s30 }
 0xb45   :  { %v1512_v28 = vpop.xlane.xlu0 %1511 }
 0xb46   :  { %11161 = vrcp.f32 %v1512_v28 }
 0xb49   :  { %v1212_v29 = vpop.permute.xlu0 %1211 }
 0xb4a   :  { %v1214_v30 = vsel %vm36_vm0, %v11762_v45, %v1212_v29 }
 0xb4b   :  { %10153 = vmatmul.mubr.msk.f32.vlgmr.msra.gmra.mrb[6].mxu0 %vm985_vm13, %v1214_v30 }
 0xb4c   :  { %10176 = vmatpush3.msk.msra.mxu0 %vm355_vm11, %v11549_v43  ;;  %10177 = vmatprep.mubr.msk.f32.mxu0 %vm11356_vm12, %v11353_v1 }
 0xb4d   :  { %10185 = vmatprep.subr.mxu0 %v11353_v1 }
 0xb50   :  { %v11162_v15 = vpop.eup %11161 }
 0xb51   :  { %v1514_v31 = vmul.f32 %v11162_v15, %v11160_v14 }
 0xb53   :  { %v1516_v32 = vcombine.high %v1514_v31, %v1514_v31  ;;  %v1523_v11 = vrot.slane %v1514_v31, %v11425_v7 }
 0xb55   :  { %v1539_v33 = vrot.slane %v1523_v11, %v11425_v7  ;;  %v1530_v35 = vrot.slane %v1516_v32, %v11425_v7  ;;  %v1531_v45 = vcombine.high %v1523_v11, %v1523_v11 }
 0xb57   :  { %10158 = vmatmul.mubr.msk.f32.vlgmr.msra.gmra.mrb[14].mxu1 %vm291_vm10, %v1539_v33  ;;  %v1546_v20 = vrot.slane %v1530_v35, %v11425_v7  ;;  %v1553_v43 = vrot.slane %v1531_v45, %v11425_v7 }
 0xb58   :  { %10161 = vmatpush3.msk.msra.mxu1 %vm355_vm11, %v11560_v54  ;;  %10162 = vmatprep.mubr.msk.f32.mxu1 %vm11356_vm12, %v11353_v1  ;;  %v1561_v54 = vcombine.high %v1539_v33, %v1539_v33 }
 0xb59   :  { %10178 = vmatmul.mubr.msk.f32.vlgmr.msra.gmra.mrb[8].mxu0 %vm291_vm10, %v1546_v20  ;;  %10165 = vmatprep.subr.mxu1 %v11353_v1  ;;  %v1562_v38 = vcombine.high %v1546_v20, %v1546_v20 }
 0xb5a   :  { %10186 = vmatpush3.msk.msra.mxu0 %vm355_vm11, %v11568_v58  ;;  %10187 = vmatprep.mubr.msk.f32.mxu0 %vm11356_vm12, %v11353_v1  ;;  %v1563_v58 = vcombine.high %v1553_v43, %v1553_v43 }
 0xb5b   :  { %10163 = vmatmul.mubr.msk.f32.vlgmr.msra.gmra.mrb[16].mxu1 %vm291_vm10, %v1553_v43  ;;  %10870 = vmatprep.subr.bf16.mxu0 %v11358_v13 }
 0xb5c   :  { %10166 = vmatpush3.msk.msra.mxu1 %vm355_vm11, %v11580_v60  ;;  %10167 = vmatprep.mubr.msk.f32.mxu1 %vm11356_vm12, %v11353_v1  ;;  %v1532_v60 = vcombine.high %v1530_v35, %v1530_v35 }
 0xb5d   :  { %10188 = vmatmul.mubr.msk.f32.vlgmr.msra.gmra.mrb[10].mxu0 %vm291_vm10, %v1562_v38  ;;  %10170 = vmatprep.subr.mxu1 %v11353_v1 }
 0xb5e   :  { %10872 = vmatpush3.bf16.msra.mxu0 %v11637_v12  ;;  %10211 = vmatprep.mubr.msk.f32.mxu0 %vm11356_vm12, %v11353_v1 }
 0xb5f   :  { %10168 = vmatmul.mubr.msk.f32.vlgmr.msra.gmra.mrb[18].mxu1 %vm291_vm10, %v1561_v54  ;;  %10873 = vmatprep.subr.bf16.mxu0 %v11358_v13 }
 0xb60   :  { %10171 = vmatpush3.msk.msra.mxu1 %vm355_vm11, %v11596_v63  ;;  %10172 = vmatprep.mubr.msk.f32.mxu1 %vm11356_vm12, %v11353_v1  ;;  %v1560_v63 = vrot.slane %v1532_v60, %v11425_v7 }
 0xb61   :  { %10180 = vmatprep.subr.mxu1 %v11353_v1 }
 0xb62   :  { %10875 = vmatpush3.bf16.msra.mxu0 %v11649_v17 }
 0xb63   :  { %10173 = vmatmul.mubr.msk.f32.vlgmr.msra.gmra.mrb[20].mxu1 %vm291_vm10, %v1563_v58  ;;  %10876 = vmatprep.subr.bf16.mxu0 %v11358_v13 }
 0xb64   :  { %10181 = vmatpush3.msk.msra.mxu1 %vm355_vm11, %v11609_v3  ;;  %10182 = vmatprep.mubr.msk.f32.mxu1 %vm11356_vm12, %v11353_v1  ;;  %v1564_v3 = vcombine.high %v1560_v63, %v1560_v63 }
 0xb65   :  { %10190 = vmatprep.subr.mxu1 %v11353_v1 }
 0xb66   :  { %10878 = vmatpush3.bf16.msra.mxu0 %v11659_v22 }
 0xb67   :  { %10183 = vmatmul.mubr.msk.f32.vlgmr.msra.gmra.mrb[22].mxu1 %vm291_vm10, %v1560_v63  ;;  %10879 = vmatprep.subr.bf16.mxu0 %v11358_v13 }
 0xb68   :  { %10191 = vmatpush3.msk.msra.mxu1 %vm355_vm11, %v11621_v5  ;;  %10192 = vmatprep.mubr.msk.f32.mxu1 %vm11356_vm12, %v11353_v1  ;;  %v11944_v5 = vld [vmem:[%s13467_s8] ss:$0 sm:$0xff] }
 0xb69   :  { %10882 = vmatprep.subr.bf16.mxu1 %v11358_v13 }
 0xb6a   :  { %10881 = vmatpush3.bf16.msra.mxu0 %v11669_v26 }
 0xb6b   :  { %10193 = vmatmul.mubr.msk.f32.vlgmr.msra.gmra.mrb[24].mxu1 %vm291_vm10, %v1564_v3  ;;  %10894 = vmatprep.subr.bf16.mxu0 %v11358_v13 }
 0xb6c   :  { %10884 = vmatpush3.bf16.msra.mxu1 %v11705_v47  ;;  %10230 = vmatprep.mubr.msk.f32.mxu1 %vm11356_vm12, %v11353_v1 }
 0xb6d   :  { %10885 = vmatprep.subr.bf16.mxu1 %v11358_v13 }
 0xb70   :  { %10887 = vmatpush3.bf16.msra.mxu1 %v11711_v50 }
 0xb71   :  { %10888 = vmatprep.subr.bf16.mxu1 %v11358_v13 }
 0xb74   :  { %10890 = vmatpush3.bf16.msra.mxu1 %v11721_v53 }
 0xb75   :  { %10891 = vmatprep.subr.bf16.mxu1 %v11358_v13 }
 0xb78   :  { %10893 = vmatpush3.bf16.msra.mxu1 %v11732_v61 }
 0xb79   :  { %10252 = vmatprep.subr.mxu1 %v11353_v1 }
 0xc1e   :  { %v1290_v39 = vpop.f32.mrb[6].mxu0 }
 0xc1f   :  { %v1291_v41 = vadd.f32 %v11944_v5, %v1290_v39  ;;  %v10154_v49 = vpop.f32.mrb[7].mxu0 }
 0xc21   :  { %1295 = vst.msk [vmem:[%s13468_s9] sm:$0xff] %vm1294_vm14, %v1291_v41 }
 0xc2a   :  { %v1633_v34 = vpop.f32.mrb[14].mxu1 }
 0xc2b   :  { %v10159_v21 = vpop.f32.mrb[15].mxu1 }
 0xc2c   :  { %v1921_v51 = vpop.f32.mrb[8].mxu0  ;;  %v2256_v21 = vpop.permute.xlu1 %2255 }
 0xc2d   :  { %v10179_v52 = vpop.f32.mrb[9].mxu0  ;;  %v2156_v19 = vrot.slane %v1921_v51, 4 }
 0xc2e   :  { %v1705_v36 = vpop.f32.mrb[16].mxu1 }
 0xc2f   :  { %v2150_v55 = vrot.slane %v1705_v36, 7  ;;  %v10164_v27 = vpop.f32.mrb[17].mxu1 }
 0xc30   :  { %v2065_v59 = vpop.f32.mrb[10].mxu0 }
 0xc31   :  { %v2151_v62 = vsel %vm275_vm2, %v2150_v55, %v1633_v34  ;;  %v10189_v48 = vpop.f32.mrb[11].mxu0  ;;  %v2160_v31 = vrot.slane %v2065_v59, 2 }
 0xc32   :  { %v1777_v40 = vpop.f32.mrb[18].mxu1 }
 0xc33   :  { %v2152_v0 = vrot.slane %v1777_v40, 6  ;;  %v10169_v4 = vpop.f32.mrb[19].mxu1 }
 0xc35   :  { %v2153_v6 = vsel %vm277_vm3, %v2152_v0, %v2151_v62 }
 0xc36   :  { %v1849_v14 = vpop.f32.mrb[20].mxu1 }
 0xc37   :  { %v2154_v16 = vrot.slane %v1849_v14, 5  ;;  %v10174_v18 = vpop.f32.mrb[21].mxu1 }
 0xc39   :  { %v2155_v23 = vsel %vm279_vm4, %v2154_v16, %v2153_v6 }
 0xc3a   :  { %v1993_v28 = vpop.f32.mrb[22].mxu1  ;;  %v2157_v29 = vsel %vm281_vm5, %v2156_v19, %v2155_v23 }
 0xc3b   :  { %v2158_v30 = vrot.slane %v1993_v28, 3  ;;  %v10184_v15 = vpop.f32.mrb[23].mxu1 }
 0xc3d   :  { %v2159_v32 = vsel %vm283_vm6, %v2158_v30, %v2157_v29 }
 0xc3e   :  { %v2137_v11 = vpop.f32.mrb[24].mxu1  ;;  %v2161_v33 = vsel %vm285_vm7, %v2160_v31, %v2159_v32 }
 0xc3f   :  { %v2162_v35 = vrot.slane %v2137_v11, 1  ;;  %v10194_v45 = vpop.f32.mrb[25].mxu1 }
 0xc41   :  { %v11958_v20 = vsel %vm287_vm8, %v2162_v35, %v2161_v33 }
 0xc42   :  { %v2169_v43 = vsel %vm36_vm0, %v11958_v20, %v11822_v57  ;;  %v9569_v57 = vld [vmem:[%s13463_s0 + $0x8] sm:$0xff] }
 0xc43   :  { %10212 = vmatmul.mubr.msk.f32.vlgmr.msra.gmra.mrb[12].mxu0 %vm985_vm13, %v2169_v43 }
 0xc44   :  { %10896 = vmatpush3.bf16.msra.mxu0 %v11833_v2  ;;  %10249 = vmatprep.mubr.msk.f32.mxu0 %vm11356_vm12, %v11353_v1 }
 0xc45   :  { %10897 = vmatprep.subr.bf16.mxu0 %v11358_v13 }
 0xc48   :  { %10899 = vmatpush3.bf16.msra.mxu0 %v11839_v44 }
 0xc49   :  { %10900 = vmatprep.subr.bf16.mxu0 %v11358_v13 }
 0xc4c   :  { %10902 = vmatpush3.bf16.msra.mxu0 %v11850_v9 }
 0xc4d   :  { %10903 = vmatprep.subr.bf16.mxu0 %v11358_v13 }
 0xc50   :  { %10905 = vmatpush3.bf16.msra.mxu0 %v11863_v24 }
 0xc51   :  { %10272 = vmatprep.subr.mxu0 %v11353_v1 }
 0xd16   :  { %v2241_v38 = vpop.f32.mrb[12].mxu0 }
 0xd17   :  { %v2245_v54 = vadd.f32 %v9569_v57, %v2241_v38  ;;  %v10213_v58 = vpop.f32.mrb[13].mxu0 }
 0xd19   :  { %11163 = vtanh.f32 %v2245_v54  ;;  %v9571_v63 = vmul.f32 -1.442695, %v2245_v54 }
 0xd1b   :  { %11165 = vpow2.f32 %v9571_v63 }
 0xd23   :  { %v11164_v60 = vpop.eup %11163 }
 0xd24   :  { %2260 = vrot.lane.b32.xlu0 %v11164_v60, %s11359_s18 }
 0xd25   :  { %v11166_v3 = vpop.eup %11165 }
 0xd26   :  { %v2249_v39 = vadd.f32 1.0, %v11166_v3 }
 0xd28   :  { %11167 = vrcp.f32 %v2249_v39 }
 0xd32   :  { %v11168_v41 = vpop.eup %11167 }
 0xd33   :  { %v2258_v51 = vmul.f32 %v11168_v41, %v2256_v21 }
 0xd96   :  { %v2261_v49 = vpop.permute.xlu0 %2260 }
 0xd97   :  { %v2263_v34 = vmul.f32 %v11168_v41, %v2261_v49 }
 0xd99   :  { %2265 = vrot.lane.b32.xlu0 %v2263_v34, %s11357_s30 }
 0xe0b   :  { %v2266_v52 = vpop.permute.xlu0 %2265 }
 0xe0c   :  { %v11979_v36 = vadd.f32 %v2266_v52, %v2258_v51 }
 0xe0e   :  { %11169 = vtanh.f32 %v11979_v36 }
 0xe18   :  { %v11170_v55 = vpop.eup %11169 }
 0xe19   :  { %2271 = vrot.lane.b32.xlu1 %v11170_v55, %s11359_s18 }
 0xe1d   :  { %2281 = vrot.lane.b32.xlu1 %v11766_v46, %s11357_s30 }
 0xe8b   :  { %v2272_v27 = vpop.permute.xlu1 %2271 }
 0xe8c   :  { %v2274_v59 = vmul.f32 %v11168_v41, %v2272_v27  ;;  %v12024_v41 = vld [vmem:[%s13459_s1] sm:$0x3] }
 0xe8e   :  { %2277 = vrot.lane.b32.xlu0 %v2274_v59, %s11357_s30  ;;  %v12034_v59 = vld [vmem:[%s13459_s1 + $0x2] sm:$0x3] }
 0xe8f   :  { %v2282_v62 = vpop.permute.xlu1 %2281 }
 0xe92   :  { %1304 = vrot.lane.b32.xlu0 %v11757_v37, %s11360_s15 }
 0xf00   :  { %v2278_v48 = vpop.permute.xlu0 %2277 }
 0xf01   :  { %v2284_v40 = vsel %vm36_vm0, %v2278_v48, %v2282_v62  ;;  %2470 = vst.msk [vmem:[#allocation2] sm:$0xff] %vm36_vm0, %v2278_v48  ;;  %v12040_v48 = vld [vmem:[%s13459_s1 + $0x4] sm:$0x3] }
 0xf02   :  { %10231 = vmatmul.mubr.msk.f32.vlgmr.msra.gmra.mrb[26].mxu1 %vm985_vm13, %v2284_v40 }
 0xf03   :  { %10253 = vmatpush3.msk.msra.mxu1 %vm355_vm11, %v11537_v42  ;;  %10254 = vmatprep.mubr.msk.f32.mxu1 %vm11356_vm12, %v11353_v1 }
 0xf04   :  { %v1305_v46 = vpop.permute.xlu0 %1304  ;;  %10257 = vmatprep.subr.mxu1 %v11353_v1 }
 0xf05   :  { %1307 = vst.msk [vmem:[#allocation5] sm:$0xff] %vm36_vm0, %v1305_v46 }
 0xf0c   :  { %v2365_v37 = vld [vmem:[#allocation5] sm:$0xff] }
 0xf0d   :  { %2367 = vrot.lane.b32.xlu0 %v2365_v37, %s11357_s30 }
 0xf7f   :  { %v2368_v29 = vpop.permute.xlu0 %2367 }
 0xfd5   :  { %v2354_v0 = vpop.f32.mrb[26].mxu1 }
 0xfd6   :  { %v2355_v4 = vadd.f32 %v11752_v8, %v2354_v0  ;;  %v10232_v6 = vpop.f32.mrb[27].mxu1 }
 0xfd8   :  { %11171 = vtanh.f32 %v2355_v4  ;;  %v9573_v42 = vmul.f32 -1.442695, %v2355_v4  ;;  %v12049_v4 = vld [vmem:[%s13459_s1 + $0x8] sm:$0x3] }
 0xfda   :  { %11173 = vpow2.f32 %v9573_v42 }
 0xfe2   :  { %v11172_v14 = vpop.eup %11171 }
 0xfe3   :  { %2372 = vrot.lane.b32.xlu1 %v11172_v14, %s11359_s18 }
 0xfe4   :  { %v11174_v16 = vpop.eup %11173 }
 0xfe5   :  { %v2361_v18 = vadd.f32 1.0, %v11174_v16  ;;  %v12057_v16 = vld [vmem:[%s13459_s1 + $0x6] sm:$0x3] }
 0xfe7   :  { %11175 = vrcp.f32 %v2361_v18 }
 0xff1   :  { %v11176_v19 = vpop.eup %11175 }
 0xff2   :  { %v2370_v30 = vmul.f32 %v11176_v19, %v2368_v29  ;;  %v12065_v29 = vld [vmem:[%s13459_s1 + $0xc] sm:$0x3] }
0x1055   :  { %v2373_v23 = vpop.permute.xlu1 %2372 }
0x1056   :  { %v2375_v28 = vmul.f32 %v11176_v19, %v2373_v23 }
0x1058   :  { %2377 = vrot.lane.b32.xlu1 %v2375_v28, %s11357_s30 }
0x10ca   :  { %v2378_v15 = vpop.permute.xlu1 %2377 }
0x10cb   :  { %v12001_v31 = vadd.f32 %v2378_v15, %v2370_v30 }
0x10cd   :  { %11177 = vtanh.f32 %v12001_v31 }
0x10d7   :  { %v11178_v8 = vpop.eup %11177 }
0x10d8   :  { %2383 = vrot.lane.b32.xlu0 %v11178_v8, %s11359_s18  ;;  %v12072_v8 = vld [vmem:[%s13459_s1 + $0xa] sm:$0x3] }
0x114a   :  { %v2384_v32 = vpop.permute.xlu0 %2383 }
0x114b   :  { %v2386_v11 = vmul.f32 %v11176_v19, %v2384_v32 }
0x114d   :  { %2388 = vrot.lane.b32.xlu1 %v2386_v11, %s11357_s30 }
0x11bf   :  { %v12006_v33 = vpop.permute.xlu1 %2388 }
0x11c0   :  { %2476 = vst.msk [vmem:[#allocation4] sm:$0xff] %vm36_vm0, %v12006_v33 }
0x11c7   :  { %v12010_v35 = vld [vmem:[#allocation4] sm:$0xff] }
0x11c8   :  { %v2491_v45 = vrot.slane %v12010_v35, %v11425_v7  ;;  %v2484_v43 = vcombine.high %v12010_v35, %v12010_v35 }
0x11ca   :  { %v2507_v57 = vrot.slane %v2491_v45, %v11425_v7  ;;  %v2499_v38 = vcombine.high %v2491_v45, %v2491_v45  ;;  %v2498_v54 = vrot.slane %v2484_v43, %v11425_v7 }
0x11cc   :  { %v2536_v58 = vrot.slane %v2507_v57, %v11432_v10  ;;  %v2521_v60 = vrot.slane %v2499_v38, %v11425_v7  ;;  %v2529_v63 = vcombine.high %v2507_v57, %v2507_v57  ;;  %v2514_v3 = vrot.slane %v2498_v54, %v11425_v7  ;;  %v12081_v57 = vld [vmem:[%s13459_s1 + $0xe] sm:$0x3] }
0x11cd   :  { %v2500_v39 = vcombine.high %v2498_v54, %v2498_v54 }
0x11ce   :  { %v2538_v49 = vmul.f32 %v12024_v41, %v2536_v58  ;;  %v2545_v34 = vrot.slane %v2521_v60, %v11432_v10  ;;  %v2554_v21 = vrot.slane %v2529_v63, %v11432_v10  ;;  %v2572_v51 = vrot.slane %v2514_v3, %v11432_v10 }
0x11cf   :  { %v2531_v52 = vcombine.high %v2521_v60, %v2521_v60  ;;  %v2530_v55 = vcombine.high %v2514_v3, %v2514_v3  ;;  %v2528_v46 = vrot.slane %v2500_v39, %v11425_v7 }
0x11d0   :  { %v2539_v27 = vsel %vm142_vm1, %v2538_v49, 0.0  ;;  %v2547_v62 = vmul.f32 %v12034_v59, %v2545_v34  ;;  %v2556_v40 = vmul.f32 %v12040_v48, %v2554_v21  ;;  %v2574_v6 = vmul.f32 %v12049_v4, %v2572_v51 }
0x11d1   :  { %2540 = vadd.xlane.f32.xlu0 %v2539_v27  ;;  %v2563_v37 = vrot.slane %v2531_v52, %v11432_v10  ;;  %v2590_v14 = vrot.slane %v2530_v55, %v11432_v10  ;;  %v2581_v19 = vrot.slane %v2528_v46, %v11432_v10  ;;  %v2532_v23 = vcombine.high %v2528_v46, %v2528_v46 }
0x11d2   :  { %v2548_v0 = vsel %vm142_vm1, %v2547_v62, 0.0  ;;  %v2557_v42 = vsel %vm142_vm1, %v2556_v40, 0.0  ;;  %v2575_v28 = vsel %vm142_vm1, %v2574_v6, 0.0 }
0x11d3   :  { %2549 = vadd.xlane.f32.xlu1 %v2548_v0  ;;  %v2565_v18 = vmul.f32 %v12057_v16, %v2563_v37  ;;  %v2592_v30 = vmul.f32 %v12065_v29, %v2590_v14  ;;  %v2583_v32 = vmul.f32 %v12072_v8, %v2581_v19  ;;  %v2599_v11 = vrot.slane %v2532_v23, %v11432_v10 }
0x11d5   :  { %2558 = vadd.xlane.f32.xlu0 %v2557_v42  ;;  %v2566_v15 = vsel %vm142_vm1, %v2565_v18, 0.0  ;;  %v2593_v45 = vsel %vm142_vm1, %v2592_v30, 0.0  ;;  %v2584_v43 = vsel %vm142_vm1, %v2583_v32, 0.0  ;;  %v2601_v38 = vmul.f32 %v12081_v57, %v2599_v11 }
0x11d7   :  { %2576 = vadd.xlane.f32.xlu1 %v2575_v28  ;;  %v2602_v54 = vsel %vm142_vm1, %v2601_v38, 0.0 }
0x11d9   :  { %2567 = vadd.xlane.f32.xlu0 %v2566_v15 }
0x11db   :  { %2594 = vadd.xlane.f32.xlu1 %v2593_v45 }
0x11dd   :  { %2585 = vadd.xlane.f32.xlu0 %v2584_v43 }
0x11e1   :  { %2603 = vadd.xlane.f32.xlu0 %v2602_v54 }
0x125e   :  { %v2541_v58 = vpop.xlane.xlu0 %2540 }
0x125f   :  { %2614 = vperm.xlu1 %11131, %v2541_v58  }
0x1260   :  { %v2550_v60 = vpop.xlane.xlu1 %2549 }
0x1261   :  { %2617 = vperm.xlu0 %11130, %v2550_v60  }
0x1262   :  { %v2559_v63 = vpop.xlane.xlu0 %2558 }
0x1263   :  { %2620 = vperm.xlu1 %11131, %v2559_v63  }
0x1264   :  { %v2577_v3 = vpop.xlane.xlu1 %2576 }
0x1265   :  { %2626 = vperm.xlu0 %11130, %v2577_v3  }
0x1266   :  { %v2568_v39 = vpop.xlane.xlu0 %2567 }
0x1267   :  { %2623 = vperm.xlu1 %11131, %v2568_v39  }
0x1268   :  { %v2595_v49 = vpop.xlane.xlu1 %2594 }
0x1269   :  { %2632 = vperm.xlu0 %11130, %v2595_v49  }
0x126a   :  { %v2586_v34 = vpop.xlane.xlu0 %2585 }
0x126b   :  { %2629 = vperm.xlu1 %11131, %v2586_v34   ;;  %v12113_v34 = vld [vmem:[%s13461_s2 + $0x8] sm:$0x3] }
0x126e   :  { %v2604_v21 = vpop.xlane.xlu0 %2603 }
0x126f   :  { %2635 = vperm.xlu1 %11131, %v2604_v21  }
0x12de   :  { %v2615_v51 = vpop.permute.xlu1 %2614 }
0x12df   :  { %v2640_v62 = vrot.slane %v2615_v51, %v11507_v56  ;;  %v3315_v51 = vld [vmem:[#allocation2] sm:$0xff] }
0x12e0   :  { %v2618_v52 = vpop.permute.xlu0 %2617 }
0x12e1   :  { %v2644_v55 = vrot.slane %v2618_v52, %v11507_v56 }
0x12e2   :  { %v2621_v27 = vpop.permute.xlu1 %2620 }
0x12e3   :  { %v2648_v40 = vrot.slane %v2621_v27, %v11507_v56  ;;  %v2669_v46 = vsel %vm275_vm2, %v2644_v55, %v2640_v62 }
0x12e4   :  { %v2627_v37 = vpop.permute.xlu0 %2626 }
0x12e5   :  { %v2670_v14 = vsel %vm277_vm3, %v2648_v40, %v2669_v46  ;;  %v2656_v18 = vrot.slane %v2627_v37, %v11507_v56 }
0x12e6   :  { %v2624_v0 = vpop.permute.xlu1 %2623 }
0x12e7   :  { %v2652_v6 = vrot.slane %v2624_v0, %v11507_v56 }
0x12e8   :  { %v2633_v23 = vpop.permute.xlu0 %2632 }
0x12e9   :  { %v2671_v42 = vsel %vm279_vm4, %v2652_v6, %v2670_v14  ;;  %v2664_v32 = vrot.slane %v2633_v23, %v11507_v56  ;;  %v12132_v14 = vld [vmem:[%s13461_s2 + $0x2] sm:$0x3]  ;;  %v12155_v23 = vld [vmem:[%s13461_s2 + $0x4] sm:$0x3] }
0x12ea   :  { %v2630_v19 = vpop.permute.xlu1 %2629  ;;  %v2672_v30 = vsel %vm281_vm5, %v2656_v18, %v2671_v42  ;;  %v12144_v18 = vld [vmem:[%s13461_s2 + $0xc] sm:$0x3] }
0x12eb   :  { %v2660_v28 = vrot.slane %v2630_v19, %v11507_v56 }
0x12ed   :  { %v2673_v15 = vsel %vm283_vm6, %v2660_v28, %v2672_v30  ;;  %v12171_v30 = vld [vmem:[%s13461_s2 + $0x6] sm:$0x3] }
0x12ee   :  { %v2636_v11 = vpop.permute.xlu1 %2635  ;;  %v2674_v43 = vsel %vm285_vm7, %v2664_v32, %v2673_v15 }
0x12ef   :  { %v2668_v45 = vrot.slane %v2636_v11, %v11507_v56  ;;  %v12184_v11 = vld [vmem:[%s13461_s2 + $0xa] sm:$0x3] }
0x12f1   :  { %v2675_v38 = vsel %vm287_vm8, %v2668_v45, %v2674_v43  ;;  %v12198_v43 = vld [vmem:[%s13461_s2 + $0xe] sm:$0x3] }
0x12f2   :  { %v2677_v54 = vsel %vm58_vm9, %v2675_v38, -1e+09 }
0x12f3   :  { %v2678_v58 = vsel %vm291_vm10, %v2677_v54, -inf }
0x12f4   :  { %2679 = vmax.xlane.f32.xlu0 %v2678_v58 }
0x130a   :  { %2391 = vrot.lane.b32.xlu0 %v11958_v20, %s11357_s30 }
0x130e   :  { %2472 = vrot.lane.b32.xlu0 %v11979_v36, %s11360_s15 }
0x1381   :  { %v2680_v60 = vpop.xlane.xlu0 %2679 }
0x1382   :  { %v2681_v63 = vsub.f32 %v2677_v54, %v2680_v60 }
0x1384   :  { %v2682_v3 = vmul.f32 1.442695, %v2681_v63 }
0x1385   :  { %v2392_v39 = vpop.permute.xlu0 %2391 }
0x1386   :  { %11179 = vpow2.f32 %v2682_v3  ;;  %v2394_v49 = vsel %vm36_vm0, %v12006_v33, %v2392_v39 }
0x1387   :  { %10250 = vmatmul.mubr.msk.f32.vlgmr.msra.gmra.mrb[14].mxu0 %vm985_vm13, %v2394_v49 }
0x1388   :  { %10273 = vmatpush3.msk.msra.mxu0 %vm355_vm11, %v12113_v34  ;;  %10274 = vmatprep.mubr.msk.f32.mxu0 %vm11356_vm12, %v11353_v1 }
0x1389   :  { %v2473_v20 = vpop.permute.xlu0 %2472  ;;  %10282 = vmatprep.subr.mxu0 %v11353_v1 }
0x138a   :  { %2475 = vst.msk [vmem:[#allocation3] sm:$0xff] %vm36_vm0, %v2473_v20 }
0x1390   :  { %v11180_v36 = vpop.eup %11179 }
0x1391   :  { %v2684_v33 = vsel %vm291_vm10, %v11180_v36, 0.0  ;;  %v3427_v21 = vld [vmem:[#allocation3] sm:$0xff] }
0x1392   :  { %2685 = vadd.xlane.f32.xlu1 %v2684_v33  ;;  %3429 = vrot.lane.b32.xlu0 %v3427_v21, %s11357_s30 }
0x13a3   :  { %3340 = vrot.lane.b32.xlu1 %v3315_v51, %s11357_s30 }
0x141f   :  { %v2686_v52 = vpop.xlane.xlu1 %2685 }
0x1420   :  { %11181 = vrcp.f32 %v2686_v52 }
0x142a   :  { %v11182_v55 = vpop.eup %11181 }
0x142b   :  { %v2688_v27 = vmul.f32 %v11182_v55, %v11180_v36 }
0x142d   :  { %v2690_v62 = vcombine.high %v2688_v27, %v2688_v27  ;;  %v2697_v40 = vrot.slane %v2688_v27, %v11425_v7 }
0x142f   :  { %v2713_v46 = vrot.slane %v2697_v40, %v11425_v7  ;;  %v2704_v37 = vrot.slane %v2690_v62, %v11425_v7  ;;  %v2705_v0 = vcombine.high %v2697_v40, %v2697_v40 }
0x1431   :  { %10255 = vmatmul.mubr.msk.f32.vlgmr.msra.gmra.mrb[28].mxu1 %vm291_vm10, %v2713_v46  ;;  %v2720_v6 = vrot.slane %v2704_v37, %v11425_v7  ;;  %v2727_v42 = vrot.slane %v2705_v0, %v11425_v7  ;;  %v2735_v28 = vcombine.high %v2713_v46, %v2713_v46  ;;  %v2706_v32 = vcombine.high %v2704_v37, %v2704_v37 }
0x1432   :  { %10258 = vmatpush3.msk.msra.mxu1 %vm355_vm11, %v12132_v14  ;;  %10259 = vmatprep.mubr.msk.f32.mxu1 %vm11356_vm12, %v11353_v1 }
0x1433   :  { %10275 = vmatmul.mubr.msk.f32.vlgmr.msra.gmra.mrb[16].mxu0 %vm291_vm10, %v2720_v6  ;;  %10262 = vmatprep.subr.mxu1 %v11353_v1  ;;  %v2736_v19 = vcombine.high %v2720_v6, %v2720_v6  ;;  %v2737_v15 = vcombine.high %v2727_v42, %v2727_v42  ;;  %v2734_v45 = vrot.slane %v2706_v32, %v11425_v7 }
0x1434   :  { %10283 = vmatpush3.msk.msra.mxu0 %vm355_vm11, %v12144_v18  ;;  %10284 = vmatprep.mubr.msk.f32.mxu0 %vm11356_vm12, %v11353_v1 }
0x1435   :  { %10260 = vmatmul.mubr.msk.f32.vlgmr.msra.gmra.mrb[30].mxu1 %vm291_vm10, %v2727_v42  ;;  %10906 = vmatprep.subr.bf16.mxu0 %v11358_v13  ;;  %v2738_v38 = vcombine.high %v2734_v45, %v2734_v45 }
0x1436   :  { %10263 = vmatpush3.msk.msra.mxu1 %vm355_vm11, %v12155_v23  ;;  %10264 = vmatprep.mubr.msk.f32.mxu1 %vm11356_vm12, %v11353_v1 }
0x1437   :  { %10285 = vmatmul.mubr.msk.f32.vlgmr.msra.gmra.mrb[18].mxu0 %vm291_vm10, %v2736_v19  ;;  %10267 = vmatprep.subr.mxu1 %v11353_v1 }
0x1438   :  { %10908 = vmatpush3.bf16.msra.mxu0 %v11637_v12  ;;  %10308 = vmatprep.mubr.msk.f32.mxu0 %vm11356_vm12, %v11353_v1 }
0x1439   :  { %10265 = vmatmul.mubr.msk.f32.vlgmr.msra.gmra.mrb[32].mxu1 %vm291_vm10, %v2735_v28  ;;  %10909 = vmatprep.subr.bf16.mxu0 %v11358_v13 }
0x143a   :  { %10268 = vmatpush3.msk.msra.mxu1 %vm355_vm11, %v12171_v30  ;;  %10269 = vmatprep.mubr.msk.f32.mxu1 %vm11356_vm12, %v11353_v1 }
0x143b   :  { %10277 = vmatprep.subr.mxu1 %v11353_v1 }
0x143c   :  { %10911 = vmatpush3.bf16.msra.mxu0 %v11649_v17 }
0x143d   :  { %10270 = vmatmul.mubr.msk.f32.vlgmr.msra.gmra.mrb[34].mxu1 %vm291_vm10, %v2737_v15  ;;  %10912 = vmatprep.subr.bf16.mxu0 %v11358_v13 }
0x143e   :  { %10278 = vmatpush3.msk.msra.mxu1 %vm355_vm11, %v12184_v11  ;;  %10279 = vmatprep.mubr.msk.f32.mxu1 %vm11356_vm12, %v11353_v1 }
0x143f   :  { %10287 = vmatprep.subr.mxu1 %v11353_v1 }
0x1440   :  { %10914 = vmatpush3.bf16.msra.mxu0 %v11659_v22 }
0x1441   :  { %10280 = vmatmul.mubr.msk.f32.vlgmr.msra.gmra.mrb[36].mxu1 %vm291_vm10, %v2734_v45  ;;  %10915 = vmatprep.subr.bf16.mxu0 %v11358_v13 }
0x1442   :  { %10288 = vmatpush3.msk.msra.mxu1 %vm355_vm11, %v12198_v43  ;;  %10289 = vmatprep.mubr.msk.f32.mxu1 %vm11356_vm12, %v11353_v1 }
0x1443   :  { %10918 = vmatprep.subr.bf16.mxu1 %v11358_v13 }
0x1444   :  { %10917 = vmatpush3.bf16.msra.mxu0 %v11669_v26 }
0x1445   :  { %10290 = vmatmul.mubr.msk.f32.vlgmr.msra.gmra.mrb[38].mxu1 %vm291_vm10, %v2738_v38  ;;  %10930 = vmatprep.subr.bf16.mxu0 %v11358_v13 }
0x1446   :  { %10920 = vmatpush3.bf16.msra.mxu1 %v11705_v47  ;;  %10327 = vmatprep.mubr.msk.f32.mxu1 %vm11356_vm12, %v11353_v1 }
0x1447   :  { %10921 = vmatprep.subr.bf16.mxu1 %v11358_v13 }
0x144a   :  { %10923 = vmatpush3.bf16.msra.mxu1 %v11711_v50 }
0x144b   :  { %10924 = vmatprep.subr.bf16.mxu1 %v11358_v13 }
0x144e   :  { %10926 = vmatpush3.bf16.msra.mxu1 %v11721_v53 }
0x144f   :  { %10927 = vmatprep.subr.bf16.mxu1 %v11358_v13 }
0x1452   :  { %10929 = vmatpush3.bf16.msra.mxu1 %v11732_v61 }
0x1453   :  { %10349 = vmatprep.subr.mxu1 %v11353_v1 }
0x145a   :  { %v2464_v54 = vpop.f32.mrb[14].mxu0 }
0x145b   :  { %v2465_v58 = vadd.f32 %v11944_v5, %v2464_v54  ;;  %v10251_v60 = vpop.f32.mrb[15].mxu0 }
0x145d   :  { %9575 = vst.msk [vmem:[%s13468_s9 + $0x8] sm:$0xff] %vm1294_vm14, %v2465_v58 }
0x1504   :  { %v2807_v63 = vpop.f32.mrb[28].mxu1 }
0x1505   :  { %v10256_v3 = vpop.f32.mrb[29].mxu1 }
0x1506   :  { %v3095_v39 = vpop.f32.mrb[16].mxu0 }
0x1507   :  { %v10276_v49 = vpop.f32.mrb[17].mxu0  ;;  %v3330_v0 = vrot.slane %v3095_v39, 4 }
0x1508   :  { %v2879_v20 = vpop.f32.mrb[30].mxu1  ;;  %v9592_v49 = vld [vmem:[%s13463_s0 + $0x10] sm:$0xff] }
0x1509   :  { %v3324_v36 = vrot.slane %v2879_v20, 7  ;;  %v10261_v33 = vpop.f32.mrb[31].mxu1 }
0x150a   :  { %v3239_v21 = vpop.f32.mrb[18].mxu0 }
0x150b   :  { %v3325_v51 = vsel %vm275_vm2, %v3324_v36, %v2807_v63  ;;  %v10286_v52 = vpop.f32.mrb[19].mxu0  ;;  %v3334_v32 = vrot.slane %v3239_v21, 2  ;;  %v3341_v63 = vpop.permute.xlu1 %3340 }
0x150c   :  { %v2951_v55 = vpop.f32.mrb[32].mxu1 }
0x150d   :  { %v3326_v27 = vrot.slane %v2951_v55, 6  ;;  %v10266_v5 = vpop.f32.mrb[33].mxu1 }
0x150f   :  { %v3327_v62 = vsel %vm277_vm3, %v3326_v27, %v3325_v51 }
0x1510   :  { %v3023_v40 = vpop.f32.mrb[34].mxu1 }
0x1511   :  { %v3328_v46 = vrot.slane %v3023_v40, 5  ;;  %v10271_v37 = vpop.f32.mrb[35].mxu1  ;;  %v3430_v40 = vpop.permute.xlu0 %3429 }
0x1513   :  { %v3329_v6 = vsel %vm279_vm4, %v3328_v46, %v3327_v62 }
0x1514   :  { %v3167_v42 = vpop.f32.mrb[36].mxu1  ;;  %v3331_v19 = vsel %vm281_vm5, %v3330_v0, %v3329_v6 }
0x1515   :  { %v3332_v28 = vrot.slane %v3167_v42, 3  ;;  %v10281_v15 = vpop.f32.mrb[37].mxu1 }
0x1517   :  { %v3333_v45 = vsel %vm283_vm6, %v3332_v28, %v3331_v19 }
0x1518   :  { %v3311_v38 = vpop.f32.mrb[38].mxu1  ;;  %v3335_v54 = vsel %vm285_vm7, %v3334_v32, %v3333_v45  ;;  %v12265_v45 = vld [vmem:[%s13461_s2] sm:$0x3] }
0x1519   :  { %v3336_v58 = vrot.slane %v3311_v38, 1  ;;  %v10291_v60 = vpop.f32.mrb[39].mxu1 }
0x151b   :  { %v12230_v3 = vsel %vm287_vm8, %v3336_v58, %v3335_v54  ;;  %v12277_v54 = vld [vmem:[%s13465_s6] ss:$0 sm:$0xff] }
0x151c   :  { %v3343_v39 = vsel %vm36_vm0, %v12230_v3, %v3341_v63 }
0x151d   :  { %10309 = vmatmul.mubr.msk.f32.vlgmr.msra.gmra.mrb[20].mxu0 %vm985_vm13, %v3343_v39 }
0x151e   :  { %10932 = vmatpush3.bf16.msra.mxu0 %v11833_v2  ;;  %10346 = vmatprep.mubr.msk.f32.mxu0 %vm11356_vm12, %v11353_v1 }
0x151f   :  { %10933 = vmatprep.subr.bf16.mxu0 %v11358_v13 }
0x1522   :  { %10935 = vmatpush3.bf16.msra.mxu0 %v11839_v44 }
0x1523   :  { %10936 = vmatprep.subr.bf16.mxu0 %v11358_v13 }
0x1526   :  { %10938 = vmatpush3.bf16.msra.mxu0 %v11850_v9 }
0x1527   :  { %10939 = vmatprep.subr.bf16.mxu0 %v11358_v13 }
0x152a   :  { %10941 = vmatpush3.bf16.msra.mxu0 %v11863_v24 }
0x152b   :  { %10369 = vmatprep.subr.mxu0 %v11353_v1 }
0x15f0   :  { %v3415_v20 = vpop.f32.mrb[20].mxu0 }
0x15f1   :  { %v3419_v36 = vadd.f32 %v9592_v49, %v3415_v20  ;;  %v10310_v33 = vpop.f32.mrb[21].mxu0 }
0x15f3   :  { %11183 = vtanh.f32 %v3419_v36  ;;  %v9594_v51 = vmul.f32 -1.442695, %v3419_v36 }
0x15f5   :  { %11185 = vpow2.f32 %v9594_v51 }
0x15fd   :  { %v11184_v21 = vpop.eup %11183 }
0x15fe   :  { %3434 = vrot.lane.b32.xlu1 %v11184_v21, %s11359_s18 }
0x15ff   :  { %v11186_v52 = vpop.eup %11185 }
0x1600   :  { %v3423_v55 = vadd.f32 1.0, %v11186_v52 }
0x1602   :  { %11187 = vrcp.f32 %v3423_v55 }
0x160c   :  { %v11188_v27 = vpop.eup %11187 }
0x160d   :  { %v3432_v46 = vmul.f32 %v11188_v27, %v3430_v40 }
0x1670   :  { %v3435_v5 = vpop.permute.xlu1 %3434 }
0x1671   :  { %v3437_v62 = vmul.f32 %v11188_v27, %v3435_v5 }
0x1673   :  { %3439 = vrot.lane.b32.xlu1 %v3437_v62, %s11357_s30 }
0x16e5   :  { %v3440_v37 = vpop.permute.xlu1 %3439 }
0x16e6   :  { %v12250_v0 = vadd.f32 %v3440_v37, %v3432_v46 }
0x16e8   :  { %11189 = vtanh.f32 %v12250_v0 }
0x16f2   :  { %v11190_v6 = vpop.eup %11189 }
0x16f3   :  { %3445 = vrot.lane.b32.xlu0 %v11190_v6, %s11359_s18 }
0x16f7   :  { %3455 = vrot.lane.b32.xlu0 %v12010_v35, %s11357_s30 }
0x1765   :  { %v3446_v42 = vpop.permute.xlu0 %3445 }
0x1766   :  { %v3448_v19 = vmul.f32 %v11188_v27, %v3446_v42 }
0x1768   :  { %3451 = vrot.lane.b32.xlu1 %v3448_v19, %s11357_s30 }
0x1769   :  { %v3456_v28 = vpop.permute.xlu0 %3455 }
0x176c   :  { %2478 = vrot.lane.b32.xlu1 %v12001_v31, %s11360_s15 }
0x17da   :  { %v3452_v15 = vpop.permute.xlu1 %3451 }
0x17db   :  { %v3458_v32 = vsel %vm36_vm0, %v3452_v15, %v3456_v28  ;;  %3644 = vst.msk [vmem:[#allocation2] sm:$0xff] %vm36_vm0, %v3452_v15 }
0x17dc   :  { %10328 = vmatmul.mubr.msk.f32.vlgmr.msra.gmra.mrb[40].mxu1 %vm985_vm13, %v3458_v32 }
0x17dd   :  { %10350 = vmatpush3.msk.msra.mxu1 %vm355_vm11, %v12265_v45  ;;  %10351 = vmatprep.mubr.msk.f32.mxu1 %vm11356_vm12, %v11353_v1 }
0x17de   :  { %v2479_v31 = vpop.permute.xlu1 %2478  ;;  %10354 = vmatprep.subr.mxu1 %v11353_v1 }
0x17df   :  { %2481 = vst.msk [vmem:[#allocation5] sm:$0xff] %vm36_vm0, %v2479_v31 }
0x17e6   :  { %v3539_v35 = vld [vmem:[#allocation5] sm:$0xff] }
0x17e7   :  { %3541 = vrot.lane.b32.xlu1 %v3539_v35, %s11357_s30 }
0x1859   :  { %v3542_v51 = vpop.permute.xlu1 %3541 }
0x18af   :  { %v3528_v38 = vpop.f32.mrb[40].mxu1 }
0x18b0   :  { %v3529_v58 = vadd.f32 %v12277_v54, %v3528_v38  ;;  %v10329_v60 = vpop.f32.mrb[41].mxu1 }
0x18b2   :  { %11191 = vtanh.f32 %v3529_v58  ;;  %v9596_v39 = vmul.f32 -1.442695, %v3529_v58 }
0x18b4   :  { %11193 = vpow2.f32 %v9596_v39 }
0x18bc   :  { %v11192_v63 = vpop.eup %11191 }
0x18bd   :  { %3546 = vrot.lane.b32.xlu0 %v11192_v63, %s11359_s18 }
0x18be   :  { %v11194_v49 = vpop.eup %11193 }
0x18bf   :  { %v3535_v20 = vadd.f32 1.0, %v11194_v49 }
0x18c1   :  { %11195 = vrcp.f32 %v3535_v20 }
0x18cb   :  { %v11196_v36 = vpop.eup %11195 }
0x18cc   :  { %v3544_v52 = vmul.f32 %v11196_v36, %v3542_v51 }
0x192f   :  { %v3547_v33 = vpop.permute.xlu0 %3546 }
0x1930   :  { %v3549_v21 = vmul.f32 %v11196_v36, %v3547_v33 }
0x1932   :  { %3551 = vrot.lane.b32.xlu0 %v3549_v21, %s11357_s30 }
0x19a4   :  { %v3552_v55 = vpop.permute.xlu0 %3551 }
0x19a5   :  { %v12282_v27 = vadd.f32 %v3552_v55, %v3544_v52 }
0x19a7   :  { %11197 = vtanh.f32 %v12282_v27 }
0x19b1   :  { %v11198_v5 = vpop.eup %11197 }
0x19b2   :  { %3557 = vrot.lane.b32.xlu1 %v11198_v5, %s11359_s18 }
0x1a24   :  { %v3558_v62 = vpop.permute.xlu1 %3557 }
0x1a25   :  { %v3560_v40 = vmul.f32 %v11196_v36, %v3558_v62 }
0x1a27   :  { %3562 = vrot.lane.b32.xlu0 %v3560_v40, %s11357_s30 }
0x1a99   :  { %v12287_v46 = vpop.permute.xlu0 %3562 }
0x1a9a   :  { %3650 = vst.msk [vmem:[#allocation4] sm:$0xff] %vm36_vm0, %v12287_v46 }
0x1aa1   :  { %v12291_v37 = vld [vmem:[#allocation4] sm:$0xff] }
0x1aa2   :  { %v3665_v6 = vrot.slane %v12291_v37, %v11425_v7  ;;  %v3658_v42 = vcombine.high %v12291_v37, %v12291_v37 }
0x1aa4   :  { %v3681_v19 = vrot.slane %v3665_v6, %v11425_v7  ;;  %v3673_v28 = vcombine.high %v3665_v6, %v3665_v6  ;;  %v3672_v15 = vrot.slane %v3658_v42, %v11425_v7 }
0x1aa6   :  { %v3710_v32 = vrot.slane %v3681_v19, %v11432_v10  ;;  %v3695_v31 = vrot.slane %v3673_v28, %v11425_v7  ;;  %v3703_v35 = vcombine.high %v3681_v19, %v3681_v19  ;;  %v3674_v38 = vcombine.high %v3672_v15, %v3672_v15 }
0x1aa7   :  { %v3688_v58 = vrot.slane %v3672_v15, %v11425_v7 }
0x1aa8   :  { %v3712_v60 = vmul.f32 %v12024_v41, %v3710_v32  ;;  %v3719_v63 = vrot.slane %v3695_v31, %v11432_v10  ;;  %v3705_v39 = vcombine.high %v3695_v31, %v3695_v31  ;;  %v3728_v49 = vrot.slane %v3703_v35, %v11432_v10 }
0x1aa9   :  { %v3702_v20 = vrot.slane %v3674_v38, %v11425_v7  ;;  %v3746_v52 = vrot.slane %v3688_v58, %v11432_v10  ;;  %v3704_v40 = vcombine.high %v3688_v58, %v3688_v58 }
0x1aaa   :  { %v3713_v36 = vsel %vm142_vm1, %v3712_v60, 0.0  ;;  %v3721_v33 = vmul.f32 %v12034_v59, %v3719_v63  ;;  %v3737_v21 = vrot.slane %v3705_v39, %v11432_v10  ;;  %v3730_v62 = vmul.f32 %v12040_v48, %v3728_v49 }
0x1aab   :  { %3714 = vadd.xlane.f32.xlu1 %v3713_v36  ;;  %v3755_v51 = vrot.slane %v3702_v20, %v11432_v10  ;;  %v3706_v55 = vcombine.high %v3702_v20, %v3702_v20  ;;  %v3748_v28 = vmul.f32 %v12049_v4, %v3746_v52  ;;  %v3764_v15 = vrot.slane %v3704_v40, %v11432_v10 }
0x1aac   :  { %v3722_v41 = vsel %vm142_vm1, %v3721_v33, 0.0  ;;  %v3739_v5 = vmul.f32 %v12057_v16, %v3737_v21  ;;  %v3731_v19 = vsel %vm142_vm1, %v3730_v62, 0.0 }
0x1aad   :  { %3723 = vadd.xlane.f32.xlu0 %v3722_v41  ;;  %v3757_v59 = vmul.f32 %v12072_v8, %v3755_v51  ;;  %v3773_v42 = vrot.slane %v3706_v55, %v11432_v10  ;;  %v3749_v32 = vsel %vm142_vm1, %v3748_v28, 0.0  ;;  %v3766_v31 = vmul.f32 %v12065_v29, %v3764_v15 }
0x1aae   :  { %v3740_v6 = vsel %vm142_vm1, %v3739_v5, 0.0 }
0x1aaf   :  { %3741 = vadd.xlane.f32.xlu1 %v3740_v6  ;;  %v3758_v16 = vsel %vm142_vm1, %v3757_v59, 0.0  ;;  %v3775_v48 = vmul.f32 %v12081_v57, %v3773_v42  ;;  %v3767_v35 = vsel %vm142_vm1, %v3766_v31, 0.0 }
0x1ab1   :  { %3732 = vadd.xlane.f32.xlu0 %v3731_v19  ;;  %v3776_v8 = vsel %vm142_vm1, %v3775_v48, 0.0 }
0x1ab3   :  { %3759 = vadd.xlane.f32.xlu1 %v3758_v16 }
0x1ab5   :  { %3750 = vadd.xlane.f32.xlu0 %v3749_v32 }
0x1ab7   :  { %3777 = vadd.xlane.f32.xlu1 %v3776_v8 }
0x1ab9   :  { %3768 = vadd.xlane.f32.xlu0 %v3767_v35 }
0x1b38   :  { %v3715_v4 = vpop.xlane.xlu1 %3714 }
0x1b39   :  { %3788 = vperm.xlu0 %11130, %v3715_v4  }
0x1b3a   :  { %v3724_v38 = vpop.xlane.xlu0 %3723 }
0x1b3b   :  { %3791 = vperm.xlu1 %11131, %v3724_v38   ;;  %v4489_v38 = vld [vmem:[#allocation2] sm:$0xff] }
0x1b3c   :  { %v3742_v58 = vpop.xlane.xlu1 %3741 }
0x1b3d   :  { %3797 = vperm.xlu0 %11130, %v3742_v58  }
0x1b3e   :  { %v3733_v60 = vpop.xlane.xlu0 %3732 }
0x1b3f   :  { %3794 = vperm.xlu1 %11131, %v3733_v60  }
0x1b40   :  { %v3760_v57 = vpop.xlane.xlu1 %3759 }
0x1b41   :  { %3803 = vperm.xlu0 %11130, %v3760_v57  }
0x1b42   :  { %v3751_v63 = vpop.xlane.xlu0 %3750 }
0x1b43   :  { %3800 = vperm.xlu1 %11131, %v3751_v63  }
0x1b44   :  { %v3778_v29 = vpop.xlane.xlu1 %3777 }
0x1b45   :  { %3809 = vperm.xlu0 %11130, %v3778_v29  }
0x1b46   :  { %v3769_v39 = vpop.xlane.xlu0 %3768 }
0x1b47   :  { %3806 = vperm.xlu1 %11131, %v3769_v39  }
0x1bb8   :  { %v3789_v49 = vpop.permute.xlu0 %3788 }
0x1bb9   :  { %v3814_v21 = vrot.slane %v3789_v49, %v11507_v56 }
0x1bba   :  { %v3792_v20 = vpop.permute.xlu1 %3791 }
0x1bbb   :  { %v3818_v36 = vrot.slane %v3792_v20, %v11507_v56 }
0x1bbc   :  { %v3798_v33 = vpop.permute.xlu0 %3797 }
0x1bbd   :  { %v3843_v55 = vsel %vm275_vm2, %v3818_v36, %v3814_v21  ;;  %v3826_v62 = vrot.slane %v3798_v33, %v11507_v56 }
0x1bbe   :  { %v3795_v51 = vpop.permute.xlu1 %3794 }
0x1bbf   :  { %v3822_v52 = vrot.slane %v3795_v51, %v11507_v56 }
0x1bc0   :  { %v3804_v41 = vpop.permute.xlu0 %3803 }
0x1bc1   :  { %v3844_v5 = vsel %vm277_vm3, %v3822_v52, %v3843_v55  ;;  %v3834_v28 = vrot.slane %v3804_v41, %v11507_v56 }
0x1bc2   :  { %v3801_v40 = vpop.permute.xlu1 %3800  ;;  %v3845_v59 = vsel %vm279_vm4, %v3826_v62, %v3844_v5 }
0x1bc3   :  { %v3830_v6 = vrot.slane %v3801_v40, %v11507_v56  ;;  %v12429_v40 = vld [vmem:[%s13467_s8] ss:$0 sm:$0xff] }
0x1bc4   :  { %v3810_v19 = vpop.permute.xlu0 %3809 }
0x1bc5   :  { %v3846_v42 = vsel %vm281_vm5, %v3830_v6, %v3845_v59  ;;  %v3842_v48 = vrot.slane %v3810_v19, %v11507_v56 }
0x1bc6   :  { %v3807_v15 = vpop.permute.xlu1 %3806  ;;  %v3847_v32 = vsel %vm283_vm6, %v3834_v28, %v3846_v42 }
0x1bc7   :  { %v3838_v16 = vrot.slane %v3807_v15, %v11507_v56 }
0x1bc9   :  { %v3848_v31 = vsel %vm285_vm7, %v3838_v16, %v3847_v32 }
0x1bca   :  { %v3849_v8 = vsel %vm287_vm8, %v3842_v48, %v3848_v31 }
0x1bcb   :  { %v3851_v35 = vsel %vm58_vm9, %v3849_v8, -1e+09 }
0x1bcc   :  { %v3852_v4 = vsel %vm291_vm10, %v3851_v35, -inf }
0x1bcd   :  { %3853 = vmax.xlane.f32.xlu1 %v3852_v4 }
0x1bde   :  { %4514 = vrot.lane.b32.xlu1 %v4489_v38, %s11357_s30 }
0x1be2   :  { %3646 = vrot.lane.b32.xlu1 %v12250_v0, %s11360_s15 }
0x1c5a   :  { %v3854_v58 = vpop.xlane.xlu1 %3853 }
0x1c5b   :  { %v3855_v60 = vsub.f32 %v3851_v35, %v3854_v58 }
0x1c5d   :  { %v3856_v57 = vmul.f32 1.442695, %v3855_v60 }
0x1c5e   :  { %v12347_v63 = vpop.permute.xlu1 %4514 }
0x1c5f   :  { %11199 = vpow2.f32 %v3856_v57 }
0x1c62   :  { %v3647_v29 = vpop.permute.xlu1 %3646 }
0x1c63   :  { %3649 = vst.msk [vmem:[#allocation3] sm:$0xff] %vm36_vm0, %v3647_v29 }
0x1c69   :  { %v11200_v39 = vpop.eup %11199 }
0x1c6a   :  { %v3858_v49 = vsel %vm291_vm10, %v11200_v39, 0.0  ;;  %v4601_v20 = vld [vmem:[#allocation3] sm:$0xff] }
0x1c6b   :  { %3859 = vadd.xlane.f32.xlu0 %v3858_v49  ;;  %4603 = vrot.lane.b32.xlu1 %v4601_v20, %s11357_s30 }
0x1c81   :  { %3565 = vrot.lane.b32.xlu0 %v12230_v3, %s11357_s30 }
0x1cf8   :  { %v3860_v0 = vpop.xlane.xlu0 %3859 }
0x1cf9   :  { %11201 = vrcp.f32 %v3860_v0 }
0x1cfc   :  { %v3566_v36 = vpop.permute.xlu0 %3565 }
0x1cfd   :  { %v3568_v33 = vsel %vm36_vm0, %v12287_v46, %v3566_v36 }
0x1cfe   :  { %10347 = vmatmul.mubr.msk.f32.vlgmr.msra.gmra.mrb[22].mxu0 %vm985_vm13, %v3568_v33 }
0x1cff   :  { %10370 = vmatpush3.msk.msra.mxu0 %vm355_vm11, %v12113_v34  ;;  %10371 = vmatprep.mubr.msk.f32.mxu0 %vm11356_vm12, %v11353_v1 }
0x1d00   :  { %10379 = vmatprep.subr.mxu0 %v11353_v1 }
0x1d03   :  { %v11202_v21 = vpop.eup %11201 }
0x1d04   :  { %v3862_v51 = vmul.f32 %v11202_v21, %v11200_v39 }
0x1d06   :  { %v3864_v52 = vcombine.high %v3862_v51, %v3862_v51  ;;  %v3871_v3 = vrot.slane %v3862_v51, %v11425_v7 }
0x1d08   :  { %v3887_v55 = vrot.slane %v3871_v3, %v11425_v7  ;;  %v3878_v41 = vrot.slane %v3864_v52, %v11425_v7  ;;  %v3879_v46 = vcombine.high %v3871_v3, %v3871_v3 }
0x1d0a   :  { %10352 = vmatmul.mubr.msk.f32.vlgmr.msra.gmra.mrb[42].mxu1 %vm291_vm10, %v3887_v55  ;;  %v3894_v5 = vrot.slane %v3878_v41, %v11425_v7  ;;  %v3901_v34 = vrot.slane %v3879_v46, %v11425_v7 }
0x1d0b   :  { %10355 = vmatpush3.msk.msra.mxu1 %vm355_vm11, %v12132_v14  ;;  %10356 = vmatprep.mubr.msk.f32.mxu1 %vm11356_vm12, %v11353_v1  ;;  %v3909_v14 = vcombine.high %v3887_v55, %v3887_v55 }
0x1d0c   :  { %10372 = vmatmul.mubr.msk.f32.vlgmr.msra.gmra.mrb[24].mxu0 %vm291_vm10, %v3894_v5  ;;  %10359 = vmatprep.subr.mxu1 %v11353_v1  ;;  %v3910_v62 = vcombine.high %v3894_v5, %v3894_v5 }
0x1d0d   :  { %10380 = vmatpush3.msk.msra.mxu0 %vm355_vm11, %v12144_v18  ;;  %10381 = vmatprep.mubr.msk.f32.mxu0 %vm11356_vm12, %v11353_v1  ;;  %v3911_v18 = vcombine.high %v3901_v34, %v3901_v34 }
0x1d0e   :  { %10357 = vmatmul.mubr.msk.f32.vlgmr.msra.gmra.mrb[44].mxu1 %vm291_vm10, %v3901_v34  ;;  %10942 = vmatprep.subr.bf16.mxu0 %v11358_v13 }
0x1d0f   :  { %10360 = vmatpush3.msk.msra.mxu1 %vm355_vm11, %v12155_v23  ;;  %10361 = vmatprep.mubr.msk.f32.mxu1 %vm11356_vm12, %v11353_v1  ;;  %v3880_v23 = vcombine.high %v3878_v41, %v3878_v41 }
0x1d10   :  { %10382 = vmatmul.mubr.msk.f32.vlgmr.msra.gmra.mrb[26].mxu0 %vm291_vm10, %v3910_v62  ;;  %10364 = vmatprep.subr.mxu1 %v11353_v1 }
0x1d11   :  { %10944 = vmatpush3.bf16.msra.mxu0 %v11637_v12  ;;  %10405 = vmatprep.mubr.msk.f32.mxu0 %vm11356_vm12, %v11353_v1 }
0x1d12   :  { %10362 = vmatmul.mubr.msk.f32.vlgmr.msra.gmra.mrb[46].mxu1 %vm291_vm10, %v3909_v14  ;;  %10945 = vmatprep.subr.bf16.mxu0 %v11358_v13 }
0x1d13   :  { %10365 = vmatpush3.msk.msra.mxu1 %vm355_vm11, %v12171_v30  ;;  %10366 = vmatprep.mubr.msk.f32.mxu1 %vm11356_vm12, %v11353_v1  ;;  %v3908_v30 = vrot.slane %v3880_v23, %v11425_v7 }
0x1d14   :  { %10374 = vmatprep.subr.mxu1 %v11353_v1 }
0x1d15   :  { %10947 = vmatpush3.bf16.msra.mxu0 %v11649_v17 }
0x1d16   :  { %10367 = vmatmul.mubr.msk.f32.vlgmr.msra.gmra.mrb[48].mxu1 %vm291_vm10, %v3911_v18  ;;  %10948 = vmatprep.subr.bf16.mxu0 %v11358_v13 }
0x1d17   :  { %10375 = vmatpush3.msk.msra.mxu1 %vm355_vm11, %v12184_v11  ;;  %10376 = vmatprep.mubr.msk.f32.mxu1 %vm11356_vm12, %v11353_v1  ;;  %v3912_v11 = vcombine.high %v3908_v30, %v3908_v30 }
0x1d18   :  { %10384 = vmatprep.subr.mxu1 %v11353_v1 }
0x1d19   :  { %10950 = vmatpush3.bf16.msra.mxu0 %v11659_v22 }
0x1d1a   :  { %10377 = vmatmul.mubr.msk.f32.vlgmr.msra.gmra.mrb[50].mxu1 %vm291_vm10, %v3908_v30  ;;  %10951 = vmatprep.subr.bf16.mxu0 %v11358_v13 }
0x1d1b   :  { %10385 = vmatpush3.msk.msra.mxu1 %vm355_vm11, %v12198_v43  ;;  %10386 = vmatprep.mubr.msk.f32.mxu1 %vm11356_vm12, %v11353_v1 }
0x1d1c   :  { %10954 = vmatprep.subr.bf16.mxu1 %v11358_v13 }
0x1d1d   :  { %10953 = vmatpush3.bf16.msra.mxu0 %v11669_v26 }
0x1d1e   :  { %10387 = vmatmul.mubr.msk.f32.vlgmr.msra.gmra.mrb[52].mxu1 %vm291_vm10, %v3912_v11  ;;  %10966 = vmatprep.subr.bf16.mxu0 %v11358_v13 }
0x1d1f   :  { %10956 = vmatpush3.bf16.msra.mxu1 %v11705_v47  ;;  %10424 = vmatprep.mubr.msk.f32.mxu1 %vm11356_vm12, %v11353_v1 }
0x1d20   :  { %10957 = vmatprep.subr.bf16.mxu1 %v11358_v13 }
0x1d23   :  { %10959 = vmatpush3.bf16.msra.mxu1 %v11711_v50 }
0x1d24   :  { %10960 = vmatprep.subr.bf16.mxu1 %v11358_v13 }
0x1d27   :  { %10962 = vmatpush3.bf16.msra.mxu1 %v11721_v53 }
0x1d28   :  { %10963 = vmatprep.subr.bf16.mxu1 %v11358_v13 }
0x1d2b   :  { %10965 = vmatpush3.bf16.msra.mxu1 %v11732_v61 }
0x1d2c   :  { %10446 = vmatprep.subr.mxu1 %v11353_v1 }
0x1dd1   :  { %v3638_v43 = vpop.f32.mrb[22].mxu0 }
0x1dd2   :  { %v3639_v6 = vadd.f32 %v12429_v40, %v3638_v43  ;;  %v10348_v59 = vpop.f32.mrb[23].mxu0 }
0x1dd4   :  { %9598 = vst.msk [vmem:[%s13468_s9 + $0x10] sm:$0xff] %vm1294_vm14, %v3639_v6 }
0x1ddd   :  { %v3981_v42 = vpop.f32.mrb[42].mxu1 }
0x1dde   :  { %v10353_v19 = vpop.f32.mrb[43].mxu1 }
0x1ddf   :  { %v4269_v28 = vpop.f32.mrb[24].mxu0  ;;  %v4604_v19 = vpop.permute.xlu1 %4603 }
0x1de0   :  { %v10373_v15 = vpop.f32.mrb[25].mxu0  ;;  %v4504_v49 = vrot.slane %v4269_v28, 4 }
0x1de1   :  { %v4053_v16 = vpop.f32.mrb[44].mxu1 }
0x1de2   :  { %v4498_v48 = vrot.slane %v4053_v16, 7  ;;  %v10358_v32 = vpop.f32.mrb[45].mxu1 }
0x1de3   :  { %v4413_v31 = vpop.f32.mrb[26].mxu0 }
0x1de4   :  { %v4499_v8 = vsel %vm275_vm2, %v4498_v48, %v3981_v42  ;;  %v10383_v35 = vpop.f32.mrb[27].mxu0  ;;  %v4508_v51 = vrot.slane %v4413_v31, 2 }
0x1de5   :  { %v4125_v4 = vpop.f32.mrb[46].mxu1 }
0x1de6   :  { %v4500_v38 = vrot.slane %v4125_v4, 6  ;;  %v10363_v58 = vpop.f32.mrb[47].mxu1 }
0x1de8   :  { %v4501_v60 = vsel %vm277_vm3, %v4500_v38, %v4499_v8 }
0x1de9   :  { %v4197_v57 = vpop.f32.mrb[48].mxu1 }
0x1dea   :  { %v4502_v29 = vrot.slane %v4197_v57, 5  ;;  %v10368_v39 = vpop.f32.mrb[49].mxu1 }
0x1dec   :  { %v4503_v20 = vsel %vm279_vm4, %v4502_v29, %v4501_v60 }
0x1ded   :  { %v4341_v0 = vpop.f32.mrb[50].mxu1  ;;  %v4505_v36 = vsel %vm281_vm5, %v4504_v49, %v4503_v20 }
0x1dee   :  { %v4506_v33 = vrot.slane %v4341_v0, 3  ;;  %v10378_v21 = vpop.f32.mrb[51].mxu1 }
0x1df0   :  { %v4507_v52 = vsel %vm283_vm6, %v4506_v33, %v4505_v36 }
0x1df1   :  { %v4485_v3 = vpop.f32.mrb[52].mxu1  ;;  %v4509_v55 = vsel %vm285_vm7, %v4508_v51, %v4507_v52 }
0x1df2   :  { %v4510_v41 = vrot.slane %v4485_v3, 1  ;;  %v10388_v46 = vpop.f32.mrb[53].mxu1 }
0x1df4   :  { %v12443_v5 = vsel %vm287_vm8, %v4510_v41, %v4509_v55 }
0x1df5   :  { %v4517_v34 = vsel %vm36_vm0, %v12443_v5, %v12347_v63  ;;  %v9615_v63 = vld [vmem:[%s13463_s0 + $0x18] sm:$0xff] }
0x1df6   :  { %10406 = vmatmul.mubr.msk.f32.vlgmr.msra.gmra.mrb[28].mxu0 %vm985_vm13, %v4517_v34 }
0x1df7   :  { %10968 = vmatpush3.bf16.msra.mxu0 %v11833_v2  ;;  %10443 = vmatprep.mubr.msk.f32.mxu0 %vm11356_vm12, %v11353_v1 }
0x1df8   :  { %10969 = vmatprep.subr.bf16.mxu0 %v11358_v13 }
0x1dfb   :  { %10971 = vmatpush3.bf16.msra.mxu0 %v11839_v44 }
0x1dfc   :  { %10972 = vmatprep.subr.bf16.mxu0 %v11358_v13 }
0x1dff   :  { %10974 = vmatpush3.bf16.msra.mxu0 %v11850_v9 }
0x1e00   :  { %10975 = vmatprep.subr.bf16.mxu0 %v11358_v13 }
0x1e03   :  { %10977 = vmatpush3.bf16.msra.mxu0 %v11863_v24 }
0x1e04   :  { %10466 = vmatprep.subr.mxu0 %v11353_v1 }
0x1ec9   :  { %v4589_v62 = vpop.f32.mrb[28].mxu0 }
0x1eca   :  { %v4593_v14 = vadd.f32 %v9615_v63, %v4589_v62  ;;  %v10407_v18 = vpop.f32.mrb[29].mxu0 }
0x1ecc   :  { %11203 = vtanh.f32 %v4593_v14  ;;  %v9617_v30 = vmul.f32 -1.442695, %v4593_v14 }
0x1ece   :  { %11205 = vpow2.f32 %v9617_v30 }
0x1ed6   :  { %v11204_v23 = vpop.eup %11203 }
0x1ed7   :  { %4608 = vrot.lane.b32.xlu0 %v11204_v23, %s11359_s18 }
0x1ed8   :  { %v11206_v11 = vpop.eup %11205 }
0x1ed9   :  { %v4597_v43 = vadd.f32 1.0, %v11206_v11 }
0x1edb   :  { %11207 = vrcp.f32 %v4597_v43 }
0x1ee5   :  { %v11208_v6 = vpop.eup %11207 }
0x1ee6   :  { %v4606_v28 = vmul.f32 %v11208_v6, %v4604_v19 }
0x1f49   :  { %v4609_v59 = vpop.permute.xlu0 %4608 }
0x1f4a   :  { %v4611_v42 = vmul.f32 %v11208_v6, %v4609_v59 }
0x1f4c   :  { %4613 = vrot.lane.b32.xlu0 %v4611_v42, %s11357_s30 }
0x1fbe   :  { %v4614_v15 = vpop.permute.xlu0 %4613 }
0x1fbf   :  { %v12464_v16 = vadd.f32 %v4614_v15, %v4606_v28 }
0x1fc1   :  { %11209 = vtanh.f32 %v12464_v16 }
0x1fcb   :  { %v11210_v48 = vpop.eup %11209 }
0x1fcc   :  { %4619 = vrot.lane.b32.xlu1 %v11210_v48, %s11359_s18 }
0x1fd0   :  { %4629 = vrot.lane.b32.xlu1 %v12291_v37, %s11357_s30 }
0x203e   :  { %v4620_v32 = vpop.permute.xlu1 %4619 }
0x203f   :  { %v4622_v31 = vmul.f32 %v11208_v6, %v4620_v32  ;;  %v12509_v6 = vld [vmem:[%s13459_s1] sm:$0x3] }
0x2041   :  { %4625 = vrot.lane.b32.xlu0 %v4622_v31, %s11357_s30  ;;  %v12519_v31 = vld [vmem:[%s13459_s1 + $0x2] sm:$0x3] }
0x2042   :  { %v4630_v8 = vpop.permute.xlu1 %4629 }
0x2045   :  { %3652 = vrot.lane.b32.xlu0 %v12282_v27, %s11360_s15 }
0x20b3   :  { %v4626_v35 = vpop.permute.xlu0 %4625 }
0x20b4   :  { %v4632_v4 = vsel %vm36_vm0, %v4626_v35, %v4630_v8  ;;  %4818 = vst.msk [vmem:[#allocation2] sm:$0xff] %vm36_vm0, %v4626_v35  ;;  %v12525_v35 = vld [vmem:[%s13459_s1 + $0x4] sm:$0x3] }
0x20b5   :  { %10425 = vmatmul.mubr.msk.f32.vlgmr.msra.gmra.mrb[54].mxu1 %vm985_vm13, %v4632_v4 }
0x20b6   :  { %10447 = vmatpush3.msk.msra.mxu1 %vm355_vm11, %v12265_v45  ;;  %10448 = vmatprep.mubr.msk.f32.mxu1 %vm11356_vm12, %v11353_v1 }
0x20b7   :  { %v3653_v37 = vpop.permute.xlu0 %3652  ;;  %10451 = vmatprep.subr.mxu1 %v11353_v1 }
0x20b8   :  { %3655 = vst.msk [vmem:[#allocation5] sm:$0xff] %vm36_vm0, %v3653_v37 }
0x20bf   :  { %v4713_v27 = vld [vmem:[#allocation5] sm:$0xff] }
0x20c0   :  { %4715 = vrot.lane.b32.xlu0 %v4713_v27, %s11357_s30 }
0x2132   :  { %v4716_v36 = vpop.permute.xlu0 %4715 }
0x2188   :  { %v4702_v38 = vpop.f32.mrb[54].mxu1 }
0x2189   :  { %v4703_v58 = vadd.f32 %v12277_v54, %v4702_v38  ;;  %v10426_v60 = vpop.f32.mrb[55].mxu1 }
0x218b   :  { %11211 = vtanh.f32 %v4703_v58  ;;  %v9619_v45 = vmul.f32 -1.442695, %v4703_v58  ;;  %v12534_v58 = vld [vmem:[%s13459_s1 + $0x8] sm:$0x3] }
0x218d   :  { %11213 = vpow2.f32 %v9619_v45 }
0x2195   :  { %v11212_v57 = vpop.eup %11211 }
0x2196   :  { %4720 = vrot.lane.b32.xlu1 %v11212_v57, %s11359_s18 }
0x2197   :  { %v11214_v29 = vpop.eup %11213 }
0x2198   :  { %v4709_v39 = vadd.f32 1.0, %v11214_v29  ;;  %v12542_v29 = vld [vmem:[%s13459_s1 + $0x6] sm:$0x3] }
0x219a   :  { %11215 = vrcp.f32 %v4709_v39 }
0x21a4   :  { %v11216_v49 = vpop.eup %11215 }
0x21a5   :  { %v4718_v33 = vmul.f32 %v11216_v49, %v4716_v36  ;;  %v12550_v36 = vld [vmem:[%s13459_s1 + $0xc] sm:$0x3] }
0x2208   :  { %v4721_v20 = vpop.permute.xlu1 %4720 }
0x2209   :  { %v4723_v0 = vmul.f32 %v11216_v49, %v4721_v20 }
0x220b   :  { %4725 = vrot.lane.b32.xlu1 %v4723_v0, %s11357_s30 }
0x227d   :  { %v4726_v21 = vpop.permute.xlu1 %4725 }
0x227e   :  { %v12486_v51 = vadd.f32 %v4726_v21, %v4718_v33 }
0x2280   :  { %11217 = vtanh.f32 %v12486_v51 }
0x228a   :  { %v11218_v54 = vpop.eup %11217 }
0x228b   :  { %4731 = vrot.lane.b32.xlu0 %v11218_v54, %s11359_s18  ;;  %v12557_v54 = vld [vmem:[%s13459_s1 + $0xa] sm:$0x3] }
0x22fd   :  { %v4732_v52 = vpop.permute.xlu0 %4731 }
0x22fe   :  { %v4734_v3 = vmul.f32 %v11216_v49, %v4732_v52 }
0x2300   :  { %4736 = vrot.lane.b32.xlu1 %v4734_v3, %s11357_s30 }
0x2372   :  { %v12491_v55 = vpop.permute.xlu1 %4736 }
0x2373   :  { %4824 = vst.msk [vmem:[#allocation4] sm:$0xff] %vm36_vm0, %v12491_v55 }
0x237a   :  { %v12495_v41 = vld [vmem:[#allocation4] sm:$0xff] }
0x237b   :  { %v4839_v46 = vrot.slane %v12495_v41, %v11425_v7  ;;  %v4832_v34 = vcombine.high %v12495_v41, %v12495_v41 }
0x237d   :  { %v4855_v63 = vrot.slane %v4839_v46, %v11425_v7  ;;  %v4847_v62 = vcombine.high %v4839_v46, %v4839_v46  ;;  %v4846_v14 = vrot.slane %v4832_v34, %v11425_v7 }
0x237f   :  { %v4884_v18 = vrot.slane %v4855_v63, %v11432_v10  ;;  %v4869_v23 = vrot.slane %v4847_v62, %v11425_v7  ;;  %v4877_v30 = vcombine.high %v4855_v63, %v4855_v63  ;;  %v4862_v11 = vrot.slane %v4846_v14, %v11425_v7  ;;  %v12566_v63 = vld [vmem:[%s13459_s1 + $0xe] sm:$0x3] }
0x2380   :  { %v4848_v43 = vcombine.high %v4846_v14, %v4846_v14 }
0x2381   :  { %v4886_v59 = vmul.f32 %v12509_v6, %v4884_v18  ;;  %v4893_v42 = vrot.slane %v4869_v23, %v11432_v10  ;;  %v4902_v19 = vrot.slane %v4877_v30, %v11432_v10  ;;  %v4920_v28 = vrot.slane %v4862_v11, %v11432_v10 }
0x2382   :  { %v4879_v15 = vcombine.high %v4869_v23, %v4869_v23  ;;  %v4878_v48 = vcombine.high %v4862_v11, %v4862_v11  ;;  %v4876_v37 = vrot.slane %v4848_v43, %v11425_v7 }
0x2383   :  { %v4887_v32 = vsel %vm142_vm1, %v4886_v59, 0.0  ;;  %v4895_v8 = vmul.f32 %v12519_v31, %v4893_v42  ;;  %v4904_v4 = vmul.f32 %v12525_v35, %v4902_v19  ;;  %v4922_v60 = vmul.f32 %v12534_v58, %v4920_v28 }
0x2384   :  { %4888 = vadd.xlane.f32.xlu0 %v4887_v32  ;;  %v4911_v27 = vrot.slane %v4879_v15, %v11432_v10  ;;  %v4938_v57 = vrot.slane %v4878_v48, %v11432_v10  ;;  %v4929_v49 = vrot.slane %v4876_v37, %v11432_v10  ;;  %v4880_v20 = vcombine.high %v4876_v37, %v4876_v37 }
0x2385   :  { %v4896_v38 = vsel %vm142_vm1, %v4895_v8, 0.0  ;;  %v4905_v45 = vsel %vm142_vm1, %v4904_v4, 0.0  ;;  %v4923_v0 = vsel %vm142_vm1, %v4922_v60, 0.0 }
0x2386   :  { %4897 = vadd.xlane.f32.xlu1 %v4896_v38  ;;  %v4913_v39 = vmul.f32 %v12542_v29, %v4911_v27  ;;  %v4940_v33 = vmul.f32 %v12550_v36, %v4938_v57  ;;  %v4931_v52 = vmul.f32 %v12557_v54, %v4929_v49  ;;  %v4947_v3 = vrot.slane %v4880_v20, %v11432_v10 }
0x2388   :  { %4906 = vadd.xlane.f32.xlu0 %v4905_v45  ;;  %v4914_v21 = vsel %vm142_vm1, %v4913_v39, 0.0  ;;  %v4941_v46 = vsel %vm142_vm1, %v4940_v33, 0.0  ;;  %v4932_v34 = vsel %vm142_vm1, %v4931_v52, 0.0  ;;  %v4949_v62 = vmul.f32 %v12566_v63, %v4947_v3 }
0x238a   :  { %4924 = vadd.xlane.f32.xlu1 %v4923_v0  ;;  %v4950_v14 = vsel %vm142_vm1, %v4949_v62, 0.0 }
0x238c   :  { %4915 = vadd.xlane.f32.xlu0 %v4914_v21 }
0x238e   :  { %4942 = vadd.xlane.f32.xlu1 %v4941_v46 }
0x2390   :  { %4933 = vadd.xlane.f32.xlu0 %v4932_v34 }
0x2394   :  { %4951 = vadd.xlane.f32.xlu0 %v4950_v14 }
0x2411   :  { %v4889_v18 = vpop.xlane.xlu0 %4888 }
0x2412   :  { %4962 = vperm.xlu1 %11131, %v4889_v18  }
0x2413   :  { %v4898_v23 = vpop.xlane.xlu1 %4897 }
0x2414   :  { %4965 = vperm.xlu0 %11130, %v4898_v23  }
0x2415   :  { %v4907_v30 = vpop.xlane.xlu0 %4906 }
0x2416   :  { %4968 = vperm.xlu1 %11131, %v4907_v30  }
0x2417   :  { %v4925_v11 = vpop.xlane.xlu1 %4924 }
0x2418   :  { %4974 = vperm.xlu0 %11130, %v4925_v11  }
0x2419   :  { %v4916_v43 = vpop.xlane.xlu0 %4915 }
0x241a   :  { %4971 = vperm.xlu1 %11131, %v4916_v43  }
0x241b   :  { %v4943_v59 = vpop.xlane.xlu1 %4942 }
0x241c   :  { %4980 = vperm.xlu0 %11130, %v4943_v59  }
0x241d   :  { %v4934_v42 = vpop.xlane.xlu0 %4933 }
0x241e   :  { %4977 = vperm.xlu1 %11131, %v4934_v42   ;;  %v12598_v42 = vld [vmem:[%s13461_s2 + $0x8] sm:$0x3] }
0x2421   :  { %v4952_v19 = vpop.xlane.xlu0 %4951 }
0x2422   :  { %4983 = vperm.xlu1 %11131, %v4952_v19  }
0x2491   :  { %v4963_v28 = vpop.permute.xlu1 %4962 }
0x2492   :  { %v4988_v8 = vrot.slane %v4963_v28, %v11507_v56  ;;  %v5663_v28 = vld [vmem:[#allocation2] sm:$0xff] }
0x2493   :  { %v4966_v15 = vpop.permute.xlu0 %4965 }
0x2494   :  { %v4992_v48 = vrot.slane %v4966_v15, %v11507_v56 }
0x2495   :  { %v4969_v32 = vpop.permute.xlu1 %4968 }
0x2496   :  { %v4996_v4 = vrot.slane %v4969_v32, %v11507_v56  ;;  %v5017_v37 = vsel %vm275_vm2, %v4992_v48, %v4988_v8 }
0x2497   :  { %v4975_v27 = vpop.permute.xlu0 %4974 }
0x2498   :  { %v5018_v57 = vsel %vm277_vm3, %v4996_v4, %v5017_v37  ;;  %v5004_v39 = vrot.slane %v4975_v27, %v11507_v56 }
0x2499   :  { %v4972_v38 = vpop.permute.xlu1 %4971 }
0x249a   :  { %v5000_v60 = vrot.slane %v4972_v38, %v11507_v56 }
0x249b   :  { %v4981_v20 = vpop.permute.xlu0 %4980 }
0x249c   :  { %v5019_v45 = vsel %vm279_vm4, %v5000_v60, %v5018_v57  ;;  %v5012_v52 = vrot.slane %v4981_v20, %v11507_v56  ;;  %v12617_v57 = vld [vmem:[%s13461_s2 + $0x2] sm:$0x3]  ;;  %v12640_v20 = vld [vmem:[%s13461_s2 + $0x4] sm:$0x3] }
0x249d   :  { %v4978_v49 = vpop.permute.xlu1 %4977  ;;  %v5020_v33 = vsel %vm281_vm5, %v5004_v39, %v5019_v45  ;;  %v12629_v39 = vld [vmem:[%s13461_s2 + $0xc] sm:$0x3] }
0x249e   :  { %v5008_v0 = vrot.slane %v4978_v49, %v11507_v56 }
0x24a0   :  { %v5021_v21 = vsel %vm283_vm6, %v5008_v0, %v5020_v33  ;;  %v12656_v33 = vld [vmem:[%s13461_s2 + $0x6] sm:$0x3] }
0x24a1   :  { %v4984_v3 = vpop.permute.xlu1 %4983  ;;  %v5022_v34 = vsel %vm285_vm7, %v5012_v52, %v5021_v21 }
0x24a2   :  { %v5016_v46 = vrot.slane %v4984_v3, %v11507_v56  ;;  %v12669_v3 = vld [vmem:[%s13461_s2 + $0xa] sm:$0x3] }
0x24a4   :  { %v5023_v62 = vsel %vm287_vm8, %v5016_v46, %v5022_v34  ;;  %v12683_v34 = vld [vmem:[%s13461_s2 + $0xe] sm:$0x3] }
0x24a5   :  { %v5025_v14 = vsel %vm58_vm9, %v5023_v62, -1e+09 }
0x24a6   :  { %v5026_v18 = vsel %vm291_vm10, %v5025_v14, -inf }
0x24a7   :  { %5027 = vmax.xlane.f32.xlu0 %v5026_v18 }
0x24bd   :  { %4739 = vrot.lane.b32.xlu0 %v12443_v5, %s11357_s30 }
0x24c1   :  { %4820 = vrot.lane.b32.xlu0 %v12464_v16, %s11360_s15 }
0x2534   :  { %v5028_v23 = vpop.xlane.xlu0 %5027 }
0x2535   :  { %v5029_v30 = vsub.f32 %v5025_v14, %v5028_v23 }
0x2537   :  { %v5030_v11 = vmul.f32 1.442695, %v5029_v30 }
0x2538   :  { %v4740_v43 = vpop.permute.xlu0 %4739 }
0x2539   :  { %11219 = vpow2.f32 %v5030_v11  ;;  %v4742_v59 = vsel %vm36_vm0, %v12491_v55, %v4740_v43 }
0x253a   :  { %10444 = vmatmul.mubr.msk.f32.vlgmr.msra.gmra.mrb[30].mxu0 %vm985_vm13, %v4742_v59 }
0x253b   :  { %10467 = vmatpush3.msk.msra.mxu0 %vm355_vm11, %v12598_v42  ;;  %10468 = vmatprep.mubr.msk.f32.mxu0 %vm11356_vm12, %v11353_v1 }
0x253c   :  { %v4821_v5 = vpop.permute.xlu0 %4820  ;;  %10476 = vmatprep.subr.mxu0 %v11353_v1 }
0x253d   :  { %4823 = vst.msk [vmem:[#allocation3] sm:$0xff] %vm36_vm0, %v4821_v5 }
0x2543   :  { %v11220_v16 = vpop.eup %11219 }
0x2544   :  { %v5032_v55 = vsel %vm291_vm10, %v11220_v16, 0.0  ;;  %v5775_v19 = vld [vmem:[#allocation3] sm:$0xff] }
0x2545   :  { %5033 = vadd.xlane.f32.xlu1 %v5032_v55  ;;  %5777 = vrot.lane.b32.xlu0 %v5775_v19, %s11357_s30 }
0x2556   :  { %5688 = vrot.lane.b32.xlu1 %v5663_v28, %s11357_s30 }
0x25d2   :  { %v5034_v15 = vpop.xlane.xlu1 %5033 }
0x25d3   :  { %11221 = vrcp.f32 %v5034_v15 }
0x25dd   :  { %v11222_v48 = vpop.eup %11221 }
0x25de   :  { %v5036_v32 = vmul.f32 %v11222_v48, %v11220_v16 }
0x25e0   :  { %v5038_v8 = vcombine.high %v5036_v32, %v5036_v32  ;;  %v5045_v4 = vrot.slane %v5036_v32, %v11425_v7 }
0x25e2   :  { %v5061_v37 = vrot.slane %v5045_v4, %v11425_v7  ;;  %v5052_v27 = vrot.slane %v5038_v8, %v11425_v7  ;;  %v5053_v38 = vcombine.high %v5045_v4, %v5045_v4 }
0x25e4   :  { %10449 = vmatmul.mubr.msk.f32.vlgmr.msra.gmra.mrb[56].mxu1 %vm291_vm10, %v5061_v37  ;;  %v5068_v60 = vrot.slane %v5052_v27, %v11425_v7  ;;  %v5075_v45 = vrot.slane %v5053_v38, %v11425_v7  ;;  %v5083_v0 = vcombine.high %v5061_v37, %v5061_v37  ;;  %v5054_v52 = vcombine.high %v5052_v27, %v5052_v27 }
0x25e5   :  { %10452 = vmatpush3.msk.msra.mxu1 %vm355_vm11, %v12617_v57  ;;  %10453 = vmatprep.mubr.msk.f32.mxu1 %vm11356_vm12, %v11353_v1 }
0x25e6   :  { %10469 = vmatmul.mubr.msk.f32.vlgmr.msra.gmra.mrb[32].mxu0 %vm291_vm10, %v5068_v60  ;;  %10456 = vmatprep.subr.mxu1 %v11353_v1  ;;  %v5084_v49 = vcombine.high %v5068_v60, %v5068_v60  ;;  %v5085_v21 = vcombine.high %v5075_v45, %v5075_v45  ;;  %v5082_v46 = vrot.slane %v5054_v52, %v11425_v7 }
0x25e7   :  { %10477 = vmatpush3.msk.msra.mxu0 %vm355_vm11, %v12629_v39  ;;  %10478 = vmatprep.mubr.msk.f32.mxu0 %vm11356_vm12, %v11353_v1 }
0x25e8   :  { %10454 = vmatmul.mubr.msk.f32.vlgmr.msra.gmra.mrb[58].mxu1 %vm291_vm10, %v5075_v45  ;;  %10978 = vmatprep.subr.bf16.mxu0 %v11358_v13  ;;  %v5086_v62 = vcombine.high %v5082_v46, %v5082_v46 }
0x25e9   :  { %10457 = vmatpush3.msk.msra.mxu1 %vm355_vm11, %v12640_v20  ;;  %10458 = vmatprep.mubr.msk.f32.mxu1 %vm11356_vm12, %v11353_v1 }
0x25ea   :  { %10479 = vmatmul.mubr.msk.f32.vlgmr.msra.gmra.mrb[34].mxu0 %vm291_vm10, %v5084_v49  ;;  %10461 = vmatprep.subr.mxu1 %v11353_v1 }
0x25eb   :  { %10980 = vmatpush3.bf16.msra.mxu0 %v11637_v12  ;;  %10502 = vmatprep.mubr.msk.f32.mxu0 %vm11356_vm12, %v11353_v1 }
0x25ec   :  { %10459 = vmatmul.mubr.msk.f32.vlgmr.msra.gmra.mrb[60].mxu1 %vm291_vm10, %v5083_v0  ;;  %10981 = vmatprep.subr.bf16.mxu0 %v11358_v13 }
0x25ed   :  { %10462 = vmatpush3.msk.msra.mxu1 %vm355_vm11, %v12656_v33  ;;  %10463 = vmatprep.mubr.msk.f32.mxu1 %vm11356_vm12, %v11353_v1 }
0x25ee   :  { %10471 = vmatprep.subr.mxu1 %v11353_v1 }
0x25ef   :  { %10983 = vmatpush3.bf16.msra.mxu0 %v11649_v17 }
0x25f0   :  { %10464 = vmatmul.mubr.msk.f32.vlgmr.msra.gmra.mrb[62].mxu1 %vm291_vm10, %v5085_v21  ;;  %10984 = vmatprep.subr.bf16.mxu0 %v11358_v13 }
0x25f1   :  { %10472 = vmatpush3.msk.msra.mxu1 %vm355_vm11, %v12669_v3  ;;  %10473 = vmatprep.mubr.msk.f32.mxu1 %vm11356_vm12, %v11353_v1 }
0x25f2   :  { %10481 = vmatprep.subr.mxu1 %v11353_v1 }
0x25f3   :  { %10986 = vmatpush3.bf16.msra.mxu0 %v11659_v22 }
0x25f4   :  { %10474 = vmatmul.mubr.msk.f32.vlgmr.msra.gmra.mrb[64].mxu1 %vm291_vm10, %v5082_v46  ;;  %10987 = vmatprep.subr.bf16.mxu0 %v11358_v13 }
0x25f5   :  { %10482 = vmatpush3.msk.msra.mxu1 %vm355_vm11, %v12683_v34  ;;  %10483 = vmatprep.mubr.msk.f32.mxu1 %vm11356_vm12, %v11353_v1 }
0x25f6   :  { %10990 = vmatprep.subr.bf16.mxu1 %v11358_v13 }
0x25f7   :  { %10989 = vmatpush3.bf16.msra.mxu0 %v11669_v26 }
0x25f8   :  { %10484 = vmatmul.mubr.msk.f32.vlgmr.msra.gmra.mrb[66].mxu1 %vm291_vm10, %v5086_v62  ;;  %11002 = vmatprep.subr.bf16.mxu0 %v11358_v13 }
0x25f9   :  { %10992 = vmatpush3.bf16.msra.mxu1 %v11705_v47  ;;  %10521 = vmatprep.mubr.msk.f32.mxu1 %vm11356_vm12, %v11353_v1 }
0x25fa   :  { %10993 = vmatprep.subr.bf16.mxu1 %v11358_v13 }
0x25fd   :  { %10995 = vmatpush3.bf16.msra.mxu1 %v11711_v50 }
0x25fe   :  { %10996 = vmatprep.subr.bf16.mxu1 %v11358_v13 }
0x2601   :  { %10998 = vmatpush3.bf16.msra.mxu1 %v11721_v53 }
0x2602   :  { %10999 = vmatprep.subr.bf16.mxu1 %v11358_v13 }
0x2605   :  { %11001 = vmatpush3.bf16.msra.mxu1 %v11732_v61 }
0x2606   :  { %10543 = vmatprep.subr.mxu1 %v11353_v1 }
0x260d   :  { %v4812_v14 = vpop.f32.mrb[30].mxu0 }
0x260e   :  { %v4813_v18 = vadd.f32 %v12429_v40, %v4812_v14  ;;  %v10445_v23 = vpop.f32.mrb[31].mxu0 }
0x2610   :  { %9621 = vst.msk [vmem:[%s13468_s9 + $0x18] sm:$0xff] %vm1294_vm14, %v4813_v18 }
0x26b7   :  { %v5155_v30 = vpop.f32.mrb[56].mxu1 }
0x26b8   :  { %v10450_v11 = vpop.f32.mrb[57].mxu1 }
0x26b9   :  { %v5443_v43 = vpop.f32.mrb[32].mxu0 }
0x26ba   :  { %v10470_v59 = vpop.f32.mrb[33].mxu0  ;;  %v5678_v38 = vrot.slane %v5443_v43, 4 }
0x26bb   :  { %v5227_v5 = vpop.f32.mrb[58].mxu1  ;;  %v9638_v59 = vld [vmem:[%s13463_s0 + $0x20] sm:$0xff] }
0x26bc   :  { %v5672_v16 = vrot.slane %v5227_v5, 7  ;;  %v10455_v55 = vpop.f32.mrb[59].mxu1 }
0x26bd   :  { %v5587_v19 = vpop.f32.mrb[34].mxu0 }
0x26be   :  { %v5673_v28 = vsel %vm275_vm2, %v5672_v16, %v5155_v30  ;;  %v10480_v15 = vpop.f32.mrb[35].mxu0  ;;  %v5682_v52 = vrot.slane %v5587_v19, 2  ;;  %v5689_v30 = vpop.permute.xlu1 %5688 }
0x26bf   :  { %v5299_v48 = vpop.f32.mrb[60].mxu1 }
0x26c0   :  { %v5674_v32 = vrot.slane %v5299_v48, 6  ;;  %v10460_v40 = vpop.f32.mrb[61].mxu1 }
0x26c2   :  { %v5675_v8 = vsel %vm277_vm3, %v5674_v32, %v5673_v28 }
0x26c3   :  { %v5371_v4 = vpop.f32.mrb[62].mxu1 }
0x26c4   :  { %v5676_v37 = vrot.slane %v5371_v4, 5  ;;  %v10465_v27 = vpop.f32.mrb[63].mxu1  ;;  %v5778_v4 = vpop.permute.xlu0 %5777 }
0x26c6   :  { %v5677_v60 = vsel %vm279_vm4, %v5676_v37, %v5675_v8 }
0x26c7   :  { %v5515_v45 = vpop.f32.mrb[64].mxu1  ;;  %v5679_v49 = vsel %vm281_vm5, %v5678_v38, %v5677_v60 }
0x26c8   :  { %v5680_v0 = vrot.slane %v5515_v45, 3  ;;  %v10475_v21 = vpop.f32.mrb[65].mxu1 }
0x26ca   :  { %v5681_v46 = vsel %vm283_vm6, %v5680_v0, %v5679_v49 }
0x26cb   :  { %v5659_v62 = vpop.f32.mrb[66].mxu1  ;;  %v5683_v14 = vsel %vm285_vm7, %v5682_v52, %v5681_v46  ;;  %v12750_v46 = vld [vmem:[%s13461_s2] sm:$0x3] }
0x26cc   :  { %v5684_v18 = vrot.slane %v5659_v62, 1  ;;  %v10485_v23 = vpop.f32.mrb[67].mxu1 }
0x26ce   :  { %v12715_v11 = vsel %vm287_vm8, %v5684_v18, %v5683_v14  ;;  %v12762_v14 = vld [vmem:[%s13465_s6] ss:$0 sm:$0xff] }
0x26cf   :  { %v5691_v43 = vsel %vm36_vm0, %v12715_v11, %v5689_v30 }
0x26d0   :  { %10503 = vmatmul.mubr.msk.f32.vlgmr.msra.gmra.mrb[36].mxu0 %vm985_vm13, %v5691_v43 }
0x26d1   :  { %11004 = vmatpush3.bf16.msra.mxu0 %v11833_v2  ;;  %10540 = vmatprep.mubr.msk.f32.mxu0 %vm11356_vm12, %v11353_v1 }
0x26d2   :  { %11005 = vmatprep.subr.bf16.mxu0 %v11358_v13 }
0x26d5   :  { %11007 = vmatpush3.bf16.msra.mxu0 %v11839_v44 }
0x26d6   :  { %11008 = vmatprep.subr.bf16.mxu0 %v11358_v13 }
0x26d9   :  { %11010 = vmatpush3.bf16.msra.mxu0 %v11850_v9 }
0x26da   :  { %11011 = vmatprep.subr.bf16.mxu0 %v11358_v13 }
0x26dd   :  { %11013 = vmatpush3.bf16.msra.mxu0 %v11863_v24 }
0x26de   :  { %10563 = vmatprep.subr.mxu0 %v11353_v1 }
0x27a3   :  { %v5763_v5 = vpop.f32.mrb[36].mxu0 }
0x27a4   :  { %v5767_v16 = vadd.f32 %v9638_v59, %v5763_v5  ;;  %v10504_v55 = vpop.f32.mrb[37].mxu0 }
0x27a6   :  { %11223 = vtanh.f32 %v5767_v16  ;;  %v9640_v28 = vmul.f32 -1.442695, %v5767_v16 }
0x27a8   :  { %11225 = vpow2.f32 %v9640_v28 }
0x27b0   :  { %v11224_v19 = vpop.eup %11223 }
0x27b1   :  { %5782 = vrot.lane.b32.xlu1 %v11224_v19, %s11359_s18 }
0x27b2   :  { %v11226_v15 = vpop.eup %11225 }
0x27b3   :  { %v5771_v48 = vadd.f32 1.0, %v11226_v15 }
0x27b5   :  { %11227 = vrcp.f32 %v5771_v48 }
0x27bf   :  { %v11228_v32 = vpop.eup %11227 }
0x27c0   :  { %v5780_v37 = vmul.f32 %v11228_v32, %v5778_v4 }
0x2823   :  { %v5783_v40 = vpop.permute.xlu1 %5782 }
0x2824   :  { %v5785_v8 = vmul.f32 %v11228_v32, %v5783_v40 }
0x2826   :  { %5787 = vrot.lane.b32.xlu1 %v5785_v8, %s11357_s30 }
0x2898   :  { %v5788_v27 = vpop.permute.xlu1 %5787 }
0x2899   :  { %v12735_v38 = vadd.f32 %v5788_v27, %v5780_v37 }
0x289b   :  { %11229 = vtanh.f32 %v12735_v38 }
0x28a5   :  { %v11230_v60 = vpop.eup %11229 }
0x28a6   :  { %5793 = vrot.lane.b32.xlu0 %v11230_v60, %s11359_s18 }
0x28aa   :  { %5803 = vrot.lane.b32.xlu0 %v12495_v41, %s11357_s30 }
0x2918   :  { %v5794_v45 = vpop.permute.xlu0 %5793 }
0x2919   :  { %v5796_v49 = vmul.f32 %v11228_v32, %v5794_v45 }
0x291b   :  { %5799 = vrot.lane.b32.xlu1 %v5796_v49, %s11357_s30 }
0x291c   :  { %v5804_v0 = vpop.permute.xlu0 %5803 }
0x291f   :  { %4826 = vrot.lane.b32.xlu1 %v12486_v51, %s11360_s15 }
0x298d   :  { %v5800_v21 = vpop.permute.xlu1 %5799 }
0x298e   :  { %v5806_v52 = vsel %vm36_vm0, %v5800_v21, %v5804_v0  ;;  %5992 = vst.msk [vmem:[#allocation2] sm:$0xff] %vm36_vm0, %v5800_v21 }
0x298f   :  { %10522 = vmatmul.mubr.msk.f32.vlgmr.msra.gmra.mrb[68].mxu1 %vm985_vm13, %v5806_v52 }
0x2990   :  { %10544 = vmatpush3.msk.msra.mxu1 %vm355_vm11, %v12750_v46  ;;  %10545 = vmatprep.mubr.msk.f32.mxu1 %vm11356_vm12, %v11353_v1 }
0x2991   :  { %v4827_v51 = vpop.permute.xlu1 %4826  ;;  %10548 = vmatprep.subr.mxu1 %v11353_v1 }
0x2992   :  { %4829 = vst.msk [vmem:[#allocation5] sm:$0xff] %vm36_vm0, %v4827_v51 }
0x2999   :  { %v5887_v41 = vld [vmem:[#allocation5] sm:$0xff] }
0x299a   :  { %5889 = vrot.lane.b32.xlu1 %v5887_v41, %s11357_s30 }
0x2a0c   :  { %v5890_v28 = vpop.permute.xlu1 %5889 }
0x2a62   :  { %v5876_v62 = vpop.f32.mrb[68].mxu1 }
0x2a63   :  { %v5877_v18 = vadd.f32 %v12762_v14, %v5876_v62  ;;  %v10523_v23 = vpop.f32.mrb[69].mxu1 }
0x2a65   :  { %11231 = vtanh.f32 %v5877_v18  ;;  %v9642_v43 = vmul.f32 -1.442695, %v5877_v18 }
0x2a67   :  { %11233 = vpow2.f32 %v9642_v43 }
0x2a6f   :  { %v11232_v30 = vpop.eup %11231 }
0x2a70   :  { %5894 = vrot.lane.b32.xlu0 %v11232_v30, %s11359_s18 }
0x2a71   :  { %v11234_v59 = vpop.eup %11233 }
0x2a72   :  { %v5883_v5 = vadd.f32 1.0, %v11234_v59 }
0x2a74   :  { %11235 = vrcp.f32 %v5883_v5 }
0x2a7e   :  { %v11236_v16 = vpop.eup %11235 }
0x2a7f   :  { %v5892_v15 = vmul.f32 %v11236_v16, %v5890_v28 }
0x2ae2   :  { %v5895_v55 = vpop.permute.xlu0 %5894 }
0x2ae3   :  { %v5897_v19 = vmul.f32 %v11236_v16, %v5895_v55 }
0x2ae5   :  { %5899 = vrot.lane.b32.xlu0 %v5897_v19, %s11357_s30 }
0x2b57   :  { %v5900_v48 = vpop.permute.xlu0 %5899 }
0x2b58   :  { %v12767_v32 = vadd.f32 %v5900_v48, %v5892_v15 }
0x2b5a   :  { %11237 = vtanh.f32 %v12767_v32 }
0x2b64   :  { %v11238_v40 = vpop.eup %11237 }
0x2b65   :  { %5905 = vrot.lane.b32.xlu1 %v11238_v40, %s11359_s18 }
0x2bd7   :  { %v5906_v8 = vpop.permute.xlu1 %5905 }
0x2bd8   :  { %v5908_v4 = vmul.f32 %v11236_v16, %v5906_v8 }
0x2bda   :  { %5910 = vrot.lane.b32.xlu0 %v5908_v4, %s11357_s30 }
0x2c4c   :  { %v12772_v37 = vpop.permute.xlu0 %5910 }
0x2c4d   :  { %5998 = vst.msk [vmem:[#allocation4] sm:$0xff] %vm36_vm0, %v12772_v37 }
0x2c54   :  { %v12776_v27 = vld [vmem:[#allocation4] sm:$0xff] }
0x2c55   :  { %v6013_v60 = vrot.slane %v12776_v27, %v11425_v7  ;;  %v6006_v45 = vcombine.high %v12776_v27, %v12776_v27 }
0x2c57   :  { %v6029_v49 = vrot.slane %v6013_v60, %v11425_v7  ;;  %v6021_v0 = vcombine.high %v6013_v60, %v6013_v60  ;;  %v6020_v21 = vrot.slane %v6006_v45, %v11425_v7 }
0x2c59   :  { %v6058_v52 = vrot.slane %v6029_v49, %v11432_v10  ;;  %v6043_v51 = vrot.slane %v6021_v0, %v11425_v7  ;;  %v6051_v41 = vcombine.high %v6029_v49, %v6029_v49  ;;  %v6022_v62 = vcombine.high %v6020_v21, %v6020_v21 }
0x2c5a   :  { %v6036_v18 = vrot.slane %v6020_v21, %v11425_v7 }
0x2c5b   :  { %v6060_v23 = vmul.f32 %v12509_v6, %v6058_v52  ;;  %v6067_v30 = vrot.slane %v6043_v51, %v11432_v10  ;;  %v6053_v43 = vcombine.high %v6043_v51, %v6043_v51  ;;  %v6076_v59 = vrot.slane %v6051_v41, %v11432_v10 }
0x2c5c   :  { %v6050_v5 = vrot.slane %v6022_v62, %v11425_v7  ;;  %v6094_v15 = vrot.slane %v6036_v18, %v11432_v10  ;;  %v6052_v4 = vcombine.high %v6036_v18, %v6036_v18 }
0x2c5d   :  { %v6061_v16 = vsel %vm142_vm1, %v6060_v23, 0.0  ;;  %v6069_v55 = vmul.f32 %v12519_v31, %v6067_v30  ;;  %v6085_v19 = vrot.slane %v6053_v43, %v11432_v10  ;;  %v6078_v8 = vmul.f32 %v12525_v35, %v6076_v59 }
0x2c5e   :  { %6062 = vadd.xlane.f32.xlu1 %v6061_v16  ;;  %v6103_v28 = vrot.slane %v6050_v5, %v11432_v10  ;;  %v6054_v48 = vcombine.high %v6050_v5, %v6050_v5  ;;  %v6096_v0 = vmul.f32 %v12534_v58, %v6094_v15  ;;  %v6112_v21 = vrot.slane %v6052_v4, %v11432_v10 }
0x2c5f   :  { %v6070_v6 = vsel %vm142_vm1, %v6069_v55, 0.0  ;;  %v6087_v40 = vmul.f32 %v12542_v29, %v6085_v19  ;;  %v6079_v49 = vsel %vm142_vm1, %v6078_v8, 0.0 }
0x2c60   :  { %6071 = vadd.xlane.f32.xlu0 %v6070_v6  ;;  %v6105_v31 = vmul.f32 %v12557_v54, %v6103_v28  ;;  %v6121_v45 = vrot.slane %v6054_v48, %v11432_v10  ;;  %v6097_v52 = vsel %vm142_vm1, %v6096_v0, 0.0  ;;  %v6114_v51 = vmul.f32 %v12550_v36, %v6112_v21 }
0x2c61   :  { %v6088_v60 = vsel %vm142_vm1, %v6087_v40, 0.0 }
0x2c62   :  { %6089 = vadd.xlane.f32.xlu1 %v6088_v60  ;;  %v6106_v29 = vsel %vm142_vm1, %v6105_v31, 0.0  ;;  %v6123_v35 = vmul.f32 %v12566_v63, %v6121_v45  ;;  %v6115_v41 = vsel %vm142_vm1, %v6114_v51, 0.0 }
0x2c64   :  { %6080 = vadd.xlane.f32.xlu0 %v6079_v49  ;;  %v6124_v54 = vsel %vm142_vm1, %v6123_v35, 0.0 }
0x2c66   :  { %6107 = vadd.xlane.f32.xlu1 %v6106_v29 }
0x2c68   :  { %6098 = vadd.xlane.f32.xlu0 %v6097_v52 }
0x2c6a   :  { %6125 = vadd.xlane.f32.xlu1 %v6124_v54 }
0x2c6c   :  { %6116 = vadd.xlane.f32.xlu0 %v6115_v41 }
0x2ceb   :  { %v6063_v58 = vpop.xlane.xlu1 %6062 }
0x2cec   :  { %6136 = vperm.xlu0 %11130, %v6063_v58  }
0x2ced   :  { %v6072_v62 = vpop.xlane.xlu0 %6071 }
0x2cee   :  { %6139 = vperm.xlu1 %11131, %v6072_v62   ;;  %v6837_v62 = vld [vmem:[#allocation2] sm:$0xff] }
0x2cef   :  { %v6090_v18 = vpop.xlane.xlu1 %6089 }
0x2cf0   :  { %6145 = vperm.xlu0 %11130, %v6090_v18  }
0x2cf1   :  { %v6081_v23 = vpop.xlane.xlu0 %6080 }
0x2cf2   :  { %6142 = vperm.xlu1 %11131, %v6081_v23  }
0x2cf3   :  { %v6108_v63 = vpop.xlane.xlu1 %6107 }
0x2cf4   :  { %6151 = vperm.xlu0 %11130, %v6108_v63  }
0x2cf5   :  { %v6099_v30 = vpop.xlane.xlu0 %6098 }
0x2cf6   :  { %6148 = vperm.xlu1 %11131, %v6099_v30  }
0x2cf7   :  { %v6126_v36 = vpop.xlane.xlu1 %6125 }
0x2cf8   :  { %6157 = vperm.xlu0 %11130, %v6126_v36  }
0x2cf9   :  { %v6117_v43 = vpop.xlane.xlu0 %6116 }
0x2cfa   :  { %6154 = vperm.xlu1 %11131, %v6117_v43  }
0x2d6b   :  { %v6137_v59 = vpop.permute.xlu0 %6136 }
0x2d6c   :  { %v6162_v19 = vrot.slane %v6137_v59, %v11507_v56 }
0x2d6d   :  { %v6140_v5 = vpop.permute.xlu1 %6139 }
0x2d6e   :  { %v6166_v16 = vrot.slane %v6140_v5, %v11507_v56 }
0x2d6f   :  { %v6146_v55 = vpop.permute.xlu0 %6145 }
0x2d70   :  { %v6191_v48 = vsel %vm275_vm2, %v6166_v16, %v6162_v19  ;;  %v6174_v8 = vrot.slane %v6146_v55, %v11507_v56 }
0x2d71   :  { %v6143_v28 = vpop.permute.xlu1 %6142 }
0x2d72   :  { %v6170_v15 = vrot.slane %v6143_v28, %v11507_v56 }
0x2d73   :  { %v6152_v6 = vpop.permute.xlu0 %6151 }
0x2d74   :  { %v6192_v40 = vsel %vm277_vm3, %v6170_v15, %v6191_v48  ;;  %v6182_v0 = vrot.slane %v6152_v6, %v11507_v56 }
0x2d75   :  { %v6149_v4 = vpop.permute.xlu1 %6148  ;;  %v6193_v31 = vsel %vm279_vm4, %v6174_v8, %v6192_v40 }
0x2d76   :  { %v6178_v60 = vrot.slane %v6149_v4, %v11507_v56  ;;  %v12914_v4 = vld [vmem:[%s13467_s8] ss:$0 sm:$0xff] }
0x2d77   :  { %v6158_v49 = vpop.permute.xlu0 %6157 }
0x2d78   :  { %v6194_v45 = vsel %vm281_vm5, %v6178_v60, %v6193_v31  ;;  %v6190_v35 = vrot.slane %v6158_v49, %v11507_v56 }
0x2d79   :  { %v6155_v21 = vpop.permute.xlu1 %6154  ;;  %v6195_v52 = vsel %vm283_vm6, %v6182_v0, %v6194_v45 }
0x2d7a   :  { %v6186_v29 = vrot.slane %v6155_v21, %v11507_v56 }
0x2d7c   :  { %v6196_v51 = vsel %vm285_vm7, %v6186_v29, %v6195_v52 }
0x2d7d   :  { %v6197_v54 = vsel %vm287_vm8, %v6190_v35, %v6196_v51 }
0x2d7e   :  { %v6199_v41 = vsel %vm58_vm9, %v6197_v54, -1e+09 }
0x2d7f   :  { %v6200_v58 = vsel %vm291_vm10, %v6199_v41, -inf }
0x2d80   :  { %6201 = vmax.xlane.f32.xlu1 %v6200_v58 }
0x2d91   :  { %6862 = vrot.lane.b32.xlu1 %v6837_v62, %s11357_s30 }
0x2d95   :  { %5994 = vrot.lane.b32.xlu1 %v12735_v38, %s11360_s15 }
0x2e0d   :  { %v6202_v18 = vpop.xlane.xlu1 %6201 }
0x2e0e   :  { %v6203_v23 = vsub.f32 %v6199_v41, %v6202_v18 }
0x2e10   :  { %v6204_v63 = vmul.f32 1.442695, %v6203_v23 }
0x2e11   :  { %v12832_v30 = vpop.permute.xlu1 %6862 }
0x2e12   :  { %11239 = vpow2.f32 %v6204_v63 }
0x2e15   :  { %v5995_v36 = vpop.permute.xlu1 %5994 }
0x2e16   :  { %5997 = vst.msk [vmem:[#allocation3] sm:$0xff] %vm36_vm0, %v5995_v36 }
0x2e1c   :  { %v11240_v43 = vpop.eup %11239 }
0x2e1d   :  { %v6206_v59 = vsel %vm291_vm10, %v11240_v43, 0.0  ;;  %v6949_v5 = vld [vmem:[#allocation3] sm:$0xff] }
0x2e1e   :  { %6207 = vadd.xlane.f32.xlu0 %v6206_v59  ;;  %6951 = vrot.lane.b32.xlu1 %v6949_v5, %s11357_s30 }
0x2e34   :  { %5913 = vrot.lane.b32.xlu0 %v12715_v11, %s11357_s30 }
0x2eab   :  { %v6208_v38 = vpop.xlane.xlu0 %6207 }
0x2eac   :  { %11241 = vrcp.f32 %v6208_v38 }
0x2eaf   :  { %v5914_v16 = vpop.permute.xlu0 %5913 }
0x2eb0   :  { %v5916_v55 = vsel %vm36_vm0, %v12772_v37, %v5914_v16 }
0x2eb1   :  { %10541 = vmatmul.mubr.msk.f32.vlgmr.msra.gmra.mrb[38].mxu0 %vm985_vm13, %v5916_v55 }
0x2eb2   :  { %10564 = vmatpush3.msk.msra.mxu0 %vm355_vm11, %v12598_v42  ;;  %10565 = vmatprep.mubr.msk.f32.mxu0 %vm11356_vm12, %v11353_v1 }
0x2eb3   :  { %10573 = vmatprep.subr.mxu0 %v11353_v1 }
0x2eb6   :  { %v11242_v19 = vpop.eup %11241 }
0x2eb7   :  { %v6210_v28 = vmul.f32 %v11242_v19, %v11240_v43 }
0x2eb9   :  { %v6212_v15 = vcombine.high %v6210_v28, %v6210_v28  ;;  %v6219_v11 = vrot.slane %v6210_v28, %v11425_v7 }
0x2ebb   :  { %v6235_v48 = vrot.slane %v6219_v11, %v11425_v7  ;;  %v6226_v6 = vrot.slane %v6212_v15, %v11425_v7  ;;  %v6227_v37 = vcombine.high %v6219_v11, %v6219_v11 }
0x2ebd   :  { %10546 = vmatmul.mubr.msk.f32.vlgmr.msra.gmra.mrb[70].mxu1 %vm291_vm10, %v6235_v48  ;;  %v6242_v40 = vrot.slane %v6226_v6, %v11425_v7  ;;  %v6249_v42 = vrot.slane %v6227_v37, %v11425_v7 }
0x2ebe   :  { %10549 = vmatpush3.msk.msra.mxu1 %vm355_vm11, %v12617_v57  ;;  %10550 = vmatprep.mubr.msk.f32.mxu1 %vm11356_vm12, %v11353_v1  ;;  %v6257_v57 = vcombine.high %v6235_v48, %v6235_v48 }
0x2ebf   :  { %10566 = vmatmul.mubr.msk.f32.vlgmr.msra.gmra.mrb[40].mxu0 %vm291_vm10, %v6242_v40  ;;  %10553 = vmatprep.subr.mxu1 %v11353_v1  ;;  %v6258_v8 = vcombine.high %v6242_v40, %v6242_v40 }
0x2ec0   :  { %10574 = vmatpush3.msk.msra.mxu0 %vm355_vm11, %v12629_v39  ;;  %10575 = vmatprep.mubr.msk.f32.mxu0 %vm11356_vm12, %v11353_v1  ;;  %v6259_v39 = vcombine.high %v6249_v42, %v6249_v42 }
0x2ec1   :  { %10551 = vmatmul.mubr.msk.f32.vlgmr.msra.gmra.mrb[72].mxu1 %vm291_vm10, %v6249_v42  ;;  %11014 = vmatprep.subr.bf16.mxu0 %v11358_v13 }
0x2ec2   :  { %10554 = vmatpush3.msk.msra.mxu1 %vm355_vm11, %v12640_v20  ;;  %10555 = vmatprep.mubr.msk.f32.mxu1 %vm11356_vm12, %v11353_v1  ;;  %v6228_v20 = vcombine.high %v6226_v6, %v6226_v6 }
0x2ec3   :  { %10576 = vmatmul.mubr.msk.f32.vlgmr.msra.gmra.mrb[42].mxu0 %vm291_vm10, %v6258_v8  ;;  %10558 = vmatprep.subr.mxu1 %v11353_v1 }
0x2ec4   :  { %11016 = vmatpush3.bf16.msra.mxu0 %v11637_v12  ;;  %10599 = vmatprep.mubr.msk.f32.mxu0 %vm11356_vm12, %v11353_v1 }
0x2ec5   :  { %10556 = vmatmul.mubr.msk.f32.vlgmr.msra.gmra.mrb[74].mxu1 %vm291_vm10, %v6257_v57  ;;  %11017 = vmatprep.subr.bf16.mxu0 %v11358_v13 }
0x2ec6   :  { %10559 = vmatpush3.msk.msra.mxu1 %vm355_vm11, %v12656_v33  ;;  %10560 = vmatprep.mubr.msk.f32.mxu1 %vm11356_vm12, %v11353_v1  ;;  %v6256_v33 = vrot.slane %v6228_v20, %v11425_v7 }
0x2ec7   :  { %10568 = vmatprep.subr.mxu1 %v11353_v1 }
0x2ec8   :  { %11019 = vmatpush3.bf16.msra.mxu0 %v11649_v17 }
0x2ec9   :  { %10561 = vmatmul.mubr.msk.f32.vlgmr.msra.gmra.mrb[76].mxu1 %vm291_vm10, %v6259_v39  ;;  %11020 = vmatprep.subr.bf16.mxu0 %v11358_v13 }
0x2eca   :  { %10569 = vmatpush3.msk.msra.mxu1 %vm355_vm11, %v12669_v3  ;;  %10570 = vmatprep.mubr.msk.f32.mxu1 %vm11356_vm12, %v11353_v1  ;;  %v6260_v3 = vcombine.high %v6256_v33, %v6256_v33 }
0x2ecb   :  { %10578 = vmatprep.subr.mxu1 %v11353_v1 }
0x2ecc   :  { %11022 = vmatpush3.bf16.msra.mxu0 %v11659_v22 }
0x2ecd   :  { %10571 = vmatmul.mubr.msk.f32.vlgmr.msra.gmra.mrb[78].mxu1 %vm291_vm10, %v6256_v33  ;;  %11023 = vmatprep.subr.bf16.mxu0 %v11358_v13 }
0x2ece   :  { %10579 = vmatpush3.msk.msra.mxu1 %vm355_vm11, %v12683_v34  ;;  %10580 = vmatprep.mubr.msk.f32.mxu1 %vm11356_vm12, %v11353_v1 }
0x2ecf   :  { %11026 = vmatprep.subr.bf16.mxu1 %v11358_v13 }
0x2ed0   :  { %11025 = vmatpush3.bf16.msra.mxu0 %v11669_v26 }
0x2ed1   :  { %10581 = vmatmul.mubr.msk.f32.vlgmr.msra.gmra.mrb[80].mxu1 %vm291_vm10, %v6260_v3  ;;  %11038 = vmatprep.subr.bf16.mxu0 %v11358_v13 }
0x2ed2   :  { %11028 = vmatpush3.bf16.msra.mxu1 %v11705_v47  ;;  %10618 = vmatprep.mubr.msk.f32.mxu1 %vm11356_vm12, %v11353_v1 }
0x2ed3   :  { %11029 = vmatprep.subr.bf16.mxu1 %v11358_v13 }
0x2ed6   :  { %11031 = vmatpush3.bf16.msra.mxu1 %v11711_v50 }
0x2ed7   :  { %11032 = vmatprep.subr.bf16.mxu1 %v11358_v13 }
0x2eda   :  { %11034 = vmatpush3.bf16.msra.mxu1 %v11721_v53 }
0x2edb   :  { %11035 = vmatprep.subr.bf16.mxu1 %v11358_v13 }
0x2ede   :  { %11037 = vmatpush3.bf16.msra.mxu1 %v11732_v61 }
0x2edf   :  { %10640 = vmatprep.subr.mxu1 %v11353_v1 }
0x2f84   :  { %v5986_v34 = vpop.f32.mrb[38].mxu0 }
0x2f85   :  { %v5987_v60 = vadd.f32 %v12914_v4, %v5986_v34  ;;  %v10542_v31 = vpop.f32.mrb[39].mxu0 }
0x2f87   :  { %9644 = vst.msk [vmem:[%s13468_s9 + $0x20] sm:$0xff] %vm1294_vm14, %v5987_v60 }
0x2f90   :  { %v6329_v45 = vpop.f32.mrb[70].mxu1 }
0x2f91   :  { %v10547_v49 = vpop.f32.mrb[71].mxu1 }
0x2f92   :  { %v6617_v0 = vpop.f32.mrb[40].mxu0  ;;  %v6952_v49 = vpop.permute.xlu1 %6951 }
0x2f93   :  { %v10567_v21 = vpop.f32.mrb[41].mxu0  ;;  %v6852_v59 = vrot.slane %v6617_v0, 4 }
0x2f94   :  { %v6401_v29 = vpop.f32.mrb[72].mxu1 }
0x2f95   :  { %v6846_v35 = vrot.slane %v6401_v29, 7  ;;  %v10552_v52 = vpop.f32.mrb[73].mxu1 }
0x2f96   :  { %v6761_v51 = vpop.f32.mrb[42].mxu0 }
0x2f97   :  { %v6847_v54 = vsel %vm275_vm2, %v6846_v35, %v6329_v45  ;;  %v10577_v41 = vpop.f32.mrb[43].mxu0  ;;  %v6856_v28 = vrot.slane %v6761_v51, 2 }
0x2f98   :  { %v6473_v58 = vpop.f32.mrb[74].mxu1 }
0x2f99   :  { %v6848_v62 = vrot.slane %v6473_v58, 6  ;;  %v10557_v18 = vpop.f32.mrb[75].mxu1 }
0x2f9b   :  { %v6849_v23 = vsel %vm277_vm3, %v6848_v62, %v6847_v54 }
0x2f9c   :  { %v6545_v63 = vpop.f32.mrb[76].mxu1 }
0x2f9d   :  { %v6850_v36 = vrot.slane %v6545_v63, 5  ;;  %v10562_v43 = vpop.f32.mrb[77].mxu1 }
0x2f9f   :  { %v6851_v5 = vsel %vm279_vm4, %v6850_v36, %v6849_v23 }
0x2fa0   :  { %v6689_v38 = vpop.f32.mrb[78].mxu1  ;;  %v6853_v16 = vsel %vm281_vm5, %v6852_v59, %v6851_v5 }
0x2fa1   :  { %v6854_v55 = vrot.slane %v6689_v38, 3  ;;  %v10572_v19 = vpop.f32.mrb[79].mxu1 }
0x2fa3   :  { %v6855_v15 = vsel %vm283_vm6, %v6854_v55, %v6853_v16 }
0x2fa4   :  { %v6833_v11 = vpop.f32.mrb[80].mxu1  ;;  %v6857_v48 = vsel %vm285_vm7, %v6856_v28, %v6855_v15 }
0x2fa5   :  { %v6858_v6 = vrot.slane %v6833_v11, 1  ;;  %v10582_v37 = vpop.f32.mrb[81].mxu1 }
0x2fa7   :  { %v12928_v40 = vsel %vm287_vm8, %v6858_v6, %v6857_v48 }
0x2fa8   :  { %v6865_v42 = vsel %vm36_vm0, %v12928_v40, %v12832_v30  ;;  %v9661_v30 = vld [vmem:[%s13463_s0 + $0x28] sm:$0xff] }
0x2fa9   :  { %10600 = vmatmul.mubr.msk.f32.vlgmr.msra.gmra.mrb[44].mxu0 %vm985_vm13, %v6865_v42 }
0x2faa   :  { %11040 = vmatpush3.bf16.msra.mxu0 %v11833_v2  ;;  %10637 = vmatprep.mubr.msk.f32.mxu0 %vm11356_vm12, %v11353_v1 }
0x2fab   :  { %11041 = vmatprep.subr.bf16.mxu0 %v11358_v13 }
0x2fae   :  { %11043 = vmatpush3.bf16.msra.mxu0 %v11839_v44 }
0x2faf   :  { %11044 = vmatprep.subr.bf16.mxu0 %v11358_v13 }
0x2fb2   :  { %11046 = vmatpush3.bf16.msra.mxu0 %v11850_v9 }
0x2fb3   :  { %11047 = vmatprep.subr.bf16.mxu0 %v11358_v13 }
0x2fb6   :  { %11049 = vmatpush3.bf16.msra.mxu0 %v11863_v24 }
0x2fb7   :  { %10660 = vmatprep.subr.mxu0 %v11353_v1 }
0x307c   :  { %v6937_v8 = vpop.f32.mrb[44].mxu0 }
0x307d   :  { %v6941_v57 = vadd.f32 %v9661_v30, %v6937_v8  ;;  %v10601_v39 = vpop.f32.mrb[45].mxu0 }
0x307f   :  { %11243 = vtanh.f32 %v6941_v57  ;;  %v9663_v33 = vmul.f32 -1.442695, %v6941_v57 }
0x3081   :  { %11245 = vpow2.f32 %v9663_v33 }
0x3089   :  { %v11244_v20 = vpop.eup %11243 }
0x308a   :  { %6956 = vrot.lane.b32.xlu0 %v11244_v20, %s11359_s18 }
0x308b   :  { %v11246_v3 = vpop.eup %11245 }
0x308c   :  { %v6945_v34 = vadd.f32 1.0, %v11246_v3 }
0x308e   :  { %11247 = vrcp.f32 %v6945_v34 }
0x3098   :  { %v11248_v60 = vpop.eup %11247 }
0x3099   :  { %v6954_v0 = vmul.f32 %v11248_v60, %v6952_v49 }
0x30fc   :  { %v6957_v31 = vpop.permute.xlu0 %6956 }
0x30fd   :  { %v6959_v45 = vmul.f32 %v11248_v60, %v6957_v31 }
0x30ff   :  { %6961 = vrot.lane.b32.xlu0 %v6959_v45, %s11357_s30 }
0x3171   :  { %v6962_v21 = vpop.permute.xlu0 %6961 }
0x3172   :  { %v12949_v29 = vadd.f32 %v6962_v21, %v6954_v0 }
0x3174   :  { %11249 = vtanh.f32 %v12949_v29 }
0x317e   :  { %v11250_v35 = vpop.eup %11249 }
0x317f   :  { %6967 = vrot.lane.b32.xlu1 %v11250_v35, %s11359_s18 }
0x3183   :  { %6977 = vrot.lane.b32.xlu1 %v12776_v27, %s11357_s30 }
0x31f1   :  { %v6968_v52 = vpop.permute.xlu1 %6967 }
0x31f2   :  { %v6970_v51 = vmul.f32 %v11248_v60, %v6968_v52  ;;  %v12994_v60 = vld [vmem:[%s13459_s1] sm:$0x3] }
0x31f4   :  { %6973 = vrot.lane.b32.xlu0 %v6970_v51, %s11357_s30  ;;  %v13004_v51 = vld [vmem:[%s13459_s1 + $0x2] sm:$0x3] }
0x31f5   :  { %v6978_v54 = vpop.permute.xlu1 %6977 }
0x31f8   :  { %6000 = vrot.lane.b32.xlu0 %v12767_v32, %s11360_s15 }
0x3266   :  { %v6974_v41 = vpop.permute.xlu0 %6973 }
0x3267   :  { %v6980_v58 = vsel %vm36_vm0, %v6974_v41, %v6978_v54  ;;  %7166 = vst.msk [vmem:[#allocation2] sm:$0xff] %vm36_vm0, %v6974_v41  ;;  %v13010_v41 = vld [vmem:[%s13459_s1 + $0x4] sm:$0x3] }
0x3268   :  { %10619 = vmatmul.mubr.msk.f32.vlgmr.msra.gmra.mrb[82].mxu1 %vm985_vm13, %v6980_v58 }
0x3269   :  { %10641 = vmatpush3.msk.msra.mxu1 %vm355_vm11, %v12750_v46  ;;  %10642 = vmatprep.mubr.msk.f32.mxu1 %vm11356_vm12, %v11353_v1 }
0x326a   :  { %v6001_v27 = vpop.permute.xlu0 %6000  ;;  %10645 = vmatprep.subr.mxu1 %v11353_v1 }
0x326b   :  { %6003 = vst.msk [vmem:[#allocation5] sm:$0xff] %vm36_vm0, %v6001_v27 }
0x3272   :  { %v7061_v32 = vld [vmem:[#allocation5] sm:$0xff] }
0x3273   :  { %7063 = vrot.lane.b32.xlu0 %v7061_v32, %s11357_s30 }
0x32e5   :  { %v7064_v16 = vpop.permute.xlu0 %7063 }
0x333b   :  { %v7050_v62 = vpop.f32.mrb[82].mxu1 }
0x333c   :  { %v7051_v18 = vadd.f32 %v12762_v14, %v7050_v62  ;;  %v10620_v23 = vpop.f32.mrb[83].mxu1 }
0x333e   :  { %11251 = vtanh.f32 %v7051_v18  ;;  %v9665_v46 = vmul.f32 -1.442695, %v7051_v18  ;;  %v13019_v18 = vld [vmem:[%s13459_s1 + $0x8] sm:$0x3] }
0x3340   :  { %11253 = vpow2.f32 %v9665_v46 }
0x3348   :  { %v11252_v63 = vpop.eup %11251 }
0x3349   :  { %7068 = vrot.lane.b32.xlu1 %v11252_v63, %s11359_s18 }
0x334a   :  { %v11254_v36 = vpop.eup %11253 }
0x334b   :  { %v7057_v43 = vadd.f32 1.0, %v11254_v36  ;;  %v13027_v36 = vld [vmem:[%s13459_s1 + $0x6] sm:$0x3] }
0x334d   :  { %11255 = vrcp.f32 %v7057_v43 }
0x3357   :  { %v11256_v59 = vpop.eup %11255 }
0x3358   :  { %v7066_v55 = vmul.f32 %v11256_v59, %v7064_v16  ;;  %v13035_v16 = vld [vmem:[%s13459_s1 + $0xc] sm:$0x3] }
0x33bb   :  { %v7069_v5 = vpop.permute.xlu1 %7068 }
0x33bc   :  { %v7071_v38 = vmul.f32 %v11256_v59, %v7069_v5 }
0x33be   :  { %7073 = vrot.lane.b32.xlu1 %v7071_v38, %s11357_s30 }
0x3430   :  { %v7074_v19 = vpop.permute.xlu1 %7073 }
0x3431   :  { %v12971_v28 = vadd.f32 %v7074_v19, %v7066_v55 }
0x3433   :  { %11257 = vtanh.f32 %v12971_v28 }
0x343d   :  { %v11258_v14 = vpop.eup %11257 }
0x343e   :  { %7079 = vrot.lane.b32.xlu0 %v11258_v14, %s11359_s18  ;;  %v13042_v14 = vld [vmem:[%s13459_s1 + $0xa] sm:$0x3] }
0x34b0   :  { %v7080_v15 = vpop.permute.xlu0 %7079 }
0x34b1   :  { %v7082_v11 = vmul.f32 %v11256_v59, %v7080_v15 }
0x34b3   :  { %7084 = vrot.lane.b32.xlu1 %v7082_v11, %s11357_s30 }
0x3525   :  { %v12976_v48 = vpop.permute.xlu1 %7084 }
0x3526   :  { %7172 = vst.msk [vmem:[#allocation4] sm:$0xff] %vm36_vm0, %v12976_v48 }
0x352d   :  { %v12980_v6 = vld [vmem:[#allocation4] sm:$0xff] }
0x352e   :  { %v7187_v37 = vrot.slane %v12980_v6, %v11425_v7  ;;  %v7180_v42 = vcombine.high %v12980_v6, %v12980_v6 }
0x3530   :  { %v7203_v30 = vrot.slane %v7187_v37, %v11425_v7  ;;  %v7195_v8 = vcombine.high %v7187_v37, %v7187_v37  ;;  %v7194_v57 = vrot.slane %v7180_v42, %v11425_v7 }
0x3532   :  { %v7232_v39 = vrot.slane %v7203_v30, %v11432_v10  ;;  %v7217_v20 = vrot.slane %v7195_v8, %v11425_v7  ;;  %v7225_v33 = vcombine.high %v7203_v30, %v7203_v30  ;;  %v7210_v3 = vrot.slane %v7194_v57, %v11425_v7  ;;  %v13051_v30 = vld [vmem:[%s13459_s1 + $0xe] sm:$0x3] }
0x3533   :  { %v7196_v34 = vcombine.high %v7194_v57, %v7194_v57 }
0x3534   :  { %v7234_v31 = vmul.f32 %v12994_v60, %v7232_v39  ;;  %v7241_v45 = vrot.slane %v7217_v20, %v11432_v10  ;;  %v7250_v49 = vrot.slane %v7225_v33, %v11432_v10  ;;  %v7268_v0 = vrot.slane %v7210_v3, %v11432_v10 }
0x3535   :  { %v7227_v21 = vcombine.high %v7217_v20, %v7217_v20  ;;  %v7226_v35 = vcombine.high %v7210_v3, %v7210_v3  ;;  %v7224_v27 = vrot.slane %v7196_v34, %v11425_v7 }
0x3536   :  { %v7235_v52 = vsel %vm142_vm1, %v7234_v31, 0.0  ;;  %v7243_v54 = vmul.f32 %v13004_v51, %v7241_v45  ;;  %v7252_v58 = vmul.f32 %v13010_v41, %v7250_v49  ;;  %v7270_v23 = vmul.f32 %v13019_v18, %v7268_v0 }
0x3537   :  { %7236 = vadd.xlane.f32.xlu0 %v7235_v52  ;;  %v7259_v32 = vrot.slane %v7227_v21, %v11432_v10  ;;  %v7286_v63 = vrot.slane %v7226_v35, %v11432_v10  ;;  %v7277_v59 = vrot.slane %v7224_v27, %v11432_v10  ;;  %v7228_v5 = vcombine.high %v7224_v27, %v7224_v27 }
0x3538   :  { %v7244_v62 = vsel %vm142_vm1, %v7243_v54, 0.0  ;;  %v7253_v46 = vsel %vm142_vm1, %v7252_v58, 0.0  ;;  %v7271_v38 = vsel %vm142_vm1, %v7270_v23, 0.0 }
0x3539   :  { %7245 = vadd.xlane.f32.xlu1 %v7244_v62  ;;  %v7261_v43 = vmul.f32 %v13027_v36, %v7259_v32  ;;  %v7288_v55 = vmul.f32 %v13035_v16, %v7286_v63  ;;  %v7279_v15 = vmul.f32 %v13042_v14, %v7277_v59  ;;  %v7295_v11 = vrot.slane %v7228_v5, %v11432_v10 }
0x353b   :  { %7254 = vadd.xlane.f32.xlu0 %v7253_v46  ;;  %v7262_v19 = vsel %vm142_vm1, %v7261_v43, 0.0  ;;  %v7289_v37 = vsel %vm142_vm1, %v7288_v55, 0.0  ;;  %v7280_v42 = vsel %vm142_vm1, %v7279_v15, 0.0  ;;  %v7297_v8 = vmul.f32 %v13051_v30, %v7295_v11 }
0x353d   :  { %7272 = vadd.xlane.f32.xlu1 %v7271_v38  ;;  %v7298_v57 = vsel %vm142_vm1, %v7297_v8, 0.0 }
0x353f   :  { %7263 = vadd.xlane.f32.xlu0 %v7262_v19 }
0x3541   :  { %7290 = vadd.xlane.f32.xlu1 %v7289_v37 }
0x3543   :  { %7281 = vadd.xlane.f32.xlu0 %v7280_v42 }
0x3547   :  { %7299 = vadd.xlane.f32.xlu0 %v7298_v57 }
0x35c4   :  { %v7237_v39 = vpop.xlane.xlu0 %7236 }
0x35c5   :  { %7310 = vperm.xlu1 %11131, %v7237_v39  }
0x35c6   :  { %v7246_v20 = vpop.xlane.xlu1 %7245 }
0x35c7   :  { %7313 = vperm.xlu0 %11130, %v7246_v20  }
0x35c8   :  { %v7255_v33 = vpop.xlane.xlu0 %7254 }
0x35c9   :  { %7316 = vperm.xlu1 %11131, %v7255_v33  }
0x35ca   :  { %v7273_v3 = vpop.xlane.xlu1 %7272 }
0x35cb   :  { %7322 = vperm.xlu0 %11130, %v7273_v3  }
0x35cc   :  { %v7264_v34 = vpop.xlane.xlu0 %7263 }
0x35cd   :  { %7319 = vperm.xlu1 %11131, %v7264_v34  }
0x35ce   :  { %v7291_v31 = vpop.xlane.xlu1 %7290 }
0x35cf   :  { %7328 = vperm.xlu0 %11130, %v7291_v31  }
0x35d0   :  { %v7282_v45 = vpop.xlane.xlu0 %7281 }
0x35d1   :  { %7325 = vperm.xlu1 %11131, %v7282_v45   ;;  %v13083_v45 = vld [vmem:[%s13461_s2 + $0x8] sm:$0x3] }
0x35d4   :  { %v7300_v49 = vpop.xlane.xlu0 %7299 }
0x35d5   :  { %7331 = vperm.xlu1 %11131, %v7300_v49  }
0x3644   :  { %v7311_v0 = vpop.permute.xlu1 %7310 }
0x3645   :  { %v7336_v54 = vrot.slane %v7311_v0, %v11507_v56  ;;  %v8011_v0 = vld [vmem:[#allocation2] sm:$0xff] }
0x3646   :  { %v7314_v21 = vpop.permute.xlu0 %7313 }
0x3647   :  { %v7340_v35 = vrot.slane %v7314_v21, %v11507_v56 }
0x3648   :  { %v7317_v52 = vpop.permute.xlu1 %7316 }
0x3649   :  { %v7344_v58 = vrot.slane %v7317_v52, %v11507_v56  ;;  %v7365_v27 = vsel %vm275_vm2, %v7340_v35, %v7336_v54 }
0x364a   :  { %v7323_v32 = vpop.permute.xlu0 %7322 }
0x364b   :  { %v7366_v63 = vsel %vm277_vm3, %v7344_v58, %v7365_v27  ;;  %v7352_v43 = vrot.slane %v7323_v32, %v11507_v56 }
0x364c   :  { %v7320_v62 = vpop.permute.xlu1 %7319 }
0x364d   :  { %v7348_v23 = vrot.slane %v7320_v62, %v11507_v56 }
0x364e   :  { %v7329_v5 = vpop.permute.xlu0 %7328 }
0x364f   :  { %v7367_v46 = vsel %vm279_vm4, %v7348_v23, %v7366_v63  ;;  %v7360_v15 = vrot.slane %v7329_v5, %v11507_v56  ;;  %v13102_v63 = vld [vmem:[%s13461_s2 + $0x2] sm:$0x3]  ;;  %v13125_v5 = vld [vmem:[%s13461_s2 + $0x4] sm:$0x3] }
0x3650   :  { %v7326_v59 = vpop.permute.xlu1 %7325  ;;  %v7368_v55 = vsel %vm281_vm5, %v7352_v43, %v7367_v46  ;;  %v13114_v43 = vld [vmem:[%s13461_s2 + $0xc] sm:$0x3] }
0x3651   :  { %v7356_v38 = vrot.slane %v7326_v59, %v11507_v56 }
0x3653   :  { %v7369_v19 = vsel %vm283_vm6, %v7356_v38, %v7368_v55  ;;  %v13141_v55 = vld [vmem:[%s13461_s2 + $0x6] sm:$0x3] }
0x3654   :  { %v7332_v11 = vpop.permute.xlu1 %7331  ;;  %v7370_v42 = vsel %vm285_vm7, %v7360_v15, %v7369_v19 }
0x3655   :  { %v7364_v37 = vrot.slane %v7332_v11, %v11507_v56  ;;  %v13154_v11 = vld [vmem:[%s13461_s2 + $0xa] sm:$0x3] }
0x3657   :  { %v7371_v8 = vsel %vm287_vm8, %v7364_v37, %v7370_v42  ;;  %v13168_v42 = vld [vmem:[%s13461_s2 + $0xe] sm:$0x3] }
0x3658   :  { %v7373_v57 = vsel %vm58_vm9, %v7371_v8, -1e+09 }
0x3659   :  { %v7374_v39 = vsel %vm291_vm10, %v7373_v57, -inf }
0x365a   :  { %7375 = vmax.xlane.f32.xlu0 %v7374_v39 }
0x3670   :  { %7087 = vrot.lane.b32.xlu0 %v12928_v40, %s11357_s30 }
0x3674   :  { %7168 = vrot.lane.b32.xlu0 %v12949_v29, %s11360_s15 }
0x36e7   :  { %v7376_v20 = vpop.xlane.xlu0 %7375 }
0x36e8   :  { %v7377_v33 = vsub.f32 %v7373_v57, %v7376_v20 }
0x36ea   :  { %v7378_v3 = vmul.f32 1.442695, %v7377_v33 }
0x36eb   :  { %v7088_v34 = vpop.permute.xlu0 %7087 }
0x36ec   :  { %11259 = vpow2.f32 %v7378_v3  ;;  %v7090_v31 = vsel %vm36_vm0, %v12976_v48, %v7088_v34 }
0x36ed   :  { %10638 = vmatmul.mubr.msk.f32.vlgmr.msra.gmra.mrb[46].mxu0 %vm985_vm13, %v7090_v31 }
0x36ee   :  { %10661 = vmatpush3.msk.msra.mxu0 %vm355_vm11, %v13083_v45  ;;  %10662 = vmatprep.mubr.msk.f32.mxu0 %vm11356_vm12, %v11353_v1 }
0x36ef   :  { %v7169_v40 = vpop.permute.xlu0 %7168  ;;  %10670 = vmatprep.subr.mxu0 %v11353_v1 }
0x36f0   :  { %7171 = vst.msk [vmem:[#allocation3] sm:$0xff] %vm36_vm0, %v7169_v40 }
0x36f6   :  { %v11260_v29 = vpop.eup %11259 }
0x36f7   :  { %v7380_v48 = vsel %vm291_vm10, %v11260_v29, 0.0  ;;  %v8123_v49 = vld [vmem:[#allocation3] sm:$0xff] }
0x36f8   :  { %7381 = vadd.xlane.f32.xlu1 %v7380_v48  ;;  %8125 = vrot.lane.b32.xlu0 %v8123_v49, %s11357_s30 }
0x3709   :  { %8036 = vrot.lane.b32.xlu1 %v8011_v0, %s11357_s30 }
0x3785   :  { %v7382_v21 = vpop.xlane.xlu1 %7381 }
0x3786   :  { %11261 = vrcp.f32 %v7382_v21 }
0x3790   :  { %v11262_v35 = vpop.eup %11261 }
0x3791   :  { %v7384_v52 = vmul.f32 %v11262_v35, %v11260_v29 }
0x3793   :  { %v7386_v54 = vcombine.high %v7384_v52, %v7384_v52  ;;  %v7393_v58 = vrot.slane %v7384_v52, %v11425_v7 }
0x3795   :  { %v7409_v27 = vrot.slane %v7393_v58, %v11425_v7  ;;  %v7400_v32 = vrot.slane %v7386_v54, %v11425_v7  ;;  %v7401_v62 = vcombine.high %v7393_v58, %v7393_v58 }
0x3797   :  { %10643 = vmatmul.mubr.msk.f32.vlgmr.msra.gmra.mrb[84].mxu1 %vm291_vm10, %v7409_v27  ;;  %v7416_v23 = vrot.slane %v7400_v32, %v11425_v7  ;;  %v7423_v46 = vrot.slane %v7401_v62, %v11425_v7  ;;  %v7431_v38 = vcombine.high %v7409_v27, %v7409_v27  ;;  %v7402_v15 = vcombine.high %v7400_v32, %v7400_v32 }
0x3798   :  { %10646 = vmatpush3.msk.msra.mxu1 %vm355_vm11, %v13102_v63  ;;  %10647 = vmatprep.mubr.msk.f32.mxu1 %vm11356_vm12, %v11353_v1 }
0x3799   :  { %10663 = vmatmul.mubr.msk.f32.vlgmr.msra.gmra.mrb[48].mxu0 %vm291_vm10, %v7416_v23  ;;  %10650 = vmatprep.subr.mxu1 %v11353_v1  ;;  %v7432_v59 = vcombine.high %v7416_v23, %v7416_v23  ;;  %v7433_v19 = vcombine.high %v7423_v46, %v7423_v46  ;;  %v7430_v37 = vrot.slane %v7402_v15, %v11425_v7 }
0x379a   :  { %10671 = vmatpush3.msk.msra.mxu0 %vm355_vm11, %v13114_v43  ;;  %10672 = vmatprep.mubr.msk.f32.mxu0 %vm11356_vm12, %v11353_v1 }
0x379b   :  { %10648 = vmatmul.mubr.msk.f32.vlgmr.msra.gmra.mrb[86].mxu1 %vm291_vm10, %v7423_v46  ;;  %11050 = vmatprep.subr.bf16.mxu0 %v11358_v13  ;;  %v7434_v8 = vcombine.high %v7430_v37, %v7430_v37 }
0x379c   :  { %10651 = vmatpush3.msk.msra.mxu1 %vm355_vm11, %v13125_v5  ;;  %10652 = vmatprep.mubr.msk.f32.mxu1 %vm11356_vm12, %v11353_v1 }
0x379d   :  { %10673 = vmatmul.mubr.msk.f32.vlgmr.msra.gmra.mrb[50].mxu0 %vm291_vm10, %v7432_v59  ;;  %10655 = vmatprep.subr.mxu1 %v11353_v1 }
0x379e   :  { %11052 = vmatpush3.bf16.msra.mxu0 %v11637_v12  ;;  %10696 = vmatprep.mubr.msk.f32.mxu0 %vm11356_vm12, %v11353_v1 }
0x379f   :  { %10653 = vmatmul.mubr.msk.f32.vlgmr.msra.gmra.mrb[88].mxu1 %vm291_vm10, %v7431_v38  ;;  %11053 = vmatprep.subr.bf16.mxu0 %v11358_v13 }
0x37a0   :  { %10656 = vmatpush3.msk.msra.mxu1 %vm355_vm11, %v13141_v55  ;;  %10657 = vmatprep.mubr.msk.f32.mxu1 %vm11356_vm12, %v11353_v1 }
0x37a1   :  { %10665 = vmatprep.subr.mxu1 %v11353_v1 }
0x37a2   :  { %11055 = vmatpush3.bf16.msra.mxu0 %v11649_v17 }
0x37a3   :  { %10658 = vmatmul.mubr.msk.f32.vlgmr.msra.gmra.mrb[90].mxu1 %vm291_vm10, %v7433_v19  ;;  %11056 = vmatprep.subr.bf16.mxu0 %v11358_v13 }
0x37a4   :  { %10666 = vmatpush3.msk.msra.mxu1 %vm355_vm11, %v13154_v11  ;;  %10667 = vmatprep.mubr.msk.f32.mxu1 %vm11356_vm12, %v11353_v1 }
0x37a5   :  { %10675 = vmatprep.subr.mxu1 %v11353_v1 }
0x37a6   :  { %11058 = vmatpush3.bf16.msra.mxu0 %v11659_v22 }
0x37a7   :  { %10668 = vmatmul.mubr.msk.f32.vlgmr.msra.gmra.mrb[92].mxu1 %vm291_vm10, %v7430_v37  ;;  %11059 = vmatprep.subr.bf16.mxu0 %v11358_v13 }
0x37a8   :  { %10676 = vmatpush3.msk.msra.mxu1 %vm355_vm11, %v13168_v42  ;;  %10677 = vmatprep.mubr.msk.f32.mxu1 %vm11356_vm12, %v11353_v1 }
0x37a9   :  { %11062 = vmatprep.subr.bf16.mxu1 %v11358_v13 }
0x37aa   :  { %11061 = vmatpush3.bf16.msra.mxu0 %v11669_v26 }
0x37ab   :  { %10678 = vmatmul.mubr.msk.f32.vlgmr.msra.gmra.mrb[94].mxu1 %vm291_vm10, %v7434_v8  ;;  %11074 = vmatprep.subr.bf16.mxu0 %v11358_v13 }
0x37ac   :  { %11064 = vmatpush3.bf16.msra.mxu1 %v11705_v47  ;;  %10715 = vmatprep.mubr.msk.f32.mxu1 %vm11356_vm12, %v11353_v1 }
0x37ad   :  { %11065 = vmatprep.subr.bf16.mxu1 %v11358_v13 }
0x37b0   :  { %11067 = vmatpush3.bf16.msra.mxu1 %v11711_v50 }
0x37b1   :  { %11068 = vmatprep.subr.bf16.mxu1 %v11358_v13 }
0x37b4   :  { %11070 = vmatpush3.bf16.msra.mxu1 %v11721_v53 }
0x37b5   :  { %11071 = vmatprep.subr.bf16.mxu1 %v11358_v13 }
0x37b8   :  { %11073 = vmatpush3.bf16.msra.mxu1 %v11732_v61 }
0x37b9   :  { %10737 = vmatprep.subr.mxu1 %v11353_v1 }
0x37c0   :  { %v7160_v57 = vpop.f32.mrb[46].mxu0 }
0x37c1   :  { %v7161_v39 = vadd.f32 %v12914_v4, %v7160_v57  ;;  %v10639_v20 = vpop.f32.mrb[47].mxu0 }
0x37c3   :  { %9667 = vst.msk [vmem:[%s13468_s9 + $0x28] sm:$0xff] %vm1294_vm14, %v7161_v39 }
0x386a   :  { %v7503_v33 = vpop.f32.mrb[84].mxu1 }
0x386b   :  { %v10644_v3 = vpop.f32.mrb[85].mxu1 }
0x386c   :  { %v7791_v34 = vpop.f32.mrb[48].mxu0 }
0x386d   :  { %v10664_v31 = vpop.f32.mrb[49].mxu0  ;;  %v8026_v62 = vrot.slane %v7791_v34, 4 }
0x386e   :  { %v7575_v40 = vpop.f32.mrb[86].mxu1  ;;  %v9684_v31 = vld [vmem:[%s13463_s0 + $0x30] sm:$0xff] }
0x386f   :  { %v8020_v29 = vrot.slane %v7575_v40, 7  ;;  %v10649_v48 = vpop.f32.mrb[87].mxu1 }
0x3870   :  { %v7935_v49 = vpop.f32.mrb[50].mxu0 }
0x3871   :  { %v8021_v0 = vsel %vm275_vm2, %v8020_v29, %v7503_v33  ;;  %v10674_v21 = vpop.f32.mrb[51].mxu0  ;;  %v8030_v15 = vrot.slane %v7935_v49, 2  ;;  %v8037_v33 = vpop.permute.xlu1 %8036 }
0x3872   :  { %v7647_v35 = vpop.f32.mrb[88].mxu1 }
0x3873   :  { %v8022_v52 = vrot.slane %v7647_v35, 6  ;;  %v10654_v4 = vpop.f32.mrb[89].mxu1 }
0x3875   :  { %v8023_v54 = vsel %vm277_vm3, %v8022_v52, %v8021_v0 }
0x3876   :  { %v7719_v58 = vpop.f32.mrb[90].mxu1 }
0x3877   :  { %v8024_v27 = vrot.slane %v7719_v58, 5  ;;  %v10659_v32 = vpop.f32.mrb[91].mxu1  ;;  %v8126_v58 = vpop.permute.xlu0 %8125 }
0x3879   :  { %v8025_v23 = vsel %vm279_vm4, %v8024_v27, %v8023_v54 }
0x387a   :  { %v7863_v46 = vpop.f32.mrb[92].mxu1  ;;  %v8027_v59 = vsel %vm281_vm5, %v8026_v62, %v8025_v23 }
0x387b   :  { %v8028_v38 = vrot.slane %v7863_v46, 3  ;;  %v10669_v19 = vpop.f32.mrb[93].mxu1 }
0x387d   :  { %v8029_v37 = vsel %vm283_vm6, %v8028_v38, %v8027_v59 }
0x387e   :  { %v8007_v8 = vpop.f32.mrb[94].mxu1  ;;  %v8031_v57 = vsel %vm285_vm7, %v8030_v15, %v8029_v37  ;;  %v11350_v37 = vld [vmem:[%s13461_s2] sm:$0x3] }
0x387f   :  { %v8032_v39 = vrot.slane %v8007_v8, 1  ;;  %v10679_v20 = vpop.f32.mrb[95].mxu1 }
0x3881   :  { %v13200_v3 = vsel %vm287_vm8, %v8032_v39, %v8031_v57  ;;  %v13244_v57 = vld [vmem:[%s13465_s6] ss:$0 sm:$0xff] }
0x3882   :  { %v8039_v34 = vsel %vm36_vm0, %v13200_v3, %v8037_v33 }
0x3883   :  { %10697 = vmatmul.mubr.msk.f32.vlgmr.msra.gmra.mrb[52].mxu0 %vm985_vm13, %v8039_v34 }
0x3884   :  { %11076 = vmatpush3.bf16.msra.mxu0 %v11833_v2  ;;  %10734 = vmatprep.mubr.msk.f32.mxu0 %vm11356_vm12, %v11353_v1 }
0x3885   :  { %11077 = vmatprep.subr.bf16.mxu0 %v11358_v13 }
0x3888   :  { %11079 = vmatpush3.bf16.msra.mxu0 %v11839_v44 }
0x3889   :  { %11080 = vmatprep.subr.bf16.mxu0 %v11358_v13 }
0x388c   :  { %11082 = vmatpush3.bf16.msra.mxu0 %v11850_v9 }
0x388d   :  { %11083 = vmatprep.subr.bf16.mxu0 %v11358_v13 }
0x3890   :  { %11085 = vmatpush3.bf16.msra.mxu0 %v11863_v24 }
0x3891   :  { %10757 = vmatprep.subr.mxu0 %v11353_v1 }
0x3956   :  { %v8111_v40 = vpop.f32.mrb[52].mxu0 }
0x3957   :  { %v8115_v29 = vadd.f32 %v9684_v31, %v8111_v40  ;;  %v10698_v48 = vpop.f32.mrb[53].mxu0 }
0x3959   :  { %11263 = vtanh.f32 %v8115_v29  ;;  %v9686_v0 = vmul.f32 -1.442695, %v8115_v29 }
0x395b   :  { %11265 = vpow2.f32 %v9686_v0 }
0x3963   :  { %v11264_v49 = vpop.eup %11263 }
0x3964   :  { %8130 = vrot.lane.b32.xlu1 %v11264_v49, %s11359_s18 }
0x3965   :  { %v11266_v21 = vpop.eup %11265 }
0x3966   :  { %v8119_v35 = vadd.f32 1.0, %v11266_v21 }
0x3968   :  { %11267 = vrcp.f32 %v8119_v35 }
0x3972   :  { %v11268_v52 = vpop.eup %11267 }
0x3973   :  { %v8128_v27 = vmul.f32 %v11268_v52, %v8126_v58 }
0x39d6   :  { %v8131_v4 = vpop.permute.xlu1 %8130 }
0x39d7   :  { %v8133_v54 = vmul.f32 %v11268_v52, %v8131_v4 }
0x39d9   :  { %8135 = vrot.lane.b32.xlu1 %v8133_v54, %s11357_s30 }
0x3a4b   :  { %v8136_v32 = vpop.permute.xlu1 %8135 }
0x3a4c   :  { %v13220_v62 = vadd.f32 %v8136_v32, %v8128_v27 }
0x3a4e   :  { %11269 = vtanh.f32 %v13220_v62 }
0x3a58   :  { %v11270_v23 = vpop.eup %11269 }
0x3a59   :  { %8141 = vrot.lane.b32.xlu0 %v11270_v23, %s11359_s18 }
0x3a5d   :  { %8151 = vrot.lane.b32.xlu0 %v12980_v6, %s11357_s30 }
0x3acb   :  { %v8142_v46 = vpop.permute.xlu0 %8141 }
0x3acc   :  { %v8144_v59 = vmul.f32 %v11268_v52, %v8142_v46 }
0x3ace   :  { %8147 = vrot.lane.b32.xlu1 %v8144_v59, %s11357_s30 }
0x3acf   :  { %v8152_v38 = vpop.permute.xlu0 %8151 }
0x3ad2   :  { %7174 = vrot.lane.b32.xlu1 %v12971_v28, %s11360_s15 }
0x3b40   :  { %v8148_v19 = vpop.permute.xlu1 %8147 }
0x3b41   :  { %v8154_v15 = vsel %vm36_vm0, %v8148_v19, %v8152_v38  ;;  %8340 = vst.msk [vmem:[#allocation2] sm:$0xff] %vm36_vm0, %v8148_v19 }
0x3b42   :  { %10716 = vmatmul.mubr.msk.f32.vlgmr.msra.gmra.mrb[96].mxu1 %vm985_vm13, %v8154_v15 }
0x3b43   :  { %10738 = vmatpush3.msk.msra.mxu1 %vm355_vm11, %v11350_v37  ;;  %10739 = vmatprep.mubr.msk.f32.mxu1 %vm11356_vm12, %v11353_v1 }
0x3b44   :  { %v7175_v6 = vpop.permute.xlu1 %7174  ;;  %10742 = vmatprep.subr.mxu1 %v11353_v1 }
0x3b45   :  { %7177 = vst.msk [vmem:[#allocation5] sm:$0xff] %vm36_vm0, %v7175_v6 }
0x3b4c   :  { %v8235_v28 = vld [vmem:[#allocation5] sm:$0xff] }
0x3b4d   :  { %8237 = vrot.lane.b32.xlu1 %v8235_v28, %s11357_s30 }
0x3bbf   :  { %v8238_v0 = vpop.permute.xlu1 %8237 }
0x3c15   :  { %v8224_v8 = vpop.f32.mrb[96].mxu1 }
0x3c16   :  { %v8225_v39 = vadd.f32 %v13244_v57, %v8224_v8  ;;  %v10717_v20 = vpop.f32.mrb[97].mxu1 }
0x3c18   :  { %11271 = vtanh.f32 %v8225_v39  ;;  %v9688_v34 = vmul.f32 -1.442695, %v8225_v39 }
0x3c1a   :  { %11273 = vpow2.f32 %v9688_v34 }
0x3c22   :  { %v11272_v33 = vpop.eup %11271 }
0x3c23   :  { %8242 = vrot.lane.b32.xlu0 %v11272_v33, %s11359_s18 }
0x3c24   :  { %v11274_v31 = vpop.eup %11273 }
0x3c25   :  { %v8231_v40 = vadd.f32 1.0, %v11274_v31 }
0x3c27   :  { %11275 = vrcp.f32 %v8231_v40 }
0x3c31   :  { %v11276_v29 = vpop.eup %11275 }
0x3c32   :  { %v8240_v21 = vmul.f32 %v11276_v29, %v8238_v0 }
0x3c95   :  { %v8243_v48 = vpop.permute.xlu0 %8242 }
0x3c96   :  { %v8245_v49 = vmul.f32 %v11276_v29, %v8243_v48 }
0x3c98   :  { %8247 = vrot.lane.b32.xlu0 %v8245_v49, %s11357_s30 }
0x3d0a   :  { %v8248_v35 = vpop.permute.xlu0 %8247 }
0x3d0b   :  { %v13249_v52 = vadd.f32 %v8248_v35, %v8240_v21 }
0x3d0d   :  { %11277 = vtanh.f32 %v13249_v52 }
0x3d17   :  { %v11278_v4 = vpop.eup %11277 }
0x3d18   :  { %8253 = vrot.lane.b32.xlu1 %v11278_v4, %s11359_s18 }
0x3d8a   :  { %v8254_v54 = vpop.permute.xlu1 %8253 }
0x3d8b   :  { %v8256_v58 = vmul.f32 %v11276_v29, %v8254_v54 }
0x3d8d   :  { %8258 = vrot.lane.b32.xlu0 %v8256_v58, %s11357_s30 }
0x3dff   :  { %v13254_v27 = vpop.permute.xlu0 %8258 }
0x3e00   :  { %8346 = vst.msk [vmem:[#allocation4] sm:$0xff] %vm36_vm0, %v13254_v27 }
0x3e07   :  { %v13258_v32 = vld [vmem:[#allocation4] sm:$0xff] }
0x3e08   :  { %v8361_v23 = vrot.slane %v13258_v32, %v11425_v7  ;;  %v8354_v46 = vcombine.high %v13258_v32, %v13258_v32 }
0x3e0a   :  { %v8377_v59 = vrot.slane %v8361_v23, %v11425_v7  ;;  %v8369_v38 = vcombine.high %v8361_v23, %v8361_v23  ;;  %v8368_v19 = vrot.slane %v8354_v46, %v11425_v7 }
0x3e0c   :  { %v8406_v15 = vrot.slane %v8377_v59, %v11432_v10  ;;  %v8391_v37 = vrot.slane %v8369_v38, %v11425_v7  ;;  %v8399_v6 = vcombine.high %v8377_v59, %v8377_v59  ;;  %v8370_v28 = vcombine.high %v8368_v19, %v8368_v19 }
0x3e0d   :  { %v8384_v8 = vrot.slane %v8368_v19, %v11425_v7 }
0x3e0e   :  { %v8408_v39 = vmul.f32 %v12994_v60, %v8406_v15  ;;  %v8415_v20 = vrot.slane %v8391_v37, %v11432_v10  ;;  %v8401_v33 = vcombine.high %v8391_v37, %v8391_v37  ;;  %v8424_v34 = vrot.slane %v8399_v6, %v11432_v10 }
0x3e0f   :  { %v8398_v31 = vrot.slane %v8370_v28, %v11425_v7  ;;  %v8442_v0 = vrot.slane %v8384_v8, %v11432_v10  ;;  %v8400_v54 = vcombine.high %v8384_v8, %v8384_v8 }
0x3e10   :  { %v8409_v40 = vsel %vm142_vm1, %v8408_v39, 0.0  ;;  %v8417_v29 = vmul.f32 %v13004_v51, %v8415_v20  ;;  %v8433_v48 = vrot.slane %v8401_v33, %v11432_v10  ;;  %v8426_v4 = vmul.f32 %v13010_v41, %v8424_v34 }
0x3e11   :  { %8410 = vadd.xlane.f32.xlu1 %v8409_v40  ;;  %v8451_v49 = vrot.slane %v8398_v31, %v11432_v10  ;;  %v8402_v21 = vcombine.high %v8398_v31, %v8398_v31  ;;  %v8444_v59 = vmul.f32 %v13019_v18, %v8442_v0  ;;  %v8460_v38 = vrot.slane %v8400_v54, %v11432_v10 }
0x3e12   :  { %v8418_v60 = vsel %vm142_vm1, %v8417_v29, 0.0  ;;  %v8435_v35 = vmul.f32 %v13027_v36, %v8433_v48  ;;  %v8427_v46 = vsel %vm142_vm1, %v8426_v4, 0.0 }
0x3e13   :  { %8419 = vadd.xlane.f32.xlu0 %v8418_v60  ;;  %v8453_v51 = vmul.f32 %v13042_v14, %v8451_v49  ;;  %v8469_v23 = vrot.slane %v8402_v21, %v11432_v10  ;;  %v8445_v19 = vsel %vm142_vm1, %v8444_v59, 0.0  ;;  %v8462_v15 = vmul.f32 %v13035_v16, %v8460_v38 }
0x3e14   :  { %v8436_v58 = vsel %vm142_vm1, %v8435_v35, 0.0 }
0x3e15   :  { %8437 = vadd.xlane.f32.xlu1 %v8436_v58  ;;  %v8454_v36 = vsel %vm142_vm1, %v8453_v51, 0.0  ;;  %v8471_v41 = vmul.f32 %v13051_v30, %v8469_v23  ;;  %v8463_v37 = vsel %vm142_vm1, %v8462_v15, 0.0 }
0x3e17   :  { %8428 = vadd.xlane.f32.xlu0 %v8427_v46  ;;  %v8472_v14 = vsel %vm142_vm1, %v8471_v41, 0.0 }
0x3e19   :  { %8455 = vadd.xlane.f32.xlu1 %v8454_v36 }
0x3e1b   :  { %8446 = vadd.xlane.f32.xlu0 %v8445_v19 }
0x3e1d   :  { %8473 = vadd.xlane.f32.xlu1 %v8472_v14 }
0x3e1f   :  { %8464 = vadd.xlane.f32.xlu0 %v8463_v37  ;;  %v9185_v37 = vld [vmem:[#allocation2] sm:$0xff] }
0x3e9e   :  { %v8411_v18 = vpop.xlane.xlu1 %8410 }
0x3e9f   :  { %8484 = vperm.xlu0 %11130, %v8411_v18  }
0x3ea0   :  { %v8420_v10 = vpop.xlane.xlu0 %8419 }
0x3ea1   :  { %8487 = vperm.xlu1 %11131, %v8420_v10  }
0x3ea2   :  { %v8438_v6 = vpop.xlane.xlu1 %8437 }
0x3ea3   :  { %8493 = vperm.xlu0 %11130, %v8438_v6  }
0x3ea4   :  { %v8429_v28 = vpop.xlane.xlu0 %8428 }
0x3ea5   :  { %8490 = vperm.xlu1 %11131, %v8429_v28  }
0x3ea6   :  { %v8456_v30 = vpop.xlane.xlu1 %8455 }
0x3ea7   :  { %8499 = vperm.xlu0 %11130, %v8456_v30  }
0x3ea8   :  { %v8447_v8 = vpop.xlane.xlu0 %8446 }
0x3ea9   :  { %8496 = vperm.xlu1 %11131, %v8447_v8  }
0x3eaa   :  { %v8474_v16 = vpop.xlane.xlu1 %8473 }
0x3eab   :  { %8505 = vperm.xlu0 %11130, %v8474_v16  }
0x3eac   :  { %v8465_v39 = vpop.xlane.xlu0 %8464 }
0x3ead   :  { %8502 = vperm.xlu1 %11131, %v8465_v39  }
0x3f1e   :  { %v8485_v20 = vpop.permute.xlu0 %8484 }
0x3f1f   :  { %v8510_v40 = vrot.slane %v8485_v20, %v11507_v56 }
0x3f20   :  { %v8488_v33 = vpop.permute.xlu1 %8487 }
0x3f21   :  { %v8514_v34 = vrot.slane %v8488_v33, %v11507_v56 }
0x3f22   :  { %v8494_v31 = vpop.permute.xlu0 %8493 }
0x3f23   :  { %v8539_v49 = vsel %vm275_vm2, %v8514_v34, %v8510_v40  ;;  %v8522_v60 = vrot.slane %v8494_v31, %v11507_v56 }
0x3f24   :  { %v8491_v29 = vpop.permute.xlu1 %8490 }
0x3f25   :  { %v8518_v48 = vrot.slane %v8491_v29, %v11507_v56 }
0x3f26   :  { %v8500_v0 = vpop.permute.xlu0 %8499 }
0x3f27   :  { %v8540_v21 = vsel %vm277_vm3, %v8518_v48, %v8539_v49  ;;  %v8530_v23 = vrot.slane %v8500_v0, %v11507_v56 }
0x3f28   :  { %v8497_v35 = vpop.permute.xlu1 %8496  ;;  %v8541_v54 = vsel %vm279_vm4, %v8522_v60, %v8540_v21 }
0x3f29   :  { %v8526_v4 = vrot.slane %v8497_v35, %v11507_v56 }
0x3f2a   :  { %v8506_v51 = vpop.permute.xlu0 %8505 }
0x3f2b   :  { %v8542_v58 = vsel %vm281_vm5, %v8526_v4, %v8541_v54  ;;  %v8538_v38 = vrot.slane %v8506_v51, %v11507_v56 }
0x3f2c   :  { %v8503_v46 = vpop.permute.xlu1 %8502  ;;  %v8543_v36 = vsel %vm283_vm6, %v8530_v23, %v8542_v58 }
0x3f2d   :  { %v8534_v59 = vrot.slane %v8503_v46, %v11507_v56 }
0x3f2f   :  { %v8544_v41 = vsel %vm285_vm7, %v8534_v59, %v8543_v36 }
0x3f30   :  { %v8545_v19 = vsel %vm287_vm8, %v8538_v38, %v8544_v41 }
0x3f31   :  { %v8547_v15 = vsel %vm58_vm9, %v8545_v19, -1e+09 }
0x3f32   :  { %v8548_v14 = vsel %vm291_vm10, %v8547_v15, -inf }
0x3f33   :  { %8549 = vmax.xlane.f32.xlu1 %v8548_v14 }
0x3f44   :  { %9210 = vrot.lane.b32.xlu1 %v9185_v37, %s11357_s30 }
0x3f48   :  { %8342 = vrot.lane.b32.xlu1 %v13220_v62, %s11360_s15 }
0x3fc0   :  { %v8550_v18 = vpop.xlane.xlu1 %8549 }
0x3fc1   :  { %v8551_v56 = vsub.f32 %v8547_v15, %v8550_v18 }
0x3fc3   :  { %v8552_v10 = vmul.f32 1.442695, %v8551_v56 }
0x3fc4   :  { %v13314_v6 = vpop.permute.xlu1 %9210 }
0x3fc5   :  { %11279 = vpow2.f32 %v8552_v10 }
0x3fc8   :  { %v8343_v28 = vpop.permute.xlu1 %8342 }
0x3fc9   :  { %8345 = vst.msk [vmem:[#allocation3] sm:$0xff] %vm36_vm0, %v8343_v28 }
0x3fcf   :  { %v11280_v25 = vpop.eup %11279 }
0x3fd0   :  { %v8554_v30 = vsel %vm291_vm10, %v11280_v25, 0.0  ;;  %v9297_v8 = vld [vmem:[#allocation3] sm:$0xff] }
0x3fd1   :  { %8555 = vadd.xlane.f32.xlu0 %v8554_v30  ;;  %9299 = vrot.lane.b32.xlu1 %v9297_v8, %s11357_s30 }
0x3fe7   :  { %8261 = vrot.lane.b32.xlu0 %v13200_v3, %s11357_s30 }
0x405e   :  { %v8556_v62 = vpop.xlane.xlu0 %8555 }
0x405f   :  { %11281 = vrcp.f32 %v8556_v62 }
0x4062   :  { %v8262_v16 = vpop.permute.xlu0 %8261 }
0x4063   :  { %v8264_v39 = vsel %vm36_vm0, %v13254_v27, %v8262_v16 }
0x4064   :  { %10735 = vmatmul.mubr.msk.f32.vlgmr.msra.gmra.mrb[54].mxu0 %vm985_vm13, %v8264_v39 }
0x4065   :  { %10758 = vmatpush3.msk.msra.mxu0 %vm355_vm11, %v13083_v45  ;;  %10759 = vmatprep.mubr.msk.f32.mxu0 %vm11356_vm12, %v11353_v1 }
0x4066   :  { %10767 = vmatprep.subr.mxu0 %v11353_v1 }
0x4069   :  { %v11282_v20 = vpop.eup %11281 }
0x406a   :  { %v8558_v33 = vmul.f32 %v11282_v20, %v11280_v25 }
0x406c   :  { %v8560_v34 = vcombine.high %v8558_v33, %v8558_v33  ;;  %v8567_v3 = vrot.slane %v8558_v33, %v11425_v7 }
0x406e   :  { %v8583_v31 = vrot.slane %v8567_v3, %v11425_v7  ;;  %v8574_v40 = vrot.slane %v8560_v34, %v11425_v7  ;;  %v8575_v27 = vcombine.high %v8567_v3, %v8567_v3 }
0x4070   :  { %10740 = vmatmul.mubr.msk.f32.vlgmr.msra.gmra.mrb[98].mxu1 %vm291_vm10, %v8583_v31  ;;  %v8590_v29 = vrot.slane %v8574_v40, %v11425_v7  ;;  %v8597_v45 = vrot.slane %v8575_v27, %v11425_v7 }
0x4071   :  { %10743 = vmatpush3.msk.msra.mxu1 %vm355_vm11, %v13102_v63  ;;  %10744 = vmatprep.mubr.msk.f32.mxu1 %vm11356_vm12, %v11353_v1  ;;  %v8605_v63 = vcombine.high %v8583_v31, %v8583_v31 }
0x4072   :  { %10760 = vmatmul.mubr.msk.f32.vlgmr.msra.gmra.mrb[56].mxu0 %vm291_vm10, %v8590_v29  ;;  %10747 = vmatprep.subr.mxu1 %v11353_v1  ;;  %v8606_v48 = vcombine.high %v8590_v29, %v8590_v29 }
0x4073   :  { %10768 = vmatpush3.msk.msra.mxu0 %vm355_vm11, %v13114_v43  ;;  %10769 = vmatprep.mubr.msk.f32.mxu0 %vm11356_vm12, %v11353_v1  ;;  %v8607_v43 = vcombine.high %v8597_v45, %v8597_v45 }
0x4074   :  { %10745 = vmatmul.mubr.msk.f32.vlgmr.msra.gmra.mrb[100].mxu1 %vm291_vm10, %v8597_v45  ;;  %11086 = vmatprep.subr.bf16.mxu0 %v11358_v13 }
0x4075   :  { %10748 = vmatpush3.msk.msra.mxu1 %vm355_vm11, %v13125_v5  ;;  %10749 = vmatprep.mubr.msk.f32.mxu1 %vm11356_vm12, %v11353_v1  ;;  %v8576_v5 = vcombine.high %v8574_v40, %v8574_v40 }
0x4076   :  { %10770 = vmatmul.mubr.msk.f32.vlgmr.msra.gmra.mrb[58].mxu0 %vm291_vm10, %v8606_v48  ;;  %10752 = vmatprep.subr.mxu1 %v11353_v1 }
0x4077   :  { %11088 = vmatpush3.bf16.msra.mxu0 %v11637_v12  ;;  %10793 = vmatprep.mubr.msk.f32.mxu0 %vm11356_vm12, %v11353_v1  ;;  %v8604_v12 = vrot.slane %v8576_v5, %v11425_v7 }
0x4078   :  { %10750 = vmatmul.mubr.msk.f32.vlgmr.msra.gmra.mrb[102].mxu1 %vm291_vm10, %v8605_v63  ;;  %11089 = vmatprep.subr.bf16.mxu0 %v11358_v13 }
0x4079   :  { %10753 = vmatpush3.msk.msra.mxu1 %vm355_vm11, %v13141_v55  ;;  %10754 = vmatprep.mubr.msk.f32.mxu1 %vm11356_vm12, %v11353_v1 }
0x407a   :  { %10762 = vmatprep.subr.mxu1 %v11353_v1 }
0x407b   :  { %11091 = vmatpush3.bf16.msra.mxu0 %v11649_v17  ;;  %v8608_v17 = vcombine.high %v8604_v12, %v8604_v12 }
0x407c   :  { %10755 = vmatmul.mubr.msk.f32.vlgmr.msra.gmra.mrb[104].mxu1 %vm291_vm10, %v8607_v43  ;;  %11092 = vmatprep.subr.bf16.mxu0 %v11358_v13 }
0x407d   :  { %10763 = vmatpush3.msk.msra.mxu1 %vm355_vm11, %v13154_v11  ;;  %10764 = vmatprep.mubr.msk.f32.mxu1 %vm11356_vm12, %v11353_v1 }
0x407e   :  { %10772 = vmatprep.subr.mxu1 %v11353_v1 }
0x407f   :  { %11094 = vmatpush3.bf16.msra.mxu0 %v11659_v22  ;;  %v13395_v22 = vld [vmem:[%s13467_s8] ss:$0 sm:$0xff] }
0x4080   :  { %10765 = vmatmul.mubr.msk.f32.vlgmr.msra.gmra.mrb[106].mxu1 %vm291_vm10, %v8604_v12  ;;  %11095 = vmatprep.subr.bf16.mxu0 %v11358_v13 }
0x4081   :  { %10773 = vmatpush3.msk.msra.mxu1 %vm355_vm11, %v13168_v42  ;;  %10774 = vmatprep.mubr.msk.f32.mxu1 %vm11356_vm12, %v11353_v1 }
0x4082   :  { %11098 = vmatprep.subr.bf16.mxu1 %v11358_v13 }
0x4083   :  { %11097 = vmatpush3.bf16.msra.mxu0 %v11669_v26 }
0x4084   :  { %10775 = vmatmul.mubr.msk.f32.vlgmr.msra.gmra.mrb[108].mxu1 %vm291_vm10, %v8608_v17  ;;  %11110 = vmatprep.subr.bf16.mxu0 %v11358_v13 }
0x4085   :  { %11100 = vmatpush3.bf16.msra.mxu1 %v11705_v47  ;;  %10812 = vmatprep.mubr.msk.f32.mxu1 %vm11356_vm12, %v11353_v1 }
0x4086   :  { %11101 = vmatprep.subr.bf16.mxu1 %v11358_v13 }
0x4089   :  { %11103 = vmatpush3.bf16.msra.mxu1 %v11711_v50 }
0x408a   :  { %11104 = vmatprep.subr.bf16.mxu1 %v11358_v13 }
0x408d   :  { %11106 = vmatpush3.bf16.msra.mxu1 %v11721_v53 }
0x408e   :  { %11107 = vmatprep.subr.bf16.mxu1 %v11358_v13 }
0x4091   :  { %11109 = vmatpush3.bf16.msra.mxu1 %v11732_v61 }
0x4137   :  { %v8334_v7 = vpop.f32.mrb[54].mxu0 }
0x4138   :  { %v8335_v26 = vadd.f32 %v13395_v22, %v8334_v7  ;;  %v10736_v47 = vpop.f32.mrb[55].mxu0 }
0x413a   :  { %9690 = vst.msk [vmem:[%s13468_s9 + $0x30] sm:$0xff] %vm1294_vm14, %v8335_v26 }
0x4143   :  { %v8677_v50 = vpop.f32.mrb[98].mxu1 }
0x4144   :  { %v10741_v53 = vpop.f32.mrb[99].mxu1 }
0x4145   :  { %v8965_v55 = vpop.f32.mrb[56].mxu0 }
0x4146   :  { %v10761_v11 = vpop.f32.mrb[57].mxu0  ;;  %v9200_v59 = vrot.slane %v8965_v55, 4 }
0x4147   :  { %v8749_v42 = vpop.f32.mrb[100].mxu1 }
0x4148   :  { %v9194_v61 = vrot.slane %v8749_v42, 7  ;;  %v10746_v49 = vpop.f32.mrb[101].mxu1 }
0x4149   :  { %v9109_v0 = vpop.f32.mrb[58].mxu0 }
0x414a   :  { %v9195_v21 = vsel %vm275_vm2, %v9194_v61, %v8677_v50  ;;  %v10771_v60 = vpop.f32.mrb[59].mxu0  ;;  %v9204_v14 = vrot.slane %v9109_v0, 2 }
0x414b   :  { %v8821_v35 = vpop.f32.mrb[102].mxu1 }
0x414c   :  { %v9196_v4 = vrot.slane %v8821_v35, 6  ;;  %v10751_v54 = vpop.f32.mrb[103].mxu1 }
0x414e   :  { %v9197_v58 = vsel %vm277_vm3, %v9196_v4, %v9195_v21 }
0x414f   :  { %v8893_v51 = vpop.f32.mrb[104].mxu1 }
0x4150   :  { %v9198_v23 = vrot.slane %v8893_v51, 5  ;;  %v10756_v46 = vpop.f32.mrb[105].mxu1 }
0x4152   :  { %v9199_v38 = vsel %vm279_vm4, %v9198_v23, %v9197_v58 }
0x4153   :  { %v9037_v36 = vpop.f32.mrb[106].mxu1  ;;  %v9201_v41 = vsel %vm281_vm5, %v9200_v59, %v9199_v38 }
0x4154   :  { %v9202_v19 = vrot.slane %v9037_v36, 3  ;;  %v10766_v15 = vpop.f32.mrb[107].mxu1 }
0x4156   :  { %v9203_v37 = vsel %vm283_vm6, %v9202_v19, %v9201_v41 }
0x4157   :  { %v9181_v18 = vpop.f32.mrb[108].mxu1  ;;  %v9205_v56 = vsel %vm285_vm7, %v9204_v14, %v9203_v37 }
0x4158   :  { %v9206_v10 = vrot.slane %v9181_v18, 1  ;;  %v10776_v28 = vpop.f32.mrb[109].mxu1 }
0x415a   :  { %v13409_v25 = vsel %vm287_vm8, %v9206_v10, %v9205_v56 }
0x415b   :  { %v9213_v30 = vsel %vm36_vm0, %v13409_v25, %v13314_v6  ;;  %v9707_v6 = vld [vmem:[%s13463_s0 + $0x38] sm:$0xff] }
0x415c   :  { %10794 = vmatmul.mubr.msk.f32.vlgmr.msra.gmra.mrb[60].mxu0 %vm985_vm13, %v9213_v30 }
0x415d   :  { %11112 = vmatpush3.bf16.msra.mxu0 %v11833_v2  ;;  %10831 = vmatprep.mubr.msk.f32.mxu0 %vm11356_vm12, %v11353_v1 }
0x415e   :  { %11113 = vmatprep.subr.bf16.mxu0 %v11358_v13 }
0x4161   :  { %11115 = vmatpush3.bf16.msra.mxu0 %v11839_v44 }
0x4162   :  { %11116 = vmatprep.subr.bf16.mxu0 %v11358_v13 }
0x4165   :  { %11118 = vmatpush3.bf16.msra.mxu0 %v11850_v9 }
0x4166   :  { %11119 = vmatprep.subr.bf16.mxu0 %v11358_v13 }
0x4169   :  { %11121 = vmatpush3.bf16.msra.mxu0 %v11863_v24  ;;  %v9300_v24 = vpop.permute.xlu1 %9299 }
0x422f   :  { %v9285_v2 = vpop.f32.mrb[60].mxu0 }
0x4230   :  { %v9289_v8 = vadd.f32 %v9707_v6, %v9285_v2  ;;  %v10795_v62 = vpop.f32.mrb[61].mxu0 }
0x4232   :  { %11283 = vtanh.f32 %v9289_v8  ;;  %v9709_v44 = vmul.f32 -1.442695, %v9289_v8 }
0x4234   :  { %11285 = vpow2.f32 %v9709_v44 }
0x423c   :  { %v11284_v1 = vpop.eup %11283 }
0x423d   :  { %9304 = vrot.lane.b32.xlu0 %v11284_v1, %s11359_s18 }
0x423e   :  { %v11286_v16 = vpop.eup %11285 }
0x423f   :  { %v9293_v39 = vadd.f32 1.0, %v11286_v16 }
0x4241   :  { %11287 = vrcp.f32 %v9293_v39 }
0x424b   :  { %v11288_v9 = vpop.eup %11287 }
0x424c   :  { %v9302_v33 = vmul.f32 %v11288_v9, %v9300_v24 }
0x42af   :  { %v9305_v13 = vpop.permute.xlu0 %9304 }
0x42b0   :  { %v9307_v20 = vmul.f32 %v11288_v9, %v9305_v13 }
0x42b2   :  { %9309 = vrot.lane.b32.xlu0 %v9307_v20, %s11357_s30 }
0x4324   :  { %v9310_v34 = vpop.permute.xlu0 %9309 }
0x4325   :  { %v9312_v3 = vadd.f32 %v9310_v34, %v9302_v33 }
0x4327   :  { %11289 = vtanh.f32 %v9312_v3 }
0x4331   :  { %v11290_v31 = vpop.eup %11289 }
0x4332   :  { %9315 = vrot.lane.b32.xlu1 %v11290_v31, %s11359_s18 }
0x4336   :  { %9325 = vrot.lane.b32.xlu1 %v13258_v32, %s11357_s30 }
0x43a4   :  { %v9316_v40 = vpop.permute.xlu1 %9315 }
0x43a5   :  { %v9318_v27 = vmul.f32 %v11288_v9, %v9316_v40 }
0x43a7   :  { %9321 = vrot.lane.b32.xlu0 %v9318_v27, %s11357_s30 }
0x43a8   :  { %v9326_v29 = vpop.permute.xlu1 %9325 }
0x43ab   :  { %8348 = vrot.lane.b32.xlu0 %v13249_v52, %s11360_s15 }
0x4419   :  { %v9322_v45 = vpop.permute.xlu0 %9321 }
0x441a   :  { %v9328_v48 = vsel %vm36_vm0, %v9322_v45, %v9326_v29  ;;  %9514 = vst.msk [vmem:[#allocation2] sm:$0xff] %vm36_vm0, %v9322_v45 }
0x441b   :  { %10813 = vmatmul.mubr.msk.f32.vlgmr.msra.gmra.mrb[110].mxu1 %vm985_vm13, %v9328_v48 }
0x441d   :  { %v8349_v63 = vpop.permute.xlu0 %8348 }
0x441e   :  { %8351 = vst.msk [vmem:[#allocation5] sm:$0xff] %vm36_vm0, %v8349_v63 }
0x4425   :  { %v9409_v43 = vld [vmem:[#allocation5] sm:$0xff] }
0x4426   :  { %9411 = vrot.lane.b32.xlu0 %v9409_v43, %s11357_s30 }
0x4498   :  { %v9412_v55 = vpop.permute.xlu0 %9411 }
0x44ee   :  { %v9398_v32 = vpop.f32.mrb[110].mxu1 }
0x44ef   :  { %v9399_v5 = vadd.f32 %v13244_v57, %v9398_v32  ;;  %v10814_v12 = vpop.f32.mrb[111].mxu1 }
0x44f1   :  { %11291 = vtanh.f32 %v9399_v5  ;;  %v9711_v17 = vmul.f32 -1.442695, %v9399_v5 }
0x44f3   :  { %11293 = vpow2.f32 %v9711_v17 }
0x44fb   :  { %v11292_v52 = vpop.eup %11291 }
0x44fc   :  { %9416 = vrot.lane.b32.xlu1 %v11292_v52, %s11359_s18 }
0x44fd   :  { %v11294_v7 = vpop.eup %11293 }
0x44fe   :  { %v9405_v26 = vadd.f32 1.0, %v11294_v7 }
0x4500   :  { %11295 = vrcp.f32 %v9405_v26 }
0x450a   :  { %v11296_v47 = vpop.eup %11295 }
0x450b   :  { %v9414_v11 = vmul.f32 %v11296_v47, %v9412_v55 }
0x456e   :  { %v9417_v50 = vpop.permute.xlu1 %9416 }
0x456f   :  { %v9419_v53 = vmul.f32 %v11296_v47, %v9417_v50 }
0x4571   :  { %9421 = vrot.lane.b32.xlu1 %v9419_v53, %s11357_s30 }
0x45e3   :  { %v9422_v42 = vpop.permute.xlu1 %9421 }
0x45e4   :  { %v9424_v61 = vadd.f32 %v9422_v42, %v9414_v11 }
0x45e6   :  { %11297 = vtanh.f32 %v9424_v61 }
0x45f0   :  { %v11298_v57 = vpop.eup %11297 }
0x45f1   :  { %9427 = vrot.lane.b32.xlu0 %v11298_v57, %s11359_s18 }
0x45f5   :  { %9435 = vrot.lane.b32.xlu0 %v13409_v25, %s11357_s30 }
0x45f9   :  { %9522 = vrot.lane.b32.xlu0 %v9424_v61, %s11360_s15 }
0x4663   :  { %v9428_v49 = vpop.permute.xlu0 %9427 }
0x4664   :  { %v9430_v0 = vmul.f32 %v11296_v47, %v9428_v49 }
0x4666   :  { %9432 = vrot.lane.b32.xlu1 %v9430_v0, %s11357_s30 }
0x4667   :  { %v9436_v21 = vpop.permute.xlu0 %9435 }
0x466a   :  { %9516 = vrot.lane.b32.xlu1 %v9312_v3, %s11360_s15 }
0x466b   :  { %v9523_v60 = vpop.permute.xlu0 %9522 }
0x466c   :  { %9525 = vst.msk [vmem:[#allocation5] sm:$0xff] %vm36_vm0, %v9523_v60 }
0x46d8   :  { %v9433_v35 = vpop.permute.xlu1 %9432 }
0x46d9   :  { %v9438_v4 = vsel %vm36_vm0, %v9433_v35, %v9436_v21  ;;  %9520 = vst.msk [vmem:[#allocation4] sm:$0xff] %vm36_vm0, %v9433_v35 }
0x46da   :  { %10832 = vmatmul.mubr.msk.f32.vlgmr.msra.gmra.mrb[62].mxu0 %vm985_vm13, %v9438_v4 }
0x46dc   :  { %v9517_v54 = vpop.permute.xlu1 %9516 }
0x46dd   :  { %9519 = vst.msk [vmem:[#allocation3] sm:$0xff] %vm36_vm0, %v9517_v54 }
0x47ad   :  { %v9508_v58 = vpop.f32.mrb[62].mxu0 }
0x47ae   :  { %v9509_v51 = vadd.f32 %v13395_v22, %v9508_v58  ;;  %v10833_v23 = vpop.f32.mrb[63].mxu0 }
0x47b0   :  { %9713 = vst.msk [vmem:[%s13468_s9 + $0x38] sm:$0xff] %vm1294_vm14, %v9509_v51 }

</bundles_post_ra>
